<compile_context>
chip_gen: v7x
topology: tpu7x:2x2x1
jax: 0.10.0
libtpu: 0.0.40
codegen_flags: <defaults>
</compile_context>

<pallas_src>
import functools

import jax
import jax.numpy as jnp
from jax.experimental import pallas as pl
from jax.experimental.pallas import tpu as pltpu


# ---------------------------------------------------------------------------
# Pass 1: fused ReLU + WaveUnpool('sum') + 3x3 conv + BN partial sums.
# ---------------------------------------------------------------------------
def _upconv_kernel(ll_ref, lh_ref, hl_ref, hh_ref, w_ref, b_ref,
                   y_ref, stats_ref, u_sc, p_sc, *, th):
    H, W, Cin = ll_ref.shape[1], ll_ref.shape[2], ll_ref.shape[3]
    Cout = w_ref.shape[1]

    r = pl.program_id(1)
    nrb = pl.num_programs(1)
    r0 = pl.multiple_of(r * th, th)          # first input row of this block

    def phases(start, n):
        # Inverse 2x2 Haar phases for n input rows starting at `start`.
        ll = jnp.maximum(ll_ref[0, pl.ds(start, n), :, :], 0.0)  # self.act (ReLU on LL)
        lh = lh_ref[0, pl.ds(start, n), :, :]
        hl = hl_ref[0, pl.ds(start, n), :, :]
        hh = hh_ref[0, pl.ds(start, n), :, :]
        p00 = 0.5 * (ll - lh - hl + hh)      # -> (2i,   2j)
        p01 = 0.5 * (ll + lh - hl - hh)      # -> (2i,   2j+1)
        p10 = 0.5 * (ll - lh + hl - hh)      # -> (2i+1, 2j)
        p11 = 0.5 * (ll + lh + hl + hh)      # -> (2i+1, 2j+1)
        return p00, p01, p10, p11

    # Main row block; even/odd upsampled-row interleave only re-factors the
    # leading dims (last two dims unchanged -> layout no-op).
    p00, p01, p10, p11 = phases(r0, th)
    col_even = jnp.stack([p00, p10], axis=1).reshape(2 * th, W, Cin)
    col_odd = jnp.stack([p01, p11], axis=1).reshape(2 * th, W, Cin)

    # 1-row halo above/below (upsampled rows 2*r0-1 and 2*(r0+th));
    # multiplicative mask -> zero at the image border (= the conv zero padding).
    _, _, t10, t11 = phases(jnp.maximum(r0 - 1, 0), 1)
    b00, b01, _, _ = phases(jnp.minimum(r0 + th, H - 1), 1)
    tmask = (r > 0).astype(jnp.float32)
    bmask = (r < nrb - 1).astype(jnp.float32)
    col_even = jnp.concatenate([t10 * tmask, col_even, b00 * bmask], axis=0)
    col_odd = jnp.concatenate([t11 * tmask, col_odd, b01 * bmask], axis=0)

    # Build the zero-padded 2x-upsampled tile in VMEM only (never in HBM).
    zcol = jnp.zeros((2 * th + 2, 1, Cin), jnp.float32)
    u_sc[:, 0:1, :] = zcol                        # left conv padding
    u_sc[:, 2 * W + 1:2 * W + 2, :] = zcol        # right conv padding
    # Column interleave of the two phases.  Unrolled single-column stores keep
    # the lowering trivially supported.
    # TODO(synk): switch to a strided sublane store / relayout for large W.
    for j in range(W):
        u_sc[:, 2 * j + 1:2 * j + 2, :] = col_even[:, j:j + 1, :]
        u_sc[:, 2 * j + 2:2 * j + 3, :] = col_odd[:, j:j + 1, :]

    # im2col -> single MXU matmul (replaces the 9 tiny per-tap matmuls).
    rows, cols = 2 * th, 2 * W
    for kh in range(3):
        for kw in range(3):
            t = kh * 3 + kw
            p_sc[:, t * Cin:(t + 1) * Cin] = (
                u_sc[kh:kh + rows, kw:kw + cols, :].reshape(rows * cols, Cin))
    # TODO(synk): cast matmul operands to bf16 on v6e/v7x once tolerance allows.
    acc = jnp.dot(p_sc[...], w_ref[...], preferred_element_type=jnp.float32)
    acc = acc + b_ref[...]                        # conv bias, (1, Cout)

    # BatchNorm pass 1: per-block sum / sum-of-squares (finalized outside).
    stats_ref[0, 0, 0:1, :] = jnp.sum(acc, axis=0, keepdims=True)
    stats_ref[0, 0, 1:2, :] = jnp.sum(acc * acc, axis=0, keepdims=True)

    # Lane-dense store: channels on sublanes, flattened 2x spatial on lanes.
    y_ref[0] = jnp.transpose(acc, (1, 0))         # (Cout, rows*cols)


# ---------------------------------------------------------------------------
# Pass 2: apply the BatchNorm affine (y * scale + shift), lane-dense layout.
# ---------------------------------------------------------------------------
def _bn_apply_kernel(y_ref, scale_ref, shift_ref, o_ref):
    o_ref[0] = y_ref[0] * scale_ref[...] + shift_ref[...]


def _pick_row_block(H, W, row_block):
    # Block of input rows such that the flattened output block (4*th*W) is a
    # multiple of 128 lanes; fall back to the whole image.
    for th in range(min(row_block, H), 0, -1):
        if H % th == 0 and (4 * th * W) % 128 == 0:
            return th
    return H


# ---------------------------------------------------------------------------
# Wrapper (NCHW in / NCHW out, like the PyTorch module).
# ---------------------------------------------------------------------------
def upconv_relu_bn(LL, LH, HL, HH, conv_w, conv_b, bn_gamma, bn_beta,
                   *, eps=1e-5, row_block=8):
    N, Cin, H, W = LL.shape
    Cout = conv_w.shape[0]
    # TODO(synk): sweep row_block per chip generation (v7x has 64 MiB VMEM).
    TH = _pick_row_block(H, W, row_block)
    R = H // TH
    L = 4 * TH * W                                # output pixels per row block
    OHW = 4 * H * W

    f32 = jnp.float32
    to_nhwc = lambda x: jnp.transpose(x, (0, 2, 3, 1)).astype(f32)
    ll, lh, hl, hh = map(to_nhwc, (LL, LH, HL, HH))

    # Tiny parameter reshapes: OIHW -> (kh*kw*Cin, Cout), matching im2col order.
    w2 = jnp.transpose(conv_w, (2, 3, 1, 0)).reshape(9 * Cin, Cout).astype(f32)
    b2 = conv_b.reshape(1, Cout).astype(f32)

    band_spec = pl.BlockSpec((1, H, W, Cin), lambda n, r: (n, 0, 0, 0))

    # ---- pass 1: fused ReLU + unpool + conv (+ BN partial sums) ----
    y, stats = pl.pallas_call(
        functools.partial(_upconv_kernel, th=TH),
        out_shape=(jax.ShapeDtypeStruct((N, Cout, OHW), f32),
                   jax.ShapeDtypeStruct((N, R, 2, Cout), f32)),
        grid_spec=pltpu.PrefetchScalarGridSpec(
            num_scalar_prefetch=0,
            grid=(N, R),
            in_specs=[band_spec, band_spec, band_spec, band_spec,
                      pl.BlockSpec((9 * Cin, Cout), lambda n, r: (0, 0)),
                      pl.BlockSpec((1, Cout), lambda n, r: (0, 0))],
            out_specs=(pl.BlockSpec((1, Cout, L), lambda n, r: (n, 0, r)),
                       pl.BlockSpec((1, 1, 2, Cout), lambda n, r: (n, r, 0, 0))),
            scratch_shapes=[pltpu.VMEM((2 * TH + 2, 2 * W + 2, Cin), f32),
                            pltpu.VMEM((4 * TH * W, 9 * Cin), f32)]),
        compiler_params=pltpu.CompilerParams(
            dimension_semantics=("parallel", "parallel")),
    )(ll, lh, hl, hh, w2, b2)

    # ---- finalize BatchNorm statistics (tiny reduction, plain JAX) ----
    cnt = float(N * OHW)
    s = jnp.sum(stats, axis=(0, 1))               # (2, Cout)
    mean = s[0] / cnt
    var = jnp.maximum(s[1] / cnt - mean * mean, 0.0)   # biased batch variance
    scale = (bn_gamma.astype(f32) * jax.lax.rsqrt(var + eps)).reshape(Cout, 1)
    shift = bn_beta.astype(f32).reshape(Cout, 1) - mean.reshape(Cout, 1) * scale
    # TODO(synk): running_mean/running_var updates are module state, not forward output.

    # ---- pass 2: apply the BN affine ----
    y_bn = pl.pallas_call(
        _bn_apply_kernel,
        out_shape=jax.ShapeDtypeStruct((N, Cout, OHW), f32),
        grid_spec=pltpu.PrefetchScalarGridSpec(
            num_scalar_prefetch=0,
            grid=(N, R),
            in_specs=[pl.BlockSpec((1, Cout, L), lambda n, r: (n, 0, r)),
                      pl.BlockSpec((Cout, 1), lambda n, r: (0, 0)),
                      pl.BlockSpec((Cout, 1), lambda n, r: (0, 0))],
            out_specs=pl.BlockSpec((1, Cout, L), lambda n, r: (n, 0, r))),
        compiler_params=pltpu.CompilerParams(
            dimension_semantics=("parallel", "parallel")),
    )(y, scale, shift)

    # (N, Cout, 2H*2W) -> NCHW is a pure metadata reshape (no transpose copy).
    return y_bn.reshape(N, Cout, 2 * H, 2 * W)
    # TODO(synk): WaveUnpool 'cat5' branch (original != None) not implemented;
    # the module is exercised on the 'sum' path with original=None.


# ---------------------------------------------------------------------------
# Pure-JAX reference (sanity check).
# ---------------------------------------------------------------------------
def _reference(LL, LH, HL, HH, conv_w, conv_b, bn_gamma, bn_beta, eps=1e-5):
    ll = jax.nn.relu(LL)
    n, c, h, wd = ll.shape
    u = jnp.zeros((n, c, 2 * h, 2 * wd), jnp.float32)
    u = u.at[:, :, 0::2, 0::2].set(0.5 * (ll - LH - HL + HH))
    u = u.at[:, :, 0::2, 1::2].set(0.5 * (ll + LH - HL - HH))
    u = u.at[:, :, 1::2, 0::2].set(0.5 * (ll - LH + HL - HH))
    u = u.at[:, :, 1::2, 1::2].set(0.5 * (ll + LH + HL + HH))
    y = jax.lax.conv_general_dilated(
        u, conv_w, (1, 1), ((1, 1), (1, 1)),
        dimension_numbers=("NCHW", "OIHW", "NCHW"),
        precision=jax.lax.Precision.HIGHEST)
    y = y + conv_b.reshape(1, -1, 1, 1)
    mean = jnp.mean(y, axis=(0, 2, 3), keepdims=True)
    var = jnp.mean(jnp.square(y - mean), axis=(0, 2, 3), keepdims=True)
    yn = (y - mean) / jnp.sqrt(var + eps)
    return yn * bn_gamma.reshape(1, -1, 1, 1) + bn_beta.reshape(1, -1, 1, 1)


if __name__ == "__main__":
    N, Cin, H, W, Cout = 2, 4, 16, 16, 8

    keys = jax.random.split(jax.random.PRNGKey(0), 8)
    LL = jax.random.normal(keys[0], (N, Cin, H, W), jnp.float32)
    LH = jax.random.normal(keys[1], (N, Cin, H, W), jnp.float32)
    HL = jax.random.normal(keys[2], (N, Cin, H, W), jnp.float32)
    HH = jax.random.normal(keys[3], (N, Cin, H, W), jnp.float32)

    # Deterministic synthetic parameters (Conv2d(Cin, Cout, 3, pad=1) + BatchNorm2d(Cout)).
    conv_w = 0.1 * jax.random.normal(keys[4], (Cout, Cin, 3, 3), jnp.float32)
    conv_b = 0.1 * jax.random.normal(keys[5], (Cout,), jnp.float32)
    bn_gamma = 1.0 + 0.1 * jax.random.normal(keys[6], (Cout,), jnp.float32)
    bn_beta = 0.1 * jax.random.normal(keys[7], (Cout,), jnp.float32)

    out = upconv_relu_bn(LL, LH, HL, HH, conv_w, conv_b, bn_gamma, bn_beta)
    out = jax.block_until_ready(out)

    ref = _reference(LL, LH, HL, HH, conv_w, conv_b, bn_gamma, bn_beta)
    assert out.shape == (N, Cout, 2 * H, 2 * W), out.shape
    max_err = float(jnp.max(jnp.abs(out - ref)))
    assert jnp.allclose(out, ref, rtol=1e-2, atol=1e-2), max_err

    print("KERNEL_OK")
</pallas_src>

<mosaic_0001>
module attributes {stable_mosaic.version = 11 : i64} {
  func.func @_upconv_kernel(%arg0: i32, %arg1: i32, %arg2: memref<1x16x16x4xf32, #tpu.memory_space<vmem>>, %arg3: memref<1x16x16x4xf32, #tpu.memory_space<vmem>>, %arg4: memref<1x16x16x4xf32, #tpu.memory_space<vmem>>, %arg5: memref<1x16x16x4xf32, #tpu.memory_space<vmem>>, %arg6: memref<36x8xf32, #tpu.memory_space<vmem>>, %arg7: memref<1x8xf32, #tpu.memory_space<vmem>>, %arg8: memref<1x8x512xf32, #tpu.memory_space<vmem>>, %arg9: memref<1x1x2x8xf32, #tpu.memory_space<vmem>>, %arg10: memref<18x34x4xf32, #tpu.memory_space<vmem>>, %arg11: memref<512x36xf32, #tpu.memory_space<vmem>>) attributes {dimension_semantics = [#tpu.dimension_semantics<parallel>, #tpu.dimension_semantics<parallel>], iteration_bounds = array<i64: 2, 2>, scalar_prefetch = 0 : i64, scratch_operands = 2 : i64, tpu.core_type = #tpu.core_type<tc>, window_params = [{transform_indices = @transform_0, window_bounds = array<i64: 1, 16, 16, 4>}, {transform_indices = @transform_1, window_bounds = array<i64: 1, 16, 16, 4>}, {transform_indices = @transform_2, window_bounds = array<i64: 1, 16, 16, 4>}, {transform_indices = @transform_3, window_bounds = array<i64: 1, 16, 16, 4>}, {pipeline_mode = #tpu.pipeline_mode<synchronous>, transform_indices = @transform_4, window_bounds = array<i64: 36, 8>}, {pipeline_mode = #tpu.pipeline_mode<synchronous>, transform_indices = @transform_5, window_bounds = array<i64: 1, 8>}, {transform_indices = @transform_6, window_bounds = array<i64: 1, 8, 512>}, {transform_indices = @transform_7, window_bounds = array<i64: 1, 1, 2, 8>}]} {
    %c8_i32 = arith.constant 8 : i32
    %0 = arith.muli %arg1, %c8_i32 : i32
    %1 = tpu.assume_multiple %0, 8 : i32
    %c0 = arith.constant 0 : index
    %2 = arith.index_cast %1 : i32 to index
    %c0_0 = arith.constant 0 : index
    %c0_1 = arith.constant 0 : index
    %3 = vector.load %arg2[%c0, %2, %c0_0, %c0_1] : memref<1x16x16x4xf32, #tpu.memory_space<vmem>>, vector<1x8x16x4xf32>
    %4 = vector.shape_cast %3 : vector<1x8x16x4xf32> to vector<8x16x4xf32>
    %cst = arith.constant 0.000000e+00 : f32
    %5 = vector.broadcast %cst : f32 to vector<8x16x4xf32>
    %6 = arith.maximumf %4, %5 : vector<8x16x4xf32>
    %c0_2 = arith.constant 0 : index
    %7 = arith.index_cast %1 : i32 to index
    %c0_3 = arith.constant 0 : index
    %c0_4 = arith.constant 0 : index
    %8 = vector.load %arg3[%c0_2, %7, %c0_3, %c0_4] : memref<1x16x16x4xf32, #tpu.memory_space<vmem>>, vector<1x8x16x4xf32>
    %9 = vector.shape_cast %8 : vector<1x8x16x4xf32> to vector<8x16x4xf32>
    %c0_5 = arith.constant 0 : index
    %10 = arith.index_cast %1 : i32 to index
    %c0_6 = arith.constant 0 : index
    %c0_7 = arith.constant 0 : index
    %11 = vector.load %arg4[%c0_5, %10, %c0_6, %c0_7] : memref<1x16x16x4xf32, #tpu.memory_space<vmem>>, vector<1x8x16x4xf32>
    %12 = vector.shape_cast %11 : vector<1x8x16x4xf32> to vector<8x16x4xf32>
    %c0_8 = arith.constant 0 : index
    %13 = arith.index_cast %1 : i32 to index
    %c0_9 = arith.constant 0 : index
    %c0_10 = arith.constant 0 : index
    %14 = vector.load %arg5[%c0_8, %13, %c0_9, %c0_10] : memref<1x16x16x4xf32, #tpu.memory_space<vmem>>, vector<1x8x16x4xf32>
    %15 = vector.shape_cast %14 : vector<1x8x16x4xf32> to vector<8x16x4xf32>
    %16 = arith.subf %6, %9 : vector<8x16x4xf32>
    %17 = arith.subf %16, %12 : vector<8x16x4xf32>
    %18 = arith.addf %17, %15 : vector<8x16x4xf32>
    %cst_11 = arith.constant 5.000000e-01 : f32
    %19 = vector.broadcast %cst_11 : f32 to vector<8x16x4xf32>
    %20 = arith.mulf %19, %18 : vector<8x16x4xf32>
    %21 = arith.addf %6, %9 : vector<8x16x4xf32>
    %22 = arith.subf %21, %12 : vector<8x16x4xf32>
    %23 = arith.subf %22, %15 : vector<8x16x4xf32>
    %cst_12 = arith.constant 5.000000e-01 : f32
    %24 = vector.broadcast %cst_12 : f32 to vector<8x16x4xf32>
    %25 = arith.mulf %24, %23 : vector<8x16x4xf32>
    %26 = arith.subf %6, %9 : vector<8x16x4xf32>
    %27 = arith.addf %26, %12 : vector<8x16x4xf32>
    %28 = arith.subf %27, %15 : vector<8x16x4xf32>
    %cst_13 = arith.constant 5.000000e-01 : f32
    %29 = vector.broadcast %cst_13 : f32 to vector<8x16x4xf32>
    %30 = arith.mulf %29, %28 : vector<8x16x4xf32>
    %31 = arith.addf %6, %9 : vector<8x16x4xf32>
    %32 = arith.addf %31, %12 : vector<8x16x4xf32>
    %33 = arith.addf %32, %15 : vector<8x16x4xf32>
    %cst_14 = arith.constant 5.000000e-01 : f32
    %34 = vector.broadcast %cst_14 : f32 to vector<8x16x4xf32>
    %35 = arith.mulf %34, %33 : vector<8x16x4xf32>
    %36 = vector.shape_cast %20 : vector<8x16x4xf32> to vector<8x1x16x4xf32>
    %37 = vector.shape_cast %30 : vector<8x16x4xf32> to vector<8x1x16x4xf32>
    %38 = tpu.concatenate %36, %37 in 1 : vector<8x1x16x4xf32>, vector<8x1x16x4xf32> -> vector<8x2x16x4xf32>
    %39 = vector.shape_cast %38 : vector<8x2x16x4xf32> to vector<16x16x4xf32>
    %40 = vector.shape_cast %25 : vector<8x16x4xf32> to vector<8x1x16x4xf32>
    %41 = vector.shape_cast %35 : vector<8x16x4xf32> to vector<8x1x16x4xf32>
    %42 = tpu.concatenate %40, %41 in 1 : vector<8x1x16x4xf32>, vector<8x1x16x4xf32> -> vector<8x2x16x4xf32>
    %43 = vector.shape_cast %42 : vector<8x2x16x4xf32> to vector<16x16x4xf32>
    %c1_i32 = arith.constant 1 : i32
    %44 = arith.subi %1, %c1_i32 : i32
    %c0_i32 = arith.constant 0 : i32
    %45 = arith.maxsi %44, %c0_i32 : i32
    %c0_15 = arith.constant 0 : index
    %46 = arith.index_cast %45 : i32 to index
    %c0_16 = arith.constant 0 : index
    %c0_17 = arith.constant 0 : index
    %47 = vector.load %arg2[%c0_15, %46, %c0_16, %c0_17] : memref<1x16x16x4xf32, #tpu.memory_space<vmem>>, vector<1x1x16x4xf32>
    %48 = vector.shape_cast %47 : vector<1x1x16x4xf32> to vector<1x16x4xf32>
    %cst_18 = arith.constant 0.000000e+00 : f32
    %49 = vector.broadcast %cst_18 : f32 to vector<1x16x4xf32>
    %50 = arith.maximumf %48, %49 : vector<1x16x4xf32>
    %c0_19 = arith.constant 0 : index
    %51 = arith.index_cast %45 : i32 to index
    %c0_20 = arith.constant 0 : index
    %c0_21 = arith.constant 0 : index
    %52 = vector.load %arg3[%c0_19, %51, %c0_20, %c0_21] : memref<1x16x16x4xf32, #tpu.memory_space<vmem>>, vector<1x1x16x4xf32>
    %53 = vector.shape_cast %52 : vector<1x1x16x4xf32> to vector<1x16x4xf32>
    %c0_22 = arith.constant 0 : index
    %54 = arith.index_cast %45 : i32 to index
    %c0_23 = arith.constant 0 : index
    %c0_24 = arith.constant 0 : index
    %55 = vector.load %arg4[%c0_22, %54, %c0_23, %c0_24] : memref<1x16x16x4xf32, #tpu.memory_space<vmem>>, vector<1x1x16x4xf32>
    %56 = vector.shape_cast %55 : vector<1x1x16x4xf32> to vector<1x16x4xf32>
    %c0_25 = arith.constant 0 : index
    %57 = arith.index_cast %45 : i32 to index
    %c0_26 = arith.constant 0 : index
    %c0_27 = arith.constant 0 : index
    %58 = vector.load %arg5[%c0_25, %57, %c0_26, %c0_27] : memref<1x16x16x4xf32, #tpu.memory_space<vmem>>, vector<1x1x16x4xf32>
    %59 = vector.shape_cast %58 : vector<1x1x16x4xf32> to vector<1x16x4xf32>
    %60 = arith.subf %50, %53 : vector<1x16x4xf32>
    %61 = arith.addf %60, %56 : vector<1x16x4xf32>
    %62 = arith.subf %61, %59 : vector<1x16x4xf32>
    %cst_28 = arith.constant 5.000000e-01 : f32
    %63 = vector.broadcast %cst_28 : f32 to vector<1x16x4xf32>
    %64 = arith.mulf %63, %62 : vector<1x16x4xf32>
    %65 = arith.addf %50, %53 : vector<1x16x4xf32>
    %66 = arith.addf %65, %56 : vector<1x16x4xf32>
    %67 = arith.addf %66, %59 : vector<1x16x4xf32>
    %cst_29 = arith.constant 5.000000e-01 : f32
    %68 = vector.broadcast %cst_29 : f32 to vector<1x16x4xf32>
    %69 = arith.mulf %68, %67 : vector<1x16x4xf32>
    %c8_i32_30 = arith.constant 8 : i32
    %70 = arith.addi %1, %c8_i32_30 : i32
    %c15_i32 = arith.constant 15 : i32
    %71 = arith.minsi %70, %c15_i32 : i32
    %c0_31 = arith.constant 0 : index
    %72 = arith.index_cast %71 : i32 to index
    %c0_32 = arith.constant 0 : index
    %c0_33 = arith.constant 0 : index
    %73 = vector.load %arg2[%c0_31, %72, %c0_32, %c0_33] : memref<1x16x16x4xf32, #tpu.memory_space<vmem>>, vector<1x1x16x4xf32>
    %74 = vector.shape_cast %73 : vector<1x1x16x4xf32> to vector<1x16x4xf32>
    %cst_34 = arith.constant 0.000000e+00 : f32
    %75 = vector.broadcast %cst_34 : f32 to vector<1x16x4xf32>
    %76 = arith.maximumf %74, %75 : vector<1x16x4xf32>
    %c0_35 = arith.constant 0 : index
    %77 = arith.index_cast %71 : i32 to index
    %c0_36 = arith.constant 0 : index
    %c0_37 = arith.constant 0 : index
    %78 = vector.load %arg3[%c0_35, %77, %c0_36, %c0_37] : memref<1x16x16x4xf32, #tpu.memory_space<vmem>>, vector<1x1x16x4xf32>
    %79 = vector.shape_cast %78 : vector<1x1x16x4xf32> to vector<1x16x4xf32>
    %c0_38 = arith.constant 0 : index
    %80 = arith.index_cast %71 : i32 to index
    %c0_39 = arith.constant 0 : index
    %c0_40 = arith.constant 0 : index
    %81 = vector.load %arg4[%c0_38, %80, %c0_39, %c0_40] : memref<1x16x16x4xf32, #tpu.memory_space<vmem>>, vector<1x1x16x4xf32>
    %82 = vector.shape_cast %81 : vector<1x1x16x4xf32> to vector<1x16x4xf32>
    %c0_41 = arith.constant 0 : index
    %83 = arith.index_cast %71 : i32 to index
    %c0_42 = arith.constant 0 : index
    %c0_43 = arith.constant 0 : index
    %84 = vector.load %arg5[%c0_41, %83, %c0_42, %c0_43] : memref<1x16x16x4xf32, #tpu.memory_space<vmem>>, vector<1x1x16x4xf32>
    %85 = vector.shape_cast %84 : vector<1x1x16x4xf32> to vector<1x16x4xf32>
    %86 = arith.subf %76, %79 : vector<1x16x4xf32>
    %87 = arith.subf %86, %82 : vector<1x16x4xf32>
    %88 = arith.addf %87, %85 : vector<1x16x4xf32>
    %cst_44 = arith.constant 5.000000e-01 : f32
    %89 = vector.broadcast %cst_44 : f32 to vector<1x16x4xf32>
    %90 = arith.mulf %89, %88 : vector<1x16x4xf32>
    %91 = arith.addf %76, %79 : vector<1x16x4xf32>
    %92 = arith.subf %91, %82 : vector<1x16x4xf32>
    %93 = arith.subf %92, %85 : vector<1x16x4xf32>
    %cst_45 = arith.constant 5.000000e-01 : f32
    %94 = vector.broadcast %cst_45 : f32 to vector<1x16x4xf32>
    %95 = arith.mulf %94, %93 : vector<1x16x4xf32>
    %c0_i32_46 = arith.constant 0 : i32
    %96 = arith.cmpi sgt, %arg1, %c0_i32_46 : i32
    %97 = arith.extui %96 : i1 to i32
    %98 = arith.sitofp %97 : i32 to f32
    %c1_i32_47 = arith.constant 1 : i32
    %99 = arith.cmpi slt, %arg1, %c1_i32_47 : i32
    %100 = arith.extui %99 : i1 to i32
    %101 = arith.sitofp %100 : i32 to f32
    %102 = vector.broadcast %98 : f32 to vector<1x16x4xf32>
    %103 = arith.mulf %64, %102 : vector<1x16x4xf32>
    %104 = vector.broadcast %101 : f32 to vector<1x16x4xf32>
    %105 = arith.mulf %90, %104 : vector<1x16x4xf32>
    %106 = tpu.concatenate %103, %39, %105 in 0 : vector<1x16x4xf32>, vector<16x16x4xf32>, vector<1x16x4xf32> -> vector<18x16x4xf32>
    %107 = vector.broadcast %98 : f32 to vector<1x16x4xf32>
    %108 = arith.mulf %69, %107 : vector<1x16x4xf32>
    %109 = vector.broadcast %101 : f32 to vector<1x16x4xf32>
    %110 = arith.mulf %95, %109 : vector<1x16x4xf32>
    %111 = tpu.concatenate %108, %43, %110 in 0 : vector<1x16x4xf32>, vector<16x16x4xf32>, vector<1x16x4xf32> -> vector<18x16x4xf32>
    %cst_48 = arith.constant 0.000000e+00 : f32
    %112 = vector.broadcast %cst_48 : f32 to vector<18x1x4xf32>
    %c0_49 = arith.constant 0 : index
    %c0_50 = arith.constant 0 : index
    %c0_51 = arith.constant 0 : index
    %113 = vector.load %arg10[%c0_49, %c0_50, %c0_51] : memref<18x34x4xf32, #tpu.memory_space<vmem>>, vector<18x1x4xf32>
    tpu.vector_store %arg10[%c0_49, %c0_50, %c0_51], %112 {strides = array<i32>} : memref<18x34x4xf32, #tpu.memory_space<vmem>>, vector<18x1x4xf32>,
    %c0_52 = arith.constant 0 : index
    %c33 = arith.constant 33 : index
    %c0_53 = arith.constant 0 : index
    %114 = vector.load %arg10[%c0_52, %c33, %c0_53] : memref<18x34x4xf32, #tpu.memory_space<vmem>>, vector<18x1x4xf32>
    tpu.vector_store %arg10[%c0_52, %c33, %c0_53], %112 {strides = array<i32>} : memref<18x34x4xf32, #tpu.memory_space<vmem>>, vector<18x1x4xf32>,
    %115 = vector.extract_strided_slice %106 {offsets = [0, 0, 0], sizes = [18, 1, 4], strides = [1, 1, 1]} : vector<18x16x4xf32> to vector<18x1x4xf32>
    %c0_54 = arith.constant 0 : index
    %c1 = arith.constant 1 : index
    %c0_55 = arith.constant 0 : index
    %116 = vector.load %arg10[%c0_54, %c1, %c0_55] : memref<18x34x4xf32, #tpu.memory_space<vmem>>, vector<18x1x4xf32>
    tpu.vector_store %arg10[%c0_54, %c1, %c0_55], %115 {strides = array<i32>} : memref<18x34x4xf32, #tpu.memory_space<vmem>>, vector<18x1x4xf32>,
    %117 = vector.extract_strided_slice %111 {offsets = [0, 0, 0], sizes = [18, 1, 4], strides = [1, 1, 1]} : vector<18x16x4xf32> to vector<18x1x4xf32>
    %c0_56 = arith.constant 0 : index
    %c2 = arith.constant 2 : index
    %c0_57 = arith.constant 0 : index
    %118 = vector.load %arg10[%c0_56, %c2, %c0_57] : memref<18x34x4xf32, #tpu.memory_space<vmem>>, vector<18x1x4xf32>
    tpu.vector_store %arg10[%c0_56, %c2, %c0_57], %117 {strides = array<i32>} : memref<18x34x4xf32, #tpu.memory_space<vmem>>, vector<18x1x4xf32>,
    %119 = vector.extract_strided_slice %106 {offsets = [0, 1, 0], sizes = [18, 1, 4], strides = [1, 1, 1]} : vector<18x16x4xf32> to vector<18x1x4xf32>
    %c0_58 = arith.constant 0 : index
    %c3 = arith.constant 3 : index
    %c0_59 = arith.constant 0 : index
    %120 = vector.load %arg10[%c0_58, %c3, %c0_59] : memref<18x34x4xf32, #tpu.memory_space<vmem>>, vector<18x1x4xf32>
    tpu.vector_store %arg10[%c0_58, %c3, %c0_59], %119 {strides = array<i32>} : memref<18x34x4xf32, #tpu.memory_space<vmem>>, vector<18x1x4xf32>,
    %121 = vector.extract_strided_slice %111 {offsets = [0, 1, 0], sizes = [18, 1, 4], strides = [1, 1, 1]} : vector<18x16x4xf32> to vector<18x1x4xf32>
    %c0_60 = arith.constant 0 : index
    %c4 = arith.constant 4 : index
    %c0_61 = arith.constant 0 : index
    %122 = vector.load %arg10[%c0_60, %c4, %c0_61] : memref<18x34x4xf32, #tpu.memory_space<vmem>>, vector<18x1x4xf32>
    tpu.vector_store %arg10[%c0_60, %c4, %c0_61], %121 {strides = array<i32>} : memref<18x34x4xf32, #tpu.memory_space<vmem>>, vector<18x1x4xf32>,
    %123 = vector.extract_strided_slice %106 {offsets = [0, 2, 0], sizes = [18, 1, 4], strides = [1, 1, 1]} : vector<18x16x4xf32> to vector<18x1x4xf32>
    %c0_62 = arith.constant 0 : index
    %c5 = arith.constant 5 : index
    %c0_63 = arith.constant 0 : index
    %124 = vector.load %arg10[%c0_62, %c5, %c0_63] : memref<18x34x4xf32, #tpu.memory_space<vmem>>, vector<18x1x4xf32>
    tpu.vector_store %arg10[%c0_62, %c5, %c0_63], %123 {strides = array<i32>} : memref<18x34x4xf32, #tpu.memory_space<vmem>>, vector<18x1x4xf32>,
    %125 = vector.extract_strided_slice %111 {offsets = [0, 2, 0], sizes = [18, 1, 4], strides = [1, 1, 1]} : vector<18x16x4xf32> to vector<18x1x4xf32>
    %c0_64 = arith.constant 0 : index
    %c6 = arith.constant 6 : index
    %c0_65 = arith.constant 0 : index
    %126 = vector.load %arg10[%c0_64, %c6, %c0_65] : memref<18x34x4xf32, #tpu.memory_space<vmem>>, vector<18x1x4xf32>
    tpu.vector_store %arg10[%c0_64, %c6, %c0_65], %125 {strides = array<i32>} : memref<18x34x4xf32, #tpu.memory_space<vmem>>, vector<18x1x4xf32>,
    %127 = vector.extract_strided_slice %106 {offsets = [0, 3, 0], sizes = [18, 1, 4], strides = [1, 1, 1]} : vector<18x16x4xf32> to vector<18x1x4xf32>
    %c0_66 = arith.constant 0 : index
    %c7 = arith.constant 7 : index
    %c0_67 = arith.constant 0 : index
    %128 = vector.load %arg10[%c0_66, %c7, %c0_67] : memref<18x34x4xf32, #tpu.memory_space<vmem>>, vector<18x1x4xf32>
    tpu.vector_store %arg10[%c0_66, %c7, %c0_67], %127 {strides = array<i32>} : memref<18x34x4xf32, #tpu.memory_space<vmem>>, vector<18x1x4xf32>,
    %129 = vector.extract_strided_slice %111 {offsets = [0, 3, 0], sizes = [18, 1, 4], strides = [1, 1, 1]} : vector<18x16x4xf32> to vector<18x1x4xf32>
    %c0_68 = arith.constant 0 : index
    %c8 = arith.constant 8 : index
    %c0_69 = arith.constant 0 : index
    %130 = vector.load %arg10[%c0_68, %c8, %c0_69] : memref<18x34x4xf32, #tpu.memory_space<vmem>>, vector<18x1x4xf32>
    tpu.vector_store %arg10[%c0_68, %c8, %c0_69], %129 {strides = array<i32>} : memref<18x34x4xf32, #tpu.memory_space<vmem>>, vector<18x1x4xf32>,
    %131 = vector.extract_strided_slice %106 {offsets = [0, 4, 0], sizes = [18, 1, 4], strides = [1, 1, 1]} : vector<18x16x4xf32> to vector<18x1x4xf32>
    %c0_70 = arith.constant 0 : index
    %c9 = arith.constant 9 : index
    %c0_71 = arith.constant 0 : index
    %132 = vector.load %arg10[%c0_70, %c9, %c0_71] : memref<18x34x4xf32, #tpu.memory_space<vmem>>, vector<18x1x4xf32>
    tpu.vector_store %arg10[%c0_70, %c9, %c0_71], %131 {strides = array<i32>} : memref<18x34x4xf32, #tpu.memory_space<vmem>>, vector<18x1x4xf32>,
    %133 = vector.extract_strided_slice %111 {offsets = [0, 4, 0], sizes = [18, 1, 4], strides = [1, 1, 1]} : vector<18x16x4xf32> to vector<18x1x4xf32>
    %c0_72 = arith.constant 0 : index
    %c10 = arith.constant 10 : index
    %c0_73 = arith.constant 0 : index
    %134 = vector.load %arg10[%c0_72, %c10, %c0_73] : memref<18x34x4xf32, #tpu.memory_space<vmem>>, vector<18x1x4xf32>
    tpu.vector_store %arg10[%c0_72, %c10, %c0_73], %133 {strides = array<i32>} : memref<18x34x4xf32, #tpu.memory_space<vmem>>, vector<18x1x4xf32>,
    %135 = vector.extract_strided_slice %106 {offsets = [0, 5, 0], sizes = [18, 1, 4], strides = [1, 1, 1]} : vector<18x16x4xf32> to vector<18x1x4xf32>
    %c0_74 = arith.constant 0 : index
    %c11 = arith.constant 11 : index
    %c0_75 = arith.constant 0 : index
    %136 = vector.load %arg10[%c0_74, %c11, %c0_75] : memref<18x34x4xf32, #tpu.memory_space<vmem>>, vector<18x1x4xf32>
    tpu.vector_store %arg10[%c0_74, %c11, %c0_75], %135 {strides = array<i32>} : memref<18x34x4xf32, #tpu.memory_space<vmem>>, vector<18x1x4xf32>,
    %137 = vector.extract_strided_slice %111 {offsets = [0, 5, 0], sizes = [18, 1, 4], strides = [1, 1, 1]} : vector<18x16x4xf32> to vector<18x1x4xf32>
    %c0_76 = arith.constant 0 : index
    %c12 = arith.constant 12 : index
    %c0_77 = arith.constant 0 : index
    %138 = vector.load %arg10[%c0_76, %c12, %c0_77] : memref<18x34x4xf32, #tpu.memory_space<vmem>>, vector<18x1x4xf32>
    tpu.vector_store %arg10[%c0_76, %c12, %c0_77], %137 {strides = array<i32>} : memref<18x34x4xf32, #tpu.memory_space<vmem>>, vector<18x1x4xf32>,
    %139 = vector.extract_strided_slice %106 {offsets = [0, 6, 0], sizes = [18, 1, 4], strides = [1, 1, 1]} : vector<18x16x4xf32> to vector<18x1x4xf32>
    %c0_78 = arith.constant 0 : index
    %c13 = arith.constant 13 : index
    %c0_79 = arith.constant 0 : index
    %140 = vector.load %arg10[%c0_78, %c13, %c0_79] : memref<18x34x4xf32, #tpu.memory_space<vmem>>, vector<18x1x4xf32>
    tpu.vector_store %arg10[%c0_78, %c13, %c0_79], %139 {strides = array<i32>} : memref<18x34x4xf32, #tpu.memory_space<vmem>>, vector<18x1x4xf32>,
    %141 = vector.extract_strided_slice %111 {offsets = [0, 6, 0], sizes = [18, 1, 4], strides = [1, 1, 1]} : vector<18x16x4xf32> to vector<18x1x4xf32>
    %c0_80 = arith.constant 0 : index
    %c14 = arith.constant 14 : index
    %c0_81 = arith.constant 0 : index
    %142 = vector.load %arg10[%c0_80, %c14, %c0_81] : memref<18x34x4xf32, #tpu.memory_space<vmem>>, vector<18x1x4xf32>
    tpu.vector_store %arg10[%c0_80, %c14, %c0_81], %141 {strides = array<i32>} : memref<18x34x4xf32, #tpu.memory_space<vmem>>, vector<18x1x4xf32>,
    %143 = vector.extract_strided_slice %106 {offsets = [0, 7, 0], sizes = [18, 1, 4], strides = [1, 1, 1]} : vector<18x16x4xf32> to vector<18x1x4xf32>
    %c0_82 = arith.constant 0 : index
    %c15 = arith.constant 15 : index
    %c0_83 = arith.constant 0 : index
    %144 = vector.load %arg10[%c0_82, %c15, %c0_83] : memref<18x34x4xf32, #tpu.memory_space<vmem>>, vector<18x1x4xf32>
    tpu.vector_store %arg10[%c0_82, %c15, %c0_83], %143 {strides = array<i32>} : memref<18x34x4xf32, #tpu.memory_space<vmem>>, vector<18x1x4xf32>,
    %145 = vector.extract_strided_slice %111 {offsets = [0, 7, 0], sizes = [18, 1, 4], strides = [1, 1, 1]} : vector<18x16x4xf32> to vector<18x1x4xf32>
    %c0_84 = arith.constant 0 : index
    %c16 = arith.constant 16 : index
    %c0_85 = arith.constant 0 : index
    %146 = vector.load %arg10[%c0_84, %c16, %c0_85] : memref<18x34x4xf32, #tpu.memory_space<vmem>>, vector<18x1x4xf32>
    tpu.vector_store %arg10[%c0_84, %c16, %c0_85], %145 {strides = array<i32>} : memref<18x34x4xf32, #tpu.memory_space<vmem>>, vector<18x1x4xf32>,
    %147 = vector.extract_strided_slice %106 {offsets = [0, 8, 0], sizes = [18, 1, 4], strides = [1, 1, 1]} : vector<18x16x4xf32> to vector<18x1x4xf32>
    %c0_86 = arith.constant 0 : index
    %c17 = arith.constant 17 : index
    %c0_87 = arith.constant 0 : index
    %148 = vector.load %arg10[%c0_86, %c17, %c0_87] : memref<18x34x4xf32, #tpu.memory_space<vmem>>, vector<18x1x4xf32>
    tpu.vector_store %arg10[%c0_86, %c17, %c0_87], %147 {strides = array<i32>} : memref<18x34x4xf32, #tpu.memory_space<vmem>>, vector<18x1x4xf32>,
    %149 = vector.extract_strided_slice %111 {offsets = [0, 8, 0], sizes = [18, 1, 4], strides = [1, 1, 1]} : vector<18x16x4xf32> to vector<18x1x4xf32>
    %c0_88 = arith.constant 0 : index
    %c18 = arith.constant 18 : index
    %c0_89 = arith.constant 0 : index
    %150 = vector.load %arg10[%c0_88, %c18, %c0_89] : memref<18x34x4xf32, #tpu.memory_space<vmem>>, vector<18x1x4xf32>
    tpu.vector_store %arg10[%c0_88, %c18, %c0_89], %149 {strides = array<i32>} : memref<18x34x4xf32, #tpu.memory_space<vmem>>, vector<18x1x4xf32>,
    %151 = vector.extract_strided_slice %106 {offsets = [0, 9, 0], sizes = [18, 1, 4], strides = [1, 1, 1]} : vector<18x16x4xf32> to vector<18x1x4xf32>
    %c0_90 = arith.constant 0 : index
    %c19 = arith.constant 19 : index
    %c0_91 = arith.constant 0 : index
    %152 = vector.load %arg10[%c0_90, %c19, %c0_91] : memref<18x34x4xf32, #tpu.memory_space<vmem>>, vector<18x1x4xf32>
    tpu.vector_store %arg10[%c0_90, %c19, %c0_91], %151 {strides = array<i32>} : memref<18x34x4xf32, #tpu.memory_space<vmem>>, vector<18x1x4xf32>,
    %153 = vector.extract_strided_slice %111 {offsets = [0, 9, 0], sizes = [18, 1, 4], strides = [1, 1, 1]} : vector<18x16x4xf32> to vector<18x1x4xf32>
    %c0_92 = arith.constant 0 : index
    %c20 = arith.constant 20 : index
    %c0_93 = arith.constant 0 : index
    %154 = vector.load %arg10[%c0_92, %c20, %c0_93] : memref<18x34x4xf32, #tpu.memory_space<vmem>>, vector<18x1x4xf32>
    tpu.vector_store %arg10[%c0_92, %c20, %c0_93], %153 {strides = array<i32>} : memref<18x34x4xf32, #tpu.memory_space<vmem>>, vector<18x1x4xf32>,
    %155 = vector.extract_strided_slice %106 {offsets = [0, 10, 0], sizes = [18, 1, 4], strides = [1, 1, 1]} : vector<18x16x4xf32> to vector<18x1x4xf32>
    %c0_94 = arith.constant 0 : index
    %c21 = arith.constant 21 : index
    %c0_95 = arith.constant 0 : index
    %156 = vector.load %arg10[%c0_94, %c21, %c0_95] : memref<18x34x4xf32, #tpu.memory_space<vmem>>, vector<18x1x4xf32>
    tpu.vector_store %arg10[%c0_94, %c21, %c0_95], %155 {strides = array<i32>} : memref<18x34x4xf32, #tpu.memory_space<vmem>>, vector<18x1x4xf32>,
    %157 = vector.extract_strided_slice %111 {offsets = [0, 10, 0], sizes = [18, 1, 4], strides = [1, 1, 1]} : vector<18x16x4xf32> to vector<18x1x4xf32>
    %c0_96 = arith.constant 0 : index
    %c22 = arith.constant 22 : index
    %c0_97 = arith.constant 0 : index
    %158 = vector.load %arg10[%c0_96, %c22, %c0_97] : memref<18x34x4xf32, #tpu.memory_space<vmem>>, vector<18x1x4xf32>
    tpu.vector_store %arg10[%c0_96, %c22, %c0_97], %157 {strides = array<i32>} : memref<18x34x4xf32, #tpu.memory_space<vmem>>, vector<18x1x4xf32>,
    %159 = vector.extract_strided_slice %106 {offsets = [0, 11, 0], sizes = [18, 1, 4], strides = [1, 1, 1]} : vector<18x16x4xf32> to vector<18x1x4xf32>
    %c0_98 = arith.constant 0 : index
    %c23 = arith.constant 23 : index
    %c0_99 = arith.constant 0 : index
    %160 = vector.load %arg10[%c0_98, %c23, %c0_99] : memref<18x34x4xf32, #tpu.memory_space<vmem>>, vector<18x1x4xf32>
    tpu.vector_store %arg10[%c0_98, %c23, %c0_99], %159 {strides = array<i32>} : memref<18x34x4xf32, #tpu.memory_space<vmem>>, vector<18x1x4xf32>,
    %161 = vector.extract_strided_slice %111 {offsets = [0, 11, 0], sizes = [18, 1, 4], strides = [1, 1, 1]} : vector<18x16x4xf32> to vector<18x1x4xf32>
    %c0_100 = arith.constant 0 : index
    %c24 = arith.constant 24 : index
    %c0_101 = arith.constant 0 : index
    %162 = vector.load %arg10[%c0_100, %c24, %c0_101] : memref<18x34x4xf32, #tpu.memory_space<vmem>>, vector<18x1x4xf32>
    tpu.vector_store %arg10[%c0_100, %c24, %c0_101], %161 {strides = array<i32>} : memref<18x34x4xf32, #tpu.memory_space<vmem>>, vector<18x1x4xf32>,
    %163 = vector.extract_strided_slice %106 {offsets = [0, 12, 0], sizes = [18, 1, 4], strides = [1, 1, 1]} : vector<18x16x4xf32> to vector<18x1x4xf32>
    %c0_102 = arith.constant 0 : index
    %c25 = arith.constant 25 : index
    %c0_103 = arith.constant 0 : index
    %164 = vector.load %arg10[%c0_102, %c25, %c0_103] : memref<18x34x4xf32, #tpu.memory_space<vmem>>, vector<18x1x4xf32>
    tpu.vector_store %arg10[%c0_102, %c25, %c0_103], %163 {strides = array<i32>} : memref<18x34x4xf32, #tpu.memory_space<vmem>>, vector<18x1x4xf32>,
    %165 = vector.extract_strided_slice %111 {offsets = [0, 12, 0], sizes = [18, 1, 4], strides = [1, 1, 1]} : vector<18x16x4xf32> to vector<18x1x4xf32>
    %c0_104 = arith.constant 0 : index
    %c26 = arith.constant 26 : index
    %c0_105 = arith.constant 0 : index
    %166 = vector.load %arg10[%c0_104, %c26, %c0_105] : memref<18x34x4xf32, #tpu.memory_space<vmem>>, vector<18x1x4xf32>
    tpu.vector_store %arg10[%c0_104, %c26, %c0_105], %165 {strides = array<i32>} : memref<18x34x4xf32, #tpu.memory_space<vmem>>, vector<18x1x4xf32>,
    %167 = vector.extract_strided_slice %106 {offsets = [0, 13, 0], sizes = [18, 1, 4], strides = [1, 1, 1]} : vector<18x16x4xf32> to vector<18x1x4xf32>
    %c0_106 = arith.constant 0 : index
    %c27 = arith.constant 27 : index
    %c0_107 = arith.constant 0 : index
    %168 = vector.load %arg10[%c0_106, %c27, %c0_107] : memref<18x34x4xf32, #tpu.memory_space<vmem>>, vector<18x1x4xf32>
    tpu.vector_store %arg10[%c0_106, %c27, %c0_107], %167 {strides = array<i32>} : memref<18x34x4xf32, #tpu.memory_space<vmem>>, vector<18x1x4xf32>,
    %169 = vector.extract_strided_slice %111 {offsets = [0, 13, 0], sizes = [18, 1, 4], strides = [1, 1, 1]} : vector<18x16x4xf32> to vector<18x1x4xf32>
    %c0_108 = arith.constant 0 : index
    %c28 = arith.constant 28 : index
    %c0_109 = arith.constant 0 : index
    %170 = vector.load %arg10[%c0_108, %c28, %c0_109] : memref<18x34x4xf32, #tpu.memory_space<vmem>>, vector<18x1x4xf32>
    tpu.vector_store %arg10[%c0_108, %c28, %c0_109], %169 {strides = array<i32>} : memref<18x34x4xf32, #tpu.memory_space<vmem>>, vector<18x1x4xf32>,
    %171 = vector.extract_strided_slice %106 {offsets = [0, 14, 0], sizes = [18, 1, 4], strides = [1, 1, 1]} : vector<18x16x4xf32> to vector<18x1x4xf32>
    %c0_110 = arith.constant 0 : index
    %c29 = arith.constant 29 : index
    %c0_111 = arith.constant 0 : index
    %172 = vector.load %arg10[%c0_110, %c29, %c0_111] : memref<18x34x4xf32, #tpu.memory_space<vmem>>, vector<18x1x4xf32>
    tpu.vector_store %arg10[%c0_110, %c29, %c0_111], %171 {strides = array<i32>} : memref<18x34x4xf32, #tpu.memory_space<vmem>>, vector<18x1x4xf32>,
    %173 = vector.extract_strided_slice %111 {offsets = [0, 14, 0], sizes = [18, 1, 4], strides = [1, 1, 1]} : vector<18x16x4xf32> to vector<18x1x4xf32>
    %c0_112 = arith.constant 0 : index
    %c30 = arith.constant 30 : index
    %c0_113 = arith.constant 0 : index
    %174 = vector.load %arg10[%c0_112, %c30, %c0_113] : memref<18x34x4xf32, #tpu.memory_space<vmem>>, vector<18x1x4xf32>
    tpu.vector_store %arg10[%c0_112, %c30, %c0_113], %173 {strides = array<i32>} : memref<18x34x4xf32, #tpu.memory_space<vmem>>, vector<18x1x4xf32>,
    %175 = vector.extract_strided_slice %106 {offsets = [0, 15, 0], sizes = [18, 1, 4], strides = [1, 1, 1]} : vector<18x16x4xf32> to vector<18x1x4xf32>
    %c0_114 = arith.constant 0 : index
    %c31 = arith.constant 31 : index
    %c0_115 = arith.constant 0 : index
    %176 = vector.load %arg10[%c0_114, %c31, %c0_115] : memref<18x34x4xf32, #tpu.memory_space<vmem>>, vector<18x1x4xf32>
    tpu.vector_store %arg10[%c0_114, %c31, %c0_115], %175 {strides = array<i32>} : memref<18x34x4xf32, #tpu.memory_space<vmem>>, vector<18x1x4xf32>,
    %177 = vector.extract_strided_slice %111 {offsets = [0, 15, 0], sizes = [18, 1, 4], strides = [1, 1, 1]} : vector<18x16x4xf32> to vector<18x1x4xf32>
    %c0_116 = arith.constant 0 : index
    %c32 = arith.constant 32 : index
    %c0_117 = arith.constant 0 : index
    %178 = vector.load %arg10[%c0_116, %c32, %c0_117] : memref<18x34x4xf32, #tpu.memory_space<vmem>>, vector<18x1x4xf32>
    tpu.vector_store %arg10[%c0_116, %c32, %c0_117], %177 {strides = array<i32>} : memref<18x34x4xf32, #tpu.memory_space<vmem>>, vector<18x1x4xf32>,
    %c0_118 = arith.constant 0 : index
    %c0_119 = arith.constant 0 : index
    %c0_120 = arith.constant 0 : index
    %179 = vector.load %arg10[%c0_118, %c0_119, %c0_120] : memref<18x34x4xf32, #tpu.memory_space<vmem>>, vector<16x32x4xf32>
    %180 = vector.shape_cast %179 : vector<16x32x4xf32> to vector<512x4xf32>
    %c0_121 = arith.constant 0 : index
    %c0_122 = arith.constant 0 : index
    %181 = vector.load %arg11[%c0_121, %c0_122] : memref<512x36xf32, #tpu.memory_space<vmem>>, vector<512x4xf32>
    tpu.vector_store %arg11[%c0_121, %c0_122], %180 {strides = array<i32>} : memref<512x36xf32, #tpu.memory_space<vmem>>, vector<512x4xf32>,
    %c0_123 = arith.constant 0 : index
    %c1_124 = arith.constant 1 : index
    %c0_125 = arith.constant 0 : index
    %182 = vector.load %arg10[%c0_123, %c1_124, %c0_125] : memref<18x34x4xf32, #tpu.memory_space<vmem>>, vector<16x32x4xf32>
    %183 = vector.shape_cast %182 : vector<16x32x4xf32> to vector<512x4xf32>
    %c0_126 = arith.constant 0 : index
    %c4_127 = arith.constant 4 : index
    %184 = vector.load %arg11[%c0_126, %c4_127] : memref<512x36xf32, #tpu.memory_space<vmem>>, vector<512x4xf32>
    tpu.vector_store %arg11[%c0_126, %c4_127], %183 {strides = array<i32>} : memref<512x36xf32, #tpu.memory_space<vmem>>, vector<512x4xf32>,
    %c0_128 = arith.constant 0 : index
    %c2_129 = arith.constant 2 : index
    %c0_130 = arith.constant 0 : index
    %185 = vector.load %arg10[%c0_128, %c2_129, %c0_130] : memref<18x34x4xf32, #tpu.memory_space<vmem>>, vector<16x32x4xf32>
    %186 = vector.shape_cast %185 : vector<16x32x4xf32> to vector<512x4xf32>
    %c0_131 = arith.constant 0 : index
    %c8_132 = arith.constant 8 : index
    %187 = vector.load %arg11[%c0_131, %c8_132] : memref<512x36xf32, #tpu.memory_space<vmem>>, vector<512x4xf32>
    tpu.vector_store %arg11[%c0_131, %c8_132], %186 {strides = array<i32>} : memref<512x36xf32, #tpu.memory_space<vmem>>, vector<512x4xf32>,
    %c1_133 = arith.constant 1 : index
    %c0_134 = arith.constant 0 : index
    %c0_135 = arith.constant 0 : index
    %188 = vector.load %arg10[%c1_133, %c0_134, %c0_135] : memref<18x34x4xf32, #tpu.memory_space<vmem>>, vector<16x32x4xf32>
    %189 = vector.shape_cast %188 : vector<16x32x4xf32> to vector<512x4xf32>
    %c0_136 = arith.constant 0 : index
    %c12_137 = arith.constant 12 : index
    %190 = vector.load %arg11[%c0_136, %c12_137] : memref<512x36xf32, #tpu.memory_space<vmem>>, vector<512x4xf32>
    tpu.vector_store %arg11[%c0_136, %c12_137], %189 {strides = array<i32>} : memref<512x36xf32, #tpu.memory_space<vmem>>, vector<512x4xf32>,
    %c1_138 = arith.constant 1 : index
    %c1_139 = arith.constant 1 : index
    %c0_140 = arith.constant 0 : index
    %191 = vector.load %arg10[%c1_138, %c1_139, %c0_140] : memref<18x34x4xf32, #tpu.memory_space<vmem>>, vector<16x32x4xf32>
    %192 = vector.shape_cast %191 : vector<16x32x4xf32> to vector<512x4xf32>
    %c0_141 = arith.constant 0 : index
    %c16_142 = arith.constant 16 : index
    %193 = vector.load %arg11[%c0_141, %c16_142] : memref<512x36xf32, #tpu.memory_space<vmem>>, vector<512x4xf32>
    tpu.vector_store %arg11[%c0_141, %c16_142], %192 {strides = array<i32>} : memref<512x36xf32, #tpu.memory_space<vmem>>, vector<512x4xf32>,
    %c1_143 = arith.constant 1 : index
    %c2_144 = arith.constant 2 : index
    %c0_145 = arith.constant 0 : index
    %194 = vector.load %arg10[%c1_143, %c2_144, %c0_145] : memref<18x34x4xf32, #tpu.memory_space<vmem>>, vector<16x32x4xf32>
    %195 = vector.shape_cast %194 : vector<16x32x4xf32> to vector<512x4xf32>
    %c0_146 = arith.constant 0 : index
    %c20_147 = arith.constant 20 : index
    %196 = vector.load %arg11[%c0_146, %c20_147] : memref<512x36xf32, #tpu.memory_space<vmem>>, vector<512x4xf32>
    tpu.vector_store %arg11[%c0_146, %c20_147], %195 {strides = array<i32>} : memref<512x36xf32, #tpu.memory_space<vmem>>, vector<512x4xf32>,
    %c2_148 = arith.constant 2 : index
    %c0_149 = arith.constant 0 : index
    %c0_150 = arith.constant 0 : index
    %197 = vector.load %arg10[%c2_148, %c0_149, %c0_150] : memref<18x34x4xf32, #tpu.memory_space<vmem>>, vector<16x32x4xf32>
    %198 = vector.shape_cast %197 : vector<16x32x4xf32> to vector<512x4xf32>
    %c0_151 = arith.constant 0 : index
    %c24_152 = arith.constant 24 : index
    %199 = vector.load %arg11[%c0_151, %c24_152] : memref<512x36xf32, #tpu.memory_space<vmem>>, vector<512x4xf32>
    tpu.vector_store %arg11[%c0_151, %c24_152], %198 {strides = array<i32>} : memref<512x36xf32, #tpu.memory_space<vmem>>, vector<512x4xf32>,
    %c2_153 = arith.constant 2 : index
    %c1_154 = arith.constant 1 : index
    %c0_155 = arith.constant 0 : index
    %200 = vector.load %arg10[%c2_153, %c1_154, %c0_155] : memref<18x34x4xf32, #tpu.memory_space<vmem>>, vector<16x32x4xf32>
    %201 = vector.shape_cast %200 : vector<16x32x4xf32> to vector<512x4xf32>
    %c0_156 = arith.constant 0 : index
    %c28_157 = arith.constant 28 : index
    %202 = vector.load %arg11[%c0_156, %c28_157] : memref<512x36xf32, #tpu.memory_space<vmem>>, vector<512x4xf32>
    tpu.vector_store %arg11[%c0_156, %c28_157], %201 {strides = array<i32>} : memref<512x36xf32, #tpu.memory_space<vmem>>, vector<512x4xf32>,
    %c2_158 = arith.constant 2 : index
    %c2_159 = arith.constant 2 : index
    %c0_160 = arith.constant 0 : index
    %203 = vector.load %arg10[%c2_158, %c2_159, %c0_160] : memref<18x34x4xf32, #tpu.memory_space<vmem>>, vector<16x32x4xf32>
    %204 = vector.shape_cast %203 : vector<16x32x4xf32> to vector<512x4xf32>
    %c0_161 = arith.constant 0 : index
    %c32_162 = arith.constant 32 : index
    %205 = vector.load %arg11[%c0_161, %c32_162] : memref<512x36xf32, #tpu.memory_space<vmem>>, vector<512x4xf32>
    tpu.vector_store %arg11[%c0_161, %c32_162], %204 {strides = array<i32>} : memref<512x36xf32, #tpu.memory_space<vmem>>, vector<512x4xf32>,
    %c0_163 = arith.constant 0 : index
    %c0_164 = arith.constant 0 : index
    %206 = vector.load %arg11[%c0_163, %c0_164] : memref<512x36xf32, #tpu.memory_space<vmem>>, vector<512x36xf32>
    %c0_165 = arith.constant 0 : index
    %c0_166 = arith.constant 0 : index
    %207 = vector.load %arg6[%c0_165, %c0_166] : memref<36x8xf32, #tpu.memory_space<vmem>>, vector<36x8xf32>
    %cst_167 = arith.constant dense<0.000000e+00> : vector<512x8xf32>
    %208 = tpu.matmul %206, %207, %cst_167 {dimension_numbers = #tpu.dot_dimension_numbers<[1], [0], [0], [1], [0, 0, 1, 1], [], []>} : vector<512x36xf32>, vector<36x8xf32>, vector<512x8xf32> -> vector<512x8xf32>
    %c0_168 = arith.constant 0 : index
    %c0_169 = arith.constant 0 : index
    %209 = vector.load %arg7[%c0_168, %c0_169] : memref<1x8xf32, #tpu.memory_space<vmem>>, vector<1x8xf32>
    %210 = vector.broadcast %209 : vector<1x8xf32> to vector<512x8xf32>
    %211 = arith.addf %208, %210 : vector<512x8xf32>
    %cst_170 = arith.constant dense<0.000000e+00> : vector<8xf32>
    %212 = vector.multi_reduction <add>, %211, %cst_170 [0] : vector<512x8xf32> to vector<8xf32>
    %213 = vector.shape_cast %212 : vector<8xf32> to vector<1x8xf32>
    %c0_171 = arith.constant 0 : index
    %c0_172 = arith.constant 0 : index
    %c0_173 = arith.constant 0 : index
    %c0_174 = arith.constant 0 : index
    %214 = vector.load %arg9[%c0_171, %c0_172, %c0_173, %c0_174] : memref<1x1x2x8xf32, #tpu.memory_space<vmem>>, vector<1x1x1x8xf32>
    %215 = vector.shape_cast %214 : vector<1x1x1x8xf32> to vector<1x8xf32>
    %216 = vector.shape_cast %213 : vector<1x8xf32> to vector<1x1x1x8xf32>
    tpu.vector_store %arg9[%c0_171, %c0_172, %c0_173, %c0_174], %216 {strides = array<i32>} : memref<1x1x2x8xf32, #tpu.memory_space<vmem>>, vector<1x1x1x8xf32>,
    %217 = arith.mulf %211, %211 : vector<512x8xf32>
    %cst_175 = arith.constant dense<0.000000e+00> : vector<8xf32>
    %218 = vector.multi_reduction <add>, %217, %cst_175 [0] : vector<512x8xf32> to vector<8xf32>
    %219 = vector.shape_cast %218 : vector<8xf32> to vector<1x8xf32>
    %c0_176 = arith.constant 0 : index
    %c0_177 = arith.constant 0 : index
    %c1_178 = arith.constant 1 : index
    %c0_179 = arith.constant 0 : index
    %220 = vector.load %arg9[%c0_176, %c0_177, %c1_178, %c0_179] : memref<1x1x2x8xf32, #tpu.memory_space<vmem>>, vector<1x1x1x8xf32>
    %221 = vector.shape_cast %220 : vector<1x1x1x8xf32> to vector<1x8xf32>
    %222 = vector.shape_cast %219 : vector<1x8xf32> to vector<1x1x1x8xf32>
    tpu.vector_store %arg9[%c0_176, %c0_177, %c1_178, %c0_179], %222 {strides = array<i32>} : memref<1x1x2x8xf32, #tpu.memory_space<vmem>>, vector<1x1x1x8xf32>,
    %223 = tpu.transpose %211, [1, 0] : vector<512x8xf32> -> vector<8x512xf32>
    %c0_180 = arith.constant 0 : index
    %c0_181 = arith.constant 0 : index
    %c0_182 = arith.constant 0 : index
    %224 = vector.load %arg8[%c0_180, %c0_181, %c0_182] : memref<1x8x512xf32, #tpu.memory_space<vmem>>, vector<1x8x512xf32>
    %225 = vector.shape_cast %224 : vector<1x8x512xf32> to vector<8x512xf32>
    %226 = vector.shape_cast %223 : vector<8x512xf32> to vector<1x8x512xf32>
    tpu.vector_store %arg8[%c0_180, %c0_181, %c0_182], %226 {strides = array<i32>} : memref<1x8x512xf32, #tpu.memory_space<vmem>>, vector<1x8x512xf32>,
    return
  }
  func.func @transform_0(%arg0: i32, %arg1: i32) -> (i32, i32, i32, i32) {
    %c0_i32 = arith.constant 0 : i32
    %c0_i32_0 = arith.constant 0 : i32
    %c0_i32_1 = arith.constant 0 : i32
    %c0_i32_2 = arith.constant 0 : i32
    return %arg0, %c0_i32, %c0_i32_0, %c0_i32_1 : i32, i32, i32, i32
  }
  func.func @transform_1(%arg0: i32, %arg1: i32) -> (i32, i32, i32, i32) {
    %c0_i32 = arith.constant 0 : i32
    %c0_i32_0 = arith.constant 0 : i32
    %c0_i32_1 = arith.constant 0 : i32
    %c0_i32_2 = arith.constant 0 : i32
    return %arg0, %c0_i32, %c0_i32_0, %c0_i32_1 : i32, i32, i32, i32
  }
  func.func @transform_2(%arg0: i32, %arg1: i32) -> (i32, i32, i32, i32) {
    %c0_i32 = arith.constant 0 : i32
    %c0_i32_0 = arith.constant 0 : i32
    %c0_i32_1 = arith.constant 0 : i32
    %c0_i32_2 = arith.constant 0 : i32
    return %arg0, %c0_i32, %c0_i32_0, %c0_i32_1 : i32, i32, i32, i32
  }
  func.func @transform_3(%arg0: i32, %arg1: i32) -> (i32, i32, i32, i32) {
    %c0_i32 = arith.constant 0 : i32
    %c0_i32_0 = arith.constant 0 : i32
    %c0_i32_1 = arith.constant 0 : i32
    %c0_i32_2 = arith.constant 0 : i32
    return %arg0, %c0_i32, %c0_i32_0, %c0_i32_1 : i32, i32, i32, i32
  }
  func.func @transform_4(%arg0: i32, %arg1: i32) -> (i32, i32) {
    %c0_i32 = arith.constant 0 : i32
    %c0_i32_0 = arith.constant 0 : i32
    %c0_i32_1 = arith.constant 0 : i32
    return %c0_i32, %c0_i32_0 : i32, i32
  }
  func.func @transform_5(%arg0: i32, %arg1: i32) -> (i32, i32) {
    %c0_i32 = arith.constant 0 : i32
    %c0_i32_0 = arith.constant 0 : i32
    %c0_i32_1 = arith.constant 0 : i32
    return %c0_i32, %c0_i32_0 : i32, i32
  }
  func.func @transform_6(%arg0: i32, %arg1: i32) -> (i32, i32, i32) {
    %c0_i32 = arith.constant 0 : i32
    %c0_i32_0 = arith.constant 0 : i32
    return %arg0, %c0_i32, %arg1 : i32, i32, i32
  }
  func.func @transform_7(%arg0: i32, %arg1: i32) -> (i32, i32, i32, i32) {
    %c0_i32 = arith.constant 0 : i32
    %c0_i32_0 = arith.constant 0 : i32
    %c0_i32_1 = arith.constant 0 : i32
    return %arg0, %arg1, %c0_i32, %c0_i32_0 : i32, i32, i32, i32
  }
}

</mosaic_0001>

<bundles_post_ra>
// kernel: tpu_custom_call.1
= control target key start
LH: loop header
LB: loop body
LE: loop exit
PB: predicated region body
PF: predicated region fallthrough
CT: control target
= control target key end

     0   :  { %s9546_s0 = inlined_call_operand.vmem [shape: f32[2,16,16,4], index: 0, kind: input, shape index: {}]   ;;  %s9547_s1 = inlined_call_operand.vmem [shape: f32[2,16,16,4], index: 1, kind: input, shape index: {}]   ;;  %s9548_s2 = inlined_call_operand.vmem [shape: f32[2,16,16,4], index: 2, kind: input, shape index: {}]   ;;  %s9549_s3 = inlined_call_operand.vmem [shape: f32[2,16,16,4], index: 3, kind: input, shape index: {}]   ;;  %s9550_s4 = inlined_call_operand.vmem [shape: f32[36,8], index: 4, kind: input, shape index: {}]   ;;  %s9551_s5 = inlined_call_operand.vmem [shape: f32[1,8], index: 5, kind: input, shape index: {}]   ;;  %s9552_s6 = inlined_call_operand.hbm [shape: f32[2,8,1024], index: 6, kind: output, shape index: {0}]   ;;  %s9553_s7 = inlined_call_operand.hbm [shape: f32[2,2,2,8], index: 7, kind: output, shape index: {1}]  }
   0x1   :  { %9572 = sst [smem:[#allocation27_spill]] %s9546_s0 }
   0x2   :  { %9573 = sst [smem:[#allocation28_spill]] %s9547_s1 }
   0x3   :  { %9574 = sst [smem:[#allocation29_spill]] %s9548_s2 }
   0x4   :  { %9575 = sst [smem:[#allocation30_spill]] %s9549_s3 }
   0x5   :  { %13 = vsyncpa [#allocation5], 0 }
   0x6   :  { %15 = vsyncpa [#allocation5 + $0x1], 0 }
   0x7   :  { %16 = vsyncpa [#allocation7], 0 }
   0x8   :  { %18 = vsyncpa [#allocation7 + $0x1], 0  ;;  %s6478_s24 = smov 0   ;;  %s6480_s25 = smov 0  }
   0x9   :  { %s6482_s26 = smov 0   ;;  %s6484_s27 = smov 0  }
   0xa   :  { %s6486_s28 = smov 0   ;;  %s6488_s29 = smov 0  }
   0xb   :  { %s6490_s30 = smov 0   ;;  %s6492_s8 = smov 0  }
   0xc LB: > { %s5918_s9 = sadd.s32 4294967295, %s6425_s8   ;;  %s5919_s10 = sadd.s32 4294967294, %s6425_s8   ;;  %s6425_s8 = sphi %s6492_s8, %s24_s8   ;;  %s6421_s30 = sphi %s6490_s30, %s9623_s30   ;;  %s6417_s29 = sphi %s6488_s29, %s9622_s29   ;;  %s6413_s28 = sphi %s6486_s28, %s9621_s28   ;;  %s6409_s27 = sphi %s6484_s27, %s9620_s27   ;;  %s6405_s26 = sphi %s6482_s26, %s9619_s26   ;;  %s6401_s25 = sphi %s6480_s25, %s9618_s25   ;;  %s6397_s24 = sphi %s6478_s24, %s9617_s24  }
   0xd   : > { %s33_s11 = sadd.s32 1, %s6417_s29  ;;  %s36_s12 = sadd.s32 1, %s6421_s30 }
   0xe   : > { %p34_p0 = scmp.ge.s32.totalorder %s33_s11, 2  ;;  %p201_p1 = scmp.ne.s32.totalorder %s6405_s26, %s6401_s25 }
   0xf   : > { %p202_p2 = scmp.eq.s32.totalorder %s5918_s9, 3  ;;  %p207_p5 = scmp.ne.s32.totalorder %s6401_s25, %s6397_s24 }
  0x10   : > { %s9625_s11 = smov (%p34_p0, %s33_s11), 0  ;;  %s9627_s12 = smov (!%p34_p0, %s36_s12), %s6421_s30 }
  0x11   : > { %s187_s13 = ssub.s32 %s6417_s29, %s9625_s11  ;;  %p6529_p3 = por %p202_p2, %p201_p1 }
  0x12   : > { %p38_p4 = scmp.ge.s32.totalorder %s9627_s12, 2  ;;  %p208_p6 = scmp.eq.s32.totalorder %s5919_s10, 3 }
  0x13   : > { %p5922_p7 = scmp.ge.s32.totalorder %s6425_s8, 1  ;;  %p292_p9 = scmp.lt.s32.totalorder %s6425_s8, 5 }
  0x14   : > { %s9629_s12 = smov (%p38_p4, %s9627_s12), 0  ;;  %p6538_p8 = por %p208_p6, %p207_p5 }
  0x15   : > { %9577 = sst [smem:[#allocation10_spill]] %s9629_s12  ;;  %s186_s16 = ssub.s32 %s6421_s30, %s9629_s12 }
  0x16   : > { %s191_s17 = sadd.s32 1, %s6405_s26  ;;  %s188_s18 = sor.u32 %s187_s13, %s186_s16 }
  0x17   : > { %p293_p10 = pnand %p5922_p7, %p292_p9  ;;  %p189_p11 = scmp.eq.s32.totalorder %s188_s18, 0 }
  0x19   : > { %s6547_s19 = scalar_select %p189_p11, %s6405_s26, %s191_s17  }
  0x1a   : > { %296 = sbr.rel (%p293_p10) target bundleno = 1690 (0x69a), region = 44 }
  0x21   : > { %p344_p12 = scmp.lt.s32.totalorder %s6413_s28, 1  ;;  %s6551_s20 = sshll.u32 %s6409_s27, 7  ;;  %vm759_vm0 = vcmask 24576   ;;  %v6427_v0 = vmov 0.0   ;;  %vm943_vm1 = vcmask 28676   ;;  %vm980_vm2 = vcmask 29701  }
  0x22   : > { %s9555_s21 = sshll.u32 %s6409_s27, 3  ;;  %p743_p13 = scmp.gt.s32.totalorder %s6409_s27, 0  ;;  %761 = vst.msk [vmem:[#allocation2 + $0x28] sm:$0x1] %vm759_vm0, %v6427_v0  ;;  %760 = vst.msk [vmem:[#allocation2] sm:$0x1] %vm759_vm0, %v6427_v0 }
  0x23   : > { %s345_s22 = scalar_select %p344_p12, %s6413_s28, 1  ;;  %762 = vst.msk [vmem:[#allocation2 + $0x50] sm:$0x1] %vm759_vm0, %v6427_v0  ;;  %763 = vst.msk [vmem:[#allocation2 + $0x78] sm:$0x1] %vm759_vm0, %v6427_v0  ;;  %vm1017_vm3 = vcmask 30726  }
  0x24   : > { %s6557_s23 = sadd.s32 4294967295, %s9555_s21  ;;  %s9579_s0 = sld [smem:[#allocation27_spill]]  ;;  %764 = vst.msk [vmem:[#allocation2 + $0xa0] sm:$0x1] %vm759_vm0, %v6427_v0  ;;  %765 = vst.msk [vmem:[#allocation2 + $0xc8] sm:$0x1] %vm759_vm0, %v6427_v0 }
  0x25   : > { %s6560_s9 = sshll.u32 %s345_s22, 8  ;;  %p676_p0 = scmp.gt.s32.totalorder %s6557_s23, 0  ;;  %766 = vst.msk [vmem:[#allocation2 + $0xf0] sm:$0x1] %vm759_vm0, %v6427_v0  ;;  %767 = vst.msk [vmem:[#allocation2 + $0x118] sm:$0x1] %vm759_vm0, %v6427_v0 }
  0x26   : > { %s9580_s1 = sld [smem:[#allocation28_spill]]  ;;  %768 = vst.msk [vmem:[#allocation2 + $0x140] sm:$0x1] %vm759_vm0, %v6427_v0  ;;  %769 = vst.msk [vmem:[#allocation2 + $0x168] sm:$0x1] %vm759_vm0, %v6427_v0  ;;  %s9581_s2 = sld [smem:[#allocation29_spill]] }
  0x27   : > { %770 = vst.msk [vmem:[#allocation2 + $0x190] sm:$0x1] %vm759_vm0, %v6427_v0  ;;  %771 = vst.msk [vmem:[#allocation2 + $0x1b8] sm:$0x1] %vm759_vm0, %v6427_v0  ;;  %s9582_s3 = sld [smem:[#allocation30_spill]]  ;;  %s9631_s23 = smov (!%p676_p0, %s6557_s23), 0 }
  0x28   : > { %772 = vst.msk [vmem:[#allocation2 + $0x1e0] sm:$0x1] %vm759_vm0, %v6427_v0  ;;  %773 = vst.msk [vmem:[#allocation2 + $0x208] sm:$0x1] %vm759_vm0, %v6427_v0  ;;  %vm1054_vm4 = vcmask 31751   ;;  %vm832_vm5 = vcmask 25601  }
  0x29   : > { %774 = vst.msk [vmem:[#allocation2 + $0x230] sm:$0x1] %vm759_vm0, %v6427_v0  ;;  %775 = vst.msk [vmem:[#allocation2 + $0x258] sm:$0x1] %vm759_vm0, %v6427_v0  ;;  %vm869_vm6 = vcmask 26626   ;;  %vm906_vm7 = vcmask 27651  }
  0x2a   : > { %s6567_s16 = scalar_lea.vmem %s9579_s0, %s6560_s9  ;;  %776 = vst.msk [vmem:[#allocation2 + $0x280] sm:$0x1] %vm759_vm0, %v6427_v0  ;;  %777 = vst.msk [vmem:[#allocation2 + $0x2a8] sm:$0x1] %vm759_vm0, %v6427_v0  ;;  %vm1443_vm8 = vcmask 31744   ;;  %vm1828_vm9 = vcmask 64544  }
  0x2b   : > { %778 = vst.msk [vmem:[#allocation2 + $0x21] sm:$0x1] %vm759_vm0, %v6427_v0  ;;  %779 = vst.msk [vmem:[#allocation2 + $0x49] sm:$0x1] %vm759_vm0, %v6427_v0  ;;  %s6625_s0 = scalar_lea.vmem %s6567_s16, %s6551_s20  ;;  %vm2213_vm10 = vcmask 97344   ;;  %vm2599_vm11 = vcmask 130144  }
  0x2c   : > { %s6573_s12 = scalar_lea.vmem %s9580_s1, %s6560_s9  ;;  %780 = vst.msk [vmem:[#allocation2 + $0x71] sm:$0x1] %vm759_vm0, %v6427_v0  ;;  %781 = vst.msk [vmem:[#allocation2 + $0x99] sm:$0x1] %vm759_vm0, %v6427_v0  ;;  %s6615_s13 = scalar_lea.vmem %s9581_s2, %s6560_s9  ;;  %v368_v1 = vld [vmem:[%s6625_s0] sm:$0xff]  ;;  %v369_v3 = vld [vmem:[%s6625_s0 + $0x8] sm:$0xff] }
  0x2d   : > { %782 = vst.msk [vmem:[#allocation2 + $0xc1] sm:$0x1] %vm759_vm0, %v6427_v0  ;;  %783 = vst.msk [vmem:[#allocation2 + $0xe9] sm:$0x1] %vm759_vm0, %v6427_v0  ;;  %s6621_s21 = scalar_lea.vmem %s9582_s3, %s6560_s9  ;;  %s6629_s1 = scalar_lea.vmem %s6573_s12, %s6551_s20  ;;  %v384_v4 = vmax.f32 %v368_v1, 0.0  ;;  %v385_v5 = vmax.f32 %v369_v3, 0.0 }
  0x2e   : > { %784 = vst.msk [vmem:[#allocation2 + $0x111] sm:$0x1] %vm759_vm0, %v6427_v0  ;;  %785 = vst.msk [vmem:[#allocation2 + $0x139] sm:$0x1] %vm759_vm0, %v6427_v0  ;;  %v401_v2 = vld [vmem:[%s6629_s1] sm:$0xff]  ;;  %s6635_s22 = scalar_lea.vmem %s6615_s13, %s6551_s20  ;;  %s6639_s10 = scalar_lea.vmem %s6621_s21, %s6551_s20  ;;  %v402_v6 = vld [vmem:[%s6629_s1 + $0x8] sm:$0xff] }
  0x2f   : > { %786 = vst.msk [vmem:[#allocation2 + $0x161] sm:$0x1] %vm759_vm0, %v6427_v0  ;;  %787 = vst.msk [vmem:[#allocation2 + $0x189] sm:$0x1] %vm759_vm0, %v6427_v0  ;;  %v418_v7 = vld [vmem:[%s6635_s22] sm:$0xff]  ;;  %v419_v8 = vld [vmem:[%s6635_s22 + $0x8] sm:$0xff]  ;;  %v451_v10 = vsub.f32 %v384_v4, %v401_v2  ;;  %v515_v11 = vadd.f32 %v401_v2, %v384_v4  ;;  %v452_v12 = vsub.f32 %v385_v5, %v402_v6 }
  0x30   : > { %788 = vst.msk [vmem:[#allocation2 + $0x1b1] sm:$0x1] %vm759_vm0, %v6427_v0  ;;  %789 = vst.msk [vmem:[#allocation2 + $0x1d9] sm:$0x1] %vm759_vm0, %v6427_v0  ;;  %v6649_v9 = vld [vmem:[%s6625_s0 + $0x10] sm:$0xff]  ;;  %v516_v13 = vadd.f32 %v402_v6, %v385_v5  ;;  %s6651_s20 = sshll.u32 %s9631_s23, 4 }
  0x31   : > { %790 = vst.msk [vmem:[#allocation2 + $0x201] sm:$0x1] %vm759_vm0, %v6427_v0  ;;  %791 = vst.msk [vmem:[#allocation2 + $0x229] sm:$0x1] %vm759_vm0, %v6427_v0  ;;  %v435_v14 = vld [vmem:[%s6639_s10] sm:$0xff]  ;;  %v436_v15 = vld [vmem:[%s6639_s10 + $0x8] sm:$0xff]  ;;  %v467_v17 = vsub.f32 %v451_v10, %v418_v7  ;;  %v531_v18 = vsub.f32 %v515_v11, %v418_v7  ;;  %v468_v19 = vsub.f32 %v452_v12, %v419_v8  ;;  %s679_s17 = scalar_lea.vmem %s6567_s16, %s6651_s20  ;;  %s6670_s23 = scalar_lea.vmem %s6573_s12, %s6651_s20 }
  0x32   : > { %792 = vst.msk [vmem:[#allocation2 + $0x251] sm:$0x1] %vm759_vm0, %v6427_v0  ;;  %793 = vst.msk [vmem:[#allocation2 + $0x279] sm:$0x1] %vm759_vm0, %v6427_v0  ;;  %v386_v16 = vmax.f32 %v6649_v9, 0.0  ;;  %v532_v20 = vsub.f32 %v516_v13, %v419_v8  ;;  %v579_v21 = vadd.f32 %v451_v10, %v418_v7  ;;  %v627_v22 = vadd.f32 %v515_v11, %v418_v7  ;;  %v403_v29 = vld [vmem:[%s6629_s1 + $0x10] sm:$0xff] }
  0x33   : > { %794 = vst.msk [vmem:[#allocation2 + $0x2a1] sm:$0x1] %vm759_vm0, %v6427_v0  ;;  %795 = vst.msk [vmem:[#allocation2 + $0x2c9] sm:$0x1] %vm759_vm0, %v6427_v0  ;;  %s6658_s9 = scalar_select %p743_p13, 1, 0  ;;  %v580_v23 = vadd.f32 %v452_v12, %v419_v8  ;;  %v628_v24 = vadd.f32 %v516_v13, %v419_v8  ;;  %v483_v25 = vadd.f32 %v467_v17, %v435_v14 }
  0x34   : > { %v547_v26 = vsub.f32 %v531_v18, %v435_v14  ;;  %v484_v27 = vadd.f32 %v468_v19, %v436_v15  ;;  %v548_v28 = vsub.f32 %v532_v20, %v436_v15  ;;  %v595_v30 = vsub.f32 %v579_v21, %v435_v14  ;;  %v6664_v34 = vld [vmem:[%s6625_s0 + $0x18] sm:$0xff]  ;;  %v6666_v35 = vld [vmem:[%s679_s17 + $0x8] sm:$0xff]  ;;  %v6673_v36 = vld [vmem:[%s679_s17] sm:$0xff]  ;;  %s6693_s17 = scalar_lea.vmem %s6615_s13, %s6651_s20  ;;  %p746_p2 = scmp.lt.s32.totalorder %s6409_s27, 1 }
  0x35   : > { %v643_v31 = vadd.f32 %v627_v22, %v435_v14  ;;  %v596_v32 = vsub.f32 %v580_v23, %v436_v15  ;;  %v644_v33 = vadd.f32 %v628_v24, %v436_v15  ;;  %s745_s18 = scvt.s32.f32 %s6658_s9  ;;  %v499_v37 = vmul.f32 0.5, %v483_v25  ;;  %v6676_v41 = vld [vmem:[%s6625_s0 + $0x20] sm:$0xff]  ;;  %v6679_v42 = vld [vmem:[%s6625_s0 + $0x28] sm:$0xff]  ;;  %v6686_v47 = vld [vmem:[%s6635_s22 + $0x10] sm:$0xff]  ;;  %s6433_s9 = smov 24  }
  0x36   : > { %v563_v38 = vmul.f32 0.5, %v547_v26  ;;  %v500_v39 = vmul.f32 0.5, %v484_v27  ;;  %v564_v40 = vmul.f32 0.5, %v548_v28  ;;  %v611_v43 = vmul.f32 0.5, %v595_v30  ;;  %v6689_v48 = vld [vmem:[%s6629_s1 + $0x18] sm:$0xff]  ;;  %v686_v53 = vld [vmem:[%s6670_s23 + $0x8] sm:$0xff] }
  0x37   : > { %v659_v44 = vmul.f32 0.5, %v643_v31  ;;  %v6681_v45 = vmul.f32 0.5, %v596_v32  ;;  %v6683_v46 = vmul.f32 0.5, %v644_v33  ;;  %945 = vst.msk [vmem:[#allocation2 + $0x2d] sm:$0x10] %vm943_vm1, %v499_v37  ;;  %v6729_v49 = vsub.f32 %v386_v16, %v403_v29  ;;  %v685_v54 = vld [vmem:[%s6670_s23] sm:$0xff]  ;;  %s690_s23 = scalar_lea.vmem %s6621_s21, %s6651_s20 }
  0x38   : > { %963 = vst.msk [vmem:[#allocation2 + $0x2e] sm:$0x10] %vm943_vm1, %v563_v38  ;;  %1236 = vst.msk [vmem:[#allocation2 + $0x3d] sm:$0x10] %vm943_vm1, %v500_v39  ;;  %v6733_v50 = vadd.f32 %v403_v29, %v386_v16  ;;  %v387_v51 = vmax.f32 %v6664_v34, 0.0  ;;  %v683_v52 = vmax.f32 %v6666_v35, 0.0  ;;  %v6797_v57 = vstv %s745_s18 }
  0x39   : > { %982 = vst.msk [vmem:[#allocation2 + $0x2e] sm:$0x20] %vm980_vm2, %v499_v37  ;;  %1000 = vst.msk [vmem:[#allocation2 + $0x2f] sm:$0x20] %vm980_vm2, %v563_v38  ;;  %v6788_v55 = vld [vmem:[%s6639_s10 + $0x10] sm:$0xff]  ;;  %v6791_v56 = vld [vmem:[%s6635_s22 + $0x18] sm:$0xff]  ;;  %v469_v61 = vsub.f32 %v6729_v49, %v6686_v47  ;;  %v581_v30 = vadd.f32 %v6729_v49, %v6686_v47 }
  0x3a   : > { %1019 = vst.msk [vmem:[#allocation2 + $0x2f] sm:$0x40] %vm1017_vm3, %v499_v37  ;;  %1037 = vst.msk [vmem:[#allocation2 + $0x30] sm:$0x40] %vm1017_vm3, %v563_v38  ;;  %v682_v58 = vmax.f32 %v6673_v36, 0.0  ;;  %v388_v59 = vmax.f32 %v6676_v41, 0.0  ;;  %v533_v62 = vsub.f32 %v6733_v50, %v6686_v47  ;;  %v6807_v63 = vsub.f32 %v387_v51, %v6689_v48 }
  0x3b   : > { %1056 = vst.msk [vmem:[#allocation2 + $0x30] sm:$0x80] %vm1054_vm4, %v499_v37  ;;  %1074 = vst.msk [vmem:[#allocation2 + $0x31] sm:$0x80] %vm1054_vm4, %v563_v38  ;;  %v389_v60 = vmax.f32 %v6679_v42, 0.0  ;;  %v6810_v0 = vadd.f32 %v6689_v48, %v387_v51  ;;  %v689_v1 = vld [vmem:[%s6693_s17 + $0x8] sm:$0xff]  ;;  %v694_v4 = vsub.f32 %v683_v52, %v686_v53  ;;  %v702_v5 = vadd.f32 %v686_v53, %v683_v52 }
  0x3c   : > { %797 = vst.msk [vmem:[#allocation2 + $0x29] sm:$0x1] %vm759_vm0, %v499_v37  ;;  %815 = vst.msk [vmem:[#allocation2 + $0x2a] sm:$0x1] %vm759_vm0, %v563_v38  ;;  %v688_v2 = vld [vmem:[%s6693_s17] sm:$0xff]  ;;  %v6815_v3 = vld [vmem:[%s6639_s10 + $0x18] sm:$0xff]  ;;  %v693_v6 = vsub.f32 %v682_v58, %v685_v54  ;;  %v701_v7 = vadd.f32 %v685_v54, %v682_v58  ;;  %v485_v8 = vadd.f32 %v469_v61, %v6788_v55 }
  0x3d   : > { %834 = vst.msk [vmem:[#allocation2 + $0x2a] sm:$0x2] %vm832_vm5, %v499_v37  ;;  %852 = vst.msk [vmem:[#allocation2 + $0x2b] sm:$0x2] %vm832_vm5, %v563_v38  ;;  %v549_v9 = vsub.f32 %v533_v62, %v6788_v55  ;;  %v470_v10 = vsub.f32 %v6807_v63, %v6791_v56  ;;  %v534_v11 = vsub.f32 %v6810_v0, %v6791_v56  ;;  %v692_v12 = vld [vmem:[%s690_s23 + $0x8] sm:$0xff]  ;;  %v691_v13 = vld [vmem:[%s690_s23] sm:$0xff] }
  0x3e   : > { %871 = vst.msk [vmem:[#allocation2 + $0x2b] sm:$0x4] %vm869_vm6, %v499_v37  ;;  %889 = vst.msk [vmem:[#allocation2 + $0x2c] sm:$0x4] %vm869_vm6, %v563_v38  ;;  %v696_v14 = vadd.f32 %v694_v4, %v689_v1  ;;  %v704_v15 = vadd.f32 %v702_v5, %v689_v1  ;;  %v695_v16 = vadd.f32 %v693_v6, %v688_v2  ;;  %v501_v18 = vmul.f32 0.5, %v485_v8  ;;  %s6428_s20 = smov 4  }
  0x3f   : > { %908 = vst.msk [vmem:[#allocation2 + $0x2c] sm:$0x8] %vm906_vm7, %v499_v37  ;;  %926 = vst.msk [vmem:[#allocation2 + $0x2d] sm:$0x8] %vm906_vm7, %v563_v38  ;;  %v703_v17 = vadd.f32 %v701_v7, %v688_v2  ;;  %v565_v19 = vmul.f32 0.5, %v549_v9  ;;  %v486_v20 = vadd.f32 %v470_v10, %v6815_v3  ;;  %v550_v21 = vsub.f32 %v534_v11, %v6815_v3  ;;  %v6881_v51 = vld [vmem:[%s6625_s0 + $0x30] sm:$0xff] }
  0x40   : > { %1254 = vst.msk [vmem:[#allocation2 + $0x3e] sm:$0x10] %vm943_vm1, %v564_v40  ;;  %946 = vst.msk [vmem:[#allocation2 + $0x55] sm:$0x10] %vm943_vm1, %v611_v43  ;;  %v698_v24 = vsub.f32 %v696_v14, %v692_v12  ;;  %v706_v25 = vadd.f32 %v704_v15, %v692_v12  ;;  %v697_v26 = vsub.f32 %v695_v16, %v691_v13  ;;  %v6884_v52 = vld [vmem:[%s6625_s0 + $0x38] sm:$0xff]  ;;  %v6892_v58 = vld [vmem:[%s6639_s10 + $0x20] sm:$0xff] }
  0x41   : > { %1272 = vst.msk [vmem:[#allocation2 + $0x3e] sm:$0x20] %vm980_vm2, %v500_v39  ;;  %1290 = vst.msk [vmem:[#allocation2 + $0x3f] sm:$0x20] %vm980_vm2, %v564_v40  ;;  %v705_v27 = vadd.f32 %v703_v17, %v691_v13  ;;  %v502_v28 = vmul.f32 0.5, %v486_v20  ;;  %v566_v29 = vmul.f32 0.5, %v550_v21  ;;  %v629_v31 = vadd.f32 %v6733_v50, %v6686_v47 }
  0x42   : > { %1308 = vst.msk [vmem:[#allocation2 + $0x3f] sm:$0x40] %vm1017_vm3, %v500_v39  ;;  %1326 = vst.msk [vmem:[#allocation2 + $0x40] sm:$0x40] %vm1017_vm3, %v564_v40  ;;  %v1513_v22 = vld [vmem:[#allocation2 + $0x31] sm:$0xff]  ;;  %v700_v34 = vmul.f32 0.5, %v698_v24  ;;  %v597_v38 = vsub.f32 %v581_v30, %v6788_v55 }
  0x43   : > { %1344 = vst.msk [vmem:[#allocation2 + $0x40] sm:$0x80] %vm1054_vm4, %v500_v39  ;;  %1362 = vst.msk [vmem:[#allocation2 + $0x41] sm:$0x80] %vm1054_vm4, %v564_v40  ;;  %1646 = vrot.lane.b32.xlu1 %v1513_v22, %s6428_s20  ;;  %v708_v35 = vmul.f32 0.5, %v706_v25  ;;  %v699_v36 = vmul.f32 0.5, %v697_v26 }
  0x44   : > { %1092 = vst.msk [vmem:[#allocation2 + $0x39] sm:$0x1] %vm759_vm0, %v500_v39  ;;  %1110 = vst.msk [vmem:[#allocation2 + $0x3a] sm:$0x1] %vm759_vm0, %v564_v40  ;;  %v707_v37 = vmul.f32 0.5, %v705_v27  ;;  %v6878_v50 = vld [vmem:[%s6635_s22 + $0x20] sm:$0xff] }
  0x45   : > { %1128 = vst.msk [vmem:[#allocation2 + $0x3a] sm:$0x2] %vm832_vm5, %v500_v39  ;;  %1146 = vst.msk [vmem:[#allocation2 + $0x3b] sm:$0x2] %vm832_vm5, %v564_v40  ;;  %v756_v47 = vmul.f32 %v6797_v57, %v708_v35  ;;  %v750_v48 = vmul.f32 %v6797_v57, %v699_v36  ;;  %v613_v53 = vmul.f32 0.5, %v597_v38  ;;  %v6944_v4 = vld [vmem:[%s6625_s0 + $0x40] sm:$0xff] }
  0x46   : > { %1164 = vst.msk [vmem:[#allocation2 + $0x3b] sm:$0x4] %vm869_vm6, %v500_v39  ;;  %1182 = vst.msk [vmem:[#allocation2 + $0x3c] sm:$0x4] %vm869_vm6, %v564_v40  ;;  %v1512_v23 = vld [vmem:[#allocation2 + $0x29] sm:$0xff]  ;;  %v755_v49 = vmul.f32 %v6797_v57, %v707_v37  ;;  %v391_v5 = vmax.f32 %v6884_v52, 0.0 }
  0x47   : > { %1200 = vst.msk [vmem:[#allocation2 + $0x3c] sm:$0x8] %vm906_vm7, %v500_v39  ;;  %1218 = vst.msk [vmem:[#allocation2 + $0x3d] sm:$0x8] %vm906_vm7, %v564_v40  ;;  %1644 = vrot.lane.b32.xlu0 %v1512_v23, %s6428_s20  ;;  %v645_v39 = vadd.f32 %v629_v31, %v6788_v55  ;;  %v6867_v40 = vadd.f32 %v6807_v63, %v6791_v56  ;;  %v1384_v61 = vld [vmem:[#allocation2 + $0x30] sm:$0xff]  ;;  %v1383_v6 = vld [vmem:[#allocation2 + $0x28] sm:$0xff] }
  0x48   : > { %964 = vst.msk [vmem:[#allocation2 + $0x56] sm:$0x10] %vm943_vm1, %v659_v44  ;;  %1237 = vst.msk [vmem:[#allocation2 + $0x65] sm:$0x10] %vm943_vm1, %v6681_v45  ;;  %v392_v15 = vmax.f32 %v6944_v4, 0.0  ;;  %v407_v23 = vld [vmem:[%s6629_s1 + $0x30] sm:$0xff] }
  0x49   : > { %983 = vst.msk [vmem:[#allocation2 + $0x56] sm:$0x20] %vm980_vm2, %v611_v43  ;;  %1001 = vst.msk [vmem:[#allocation2 + $0x57] sm:$0x20] %vm980_vm2, %v659_v44  ;;  %v661_v54 = vmul.f32 0.5, %v645_v39  ;;  %v598_v55 = vsub.f32 %v6867_v40, %v6815_v3  ;;  %v7017_v35 = vld [vmem:[%s6629_s1 + $0x40] sm:$0xff] }
  0x4a   : > { %1020 = vst.msk [vmem:[#allocation2 + $0x57] sm:$0x40] %vm1017_vm3, %v611_v43  ;;  %1038 = vst.msk [vmem:[#allocation2 + $0x58] sm:$0x40] %vm1017_vm3, %v659_v44  ;;  %v1515_v32 = vld [vmem:[#allocation2 + $0x41] sm:$0xff]  ;;  %v441_v52 = vld [vmem:[%s6639_s10 + $0x30] sm:$0xff] }
  0x4b   : > { %1057 = vst.msk [vmem:[#allocation2 + $0x58] sm:$0x80] %vm1054_vm4, %v611_v43  ;;  %1075 = vst.msk [vmem:[#allocation2 + $0x59] sm:$0x80] %vm1054_vm4, %v659_v44  ;;  %1650 = vrot.lane.b32.xlu1 %v1515_v32, %s6428_s20  ;;  %v614_v41 = vmul.f32 0.5, %v598_v55  ;;  %v7020_v36 = vld [vmem:[%s6625_s0 + $0x48] sm:$0xff]  ;;  %v7122_v55 = vsub.f32 %v392_v15, %v7017_v35 }
  0x4c   : > { %798 = vst.msk [vmem:[#allocation2 + $0x51] sm:$0x1] %vm759_vm0, %v611_v43  ;;  %816 = vst.msk [vmem:[#allocation2 + $0x52] sm:$0x1] %vm759_vm0, %v659_v44  ;;  %vm2984_vm12 = vcmask 162944   ;;  %vm3369_vm13 = vcmask 195744  }
  0x4d   : > { %835 = vst.msk [vmem:[#allocation2 + $0x52] sm:$0x2] %vm832_vm5, %v611_v43  ;;  %853 = vst.msk [vmem:[#allocation2 + $0x53] sm:$0x2] %vm832_vm5, %v659_v44  ;;  %s6434_s18 = smov 28   ;;  %vm4859_vm14 = vcmask 1043456  }
  0x4e   : > { %872 = vst.msk [vmem:[#allocation2 + $0x53] sm:$0x4] %vm869_vm6, %v611_v43  ;;  %890 = vst.msk [vmem:[#allocation2 + $0x54] sm:$0x4] %vm869_vm6, %v659_v44  ;;  %v1514_v33 = vld [vmem:[#allocation2 + $0x39] sm:$0xff]  ;;  %vm3755_vm15 = vcmask 228544  }
  0x4f   : > { %909 = vst.msk [vmem:[#allocation2 + $0x54] sm:$0x8] %vm906_vm7, %v611_v43  ;;  %927 = vst.msk [vmem:[#allocation2 + $0x55] sm:$0x8] %vm906_vm7, %v659_v44  ;;  %v630_v43 = vadd.f32 %v6810_v0, %v6791_v56  ;;  %v405_v44 = vld [vmem:[%s6629_s1 + $0x20] sm:$0xff]  ;;  %1648 = vrot.lane.b32.xlu0 %v1514_v33, %s6428_s20  ;;  %v7000_v16 = vld [vmem:[#allocation2 + $0x38] sm:$0xff] }
  0x50   : > { %1255 = vst.msk [vmem:[#allocation2 + $0x66] sm:$0x10] %vm943_vm1, %v6683_v46  ;;  %947 = vst.msk [vmem:[#allocation2 + $0x7d] sm:$0x10] %vm943_vm1, %v501_v18  ;;  %v455_v0 = vsub.f32 %v388_v59, %v405_v44  ;;  %v519_v1 = vadd.f32 %v405_v44, %v388_v59  ;;  %v440_v59 = vld [vmem:[%s6639_s10 + $0x28] sm:$0xff]  ;;  %v6972_v11 = vld [vmem:[#allocation2 + $0x40] sm:$0xff] }
  0x51   : > { %1273 = vst.msk [vmem:[#allocation2 + $0x66] sm:$0x20] %vm980_vm2, %v6681_v45  ;;  %1291 = vst.msk [vmem:[#allocation2 + $0x67] sm:$0x20] %vm980_vm2, %v6683_v46  ;;  %v646_v56 = vadd.f32 %v630_v43, %v6815_v3  ;;  %v7031_v43 = vld [vmem:[%s6635_s22 + $0x30] sm:$0xff]  ;;  %v7034_v44 = vld [vmem:[%s6635_s22 + $0x38] sm:$0xff] }
  0x52   : > { %1309 = vst.msk [vmem:[#allocation2 + $0x67] sm:$0x40] %vm1017_vm3, %v6681_v45  ;;  %1327 = vst.msk [vmem:[#allocation2 + $0x68] sm:$0x40] %vm1017_vm3, %v6683_v46  ;;  %v6897_v62 = vld [vmem:[#allocation2 + $0x59] sm:$0xff]  ;;  %v471_v7 = vsub.f32 %v455_v0, %v6878_v50  ;;  %v535_v8 = vsub.f32 %v519_v1, %v6878_v50  ;;  %v583_v12 = vadd.f32 %v455_v0, %v6878_v50 }
  0x53   : > { %1345 = vst.msk [vmem:[#allocation2 + $0x68] sm:$0x80] %vm1054_vm4, %v6681_v45  ;;  %1363 = vst.msk [vmem:[#allocation2 + $0x69] sm:$0x80] %vm1054_vm4, %v6683_v46  ;;  %v662_v42 = vmul.f32 0.5, %v646_v56  ;;  %1654 = vrot.lane.b32.xlu1 %v6897_v62, %s6428_s20  ;;  %v631_v13 = vadd.f32 %v519_v1, %v6878_v50  ;;  %v7127_v56 = vadd.f32 %v7017_v35, %v392_v15 }
  0x54   : > { %1093 = vst.msk [vmem:[#allocation2 + $0x61] sm:$0x1] %vm759_vm0, %v6681_v45  ;;  %1111 = vst.msk [vmem:[#allocation2 + $0x62] sm:$0x1] %vm759_vm0, %v6683_v46  ;;  %v551_v20 = vsub.f32 %v535_v8, %v6892_v58  ;;  %v599_v24 = vsub.f32 %v583_v12, %v6892_v58 }
  0x55   : > { %1129 = vst.msk [vmem:[#allocation2 + $0x62] sm:$0x2] %vm832_vm5, %v6681_v45  ;;  %1147 = vst.msk [vmem:[#allocation2 + $0x63] sm:$0x2] %vm832_vm5, %v6683_v46  ;;  %v647_v25 = vadd.f32 %v631_v13, %v6892_v58 }
  0x56   : > { %1165 = vst.msk [vmem:[#allocation2 + $0x63] sm:$0x4] %vm869_vm6, %v6681_v45  ;;  %1183 = vst.msk [vmem:[#allocation2 + $0x64] sm:$0x4] %vm869_vm6, %v6683_v46  ;;  %v6899_v63 = vld [vmem:[#allocation2 + $0x51] sm:$0xff]  ;;  %v567_v32 = vmul.f32 0.5, %v551_v20 }
  0x57   : > { %1201 = vst.msk [vmem:[#allocation2 + $0x64] sm:$0x8] %vm906_vm7, %v6681_v45  ;;  %1219 = vst.msk [vmem:[#allocation2 + $0x65] sm:$0x8] %vm906_vm7, %v6683_v46  ;;  %v406_v45 = vld [vmem:[%s6629_s1 + $0x28] sm:$0xff]  ;;  %v751_v46 = vmul.f32 %v6797_v57, %v700_v34  ;;  %1652 = vrot.lane.b32.xlu0 %v6899_v63, %s6428_s20  ;;  %v7014_v30 = vld [vmem:[#allocation2 + $0x50] sm:$0xff] }
  0x58   : > { %965 = vst.msk [vmem:[#allocation2 + $0x7e] sm:$0x10] %vm943_vm1, %v565_v19  ;;  %1238 = vst.msk [vmem:[#allocation2 + $0x8d] sm:$0x10] %vm943_vm1, %v502_v28  ;;  %v6895_v57 = vld [vmem:[%s6635_s22 + $0x28] sm:$0xff]  ;;  %v456_v2 = vsub.f32 %v389_v60, %v406_v45  ;;  %v6941_v3 = vadd.f32 %v406_v45, %v389_v60  ;;  %v390_v60 = vmax.f32 %v6881_v51, 0.0 }
  0x59   : > { %984 = vst.msk [vmem:[#allocation2 + $0x7e] sm:$0x20] %vm980_vm2, %v501_v18  ;;  %1002 = vst.msk [vmem:[#allocation2 + $0x7f] sm:$0x20] %vm980_vm2, %v565_v19  ;;  %v615_v37 = vmul.f32 0.5, %v599_v24  ;;  %v663_v38 = vmul.f32 0.5, %v647_v25 }
  0x5a   : > { %1021 = vst.msk [vmem:[#allocation2 + $0x7f] sm:$0x40] %vm1017_vm3, %v501_v18  ;;  %1039 = vst.msk [vmem:[#allocation2 + $0x80] sm:$0x40] %vm1017_vm3, %v565_v19  ;;  %v472_v9 = vsub.f32 %v456_v2, %v6895_v57  ;;  %v536_v10 = vsub.f32 %v6941_v3, %v6895_v57  ;;  %v584_v14 = vadd.f32 %v456_v2, %v6895_v57  ;;  %v1519_v17 = vld [vmem:[#allocation2 + $0x69] sm:$0xff] }
  0x5b   : > { %1058 = vst.msk [vmem:[#allocation2 + $0x80] sm:$0x80] %vm1054_vm4, %v501_v18  ;;  %1076 = vst.msk [vmem:[#allocation2 + $0x81] sm:$0x80] %vm1054_vm4, %v565_v19  ;;  %v632_v27 = vadd.f32 %v6941_v3, %v6895_v57  ;;  %1658 = vrot.lane.b32.xlu1 %v1519_v17, %s6428_s20  ;;  %v410_v17 = vld [vmem:[%s6629_s1 + $0x48] sm:$0xff]  ;;  %v7178_v24 = vld [vmem:[%s6629_s1 + $0x50] sm:$0xff] }
  0x5c   : > { %799 = vst.msk [vmem:[#allocation2 + $0x79] sm:$0x1] %vm759_vm0, %v501_v18  ;;  %817 = vst.msk [vmem:[#allocation2 + $0x7a] sm:$0x1] %vm759_vm0, %v565_v19  ;;  %v488_v21 = vadd.f32 %v472_v9, %v440_v59  ;;  %v552_v22 = vsub.f32 %v536_v10, %v440_v59  ;;  %v600_v26 = vsub.f32 %v584_v14, %v440_v59 }
  0x5d   : > { %836 = vst.msk [vmem:[#allocation2 + $0x7a] sm:$0x2] %vm832_vm5, %v501_v18  ;;  %854 = vst.msk [vmem:[#allocation2 + $0x7b] sm:$0x2] %vm832_vm5, %v565_v19  ;;  %v648_v40 = vadd.f32 %v632_v27, %v440_v59 }
  0x5e   : > { %873 = vst.msk [vmem:[#allocation2 + $0x7b] sm:$0x4] %vm869_vm6, %v501_v18  ;;  %891 = vst.msk [vmem:[#allocation2 + $0x7c] sm:$0x4] %vm869_vm6, %v565_v19  ;;  %v504_v33 = vmul.f32 0.5, %v488_v21  ;;  %v568_v34 = vmul.f32 0.5, %v552_v22 }
  0x5f   : > { %910 = vst.msk [vmem:[#allocation2 + $0x7c] sm:$0x8] %vm906_vm7, %v501_v18  ;;  %928 = vst.msk [vmem:[#allocation2 + $0x7d] sm:$0x8] %vm906_vm7, %v565_v19  ;;  %v1518_v18 = vld [vmem:[#allocation2 + $0x61] sm:$0xff]  ;;  %v487_v19 = vadd.f32 %v471_v7, %v6892_v58  ;;  %v7028_v39 = vmul.f32 0.5, %v600_v26 }
  0x60   : > { %1256 = vst.msk [vmem:[#allocation2 + $0x8e] sm:$0x10] %vm943_vm1, %v566_v29  ;;  %1235 = vst.msk [vmem:[#allocation2 + $0x15] sm:$0x10] %vm943_vm1, %v751_v46  ;;  %1656 = vrot.lane.b32.xlu0 %v1518_v18, %s6428_s20  ;;  %v664_v51 = vmul.f32 0.5, %v648_v40  ;;  %v393_v58 = vmax.f32 %v7020_v36, 0.0 }
  0x61   : > { %1274 = vst.msk [vmem:[#allocation2 + $0x8e] sm:$0x20] %vm980_vm2, %v502_v28  ;;  %1292 = vst.msk [vmem:[#allocation2 + $0x8f] sm:$0x20] %vm980_vm2, %v566_v29  ;;  %v503_v31 = vmul.f32 0.5, %v487_v19  ;;  %v7130_v57 = vld [vmem:[#allocation2 + $0x68] sm:$0xff] }
  0x62   : > { %1310 = vst.msk [vmem:[#allocation2 + $0x8f] sm:$0x40] %vm1017_vm3, %v502_v28  ;;  %1328 = vst.msk [vmem:[#allocation2 + $0x90] sm:$0x40] %vm1017_vm3, %v566_v29  ;;  %v7036_v45 = vld [vmem:[#allocation2 + $0x81] sm:$0xff]  ;;  %v7239_v40 = vadd.f32 %v410_v17, %v393_v58 }
  0x63   : > { %1346 = vst.msk [vmem:[#allocation2 + $0x90] sm:$0x80] %vm1054_vm4, %v502_v28  ;;  %1364 = vst.msk [vmem:[#allocation2 + $0x91] sm:$0x80] %vm1054_vm4, %v566_v29  ;;  %v7139_v1 = vld [vmem:[#allocation2 + $0x60] sm:$0xff]  ;;  %1662 = vrot.lane.b32.xlu1 %v7036_v45, %s6428_s20 }
  0x64   : > { %1094 = vst.msk [vmem:[#allocation2 + $0x89] sm:$0x1] %vm759_vm0, %v502_v28  ;;  %1112 = vst.msk [vmem:[#allocation2 + $0x8a] sm:$0x1] %vm759_vm0, %v566_v29 }
  0x65   : > { %1130 = vst.msk [vmem:[#allocation2 + $0x8a] sm:$0x2] %vm832_vm5, %v502_v28  ;;  %1148 = vst.msk [vmem:[#allocation2 + $0x8b] sm:$0x2] %vm832_vm5, %v566_v29 }
  0x66   : > { %1166 = vst.msk [vmem:[#allocation2 + $0x8b] sm:$0x4] %vm869_vm6, %v502_v28  ;;  %1184 = vst.msk [vmem:[#allocation2 + $0x8c] sm:$0x4] %vm869_vm6, %v566_v29  ;;  %v7162_v59 = vld [vmem:[#allocation2 + $0x80] sm:$0xff]  ;;  %v7166_v10 = vld [vmem:[#allocation2 + $0x78] sm:$0xff] }
  0x67   : > { %1202 = vst.msk [vmem:[#allocation2 + $0x8c] sm:$0x8] %vm906_vm7, %v502_v28  ;;  %1220 = vst.msk [vmem:[#allocation2 + $0x8d] sm:$0x8] %vm906_vm7, %v566_v29  ;;  %v408_v28 = vld [vmem:[%s6629_s1 + $0x38] sm:$0xff] }
  0x68   : > { %1091 = vst.msk [vmem:[#allocation2 + $0x11] sm:$0x1] %vm759_vm0, %v751_v46  ;;  %1109 = vst.msk [vmem:[#allocation2 + $0x12] sm:$0x1] %vm759_vm0, %v756_v47  ;;  %v7012_v29 = vld [vmem:[#allocation2 + $0x58] sm:$0xff]  ;;  %v7080_v50 = vadd.f32 %v408_v28, %v391_v5 }
  0x69   : > { %1127 = vst.msk [vmem:[#allocation2 + $0x12] sm:$0x2] %vm832_vm5, %v751_v46  ;;  %1145 = vst.msk [vmem:[#allocation2 + $0x13] sm:$0x2] %vm832_vm5, %v756_v47 }
  0x6a   : > { %1163 = vst.msk [vmem:[#allocation2 + $0x13] sm:$0x4] %vm869_vm6, %v751_v46  ;;  %1181 = vst.msk [vmem:[#allocation2 + $0x14] sm:$0x4] %vm869_vm6, %v756_v47  ;;  %v538_v0 = vsub.f32 %v7080_v50, %v7034_v44  ;;  %v634_v15 = vadd.f32 %v7080_v50, %v7034_v44 }
  0x6b   : > { %1199 = vst.msk [vmem:[#allocation2 + $0x14] sm:$0x8] %vm906_vm7, %v751_v46  ;;  %1217 = vst.msk [vmem:[#allocation2 + $0x15] sm:$0x8] %vm906_vm7, %v756_v47 }
  0x6c   : > { %1253 = vst.msk [vmem:[#allocation2 + $0x16] sm:$0x10] %vm943_vm1, %v756_v47  ;;  %944 = vst.msk [vmem:[#allocation2 + $0x5] sm:$0x10] %vm943_vm1, %v750_v48 }
  0x6d   : > { %1271 = vst.msk [vmem:[#allocation2 + $0x16] sm:$0x20] %vm980_vm2, %v751_v46  ;;  %1289 = vst.msk [vmem:[#allocation2 + $0x17] sm:$0x20] %vm980_vm2, %v756_v47 }
  0x6e   : > { %1307 = vst.msk [vmem:[#allocation2 + $0x17] sm:$0x40] %vm1017_vm3, %v751_v46  ;;  %1325 = vst.msk [vmem:[#allocation2 + $0x18] sm:$0x40] %vm1017_vm3, %v756_v47  ;;  %v7173_v18 = vld [vmem:[#allocation2 + $0x90] sm:$0xff]  ;;  %v7175_v19 = vld [vmem:[#allocation2 + $0x88] sm:$0xff] }
  0x6f   : > { %1343 = vst.msk [vmem:[#allocation2 + $0x18] sm:$0x80] %vm1054_vm4, %v751_v46  ;;  %1361 = vst.msk [vmem:[#allocation2 + $0x19] sm:$0x80] %vm1054_vm4, %v756_v47  ;;  %v7038_v46 = vld [vmem:[#allocation2 + $0x79] sm:$0xff]  ;;  %v457_v47 = vsub.f32 %v390_v60, %v407_v23 }
  0x70   : > { %796 = vst.msk [vmem:[#allocation2 + $0x1] sm:$0x1] %vm759_vm0, %v750_v48  ;;  %814 = vst.msk [vmem:[#allocation2 + $0x2] sm:$0x1] %vm759_vm0, %v755_v49  ;;  %1660 = vrot.lane.b32.xlu0 %v7038_v46, %s6428_s20 }
  0x71   : > { %833 = vst.msk [vmem:[#allocation2 + $0x2] sm:$0x2] %vm832_vm5, %v750_v48  ;;  %851 = vst.msk [vmem:[#allocation2 + $0x3] sm:$0x2] %vm832_vm5, %v755_v49  ;;  %v585_v2 = vadd.f32 %v457_v47, %v7031_v43 }
  0x72   : > { %870 = vst.msk [vmem:[#allocation2 + $0x3] sm:$0x4] %vm869_vm6, %v750_v48  ;;  %888 = vst.msk [vmem:[#allocation2 + $0x4] sm:$0x4] %vm869_vm6, %v755_v49 }
  0x73   : > { %907 = vst.msk [vmem:[#allocation2 + $0x4] sm:$0x8] %vm906_vm7, %v750_v48  ;;  %925 = vst.msk [vmem:[#allocation2 + $0x5] sm:$0x8] %vm906_vm7, %v755_v49  ;;  %v601_v12 = vsub.f32 %v585_v2, %v441_v52 }
  0x74   : > { %962 = vst.msk [vmem:[#allocation2 + $0x6] sm:$0x10] %vm943_vm1, %v755_v49  ;;  %948 = vst.msk [vmem:[#allocation2 + $0xa5] sm:$0x10] %vm943_vm1, %v613_v53 }
  0x75   : > { %981 = vst.msk [vmem:[#allocation2 + $0x6] sm:$0x20] %vm980_vm2, %v750_v48  ;;  %999 = vst.msk [vmem:[#allocation2 + $0x7] sm:$0x20] %vm980_vm2, %v755_v49  ;;  %v617_v26 = vmul.f32 0.5, %v601_v12 }
  0x76   : > { %1018 = vst.msk [vmem:[#allocation2 + $0x7] sm:$0x40] %vm1017_vm3, %v750_v48  ;;  %1036 = vst.msk [vmem:[#allocation2 + $0x8] sm:$0x40] %vm1017_vm3, %v755_v49 }
  0x77   : > { %1055 = vst.msk [vmem:[#allocation2 + $0x8] sm:$0x80] %vm1054_vm4, %v750_v48  ;;  %1073 = vst.msk [vmem:[#allocation2 + $0x9] sm:$0x80] %vm1054_vm4, %v755_v49  ;;  %v521_v48 = vadd.f32 %v407_v23, %v390_v60  ;;  %v458_v49 = vsub.f32 %v391_v5, %v408_v28  ;;  %v1523_v60 = vld [vmem:[#allocation2 + $0x91] sm:$0xff]  ;;  %v1522_v5 = vld [vmem:[#allocation2 + $0x89] sm:$0xff] }
  0x78   : > { %1449 = vst.msk [vmem:[#allocation3 + $0x28] sm:$0xff] %vm1443_vm8, %v1384_v61  ;;  %1448 = vst.msk [vmem:[#allocation3 + $0x20] sm:$0xff] %vm1443_vm8, %v1383_v6  ;;  %v473_v61 = vsub.f32 %v457_v47, %v7031_v43  ;;  %1666 = vrot.lane.b32.xlu1 %v1523_v60, %s6428_s20  ;;  %1664 = vrot.lane.b32.xlu0 %v1522_v5, %s6428_s20 }
  0x79   : > { %966 = vst.msk [vmem:[#allocation2 + $0xa6] sm:$0x10] %vm943_vm1, %v661_v54  ;;  %1239 = vst.msk [vmem:[#allocation2 + $0xb5] sm:$0x10] %vm943_vm1, %v614_v41  ;;  %v537_v62 = vsub.f32 %v521_v48, %v7031_v43  ;;  %v474_v63 = vsub.f32 %v458_v49, %v7034_v44  ;;  %v633_v3 = vadd.f32 %v521_v48, %v7031_v43  ;;  %v7242_v43 = vld [vmem:[%s6625_s0 + $0x58] sm:$0xff] }
  0x7a   : > { %985 = vst.msk [vmem:[#allocation2 + $0xa6] sm:$0x20] %vm980_vm2, %v613_v53  ;;  %1003 = vst.msk [vmem:[#allocation2 + $0xa7] sm:$0x20] %vm980_vm2, %v661_v54  ;;  %v586_v4 = vadd.f32 %v458_v49, %v7034_v44  ;;  %v489_v6 = vadd.f32 %v473_v61, %v441_v52  ;;  %v7197_v35 = vld [vmem:[#allocation2 + $0x1] sm:$0xff] }
  0x7b   : > { %1022 = vst.msk [vmem:[#allocation2 + $0xa7] sm:$0x40] %vm1017_vm3, %v613_v53  ;;  %1040 = vst.msk [vmem:[#allocation2 + $0xa8] sm:$0x40] %vm1017_vm3, %v661_v54  ;;  %v553_v7 = vsub.f32 %v537_v62, %v441_v52  ;;  %v649_v13 = vadd.f32 %v633_v3, %v441_v52  ;;  %v7277_v44 = vld [vmem:[%s6639_s10 + $0x48] sm:$0xff]  ;;  %v1379_v48 = vld [vmem:[#allocation2] sm:$0xff] }
  0x7c   : > { %1059 = vst.msk [vmem:[#allocation2 + $0xa8] sm:$0x80] %vm1054_vm4, %v613_v53  ;;  %1077 = vst.msk [vmem:[#allocation2 + $0xa9] sm:$0x80] %vm1054_vm4, %v661_v54  ;;  %v505_v20 = vmul.f32 0.5, %v489_v6  ;;  %1636 = vrot.lane.b32.xlu0 %v7197_v35, %s6428_s20 }
  0x7d   : > { %800 = vst.msk [vmem:[#allocation2 + $0xa1] sm:$0x1] %vm759_vm0, %v613_v53  ;;  %818 = vst.msk [vmem:[#allocation2 + $0xa2] sm:$0x1] %vm759_vm0, %v661_v54  ;;  %v569_v21 = vmul.f32 0.5, %v553_v7  ;;  %v665_v27 = vmul.f32 0.5, %v649_v13 }
  0x7e   : > { %837 = vst.msk [vmem:[#allocation2 + $0xa2] sm:$0x2] %vm832_vm5, %v613_v53  ;;  %855 = vst.msk [vmem:[#allocation2 + $0xa3] sm:$0x2] %vm832_vm5, %v661_v54  ;;  %v1381_v25 = vld [vmem:[#allocation2 + $0x10] sm:$0xff]  ;;  %v1380_v2 = vld [vmem:[#allocation2 + $0x8] sm:$0xff] }
  0x7f   : > { %874 = vst.msk [vmem:[#allocation2 + $0xa3] sm:$0x4] %vm869_vm6, %v613_v53  ;;  %892 = vst.msk [vmem:[#allocation2 + $0xa4] sm:$0x4] %vm869_vm6, %v661_v54  ;;  %v1509_v3 = vld [vmem:[#allocation2 + $0x9] sm:$0xff] }
  0x80   : > { %911 = vst.msk [vmem:[#allocation2 + $0xa4] sm:$0x8] %vm906_vm7, %v613_v53  ;;  %929 = vst.msk [vmem:[#allocation2 + $0xa5] sm:$0x8] %vm906_vm7, %v661_v54  ;;  %v7083_v53 = vld [vmem:[%s6625_s0 + $0x50] sm:$0xff]  ;;  %v442_v54 = vld [vmem:[%s6639_s10 + $0x38] sm:$0xff]  ;;  %1638 = vrot.lane.b32.xlu0 %v1509_v3, %s6428_s20 }
  0x81   : > { %1257 = vst.msk [vmem:[#allocation2 + $0xb6] sm:$0x10] %vm943_vm1, %v662_v42  ;;  %949 = vst.msk [vmem:[#allocation2 + $0xcd] sm:$0x10] %vm943_vm1, %v503_v31  ;;  %v490_v8 = vadd.f32 %v474_v63, %v442_v54  ;;  %v554_v9 = vsub.f32 %v538_v0, %v442_v54  ;;  %v602_v14 = vsub.f32 %v586_v4, %v442_v54  ;;  %v395_v63 = vmax.f32 %v7242_v43, 0.0  ;;  %v7316_v0 = vld [vmem:[%s6629_s1 + $0x58] sm:$0xff] }
  0x82   : > { %1275 = vst.msk [vmem:[#allocation2 + $0xb6] sm:$0x20] %vm980_vm2, %v614_v41  ;;  %1293 = vst.msk [vmem:[#allocation2 + $0xb7] sm:$0x20] %vm980_vm2, %v662_v42 }
  0x83   : > { %1311 = vst.msk [vmem:[#allocation2 + $0xb7] sm:$0x40] %vm1017_vm3, %v614_v41  ;;  %1329 = vst.msk [vmem:[#allocation2 + $0xb8] sm:$0x40] %vm1017_vm3, %v662_v42  ;;  %v506_v22 = vmul.f32 0.5, %v490_v8  ;;  %v570_v23 = vmul.f32 0.5, %v554_v9 }
  0x84   : > { %1347 = vst.msk [vmem:[#allocation2 + $0xb8] sm:$0x80] %vm1054_vm4, %v614_v41  ;;  %1365 = vst.msk [vmem:[#allocation2 + $0xb9] sm:$0x80] %vm1054_vm4, %v662_v42  ;;  %v7186_v28 = vmul.f32 0.5, %v602_v14  ;;  %v7331_v14 = vld [vmem:[%s6639_s10 + $0x50] sm:$0xff] }
  0x85   : > { %1095 = vst.msk [vmem:[#allocation2 + $0xb1] sm:$0x1] %vm759_vm0, %v614_v41  ;;  %1113 = vst.msk [vmem:[#allocation2 + $0xb2] sm:$0x1] %vm759_vm0, %v662_v42 }
  0x86   : > { %1131 = vst.msk [vmem:[#allocation2 + $0xb2] sm:$0x2] %vm832_vm5, %v614_v41  ;;  %1149 = vst.msk [vmem:[#allocation2 + $0xb3] sm:$0x2] %vm832_vm5, %v662_v42 }
  0x87   : > { %1167 = vst.msk [vmem:[#allocation2 + $0xb3] sm:$0x4] %vm869_vm6, %v614_v41  ;;  %1185 = vst.msk [vmem:[#allocation2 + $0xb4] sm:$0x4] %vm869_vm6, %v662_v42  ;;  %v7322_v6 = vld [vmem:[#allocation2 + $0xa8] sm:$0xff]  ;;  %v7324_v7 = vld [vmem:[#allocation2 + $0xa0] sm:$0xff] }
  0x88   : > { %1203 = vst.msk [vmem:[#allocation2 + $0xb4] sm:$0x8] %vm906_vm7, %v614_v41  ;;  %1221 = vst.msk [vmem:[#allocation2 + $0xb5] sm:$0x8] %vm906_vm7, %v662_v42  ;;  %v7157_v41 = vld [vmem:[%s6635_s22 + $0x40] sm:$0xff]  ;;  %v394_v42 = vmax.f32 %v7083_v53, 0.0 }
  0x89   : > { %1451 = vst.msk [vmem:[#allocation3 + $0x38] sm:$0xff] %vm1443_vm8, %v6972_v11  ;;  %1450 = vst.msk [vmem:[#allocation3 + $0x30] sm:$0xff] %vm1443_vm8, %v7000_v16  ;;  %v587_v45 = vadd.f32 %v7122_v55, %v7157_v41  ;;  %v635_v46 = vadd.f32 %v7127_v56, %v7157_v41 }
  0x8a   : > { %1453 = vst.msk [vmem:[#allocation3 + $0x48] sm:$0xff] %vm1443_vm8, %v7012_v29  ;;  %1452 = vst.msk [vmem:[#allocation3 + $0x40] sm:$0xff] %vm1443_vm8, %v7014_v30  ;;  %v7286_v47 = vsub.f32 %v394_v42, %v7178_v24 }
  0x8b   : > { %967 = vst.msk [vmem:[#allocation2 + $0xce] sm:$0x10] %vm943_vm1, %v567_v32  ;;  %1240 = vst.msk [vmem:[#allocation2 + $0xdd] sm:$0x10] %vm943_vm1, %v504_v33 }
  0x8c   : > { %986 = vst.msk [vmem:[#allocation2 + $0xce] sm:$0x20] %vm980_vm2, %v503_v31  ;;  %1004 = vst.msk [vmem:[#allocation2 + $0xcf] sm:$0x20] %vm980_vm2, %v567_v32 }
  0x8d   : > { %1023 = vst.msk [vmem:[#allocation2 + $0xcf] sm:$0x40] %vm1017_vm3, %v503_v31  ;;  %1041 = vst.msk [vmem:[#allocation2 + $0xd0] sm:$0x40] %vm1017_vm3, %v567_v32 }
  0x8e   : > { %1060 = vst.msk [vmem:[#allocation2 + $0xd0] sm:$0x80] %vm1054_vm4, %v503_v31  ;;  %1078 = vst.msk [vmem:[#allocation2 + $0xd1] sm:$0x80] %vm1054_vm4, %v567_v32 }
  0x8f   : > { %801 = vst.msk [vmem:[#allocation2 + $0xc9] sm:$0x1] %vm759_vm0, %v503_v31  ;;  %819 = vst.msk [vmem:[#allocation2 + $0xca] sm:$0x1] %vm759_vm0, %v567_v32 }
  0x90   : > { %838 = vst.msk [vmem:[#allocation2 + $0xca] sm:$0x2] %vm832_vm5, %v503_v31  ;;  %856 = vst.msk [vmem:[#allocation2 + $0xcb] sm:$0x2] %vm832_vm5, %v567_v32 }
  0x91   : > { %875 = vst.msk [vmem:[#allocation2 + $0xcb] sm:$0x4] %vm869_vm6, %v503_v31  ;;  %893 = vst.msk [vmem:[#allocation2 + $0xcc] sm:$0x4] %vm869_vm6, %v567_v32 }
  0x92   : > { %912 = vst.msk [vmem:[#allocation2 + $0xcc] sm:$0x8] %vm906_vm7, %v503_v31  ;;  %930 = vst.msk [vmem:[#allocation2 + $0xcd] sm:$0x8] %vm906_vm7, %v567_v32  ;;  %v650_v31 = vadd.f32 %v634_v15, %v442_v54  ;;  %v7189_v32 = vld [vmem:[%s6639_s10 + $0x40] sm:$0xff]  ;;  %v7294_v54 = vld [vmem:[%s6635_s22 + $0x50] sm:$0xff] }
  0x93   : > { %1258 = vst.msk [vmem:[#allocation2 + $0xde] sm:$0x10] %vm943_vm1, %v568_v34  ;;  %950 = vst.msk [vmem:[#allocation2 + $0xf5] sm:$0x10] %vm943_vm1, %v615_v37  ;;  %v651_v61 = vadd.f32 %v635_v46, %v7189_v32  ;;  %v7337_v15 = vld [vmem:[#allocation2 + $0xb8] sm:$0xff]  ;;  %v589_v35 = vadd.f32 %v7286_v47, %v7294_v54 }
  0x94   : > { %1276 = vst.msk [vmem:[#allocation2 + $0xde] sm:$0x20] %vm980_vm2, %v504_v33  ;;  %1294 = vst.msk [vmem:[#allocation2 + $0xdf] sm:$0x20] %vm980_vm2, %v568_v34  ;;  %v666_v36 = vmul.f32 0.5, %v650_v31  ;;  %v1525_v31 = vld [vmem:[#allocation2 + $0xa9] sm:$0xff] }
  0x95   : > { %1312 = vst.msk [vmem:[#allocation2 + $0xdf] sm:$0x40] %vm1017_vm3, %v504_v33  ;;  %1330 = vst.msk [vmem:[#allocation2 + $0xe0] sm:$0x40] %vm1017_vm3, %v568_v34  ;;  %v667_v9 = vmul.f32 0.5, %v651_v61 }
  0x96   : > { %1348 = vst.msk [vmem:[#allocation2 + $0xe0] sm:$0x80] %vm1054_vm4, %v504_v33  ;;  %1366 = vst.msk [vmem:[#allocation2 + $0xe1] sm:$0x80] %vm1054_vm4, %v568_v34 }
  0x97   : > { %1096 = vst.msk [vmem:[#allocation2 + $0xd9] sm:$0x1] %vm759_vm0, %v504_v33  ;;  %1114 = vst.msk [vmem:[#allocation2 + $0xda] sm:$0x1] %vm759_vm0, %v568_v34 }
  0x98   : > { %1132 = vst.msk [vmem:[#allocation2 + $0xda] sm:$0x2] %vm832_vm5, %v504_v33  ;;  %1150 = vst.msk [vmem:[#allocation2 + $0xdb] sm:$0x2] %vm832_vm5, %v568_v34 }
  0x99   : > { %1168 = vst.msk [vmem:[#allocation2 + $0xdb] sm:$0x4] %vm869_vm6, %v504_v33  ;;  %1186 = vst.msk [vmem:[#allocation2 + $0xdc] sm:$0x4] %vm869_vm6, %v568_v34 }
  0x9a   : > { %1204 = vst.msk [vmem:[#allocation2 + $0xdc] sm:$0x8] %vm906_vm7, %v504_v33  ;;  %1222 = vst.msk [vmem:[#allocation2 + $0xdd] sm:$0x8] %vm906_vm7, %v568_v34  ;;  %v7192_v33 = vld [vmem:[%s6635_s22 + $0x48] sm:$0xff]  ;;  %v7195_v34 = vld [vmem:[#allocation2 + $0x11] sm:$0xff] }
  0x9b   : > { %968 = vst.msk [vmem:[#allocation2 + $0xf6] sm:$0x10] %vm943_vm1, %v663_v38  ;;  %1241 = vst.msk [vmem:[#allocation2 + $0x105] sm:$0x10] %vm943_vm1, %v7028_v39  ;;  %v540_v52 = vsub.f32 %v7239_v40, %v7192_v33  ;;  %1640 = vrot.lane.b32.xlu1 %v7195_v34, %s6428_s20  ;;  %v636_v13 = vadd.f32 %v7239_v40, %v7192_v33 }
  0x9c   : > { %987 = vst.msk [vmem:[#allocation2 + $0xf6] sm:$0x20] %vm980_vm2, %v615_v37  ;;  %1005 = vst.msk [vmem:[#allocation2 + $0xf7] sm:$0x20] %vm980_vm2, %v663_v38 }
  0x9d   : > { %1024 = vst.msk [vmem:[#allocation2 + $0xf7] sm:$0x40] %vm1017_vm3, %v615_v37  ;;  %1042 = vst.msk [vmem:[#allocation2 + $0xf8] sm:$0x40] %vm1017_vm3, %v663_v38  ;;  %v556_v5 = vsub.f32 %v540_v52, %v7277_v44  ;;  %v7458_v52 = vld [vmem:[%s6625_s0 + $0x70] sm:$0xff] }
  0x9e   : > { %1061 = vst.msk [vmem:[#allocation2 + $0xf8] sm:$0x80] %vm1054_vm4, %v615_v37  ;;  %1079 = vst.msk [vmem:[#allocation2 + $0xf9] sm:$0x80] %vm1054_vm4, %v663_v38 }
  0x9f   : > { %802 = vst.msk [vmem:[#allocation2 + $0xf1] sm:$0x1] %vm759_vm0, %v615_v37  ;;  %820 = vst.msk [vmem:[#allocation2 + $0xf2] sm:$0x1] %vm759_vm0, %v663_v38 }
  0xa0   : > { %839 = vst.msk [vmem:[#allocation2 + $0xf2] sm:$0x2] %vm832_vm5, %v615_v37  ;;  %857 = vst.msk [vmem:[#allocation2 + $0xf3] sm:$0x2] %vm832_vm5, %v663_v38 }
  0xa1   : > { %876 = vst.msk [vmem:[#allocation2 + $0xf3] sm:$0x4] %vm869_vm6, %v615_v37  ;;  %894 = vst.msk [vmem:[#allocation2 + $0xf4] sm:$0x4] %vm869_vm6, %v663_v38 }
  0xa2   : > { %913 = vst.msk [vmem:[#allocation2 + $0xf4] sm:$0x8] %vm906_vm7, %v615_v37  ;;  %931 = vst.msk [vmem:[#allocation2 + $0xf5] sm:$0x8] %vm906_vm7, %v663_v38  ;;  %v475_v37 = vsub.f32 %v7122_v55, %v7157_v41  ;;  %v539_v38 = vsub.f32 %v7127_v56, %v7157_v41  ;;  %v1382_v55 = vld [vmem:[#allocation2 + $0x18] sm:$0xff] }
  0xa3   : > { %1277 = vst.msk [vmem:[#allocation2 + $0x106] sm:$0x20] %vm980_vm2, %v7028_v39  ;;  %1295 = vst.msk [vmem:[#allocation2 + $0x107] sm:$0x20] %vm980_vm2, %v664_v51  ;;  %v1511_v56 = vld [vmem:[#allocation2 + $0x19] sm:$0xff] }
  0xa4   : > { %1313 = vst.msk [vmem:[#allocation2 + $0x107] sm:$0x40] %vm1017_vm3, %v7028_v39  ;;  %1331 = vst.msk [vmem:[#allocation2 + $0x108] sm:$0x40] %vm1017_vm3, %v664_v51  ;;  %v491_v49 = vadd.f32 %v475_v37, %v7189_v32  ;;  %v555_v50 = vsub.f32 %v539_v38, %v7189_v32  ;;  %1642 = vrot.lane.b32.xlu1 %v1511_v56, %s6428_s20  ;;  %v7429_v38 = vld [vmem:[%s6625_s0 + $0x60] sm:$0xff] }
  0xa5   : > { %1349 = vst.msk [vmem:[#allocation2 + $0x108] sm:$0x80] %vm1054_vm4, %v7028_v39  ;;  %1367 = vst.msk [vmem:[#allocation2 + $0x109] sm:$0x80] %vm1054_vm4, %v664_v51 }
  0xa6   : > { %1097 = vst.msk [vmem:[#allocation2 + $0x101] sm:$0x1] %vm759_vm0, %v7028_v39  ;;  %1115 = vst.msk [vmem:[#allocation2 + $0x102] sm:$0x1] %vm759_vm0, %v664_v51  ;;  %v507_v4 = vmul.f32 0.5, %v491_v49  ;;  %v571_v41 = vmul.f32 0.5, %v555_v50 }
  0xa7   : > { %1133 = vst.msk [vmem:[#allocation2 + $0x102] sm:$0x2] %vm832_vm5, %v7028_v39  ;;  %1151 = vst.msk [vmem:[#allocation2 + $0x103] sm:$0x2] %vm832_vm5, %v664_v51  ;;  %v7452_v50 = vld [vmem:[%s6635_s22 + $0x60] sm:$0xff] }
  0xa8   : > { %1169 = vst.msk [vmem:[#allocation2 + $0x103] sm:$0x4] %vm869_vm6, %v7028_v39  ;;  %1187 = vst.msk [vmem:[#allocation2 + $0x104] sm:$0x4] %vm869_vm6, %v664_v51  ;;  %1670 = vrot.lane.b32.xlu1 %v1525_v31, %s6428_s20 }
  0xa9   : > { %1205 = vst.msk [vmem:[#allocation2 + $0x104] sm:$0x8] %vm906_vm7, %v7028_v39  ;;  %1223 = vst.msk [vmem:[#allocation2 + $0x105] sm:$0x8] %vm906_vm7, %v664_v51  ;;  %v460_v39 = vsub.f32 %v393_v58, %v410_v17  ;;  %v603_v58 = vsub.f32 %v587_v45, %v7189_v32  ;;  %v7339_v17 = vld [vmem:[#allocation2 + $0xb0] sm:$0xff]  ;;  %v1524_v32 = vld [vmem:[#allocation2 + $0xa1] sm:$0xff] }
  0xaa   : > { %1455 = vst.msk [vmem:[#allocation3 + $0x58] sm:$0xff] %vm1443_vm8, %v7130_v57  ;;  %1454 = vst.msk [vmem:[#allocation3 + $0x50] sm:$0xff] %vm1443_vm8, %v7139_v1  ;;  %v7446_v45 = vld [vmem:[#allocation2 + $0xc8] sm:$0xff]  ;;  %1668 = vrot.lane.b32.xlu0 %v1524_v32, %s6428_s20 }
  0xab   : > { %1259 = vst.msk [vmem:[#allocation2 + $0x106] sm:$0x10] %vm943_vm1, %v664_v51  ;;  %951 = vst.msk [vmem:[#allocation2 + $0x11d] sm:$0x10] %vm943_vm1, %v505_v20  ;;  %v476_v51 = vsub.f32 %v460_v39, %v7192_v33  ;;  %v7312_v62 = vadd.f32 %v460_v39, %v7192_v33  ;;  %v619_v8 = vmul.f32 0.5, %v603_v58 }
  0xac   : > { %1457 = vst.msk [vmem:[#allocation3 + $0x68] sm:$0xff] %vm1443_vm8, %v7162_v59  ;;  %1456 = vst.msk [vmem:[#allocation3 + $0x60] sm:$0xff] %vm1443_vm8, %v7166_v10 }
  0xad   : > { %1459 = vst.msk [vmem:[#allocation3 + $0x78] sm:$0xff] %vm1443_vm8, %v7173_v18  ;;  %1458 = vst.msk [vmem:[#allocation3 + $0x70] sm:$0xff] %vm1443_vm8, %v7175_v19  ;;  %v492_v60 = vadd.f32 %v476_v51, %v7277_v44  ;;  %v604_v12 = vsub.f32 %v7312_v62, %v7277_v44  ;;  %v7455_v51 = vld [vmem:[%s6625_s0 + $0x68] sm:$0xff]  ;;  %v396_v62 = vmax.f32 %v7429_v38, 0.0 }
  0xae   : > { %1446 = vst.msk [vmem:[#allocation3 + $0x10] sm:$0xff] %vm1443_vm8, %v1381_v25  ;;  %1444 = vst.msk [vmem:[#allocation3] sm:$0xff] %vm1443_vm8, %v1379_v48  ;;  %v7365_v25 = vld [vmem:[%s6635_s22 + $0x58] sm:$0xff]  ;;  %v605_v48 = vsub.f32 %v589_v35, %v7331_v14 }
  0xaf   : > { %969 = vst.msk [vmem:[#allocation2 + $0x11e] sm:$0x10] %vm943_vm1, %v569_v21  ;;  %1242 = vst.msk [vmem:[#allocation2 + $0x12d] sm:$0x10] %vm943_vm1, %v506_v22  ;;  %v620_v53 = vmul.f32 0.5, %v604_v12 }
  0xb0   : > { %988 = vst.msk [vmem:[#allocation2 + $0x11e] sm:$0x20] %vm980_vm2, %v505_v20  ;;  %1006 = vst.msk [vmem:[#allocation2 + $0x11f] sm:$0x20] %vm980_vm2, %v569_v21 }
  0xb1   : > { %1025 = vst.msk [vmem:[#allocation2 + $0x11f] sm:$0x40] %vm1017_vm3, %v505_v20  ;;  %1043 = vst.msk [vmem:[#allocation2 + $0x120] sm:$0x40] %vm1017_vm3, %v569_v21 }
  0xb2   : > { %1062 = vst.msk [vmem:[#allocation2 + $0x120] sm:$0x80] %vm1054_vm4, %v505_v20  ;;  %1080 = vst.msk [vmem:[#allocation2 + $0x121] sm:$0x80] %vm1054_vm4, %v569_v21 }
  0xb3   : > { %803 = vst.msk [vmem:[#allocation2 + $0x119] sm:$0x1] %vm759_vm0, %v505_v20  ;;  %821 = vst.msk [vmem:[#allocation2 + $0x11a] sm:$0x1] %vm759_vm0, %v569_v21 }
  0xb4   : > { %840 = vst.msk [vmem:[#allocation2 + $0x11a] sm:$0x2] %vm832_vm5, %v505_v20  ;;  %858 = vst.msk [vmem:[#allocation2 + $0x11b] sm:$0x2] %vm832_vm5, %v569_v21 }
  0xb5   : > { %877 = vst.msk [vmem:[#allocation2 + $0x11b] sm:$0x4] %vm869_vm6, %v505_v20  ;;  %895 = vst.msk [vmem:[#allocation2 + $0x11c] sm:$0x4] %vm869_vm6, %v569_v21 }
  0xb6   : > { %914 = vst.msk [vmem:[#allocation2 + $0x11c] sm:$0x8] %vm906_vm7, %v505_v20  ;;  %932 = vst.msk [vmem:[#allocation2 + $0x11d] sm:$0x8] %vm906_vm7, %v569_v21  ;;  %v508_v20 = vmul.f32 0.5, %v492_v60  ;;  %v572_v21 = vmul.f32 0.5, %v556_v5 }
  0xb7   : > { %1260 = vst.msk [vmem:[#allocation2 + $0x12e] sm:$0x10] %vm943_vm1, %v570_v23  ;;  %952 = vst.msk [vmem:[#allocation2 + $0x145] sm:$0x10] %vm943_vm1, %v617_v26  ;;  %v7499_v5 = vld [vmem:[#allocation2 + $0xf8] sm:$0xff] }
  0xb8   : > { %1278 = vst.msk [vmem:[#allocation2 + $0x12e] sm:$0x20] %vm980_vm2, %v506_v22  ;;  %1296 = vst.msk [vmem:[#allocation2 + $0x12f] sm:$0x20] %vm980_vm2, %v570_v23 }
  0xb9   : > { %1314 = vst.msk [vmem:[#allocation2 + $0x12f] sm:$0x40] %vm1017_vm3, %v506_v22  ;;  %1332 = vst.msk [vmem:[#allocation2 + $0x130] sm:$0x40] %vm1017_vm3, %v570_v23 }
  0xba   : > { %1350 = vst.msk [vmem:[#allocation2 + $0x130] sm:$0x80] %vm1054_vm4, %v506_v22  ;;  %1368 = vst.msk [vmem:[#allocation2 + $0x131] sm:$0x80] %vm1054_vm4, %v570_v23 }
  0xbb   : > { %1098 = vst.msk [vmem:[#allocation2 + $0x129] sm:$0x1] %vm759_vm0, %v506_v22  ;;  %1116 = vst.msk [vmem:[#allocation2 + $0x12a] sm:$0x1] %vm759_vm0, %v570_v23 }
  0xbc   : > { %1134 = vst.msk [vmem:[#allocation2 + $0x12a] sm:$0x2] %vm832_vm5, %v506_v22  ;;  %1152 = vst.msk [vmem:[#allocation2 + $0x12b] sm:$0x2] %vm832_vm5, %v570_v23 }
  0xbd   : > { %1170 = vst.msk [vmem:[#allocation2 + $0x12b] sm:$0x4] %vm869_vm6, %v506_v22  ;;  %1188 = vst.msk [vmem:[#allocation2 + $0x12c] sm:$0x4] %vm869_vm6, %v570_v23 }
  0xbe   : > { %1206 = vst.msk [vmem:[#allocation2 + $0x12c] sm:$0x8] %vm906_vm7, %v506_v22  ;;  %1224 = vst.msk [vmem:[#allocation2 + $0x12d] sm:$0x8] %vm906_vm7, %v570_v23  ;;  %v477_v22 = vsub.f32 %v7286_v47, %v7294_v54  ;;  %v7362_v23 = vadd.f32 %v7178_v24, %v394_v42  ;;  %v652_v42 = vadd.f32 %v636_v13, %v7277_v44  ;;  %v7393_v24 = vld [vmem:[%s6639_s10 + $0x58] sm:$0xff]  ;;  %v7444_v44 = vld [vmem:[%s6629_s1 + $0x60] sm:$0xff] }
  0xbf   : > { %970 = vst.msk [vmem:[#allocation2 + $0x146] sm:$0x10] %vm943_vm1, %v665_v27  ;;  %1243 = vst.msk [vmem:[#allocation2 + $0x155] sm:$0x10] %vm943_vm1, %v7186_v28 }
  0xc0   : > { %989 = vst.msk [vmem:[#allocation2 + $0x146] sm:$0x20] %vm980_vm2, %v617_v26  ;;  %1007 = vst.msk [vmem:[#allocation2 + $0x147] sm:$0x20] %vm980_vm2, %v665_v27  ;;  %v493_v33 = vadd.f32 %v477_v22, %v7331_v14  ;;  %v541_v34 = vsub.f32 %v7362_v23, %v7294_v54  ;;  %v637_v37 = vadd.f32 %v7362_v23, %v7294_v54  ;;  %v668_v39 = vmul.f32 0.5, %v652_v42  ;;  %v7462_v54 = vld [vmem:[#allocation2 + $0xe0] sm:$0xff] }
  0xc1   : > { %1026 = vst.msk [vmem:[#allocation2 + $0x147] sm:$0x40] %vm1017_vm3, %v617_v26  ;;  %1044 = vst.msk [vmem:[#allocation2 + $0x148] sm:$0x40] %vm1017_vm3, %v665_v27  ;;  %v7539_v22 = vld [vmem:[%s6639_s10 + $0x60] sm:$0xff]  ;;  %v527_v23 = vadd.f32 %v7444_v44, %v396_v62  ;;  %v7545_v42 = vld [vmem:[%s6629_s1 + $0x70] sm:$0xff] }
  0xc2   : > { %1063 = vst.msk [vmem:[#allocation2 + $0x148] sm:$0x80] %vm1054_vm4, %v617_v26  ;;  %1081 = vst.msk [vmem:[#allocation2 + $0x149] sm:$0x80] %vm1054_vm4, %v665_v27  ;;  %v509_v46 = vmul.f32 0.5, %v493_v33  ;;  %v557_v47 = vsub.f32 %v541_v34, %v7331_v14  ;;  %v653_v49 = vadd.f32 %v637_v37, %v7331_v14  ;;  %v7504_v14 = vsub.f32 %v396_v62, %v7444_v44  ;;  %v1528_v33 = vld [vmem:[#allocation2 + $0xc9] sm:$0xff] }
  0xc3   : > { %804 = vst.msk [vmem:[#allocation2 + $0x141] sm:$0x1] %vm759_vm0, %v617_v26  ;;  %822 = vst.msk [vmem:[#allocation2 + $0x142] sm:$0x1] %vm759_vm0, %v665_v27  ;;  %v543_v35 = vsub.f32 %v527_v23, %v7452_v50 }
  0xc4   : > { %841 = vst.msk [vmem:[#allocation2 + $0x142] sm:$0x2] %vm832_vm5, %v617_v26  ;;  %859 = vst.msk [vmem:[#allocation2 + $0x143] sm:$0x2] %vm832_vm5, %v665_v27  ;;  %v573_v3 = vmul.f32 0.5, %v557_v47  ;;  %v591_v31 = vadd.f32 %v7504_v14, %v7452_v50 }
  0xc5   : > { %878 = vst.msk [vmem:[#allocation2 + $0x143] sm:$0x4] %vm869_vm6, %v617_v26  ;;  %896 = vst.msk [vmem:[#allocation2 + $0x144] sm:$0x4] %vm869_vm6, %v665_v27 }
  0xc6   : > { %915 = vst.msk [vmem:[#allocation2 + $0x144] sm:$0x8] %vm906_vm7, %v617_v26  ;;  %933 = vst.msk [vmem:[#allocation2 + $0x145] sm:$0x8] %vm906_vm7, %v665_v27  ;;  %v7371_v26 = vld [vmem:[#allocation2 + $0xd0] sm:$0xff]  ;;  %v462_v27 = vsub.f32 %v395_v63, %v7316_v0  ;;  %v607_v44 = vsub.f32 %v591_v31, %v7539_v22 }
  0xc7   : > { %1279 = vst.msk [vmem:[#allocation2 + $0x156] sm:$0x20] %vm980_vm2, %v7186_v28  ;;  %1297 = vst.msk [vmem:[#allocation2 + $0x157] sm:$0x20] %vm980_vm2, %v666_v36 }
  0xc8   : > { %1315 = vst.msk [vmem:[#allocation2 + $0x157] sm:$0x40] %vm1017_vm3, %v7186_v28  ;;  %1333 = vst.msk [vmem:[#allocation2 + $0x158] sm:$0x40] %vm1017_vm3, %v666_v36  ;;  %v478_v40 = vsub.f32 %v462_v27, %v7365_v25 }
  0xc9   : > { %1351 = vst.msk [vmem:[#allocation2 + $0x158] sm:$0x80] %vm1054_vm4, %v7186_v28  ;;  %1369 = vst.msk [vmem:[#allocation2 + $0x159] sm:$0x80] %vm1054_vm4, %v666_v36 }
  0xca   : > { %1099 = vst.msk [vmem:[#allocation2 + $0x151] sm:$0x1] %vm759_vm0, %v7186_v28  ;;  %1117 = vst.msk [vmem:[#allocation2 + $0x152] sm:$0x1] %vm759_vm0, %v666_v36  ;;  %v494_v56 = vadd.f32 %v478_v40, %v7393_v24  ;;  %v7585_v40 = vld [vmem:[#allocation2 + $0x100] sm:$0xff] }
  0xcb   : > { %1135 = vst.msk [vmem:[#allocation2 + $0x152] sm:$0x2] %vm832_vm5, %v7186_v28  ;;  %1153 = vst.msk [vmem:[#allocation2 + $0x153] sm:$0x2] %vm832_vm5, %v666_v36 }
  0xcc   : > { %1171 = vst.msk [vmem:[#allocation2 + $0x153] sm:$0x4] %vm869_vm6, %v7186_v28  ;;  %1189 = vst.msk [vmem:[#allocation2 + $0x154] sm:$0x4] %vm869_vm6, %v666_v36 }
  0xcd   : > { %1207 = vst.msk [vmem:[#allocation2 + $0x154] sm:$0x8] %vm906_vm7, %v7186_v28  ;;  %1225 = vst.msk [vmem:[#allocation2 + $0x155] sm:$0x8] %vm906_vm7, %v666_v36  ;;  %v7401_v28 = vadd.f32 %v7316_v0, %v395_v63  ;;  %v7481_v63 = vld [vmem:[%s6625_s0 + $0x78] sm:$0xff]  ;;  %s6429_s0 = smov 8  }
  0xce   : > { %1261 = vst.msk [vmem:[#allocation2 + $0x156] sm:$0x10] %vm943_vm1, %v666_v36  ;;  %953 = vst.msk [vmem:[#allocation2 + $0x16d] sm:$0x10] %vm943_vm1, %v507_v4  ;;  %v590_v36 = vadd.f32 %v462_v27, %v7365_v25  ;;  %v7485_v0 = vld [vmem:[#allocation2 + $0xd8] sm:$0xff]  ;;  %v399_v32 = vmax.f32 %v7481_v63, 0.0 }
  0xcf   : > { %1447 = vst.msk [vmem:[#allocation3 + $0x18] sm:$0xff] %vm1443_vm8, %v1382_v55  ;;  %1445 = vst.msk [vmem:[#allocation3 + $0x8] sm:$0xff] %vm1443_vm8, %v1380_v2  ;;  %v542_v43 = vsub.f32 %v7401_v28, %v7365_v25  ;;  %v7466_v55 = vld [vmem:[#allocation2 + $0xb9] sm:$0xff]  ;;  %v1526_v2 = vld [vmem:[#allocation2 + $0xb1] sm:$0xff]  ;;  %v638_v60 = vadd.f32 %v7401_v28, %v7365_v25  ;;  %v397_v25 = vmax.f32 %v7455_v51, 0.0 }
  0xd0   : > { %1461 = vst.msk [vmem:[#allocation3 + $0x88] sm:$0xff] %vm1443_vm8, %v7322_v6  ;;  %1460 = vst.msk [vmem:[#allocation3 + $0x80] sm:$0xff] %vm1443_vm8, %v7324_v7  ;;  %v606_v61 = vsub.f32 %v590_v36, %v7393_v24  ;;  %1674 = vrot.lane.b32.xlu1 %v7466_v55, %s6428_s20  ;;  %1672 = vrot.lane.b32.xlu0 %v1526_v2, %s6428_s20  ;;  %v1529_v27 = vld [vmem:[#allocation2 + $0xd1] sm:$0xff]  ;;  %v431_v28 = vld [vmem:[%s6635_s22 + $0x68] sm:$0xff] }
  0xd1   : > { %971 = vst.msk [vmem:[#allocation2 + $0x16e] sm:$0x10] %vm943_vm1, %v571_v41  ;;  %954 = vst.msk [vmem:[#allocation2 + $0x195] sm:$0x10] %vm943_vm1, %v619_v8  ;;  %v558_v58 = vsub.f32 %v542_v43, %v7393_v24  ;;  %v7589_v36 = vld [vmem:[%s6639_s10 + $0x68] sm:$0xff]  ;;  %v7612_v55 = vld [vmem:[%s6635_s22 + $0x70] sm:$0xff] }
  0xd2   : > { %990 = vst.msk [vmem:[#allocation2 + $0x16e] sm:$0x20] %vm980_vm2, %v507_v4  ;;  %1008 = vst.msk [vmem:[#allocation2 + $0x16f] sm:$0x20] %vm980_vm2, %v571_v41  ;;  %v622_v13 = vmul.f32 0.5, %v606_v61  ;;  %v7618_v2 = vld [vmem:[%s6639_s10 + $0x70] sm:$0xff] }
  0xd3   : > { %1027 = vst.msk [vmem:[#allocation2 + $0x16f] sm:$0x40] %vm1017_vm3, %v507_v4  ;;  %1045 = vst.msk [vmem:[#allocation2 + $0x170] sm:$0x40] %vm1017_vm3, %v571_v41  ;;  %v574_v12 = vmul.f32 0.5, %v558_v58  ;;  %v623_v58 = vmul.f32 0.5, %v607_v44 }
  0xd4   : > { %1064 = vst.msk [vmem:[#allocation2 + $0x170] sm:$0x80] %vm1054_vm4, %v507_v4  ;;  %1082 = vst.msk [vmem:[#allocation2 + $0x171] sm:$0x80] %vm1054_vm4, %v571_v41  ;;  %1678 = vrot.lane.b32.xlu1 %v1529_v27, %s6428_s20  ;;  %1676 = vrot.lane.b32.xlu0 %v1528_v33, %s6428_s20  ;;  %v7655_v27 = vld [vmem:[%s6635_s22 + $0x78] sm:$0xff] }
  0xd5   : > { %805 = vst.msk [vmem:[#allocation2 + $0x169] sm:$0x1] %vm759_vm0, %v507_v4  ;;  %823 = vst.msk [vmem:[#allocation2 + $0x16a] sm:$0x1] %vm759_vm0, %v571_v41 }
  0xd6   : > { %842 = vst.msk [vmem:[#allocation2 + $0x16a] sm:$0x2] %vm832_vm5, %v507_v4  ;;  %860 = vst.msk [vmem:[#allocation2 + $0x16b] sm:$0x2] %vm832_vm5, %v571_v41 }
  0xd7   : > { %879 = vst.msk [vmem:[#allocation2 + $0x16b] sm:$0x4] %vm869_vm6, %v507_v4  ;;  %897 = vst.msk [vmem:[#allocation2 + $0x16c] sm:$0x4] %vm869_vm6, %v571_v41 }
  0xd8   : > { %916 = vst.msk [vmem:[#allocation2 + $0x16c] sm:$0x8] %vm906_vm7, %v507_v4  ;;  %934 = vst.msk [vmem:[#allocation2 + $0x16d] sm:$0x8] %vm906_vm7, %v571_v41  ;;  %v621_v4 = vmul.f32 0.5, %v605_v48  ;;  %v669_v41 = vmul.f32 0.5, %v653_v49  ;;  %v559_v48 = vsub.f32 %v543_v35, %v7539_v22 }
  0xd9   : > { %1463 = vst.msk [vmem:[#allocation3 + $0x98] sm:$0xff] %vm1443_vm8, %v7337_v15  ;;  %1462 = vst.msk [vmem:[#allocation3 + $0x90] sm:$0xff] %vm1443_vm8, %v7339_v17 }
  0xda   : > { %972 = vst.msk [vmem:[#allocation2 + $0x196] sm:$0x10] %vm943_vm1, %v667_v9  ;;  %1244 = vst.msk [vmem:[#allocation2 + $0x17d] sm:$0x10] %vm943_vm1, %v508_v20 }
  0xdb   : > { %991 = vst.msk [vmem:[#allocation2 + $0x196] sm:$0x20] %vm980_vm2, %v619_v8  ;;  %1009 = vst.msk [vmem:[#allocation2 + $0x197] sm:$0x20] %vm980_vm2, %v667_v9 }
  0xdc   : > { %1028 = vst.msk [vmem:[#allocation2 + $0x197] sm:$0x40] %vm1017_vm3, %v619_v8  ;;  %1046 = vst.msk [vmem:[#allocation2 + $0x198] sm:$0x40] %vm1017_vm3, %v667_v9 }
  0xdd   : > { %1065 = vst.msk [vmem:[#allocation2 + $0x198] sm:$0x80] %vm1054_vm4, %v619_v8  ;;  %1083 = vst.msk [vmem:[#allocation2 + $0x199] sm:$0x80] %vm1054_vm4, %v667_v9 }
  0xde   : > { %806 = vst.msk [vmem:[#allocation2 + $0x191] sm:$0x1] %vm759_vm0, %v619_v8  ;;  %824 = vst.msk [vmem:[#allocation2 + $0x192] sm:$0x1] %vm759_vm0, %v667_v9 }
  0xdf   : > { %843 = vst.msk [vmem:[#allocation2 + $0x192] sm:$0x2] %vm832_vm5, %v619_v8  ;;  %861 = vst.msk [vmem:[#allocation2 + $0x193] sm:$0x2] %vm832_vm5, %v667_v9 }
  0xe0   : > { %880 = vst.msk [vmem:[#allocation2 + $0x193] sm:$0x4] %vm869_vm6, %v619_v8  ;;  %898 = vst.msk [vmem:[#allocation2 + $0x194] sm:$0x4] %vm869_vm6, %v667_v9 }
  0xe1   : > { %917 = vst.msk [vmem:[#allocation2 + $0x194] sm:$0x8] %vm906_vm7, %v619_v8  ;;  %935 = vst.msk [vmem:[#allocation2 + $0x195] sm:$0x8] %vm906_vm7, %v667_v9  ;;  %v7501_v8 = vld [vmem:[#allocation2 + $0xf0] sm:$0xff]  ;;  %v510_v9 = vmul.f32 0.5, %v494_v56 }
  0xe2   : > { %1465 = vst.msk [vmem:[#allocation3 + $0xa8] sm:$0xff] %vm1443_vm8, %v7371_v26  ;;  %1464 = vst.msk [vmem:[#allocation3 + $0xa0] sm:$0xff] %vm1443_vm8, %v7446_v45 }
  0xe3   : > { %1262 = vst.msk [vmem:[#allocation2 + $0x17e] sm:$0x10] %vm943_vm1, %v572_v21  ;;  %1245 = vst.msk [vmem:[#allocation2 + $0x1a5] sm:$0x10] %vm943_vm1, %v620_v53 }
  0xe4   : > { %1280 = vst.msk [vmem:[#allocation2 + $0x17e] sm:$0x20] %vm980_vm2, %v508_v20  ;;  %1298 = vst.msk [vmem:[#allocation2 + $0x17f] sm:$0x20] %vm980_vm2, %v572_v21 }
  0xe5   : > { %1316 = vst.msk [vmem:[#allocation2 + $0x17f] sm:$0x40] %vm1017_vm3, %v508_v20  ;;  %1334 = vst.msk [vmem:[#allocation2 + $0x180] sm:$0x40] %vm1017_vm3, %v572_v21 }
  0xe6   : > { %1352 = vst.msk [vmem:[#allocation2 + $0x180] sm:$0x80] %vm1054_vm4, %v508_v20  ;;  %1370 = vst.msk [vmem:[#allocation2 + $0x181] sm:$0x80] %vm1054_vm4, %v572_v21 }
  0xe7   : > { %1100 = vst.msk [vmem:[#allocation2 + $0x179] sm:$0x1] %vm759_vm0, %v508_v20  ;;  %1118 = vst.msk [vmem:[#allocation2 + $0x17a] sm:$0x1] %vm759_vm0, %v572_v21 }
  0xe8   : > { %1136 = vst.msk [vmem:[#allocation2 + $0x17a] sm:$0x2] %vm832_vm5, %v508_v20  ;;  %1154 = vst.msk [vmem:[#allocation2 + $0x17b] sm:$0x2] %vm832_vm5, %v572_v21 }
  0xe9   : > { %1172 = vst.msk [vmem:[#allocation2 + $0x17b] sm:$0x4] %vm869_vm6, %v508_v20  ;;  %1190 = vst.msk [vmem:[#allocation2 + $0x17c] sm:$0x4] %vm869_vm6, %v572_v21 }
  0xea   : > { %1208 = vst.msk [vmem:[#allocation2 + $0x17c] sm:$0x8] %vm906_vm7, %v508_v20  ;;  %1226 = vst.msk [vmem:[#allocation2 + $0x17d] sm:$0x8] %vm906_vm7, %v572_v21  ;;  %v7507_v20 = vld [vmem:[%s6629_s1 + $0x68] sm:$0xff]  ;;  %v654_v21 = vadd.f32 %v638_v60, %v7393_v24  ;;  %v479_v24 = vsub.f32 %v7504_v14, %v7452_v50  ;;  %v1530_v60 = vld [vmem:[#allocation2 + $0xd9] sm:$0xff] }
  0xeb   : > { %1281 = vst.msk [vmem:[#allocation2 + $0x1a6] sm:$0x20] %vm980_vm2, %v620_v53  ;;  %1299 = vst.msk [vmem:[#allocation2 + $0x1a7] sm:$0x20] %vm980_vm2, %v668_v39  ;;  %v464_v37 = vsub.f32 %v397_v25, %v7507_v20  ;;  %v528_v38 = vadd.f32 %v7507_v20, %v397_v25  ;;  %v7628_v20 = vld [vmem:[#allocation2 + $0x118] sm:$0xff]  ;;  %1680 = vrot.lane.b32.xlu0 %v1530_v60, %s6428_s20  ;;  %v7786_v60 = vld [vmem:[#allocation2 + $0x150] sm:$0xff] }
  0xec   : > { %1317 = vst.msk [vmem:[#allocation2 + $0x1a7] sm:$0x40] %vm1017_vm3, %v620_v53  ;;  %1335 = vst.msk [vmem:[#allocation2 + $0x1a8] sm:$0x40] %vm1017_vm3, %v668_v39  ;;  %v670_v34 = vmul.f32 0.5, %v654_v21  ;;  %v495_v43 = vadd.f32 %v479_v24, %v7539_v22 }
  0xed   : > { %1353 = vst.msk [vmem:[#allocation2 + $0x1a8] sm:$0x80] %vm1054_vm4, %v620_v53  ;;  %1371 = vst.msk [vmem:[#allocation2 + $0x1a9] sm:$0x80] %vm1054_vm4, %v668_v39  ;;  %v480_v49 = vsub.f32 %v464_v37, %v431_v28  ;;  %v592_v51 = vadd.f32 %v464_v37, %v431_v28  ;;  %v640_v62 = vadd.f32 %v528_v38, %v431_v28  ;;  %v7691_v37 = vld [vmem:[#allocation2 + $0x130] sm:$0xff] }
  0xee   : > { %1101 = vst.msk [vmem:[#allocation2 + $0x1a1] sm:$0x1] %vm759_vm0, %v620_v53  ;;  %1119 = vst.msk [vmem:[#allocation2 + $0x1a2] sm:$0x1] %vm759_vm0, %v668_v39  ;;  %v511_v56 = vmul.f32 0.5, %v495_v43  ;;  %v1532_v43 = vld [vmem:[#allocation2 + $0xf1] sm:$0xff] }
  0xef   : > { %1137 = vst.msk [vmem:[#allocation2 + $0x1a2] sm:$0x2] %vm832_vm5, %v620_v53  ;;  %1155 = vst.msk [vmem:[#allocation2 + $0x1a3] sm:$0x2] %vm832_vm5, %v668_v39  ;;  %v608_v14 = vsub.f32 %v592_v51, %v7589_v36  ;;  %1684 = vrot.lane.b32.xlu0 %v1532_v43, %s6428_s20  ;;  %v7748_v51 = vld [vmem:[#allocation2 + $0x148] sm:$0xff] }
  0xf0   : > { %1173 = vst.msk [vmem:[#allocation2 + $0x1a3] sm:$0x4] %vm869_vm6, %v620_v53  ;;  %1191 = vst.msk [vmem:[#allocation2 + $0x1a4] sm:$0x4] %vm869_vm6, %v668_v39  ;;  %v1544_v43 = vld [vmem:[#allocation2 + $0x169] sm:$0xff] }
  0xf1   : > { %1209 = vst.msk [vmem:[#allocation2 + $0x1a4] sm:$0x8] %vm906_vm7, %v620_v53  ;;  %1227 = vst.msk [vmem:[#allocation2 + $0x1a5] sm:$0x8] %vm906_vm7, %v668_v39  ;;  %v398_v53 = vmax.f32 %v7458_v52, 0.0 }
  0xf2   : > { %1263 = vst.msk [vmem:[#allocation2 + $0x1a6] sm:$0x10] %vm943_vm1, %v668_v39  ;;  %955 = vst.msk [vmem:[#allocation2 + $0x1bd] sm:$0x10] %vm943_vm1, %v509_v46  ;;  %v7583_v39 = vld [vmem:[#allocation2 + $0x108] sm:$0xff] }
  0xf3   : > { %1467 = vst.msk [vmem:[#allocation3 + $0xb8] sm:$0xff] %vm1443_vm8, %v7462_v54  ;;  %1466 = vst.msk [vmem:[#allocation3 + $0xb0] sm:$0xff] %vm1443_vm8, %v7485_v0  ;;  %v7596_v47 = vsub.f32 %v398_v53, %v7545_v42  ;;  %v7652_v25 = vadd.f32 %v7545_v42, %v398_v53  ;;  %v624_v42 = vmul.f32 0.5, %v608_v14  ;;  %v7796_v14 = vld [vmem:[#allocation2 + $0x168] sm:$0xff] }
  0xf4   : > { %992 = vst.msk [vmem:[#allocation2 + $0x1be] sm:$0x20] %vm980_vm2, %v509_v46  ;;  %1010 = vst.msk [vmem:[#allocation2 + $0x1bf] sm:$0x20] %vm980_vm2, %v573_v3 }
  0xf5   : > { %1029 = vst.msk [vmem:[#allocation2 + $0x1bf] sm:$0x40] %vm1017_vm3, %v509_v46  ;;  %1047 = vst.msk [vmem:[#allocation2 + $0x1c0] sm:$0x40] %vm1017_vm3, %v573_v3  ;;  %v545_v33 = vsub.f32 %v7652_v25, %v7612_v55 }
  0xf6   : > { %1066 = vst.msk [vmem:[#allocation2 + $0x1c0] sm:$0x80] %vm1054_vm4, %v509_v46  ;;  %1084 = vst.msk [vmem:[#allocation2 + $0x1c1] sm:$0x80] %vm1054_vm4, %v573_v3 }
  0xf7   : > { %807 = vst.msk [vmem:[#allocation2 + $0x1b9] sm:$0x1] %vm759_vm0, %v509_v46  ;;  %825 = vst.msk [vmem:[#allocation2 + $0x1ba] sm:$0x1] %vm759_vm0, %v573_v3  ;;  %v561_v44 = vsub.f32 %v545_v33, %v7618_v2 }
  0xf8   : > { %844 = vst.msk [vmem:[#allocation2 + $0x1ba] sm:$0x2] %vm832_vm5, %v509_v46  ;;  %862 = vst.msk [vmem:[#allocation2 + $0x1bb] sm:$0x2] %vm832_vm5, %v573_v3 }
  0xf9   : > { %881 = vst.msk [vmem:[#allocation2 + $0x1bb] sm:$0x4] %vm869_vm6, %v509_v46  ;;  %899 = vst.msk [vmem:[#allocation2 + $0x1bc] sm:$0x4] %vm869_vm6, %v573_v3  ;;  %v7822_v33 = vld [vmem:[#allocation2 + $0x1a8] sm:$0xff] }
  0xfa   : > { %918 = vst.msk [vmem:[#allocation2 + $0x1bc] sm:$0x8] %vm906_vm7, %v509_v46  ;;  %936 = vst.msk [vmem:[#allocation2 + $0x1bd] sm:$0x8] %vm906_vm7, %v573_v3  ;;  %v639_v46 = vadd.f32 %v527_v23, %v7452_v50  ;;  %v544_v50 = vsub.f32 %v528_v38, %v431_v28  ;;  %v481_v23 = vsub.f32 %v7596_v47, %v7612_v55  ;;  %v1533_v38 = vld [vmem:[#allocation2 + $0xf9] sm:$0xff]  ;;  %v1535_v55 = vld [vmem:[#allocation2 + $0x109] sm:$0xff] }
  0xfb   : > { %1469 = vst.msk [vmem:[#allocation3 + $0xc8] sm:$0xff] %vm1443_vm8, %v7499_v5  ;;  %1468 = vst.msk [vmem:[#allocation3 + $0xc0] sm:$0xff] %vm1443_vm8, %v7501_v8 }
  0xfc   : > { %973 = vst.msk [vmem:[#allocation2 + $0x1be] sm:$0x10] %vm943_vm1, %v573_v3  ;;  %956 = vst.msk [vmem:[#allocation2 + $0x1e5] sm:$0x10] %vm943_vm1, %v621_v4  ;;  %v655_v61 = vadd.f32 %v639_v46, %v7539_v22  ;;  %v416_v3 = vld [vmem:[%s6629_s1 + $0x78] sm:$0xff]  ;;  %v656_v22 = vadd.f32 %v640_v62, %v7589_v36  ;;  %v497_v31 = vadd.f32 %v481_v23, %v7618_v2  ;;  %v1537_v2 = vld [vmem:[#allocation2 + $0x121] sm:$0xff] }
  0xfd   : > { %974 = vst.msk [vmem:[#allocation2 + $0x1e6] sm:$0x10] %vm943_vm1, %v669_v41  ;;  %1246 = vst.msk [vmem:[#allocation2 + $0x1cd] sm:$0x10] %vm943_vm1, %v510_v9  ;;  %v7669_v24 = vsub.f32 %v399_v32, %v416_v3  ;;  %v7689_v35 = vadd.f32 %v416_v3, %v399_v32  ;;  %v7721_v32 = vld [vmem:[#allocation2 + $0x128] sm:$0xff]  ;;  %v1536_v3 = vld [vmem:[#allocation2 + $0x119] sm:$0xff] }
  0xfe   : > { %993 = vst.msk [vmem:[#allocation2 + $0x1e6] sm:$0x20] %vm980_vm2, %v621_v4  ;;  %1011 = vst.msk [vmem:[#allocation2 + $0x1e7] sm:$0x20] %vm980_vm2, %v669_v41  ;;  %v671_v21 = vmul.f32 0.5, %v655_v61  ;;  %v672_v28 = vmul.f32 0.5, %v656_v22 }
  0xff   : > { %1030 = vst.msk [vmem:[#allocation2 + $0x1e7] sm:$0x40] %vm1017_vm3, %v621_v4  ;;  %1048 = vst.msk [vmem:[#allocation2 + $0x1e8] sm:$0x40] %vm1017_vm3, %v669_v41  ;;  %v482_v63 = vsub.f32 %v7669_v24, %v7655_v27  ;;  %v546_v46 = vsub.f32 %v7689_v35, %v7655_v27  ;;  %v7752_v61 = vld [vmem:[#allocation2 + $0x140] sm:$0xff]  ;;  %v1541_v22 = vld [vmem:[#allocation2 + $0x149] sm:$0xff] }
 0x100   : > { %1067 = vst.msk [vmem:[#allocation2 + $0x1e8] sm:$0x80] %vm1054_vm4, %v621_v4  ;;  %1085 = vst.msk [vmem:[#allocation2 + $0x1e9] sm:$0x80] %vm1054_vm4, %v669_v41  ;;  %v1540_v23 = vld [vmem:[#allocation2 + $0x141] sm:$0xff]  ;;  %s6430_s1 = smov 12  }
 0x101   : > { %808 = vst.msk [vmem:[#allocation2 + $0x1e1] sm:$0x1] %vm759_vm0, %v621_v4  ;;  %826 = vst.msk [vmem:[#allocation2 + $0x1e2] sm:$0x1] %vm759_vm0, %v669_v41 }
 0x102   : > { %845 = vst.msk [vmem:[#allocation2 + $0x1e2] sm:$0x2] %vm832_vm5, %v621_v4  ;;  %863 = vst.msk [vmem:[#allocation2 + $0x1e3] sm:$0x2] %vm832_vm5, %v669_v41 }
 0x103   : > { %882 = vst.msk [vmem:[#allocation2 + $0x1e3] sm:$0x4] %vm869_vm6, %v621_v4  ;;  %900 = vst.msk [vmem:[#allocation2 + $0x1e4] sm:$0x4] %vm869_vm6, %v669_v41 }
 0x104   : > { %919 = vst.msk [vmem:[#allocation2 + $0x1e4] sm:$0x8] %vm906_vm7, %v621_v4  ;;  %937 = vst.msk [vmem:[#allocation2 + $0x1e5] sm:$0x8] %vm906_vm7, %v669_v41  ;;  %v7621_v4 = vld [vmem:[#allocation2 + $0x120] sm:$0xff] }
 0x105   : > { %1264 = vst.msk [vmem:[#allocation2 + $0x1ce] sm:$0x10] %vm943_vm1, %v574_v12  ;;  %1247 = vst.msk [vmem:[#allocation2 + $0x1f5] sm:$0x10] %vm943_vm1, %v622_v13  ;;  %v1531_v41 = vld [vmem:[#allocation2 + $0xe1] sm:$0xff] }
 0x106   : > { %1282 = vst.msk [vmem:[#allocation2 + $0x1ce] sm:$0x20] %vm980_vm2, %v510_v9  ;;  %1300 = vst.msk [vmem:[#allocation2 + $0x1cf] sm:$0x20] %vm980_vm2, %v574_v12  ;;  %1682 = vrot.lane.b32.xlu1 %v1531_v41, %s6428_s20  ;;  %v7782_v41 = vld [vmem:[#allocation2 + $0x158] sm:$0xff] }
 0x107   : > { %1318 = vst.msk [vmem:[#allocation2 + $0x1cf] sm:$0x40] %vm1017_vm3, %v510_v9  ;;  %1336 = vst.msk [vmem:[#allocation2 + $0x1d0] sm:$0x40] %vm1017_vm3, %v574_v12 }
 0x108   : > { %1354 = vst.msk [vmem:[#allocation2 + $0x1d0] sm:$0x80] %vm1054_vm4, %v510_v9  ;;  %1372 = vst.msk [vmem:[#allocation2 + $0x1d1] sm:$0x80] %vm1054_vm4, %v574_v12 }
 0x109   : > { %1102 = vst.msk [vmem:[#allocation2 + $0x1c9] sm:$0x1] %vm759_vm0, %v510_v9  ;;  %1120 = vst.msk [vmem:[#allocation2 + $0x1ca] sm:$0x1] %vm759_vm0, %v574_v12 }
 0x10a   : > { %1138 = vst.msk [vmem:[#allocation2 + $0x1ca] sm:$0x2] %vm832_vm5, %v510_v9  ;;  %1156 = vst.msk [vmem:[#allocation2 + $0x1cb] sm:$0x2] %vm832_vm5, %v574_v12  ;;  %1686 = vrot.lane.b32.xlu1 %v1533_v38, %s6428_s20  ;;  %v1545_v38 = vld [vmem:[#allocation2 + $0x171] sm:$0xff] }
 0x10b   : > { %1174 = vst.msk [vmem:[#allocation2 + $0x1cb] sm:$0x4] %vm869_vm6, %v510_v9  ;;  %1192 = vst.msk [vmem:[#allocation2 + $0x1cc] sm:$0x4] %vm869_vm6, %v574_v12 }
 0x10c   : > { %1210 = vst.msk [vmem:[#allocation2 + $0x1cc] sm:$0x8] %vm906_vm7, %v510_v9  ;;  %1228 = vst.msk [vmem:[#allocation2 + $0x1cd] sm:$0x8] %vm906_vm7, %v574_v12  ;;  %v575_v9 = vmul.f32 0.5, %v559_v48  ;;  %v496_v12 = vadd.f32 %v480_v49, %v7589_v36  ;;  %v577_v49 = vmul.f32 0.5, %v561_v44 }
 0x10d   : > { %1283 = vst.msk [vmem:[#allocation2 + $0x1f6] sm:$0x20] %vm980_vm2, %v622_v13  ;;  %1301 = vst.msk [vmem:[#allocation2 + $0x1f7] sm:$0x20] %vm980_vm2, %v670_v34  ;;  %v1547_v44 = vld [vmem:[#allocation2 + $0x181] sm:$0xff] }
 0x10e   : > { %1319 = vst.msk [vmem:[#allocation2 + $0x1f7] sm:$0x40] %vm1017_vm3, %v622_v13  ;;  %1337 = vst.msk [vmem:[#allocation2 + $0x1f8] sm:$0x40] %vm1017_vm3, %v670_v34  ;;  %v512_v52 = vmul.f32 0.5, %v496_v12  ;;  %1690 = vrot.lane.b32.xlu1 %v1535_v55, %s6428_s20  ;;  %v1539_v12 = vld [vmem:[#allocation2 + $0x131] sm:$0xff] }
 0x10f   : > { %1355 = vst.msk [vmem:[#allocation2 + $0x1f8] sm:$0x80] %vm1054_vm4, %v622_v13  ;;  %1373 = vst.msk [vmem:[#allocation2 + $0x1f9] sm:$0x80] %vm1054_vm4, %v670_v34  ;;  %v1548_v55 = vld [vmem:[#allocation2 + $0x191] sm:$0xff] }
 0x110   : > { %1103 = vst.msk [vmem:[#allocation2 + $0x1f1] sm:$0x1] %vm759_vm0, %v622_v13  ;;  %1121 = vst.msk [vmem:[#allocation2 + $0x1f2] sm:$0x1] %vm759_vm0, %v670_v34 }
 0x111   : > { %1139 = vst.msk [vmem:[#allocation2 + $0x1f2] sm:$0x2] %vm832_vm5, %v622_v13  ;;  %1157 = vst.msk [vmem:[#allocation2 + $0x1f3] sm:$0x2] %vm832_vm5, %v670_v34 }
 0x112   : > { %1175 = vst.msk [vmem:[#allocation2 + $0x1f3] sm:$0x4] %vm869_vm6, %v622_v13  ;;  %1193 = vst.msk [vmem:[#allocation2 + $0x1f4] sm:$0x4] %vm869_vm6, %v670_v34  ;;  %1694 = vrot.lane.b32.xlu1 %v1537_v2, %s6428_s20  ;;  %v1550_v2 = vld [vmem:[#allocation2 + $0x1a1] sm:$0xff] }
 0x113   : > { %1211 = vst.msk [vmem:[#allocation2 + $0x1f4] sm:$0x8] %vm906_vm7, %v622_v13  ;;  %1229 = vst.msk [vmem:[#allocation2 + $0x1f5] sm:$0x8] %vm906_vm7, %v670_v34  ;;  %v560_v13 = vsub.f32 %v544_v50, %v7589_v36  ;;  %v513_v36 = vmul.f32 0.5, %v497_v31  ;;  %v7816_v31 = vld [vmem:[#allocation2 + $0x190] sm:$0xff] }
 0x114   : > { %1471 = vst.msk [vmem:[#allocation3 + $0xd8] sm:$0xff] %vm1443_vm8, %v7583_v39  ;;  %1470 = vst.msk [vmem:[#allocation3 + $0xd0] sm:$0xff] %vm1443_vm8, %v7585_v40 }
 0x115   : > { %1265 = vst.msk [vmem:[#allocation2 + $0x1f6] sm:$0x10] %vm943_vm1, %v670_v34  ;;  %957 = vst.msk [vmem:[#allocation2 + $0x20d] sm:$0x10] %vm943_vm1, %v511_v56  ;;  %v576_v53 = vmul.f32 0.5, %v560_v13  ;;  %v7685_v34 = vld [vmem:[%s6639_s10 + $0x78] sm:$0xff] }
 0x116   : > { %1473 = vst.msk [vmem:[#allocation3 + $0xe8] sm:$0xff] %vm1443_vm8, %v7621_v4  ;;  %1472 = vst.msk [vmem:[#allocation3 + $0xe0] sm:$0xff] %vm1443_vm8, %v7628_v20  ;;  %v498_v48 = vadd.f32 %v482_v63, %v7685_v34  ;;  %v562_v50 = vsub.f32 %v546_v46, %v7685_v34  ;;  %v1538_v13 = vld [vmem:[#allocation2 + $0x129] sm:$0xff]  ;;  %1698 = vrot.lane.b32.xlu1 %v1539_v12, %s6428_s20  ;;  %v7826_v63 = vld [vmem:[#allocation2 + $0x1a0] sm:$0xff] }
 0x117   : > { %994 = vst.msk [vmem:[#allocation2 + $0x20e] sm:$0x20] %vm980_vm2, %v511_v56  ;;  %995 = vst.msk [vmem:[#allocation2 + $0x236] sm:$0x20] %vm980_vm2, %v623_v58  ;;  %v1546_v46 = vld [vmem:[#allocation2 + $0x179] sm:$0xff] }
 0x118   : > { %1031 = vst.msk [vmem:[#allocation2 + $0x20f] sm:$0x40] %vm1017_vm3, %v511_v56  ;;  %1032 = vst.msk [vmem:[#allocation2 + $0x237] sm:$0x40] %vm1017_vm3, %v623_v58  ;;  %v578_v62 = vmul.f32 0.5, %v562_v50  ;;  %v1549_v50 = vld [vmem:[#allocation2 + $0x199] sm:$0xff] }
 0x119   : > { %1068 = vst.msk [vmem:[#allocation2 + $0x210] sm:$0x80] %vm1054_vm4, %v511_v56  ;;  %1069 = vst.msk [vmem:[#allocation2 + $0x238] sm:$0x80] %vm1054_vm4, %v623_v58 }
 0x11a   : > { %809 = vst.msk [vmem:[#allocation2 + $0x209] sm:$0x1] %vm759_vm0, %v511_v56  ;;  %810 = vst.msk [vmem:[#allocation2 + $0x231] sm:$0x1] %vm759_vm0, %v623_v58  ;;  %1702 = vrot.lane.b32.xlu1 %v1541_v22, %s6428_s20  ;;  %v1552_v22 = vld [vmem:[#allocation2 + $0x1b9] sm:$0xff] }
 0x11b   : > { %846 = vst.msk [vmem:[#allocation2 + $0x20a] sm:$0x2] %vm832_vm5, %v511_v56  ;;  %847 = vst.msk [vmem:[#allocation2 + $0x232] sm:$0x2] %vm832_vm5, %v623_v58 }
 0x11c   : > { %883 = vst.msk [vmem:[#allocation2 + $0x20b] sm:$0x4] %vm869_vm6, %v511_v56  ;;  %884 = vst.msk [vmem:[#allocation2 + $0x233] sm:$0x4] %vm869_vm6, %v623_v58  ;;  %v7862_v12 = vld [vmem:[#allocation2 + $0x1f8] sm:$0xff] }
 0x11d   : > { %920 = vst.msk [vmem:[#allocation2 + $0x20c] sm:$0x8] %vm906_vm7, %v511_v56  ;;  %921 = vst.msk [vmem:[#allocation2 + $0x234] sm:$0x8] %vm906_vm7, %v623_v58  ;;  %v1534_v56 = vld [vmem:[#allocation2 + $0x101] sm:$0xff] }
 0x11e   : > { %958 = vst.msk [vmem:[#allocation2 + $0x235] sm:$0x10] %vm943_vm1, %v623_v58  ;;  %975 = vst.msk [vmem:[#allocation2 + $0x20e] sm:$0x10] %vm943_vm1, %v575_v9  ;;  %v514_v58 = vmul.f32 0.5, %v498_v48  ;;  %1688 = vrot.lane.b32.xlu0 %v1534_v56, %s6428_s20  ;;  %v7836_v48 = vld [vmem:[#allocation2 + $0x1b8] sm:$0xff] }
 0x11f   : > { %1012 = vst.msk [vmem:[#allocation2 + $0x20f] sm:$0x20] %vm980_vm2, %v575_v9  ;;  %1013 = vst.msk [vmem:[#allocation2 + $0x237] sm:$0x20] %vm980_vm2, %v671_v21  ;;  %v7846_v56 = vld [vmem:[#allocation2 + $0x1c8] sm:$0xff] }
 0x120   : > { %1049 = vst.msk [vmem:[#allocation2 + $0x210] sm:$0x40] %vm1017_vm3, %v575_v9  ;;  %1050 = vst.msk [vmem:[#allocation2 + $0x238] sm:$0x40] %vm1017_vm3, %v671_v21 }
 0x121   : > { %1086 = vst.msk [vmem:[#allocation2 + $0x211] sm:$0x80] %vm1054_vm4, %v575_v9  ;;  %1087 = vst.msk [vmem:[#allocation2 + $0x239] sm:$0x80] %vm1054_vm4, %v671_v21 }
 0x122   : > { %827 = vst.msk [vmem:[#allocation2 + $0x20a] sm:$0x1] %vm759_vm0, %v575_v9  ;;  %828 = vst.msk [vmem:[#allocation2 + $0x232] sm:$0x1] %vm759_vm0, %v671_v21  ;;  %1692 = vrot.lane.b32.xlu0 %v1536_v3, %s6428_s20  ;;  %v7856_v3 = vld [vmem:[#allocation2 + $0x1e0] sm:$0xff] }
 0x123   : > { %864 = vst.msk [vmem:[#allocation2 + $0x20b] sm:$0x2] %vm832_vm5, %v575_v9  ;;  %865 = vst.msk [vmem:[#allocation2 + $0x233] sm:$0x2] %vm832_vm5, %v671_v21 }
 0x124   : > { %901 = vst.msk [vmem:[#allocation2 + $0x20c] sm:$0x4] %vm869_vm6, %v575_v9  ;;  %902 = vst.msk [vmem:[#allocation2 + $0x234] sm:$0x4] %vm869_vm6, %v671_v21 }
 0x125   : > { %938 = vst.msk [vmem:[#allocation2 + $0x20d] sm:$0x8] %vm906_vm7, %v575_v9  ;;  %939 = vst.msk [vmem:[#allocation2 + $0x235] sm:$0x8] %vm906_vm7, %v671_v21  ;;  %v7792_v9 = vld [vmem:[#allocation2 + $0x170] sm:$0xff] }
 0x126   : > { %976 = vst.msk [vmem:[#allocation2 + $0x236] sm:$0x10] %vm943_vm1, %v671_v21  ;;  %1248 = vst.msk [vmem:[#allocation2 + $0x21d] sm:$0x10] %vm943_vm1, %v512_v52  ;;  %1696 = vrot.lane.b32.xlu0 %v1538_v13, %s6428_s20  ;;  %v7802_v21 = vld [vmem:[#allocation2 + $0x180] sm:$0xff] }
 0x127   : > { %1266 = vst.msk [vmem:[#allocation2 + $0x21e] sm:$0x10] %vm943_vm1, %v576_v53  ;;  %1249 = vst.msk [vmem:[#allocation2 + $0x245] sm:$0x10] %vm943_vm1, %v624_v42  ;;  %v1553_v13 = vld [vmem:[#allocation2 + $0x1c1] sm:$0xff] }
 0x128   : > { %1284 = vst.msk [vmem:[#allocation2 + $0x21e] sm:$0x20] %vm980_vm2, %v512_v52  ;;  %1302 = vst.msk [vmem:[#allocation2 + $0x21f] sm:$0x20] %vm980_vm2, %v576_v53 }
 0x129   : > { %1320 = vst.msk [vmem:[#allocation2 + $0x21f] sm:$0x40] %vm1017_vm3, %v512_v52  ;;  %1338 = vst.msk [vmem:[#allocation2 + $0x220] sm:$0x40] %vm1017_vm3, %v576_v53 }
 0x12a   : > { %1356 = vst.msk [vmem:[#allocation2 + $0x220] sm:$0x80] %vm1054_vm4, %v512_v52  ;;  %1374 = vst.msk [vmem:[#allocation2 + $0x221] sm:$0x80] %vm1054_vm4, %v576_v53  ;;  %1700 = vrot.lane.b32.xlu0 %v1540_v23, %s6428_s20  ;;  %v7866_v23 = vld [vmem:[#allocation2 + $0x1f0] sm:$0xff] }
 0x12b   : > { %1104 = vst.msk [vmem:[#allocation2 + $0x219] sm:$0x1] %vm759_vm0, %v512_v52  ;;  %1122 = vst.msk [vmem:[#allocation2 + $0x21a] sm:$0x1] %vm759_vm0, %v576_v53 }
 0x12c   : > { %1140 = vst.msk [vmem:[#allocation2 + $0x21a] sm:$0x2] %vm832_vm5, %v512_v52  ;;  %1158 = vst.msk [vmem:[#allocation2 + $0x21b] sm:$0x2] %vm832_vm5, %v576_v53 }
 0x12d   : > { %1176 = vst.msk [vmem:[#allocation2 + $0x21b] sm:$0x4] %vm869_vm6, %v512_v52  ;;  %1194 = vst.msk [vmem:[#allocation2 + $0x21c] sm:$0x4] %vm869_vm6, %v576_v53 }
 0x12e   : > { %1212 = vst.msk [vmem:[#allocation2 + $0x21c] sm:$0x8] %vm906_vm7, %v512_v52  ;;  %1230 = vst.msk [vmem:[#allocation2 + $0x21d] sm:$0x8] %vm906_vm7, %v576_v53  ;;  %v7806_v52 = vld [vmem:[#allocation2 + $0x178] sm:$0xff] }
 0x12f   : > { %1285 = vst.msk [vmem:[#allocation2 + $0x246] sm:$0x20] %vm980_vm2, %v624_v42  ;;  %1303 = vst.msk [vmem:[#allocation2 + $0x247] sm:$0x20] %vm980_vm2, %v672_v28  ;;  %v7812_v53 = vld [vmem:[#allocation2 + $0x198] sm:$0xff] }
 0x130   : > { %1321 = vst.msk [vmem:[#allocation2 + $0x247] sm:$0x40] %vm1017_vm3, %v624_v42  ;;  %1339 = vst.msk [vmem:[#allocation2 + $0x248] sm:$0x40] %vm1017_vm3, %v672_v28 }
 0x131   : > { %1357 = vst.msk [vmem:[#allocation2 + $0x248] sm:$0x80] %vm1054_vm4, %v624_v42  ;;  %1375 = vst.msk [vmem:[#allocation2 + $0x249] sm:$0x80] %vm1054_vm4, %v672_v28 }
 0x132   : > { %1105 = vst.msk [vmem:[#allocation2 + $0x241] sm:$0x1] %vm759_vm0, %v624_v42  ;;  %1123 = vst.msk [vmem:[#allocation2 + $0x242] sm:$0x1] %vm759_vm0, %v672_v28 }
 0x133   : > { %1141 = vst.msk [vmem:[#allocation2 + $0x242] sm:$0x2] %vm832_vm5, %v624_v42  ;;  %1159 = vst.msk [vmem:[#allocation2 + $0x243] sm:$0x2] %vm832_vm5, %v672_v28 }
 0x134   : > { %1177 = vst.msk [vmem:[#allocation2 + $0x243] sm:$0x4] %vm869_vm6, %v624_v42  ;;  %1195 = vst.msk [vmem:[#allocation2 + $0x244] sm:$0x4] %vm869_vm6, %v672_v28 }
 0x135   : > { %1213 = vst.msk [vmem:[#allocation2 + $0x244] sm:$0x8] %vm906_vm7, %v624_v42  ;;  %1231 = vst.msk [vmem:[#allocation2 + $0x245] sm:$0x8] %vm906_vm7, %v672_v28  ;;  %v1543_v42 = vld [vmem:[#allocation2 + $0x159] sm:$0xff] }
 0x136   : > { %1475 = vst.msk [vmem:[#allocation3 + $0xf8] sm:$0xff] %vm1443_vm8, %v7691_v37  ;;  %1474 = vst.msk [vmem:[#allocation3 + $0xf0] sm:$0xff] %vm1443_vm8, %v7721_v32  ;;  %1706 = vrot.lane.b32.xlu1 %v1543_v42, %s6428_s20  ;;  %v7872_v42 = vld [vmem:[#allocation2 + $0x210] sm:$0xff] }
 0x137   : > { %1267 = vst.msk [vmem:[#allocation2 + $0x246] sm:$0x10] %vm943_vm1, %v672_v28  ;;  %959 = vst.msk [vmem:[#allocation2 + $0x25d] sm:$0x10] %vm943_vm1, %v513_v36  ;;  %v1542_v28 = vld [vmem:[#allocation2 + $0x151] sm:$0xff] }
 0x138   : > { %996 = vst.msk [vmem:[#allocation2 + $0x25e] sm:$0x20] %vm980_vm2, %v513_v36  ;;  %1014 = vst.msk [vmem:[#allocation2 + $0x25f] sm:$0x20] %vm980_vm2, %v577_v49  ;;  %1704 = vrot.lane.b32.xlu0 %v1542_v28, %s6428_s20  ;;  %v1555_v28 = vld [vmem:[#allocation2 + $0x1d1] sm:$0xff] }
 0x139   : > { %1033 = vst.msk [vmem:[#allocation2 + $0x25f] sm:$0x40] %vm1017_vm3, %v513_v36  ;;  %1051 = vst.msk [vmem:[#allocation2 + $0x260] sm:$0x40] %vm1017_vm3, %v577_v49 }
 0x13a   : > { %1070 = vst.msk [vmem:[#allocation2 + $0x260] sm:$0x80] %vm1054_vm4, %v513_v36  ;;  %1088 = vst.msk [vmem:[#allocation2 + $0x261] sm:$0x80] %vm1054_vm4, %v577_v49  ;;  %1710 = vrot.lane.b32.xlu1 %v1545_v38, %s6428_s20  ;;  %v1554_v38 = vld [vmem:[#allocation2 + $0x1c9] sm:$0xff] }
 0x13b   : > { %811 = vst.msk [vmem:[#allocation2 + $0x259] sm:$0x1] %vm759_vm0, %v513_v36  ;;  %829 = vst.msk [vmem:[#allocation2 + $0x25a] sm:$0x1] %vm759_vm0, %v577_v49 }
 0x13c   : > { %848 = vst.msk [vmem:[#allocation2 + $0x25a] sm:$0x2] %vm832_vm5, %v513_v36  ;;  %866 = vst.msk [vmem:[#allocation2 + $0x25b] sm:$0x2] %vm832_vm5, %v577_v49  ;;  %1708 = vrot.lane.b32.xlu0 %v1544_v43, %s6428_s20  ;;  %v7876_v43 = vld [vmem:[#allocation2 + $0x208] sm:$0xff] }
 0x13d   : > { %885 = vst.msk [vmem:[#allocation2 + $0x25b] sm:$0x4] %vm869_vm6, %v513_v36  ;;  %903 = vst.msk [vmem:[#allocation2 + $0x25c] sm:$0x4] %vm869_vm6, %v577_v49 }
 0x13e   : > { %922 = vst.msk [vmem:[#allocation2 + $0x25c] sm:$0x8] %vm906_vm7, %v513_v36  ;;  %940 = vst.msk [vmem:[#allocation2 + $0x25d] sm:$0x8] %vm906_vm7, %v577_v49  ;;  %v7832_v36 = vld [vmem:[#allocation2 + $0x1c0] sm:$0xff]  ;;  %1714 = vrot.lane.b32.xlu1 %v1547_v44, %s6428_s20 }
 0x13f   : > { %1477 = vst.msk [vmem:[#allocation3 + $0x108] sm:$0xff] %vm1443_vm8, %v7748_v51  ;;  %1476 = vst.msk [vmem:[#allocation3 + $0x100] sm:$0xff] %vm1443_vm8, %v7752_v61  ;;  %v7882_v44 = vld [vmem:[#allocation2 + $0x220] sm:$0xff] }
 0x140   : > { %977 = vst.msk [vmem:[#allocation2 + $0x25e] sm:$0x10] %vm943_vm1, %v577_v49  ;;  %1250 = vst.msk [vmem:[#allocation2 + $0x26d] sm:$0x10] %vm943_vm1, %v514_v58  ;;  %1712 = vrot.lane.b32.xlu0 %v1546_v46, %s6428_s20  ;;  %v7842_v49 = vld [vmem:[#allocation2 + $0x1d0] sm:$0xff] }
 0x141   : > { %1286 = vst.msk [vmem:[#allocation2 + $0x26e] sm:$0x20] %vm980_vm2, %v514_v58  ;;  %1304 = vst.msk [vmem:[#allocation2 + $0x26f] sm:$0x20] %vm980_vm2, %v578_v62  ;;  %v1557_v46 = vld [vmem:[#allocation2 + $0x1e9] sm:$0xff] }
 0x142   : > { %1322 = vst.msk [vmem:[#allocation2 + $0x26f] sm:$0x40] %vm1017_vm3, %v514_v58  ;;  %1340 = vst.msk [vmem:[#allocation2 + $0x270] sm:$0x40] %vm1017_vm3, %v578_v62  ;;  %1718 = vrot.lane.b32.xlu1 %v1549_v50, %s6428_s20  ;;  %v1556_v50 = vld [vmem:[#allocation2 + $0x1e1] sm:$0xff] }
 0x143   : > { %1358 = vst.msk [vmem:[#allocation2 + $0x270] sm:$0x80] %vm1054_vm4, %v514_v58  ;;  %1376 = vst.msk [vmem:[#allocation2 + $0x271] sm:$0x80] %vm1054_vm4, %v578_v62 }
 0x144   : > { %1106 = vst.msk [vmem:[#allocation2 + $0x269] sm:$0x1] %vm759_vm0, %v514_v58  ;;  %1124 = vst.msk [vmem:[#allocation2 + $0x26a] sm:$0x1] %vm759_vm0, %v578_v62  ;;  %1716 = vrot.lane.b32.xlu0 %v1548_v55, %s6428_s20  ;;  %v7886_v55 = vld [vmem:[#allocation2 + $0x218] sm:$0xff] }
 0x145   : > { %1142 = vst.msk [vmem:[#allocation2 + $0x26a] sm:$0x2] %vm832_vm5, %v514_v58  ;;  %1160 = vst.msk [vmem:[#allocation2 + $0x26b] sm:$0x2] %vm832_vm5, %v578_v62 }
 0x146   : > { %1178 = vst.msk [vmem:[#allocation2 + $0x26b] sm:$0x4] %vm869_vm6, %v514_v58  ;;  %1196 = vst.msk [vmem:[#allocation2 + $0x26c] sm:$0x4] %vm869_vm6, %v578_v62 }
 0x147   : > { %1214 = vst.msk [vmem:[#allocation2 + $0x26c] sm:$0x8] %vm906_vm7, %v514_v58  ;;  %1232 = vst.msk [vmem:[#allocation2 + $0x26d] sm:$0x8] %vm906_vm7, %v578_v62  ;;  %v7852_v58 = vld [vmem:[#allocation2 + $0x1e8] sm:$0xff] }
 0x148   : > { %1268 = vst.msk [vmem:[#allocation2 + $0x26e] sm:$0x10] %vm943_vm1, %v578_v62  ;;  %9583 = vst [vmem:[#allocation11_spill] sm:$0xff] %v7852_v58  ;;  %v1551_v62 = vld [vmem:[#allocation2 + $0x1a9] sm:$0xff]  ;;  %1720 = vrot.lane.b32.xlu0 %v1550_v2, %s6428_s20  ;;  %v1559_v2 = vld [vmem:[#allocation2 + $0x1f9] sm:$0xff] }
 0x149   : > { %1479 = vst.msk [vmem:[#allocation3 + $0x118] sm:$0xff] %vm1443_vm8, %v7782_v41  ;;  %1478 = vst.msk [vmem:[#allocation3 + $0x110] sm:$0xff] %vm1443_vm8, %v7786_v60  ;;  %1722 = vrot.lane.b32.xlu1 %v1551_v62, %s6428_s20  ;;  %v7892_v62 = vld [vmem:[#allocation2 + $0x238] sm:$0xff] }
 0x14a   : > { %1481 = vst.msk [vmem:[#allocation3 + $0x128] sm:$0xff] %vm1443_vm8, %v7792_v9  ;;  %1480 = vst.msk [vmem:[#allocation3 + $0x120] sm:$0xff] %vm1443_vm8, %v7796_v14 }
 0x14b   : > { %1483 = vst.msk [vmem:[#allocation3 + $0x138] sm:$0xff] %vm1443_vm8, %v7802_v21  ;;  %1482 = vst.msk [vmem:[#allocation3 + $0x130] sm:$0xff] %vm1443_vm8, %v7806_v52 }
 0x14c   : > { %1485 = vst.msk [vmem:[#allocation3 + $0x148] sm:$0xff] %vm1443_vm8, %v7812_v53  ;;  %1484 = vst.msk [vmem:[#allocation3 + $0x140] sm:$0xff] %vm1443_vm8, %v7816_v31  ;;  %1724 = vrot.lane.b32.xlu0 %v1552_v22, %s6428_s20  ;;  %v7896_v22 = vld [vmem:[#allocation2 + $0x230] sm:$0xff] }
 0x14d   : > { %1487 = vst.msk [vmem:[#allocation3 + $0x158] sm:$0xff] %vm1443_vm8, %v7822_v33  ;;  %1486 = vst.msk [vmem:[#allocation3 + $0x150] sm:$0xff] %vm1443_vm8, %v7826_v63  ;;  %1726 = vrot.lane.b32.xlu1 %v1553_v13, %s6428_s20  ;;  %v1558_v13 = vld [vmem:[#allocation2 + $0x1f1] sm:$0xff] }
 0x14e   : > { %1489 = vst.msk [vmem:[#allocation3 + $0x168] sm:$0xff] %vm1443_vm8, %v7832_v36  ;;  %1488 = vst.msk [vmem:[#allocation3 + $0x160] sm:$0xff] %vm1443_vm8, %v7836_v48 }
 0x14f   : > { %1491 = vst.msk [vmem:[#allocation3 + $0x178] sm:$0xff] %vm1443_vm8, %v7842_v49  ;;  %1490 = vst.msk [vmem:[#allocation3 + $0x170] sm:$0xff] %vm1443_vm8, %v7846_v56 }
 0x150   : > { %1493 = vst.msk [vmem:[#allocation3 + $0x188] sm:$0xff] %vm1443_vm8, %v7852_v58  ;;  %9584 = vst [vmem:[#allocation12_spill] sm:$0xff] %v7856_v3  ;;  %1728 = vrot.lane.b32.xlu0 %v1554_v38, %s6428_s20  ;;  %v1561_v38 = vld [vmem:[#allocation2 + $0x211] sm:$0xff] }
 0x151   : > { %1492 = vst.msk [vmem:[#allocation3 + $0x180] sm:$0xff] %vm1443_vm8, %v7856_v3  ;;  %9585 = vst [vmem:[#allocation13_spill] sm:$0xff] %v7862_v12  ;;  %1730 = vrot.lane.b32.xlu1 %v1555_v28, %s6428_s20  ;;  %v7902_v28 = vld [vmem:[#allocation2 + $0x248] sm:$0xff] }
 0x152   : > { %1495 = vst.msk [vmem:[#allocation3 + $0x198] sm:$0xff] %vm1443_vm8, %v7862_v12  ;;  %9586 = vst [vmem:[#allocation14_spill] sm:$0xff] %v7866_v23 }
 0x153   : > { %1494 = vst.msk [vmem:[#allocation3 + $0x190] sm:$0xff] %vm1443_vm8, %v7866_v23  ;;  %9587 = vst [vmem:[#allocation15_spill] sm:$0xff] %v7872_v42 }
 0x154   : > { %1497 = vst.msk [vmem:[#allocation3 + $0x1a8] sm:$0xff] %vm1443_vm8, %v7872_v42  ;;  %9588 = vst [vmem:[#allocation16_spill] sm:$0xff] %v7876_v43  ;;  %1732 = vrot.lane.b32.xlu0 %v1556_v50, %s6428_s20  ;;  %v7906_v50 = vld [vmem:[#allocation2 + $0x240] sm:$0xff]  ;;  %v1949_v42 = vld [vmem:[#allocation2 + $0x232] sm:$0xff] }
 0x155   : > { %1496 = vst.msk [vmem:[#allocation3 + $0x1a0] sm:$0xff] %vm1443_vm8, %v7876_v43  ;;  %9589 = vst [vmem:[#allocation17_spill] sm:$0xff] %v7882_v44  ;;  %1734 = vrot.lane.b32.xlu1 %v1557_v46, %s6428_s20  ;;  %v1560_v46 = vld [vmem:[#allocation2 + $0x209] sm:$0xff] }
 0x156   : > { %1499 = vst.msk [vmem:[#allocation3 + $0x1b8] sm:$0xff] %vm1443_vm8, %v7882_v44  ;;  %9590 = vst [vmem:[#allocation18_spill] sm:$0xff] %v7886_v55 }
 0x157   : > { %1498 = vst.msk [vmem:[#allocation3 + $0x1b0] sm:$0xff] %vm1443_vm8, %v7886_v55  ;;  %9591 = vst [vmem:[#allocation19_spill] sm:$0xff] %v7892_v62  ;;  %v1568_v55 = vld [vmem:[#allocation2 + $0x259] sm:$0xff] }
 0x158   : > { %1501 = vst.msk [vmem:[#allocation3 + $0x1c8] sm:$0xff] %vm1443_vm8, %v7892_v62  ;;  %9592 = vst [vmem:[#allocation20_spill] sm:$0xff] %v7896_v22  ;;  %1736 = vrot.lane.b32.xlu0 %v1558_v13, %s6428_s20  ;;  %v1562_v13 = vld [vmem:[#allocation2 + $0x219] sm:$0xff] }
 0x159   : > { %1500 = vst.msk [vmem:[#allocation3 + $0x1c0] sm:$0xff] %vm1443_vm8, %v7896_v22  ;;  %1738 = vrot.lane.b32.xlu1 %v1559_v2, %s6428_s20  ;;  %9593 = vst [vmem:[#allocation21_spill] sm:$0xff] %v7902_v28  ;;  %v7912_v22 = vld [vmem:[#allocation2 + $0x260] sm:$0xff]  ;;  %v7916_v62 = vld [vmem:[#allocation2 + $0x258] sm:$0xff] }
 0x15a   : > { %1503 = vst.msk [vmem:[#allocation3 + $0x1d8] sm:$0xff] %vm1443_vm8, %v7902_v28  ;;  %9594 = vst [vmem:[#allocation22_spill] sm:$0xff] %v7906_v50  ;;  %v1563_v2 = vld [vmem:[#allocation2 + $0x221] sm:$0xff] }
 0x15b   : > { %1502 = vst.msk [vmem:[#allocation3 + $0x1d0] sm:$0xff] %vm1443_vm8, %v7906_v50  ;;  %9595 = vst [vmem:[#allocation23_spill] sm:$0xff] %v7912_v22  ;;  %v7922_v50 = vld [vmem:[#allocation2 + $0x270] sm:$0xff]  ;;  %v7926_v28 = vld [vmem:[#allocation2 + $0x268] sm:$0xff] }
 0x15c   : > { %1740 = vrot.lane.b32.xlu0 %v1560_v46, %s6428_s20  ;;  %1505 = vst.msk [vmem:[#allocation3 + $0x1e8] sm:$0xff] %vm1443_vm8, %v7912_v22  ;;  %9596 = vst [vmem:[#allocation24_spill] sm:$0xff] %v7916_v62  ;;  %v1564_v46 = vld [vmem:[#allocation2 + $0x231] sm:$0xff]  ;;  %v1645_v22 = vpop.permute.xlu0 %1644 }
 0x15d   : > { %1742 = vrot.lane.b32.xlu1 %v1561_v38, %s6428_s20  ;;  %1504 = vst.msk [vmem:[#allocation3 + $0x1e0] sm:$0xff] %vm1443_vm8, %v7916_v62  ;;  %9597 = vst [vmem:[#allocation25_spill] sm:$0xff] %v7922_v50  ;;  %v1565_v38 = vld [vmem:[#allocation2 + $0x239] sm:$0xff]  ;;  %v1566_v62 = vld [vmem:[#allocation2 + $0x241] sm:$0xff] }
 0x15e   : > { %1507 = vst.msk [vmem:[#allocation3 + $0x1f8] sm:$0xff] %vm1443_vm8, %v7922_v50  ;;  %9598 = vst [vmem:[#allocation26_spill] sm:$0xff] %v7926_v28  ;;  %v1569_v50 = vld [vmem:[#allocation2 + $0x261] sm:$0xff] }
 0x15f   : > { %1506 = vst.msk [vmem:[#allocation3 + $0x1f0] sm:$0xff] %vm1443_vm8, %v7926_v28  ;;  %vm4140_vm8 = vcmask 261344  }
 0x160   : > { %1744 = vrot.lane.b32.xlu0 %v1562_v13, %s6428_s20  ;;  %v1647_v13 = vpop.permute.xlu1 %1646  ;;  %1833 = vst.msk [vmem:[#allocation3 + $0x20] sm:$0xff] %vm1828_vm9, %v1645_v22  ;;  %v1649_v44 = vpop.permute.xlu0 %1648 }
 0x161   : > { %1746 = vrot.lane.b32.xlu1 %v1563_v2, %s6428_s20  ;;  %v1567_v2 = vld [vmem:[#allocation2 + $0x249] sm:$0xff]  ;;  %1834 = vst.msk [vmem:[#allocation3 + $0x28] sm:$0xff] %vm1828_vm9, %v1647_v13  ;;  %1835 = vst.msk [vmem:[#allocation3 + $0x30] sm:$0xff] %vm1828_vm9, %v1649_v44 }
 0x164   : > { %1748 = vrot.lane.b32.xlu0 %v1564_v46, %s6428_s20  ;;  %v1651_v28 = vpop.permute.xlu1 %1650  ;;  %v1570_v46 = vld [vmem:[#allocation2 + $0x269] sm:$0xff]  ;;  %v1653_v22 = vpop.permute.xlu0 %1652 }
 0x165   : > { %1750 = vrot.lane.b32.xlu1 %v1565_v38, %s6428_s20  ;;  %1836 = vst.msk [vmem:[#allocation3 + $0x38] sm:$0xff] %vm1828_vm9, %v1651_v28  ;;  %v1571_v38 = vld [vmem:[#allocation2 + $0x271] sm:$0xff]  ;;  %1837 = vst.msk [vmem:[#allocation3 + $0x40] sm:$0xff] %vm1828_vm9, %v1653_v22  ;;  %v1893_v28 = vld [vmem:[#allocation2 + $0x2] sm:$0xff] }
 0x168   : > { %1752 = vrot.lane.b32.xlu0 %v1566_v62, %s6428_s20  ;;  %v1655_v13 = vpop.permute.xlu1 %1654  ;;  %v1894_v62 = vld [vmem:[#allocation2 + $0xa] sm:$0xff]  ;;  %v1657_v44 = vpop.permute.xlu0 %1656 }
 0x169   : > { %1754 = vrot.lane.b32.xlu1 %v1567_v2, %s6428_s20  ;;  %1838 = vst.msk [vmem:[#allocation3 + $0x48] sm:$0xff] %vm1828_vm9, %v1655_v13  ;;  %1839 = vst.msk [vmem:[#allocation3 + $0x50] sm:$0xff] %vm1828_vm9, %v1657_v44 }
 0x16c   : > { %1756 = vrot.lane.b32.xlu0 %v1568_v55, %s6428_s20  ;;  %v1659_v2 = vpop.permute.xlu1 %1658  ;;  %v1896_v55 = vld [vmem:[#allocation2 + $0x1a] sm:$0xff]  ;;  %v1661_v22 = vpop.permute.xlu0 %1660 }
 0x16d   : > { %1758 = vrot.lane.b32.xlu1 %v1569_v50, %s6428_s20  ;;  %1840 = vst.msk [vmem:[#allocation3 + $0x58] sm:$0xff] %vm1828_vm9, %v1659_v2  ;;  %v1895_v50 = vld [vmem:[#allocation2 + $0x12] sm:$0xff]  ;;  %1841 = vst.msk [vmem:[#allocation3 + $0x60] sm:$0xff] %vm1828_vm9, %v1661_v22 }
 0x170   : > { %1760 = vrot.lane.b32.xlu0 %v1570_v46, %s6428_s20  ;;  %v1663_v13 = vpop.permute.xlu1 %1662  ;;  %v1897_v46 = vld [vmem:[#allocation2 + $0x2a] sm:$0xff]  ;;  %v1665_v44 = vpop.permute.xlu0 %1664 }
 0x171   : > { %1762 = vrot.lane.b32.xlu1 %v1571_v38, %s6428_s20  ;;  %1842 = vst.msk [vmem:[#allocation3 + $0x68] sm:$0xff] %vm1828_vm9, %v1663_v13  ;;  %v1898_v38 = vld [vmem:[#allocation2 + $0x32] sm:$0xff]  ;;  %1843 = vst.msk [vmem:[#allocation3 + $0x70] sm:$0xff] %vm1828_vm9, %v1665_v44  ;;  %s6435_s20 = smov 32  }
 0x174   : > { %2021 = vrot.lane.b32.xlu0 %v1893_v28, %s6429_s0  ;;  %v1667_v2 = vpop.permute.xlu1 %1666  ;;  %v1899_v28 = vld [vmem:[#allocation2 + $0x3a] sm:$0xff]  ;;  %v1637_v22 = vpop.permute.xlu0 %1636 }
 0x175   : > { %2023 = vrot.lane.b32.xlu1 %v1894_v62, %s6429_s0  ;;  %1844 = vst.msk [vmem:[#allocation3 + $0x78] sm:$0xff] %vm1828_vm9, %v1667_v2  ;;  %v1900_v62 = vld [vmem:[#allocation2 + $0x42] sm:$0xff]  ;;  %1829 = vst.msk [vmem:[#allocation3] sm:$0xff] %vm1828_vm9, %v1637_v22 }
 0x178   : > { %2025 = vrot.lane.b32.xlu0 %v1895_v50, %s6429_s0  ;;  %v1641_v13 = vpop.permute.xlu1 %1640  ;;  %v1901_v50 = vld [vmem:[#allocation2 + $0x52] sm:$0xff]  ;;  %v1639_v44 = vpop.permute.xlu0 %1638 }
 0x179   : > { %2027 = vrot.lane.b32.xlu1 %v1896_v55, %s6429_s0  ;;  %1831 = vst.msk [vmem:[#allocation3 + $0x10] sm:$0xff] %vm1828_vm9, %v1641_v13  ;;  %v1902_v55 = vld [vmem:[#allocation2 + $0x5a] sm:$0xff]  ;;  %1830 = vst.msk [vmem:[#allocation3 + $0x8] sm:$0xff] %vm1828_vm9, %v1639_v44 }
 0x17c   : > { %2029 = vrot.lane.b32.xlu0 %v1897_v46, %s6429_s0  ;;  %v1643_v2 = vpop.permute.xlu1 %1642  ;;  %v1903_v46 = vld [vmem:[#allocation2 + $0x62] sm:$0xff]  ;;  %v1669_v22 = vpop.permute.xlu0 %1668 }
 0x17d   : > { %2031 = vrot.lane.b32.xlu1 %v1898_v38, %s6429_s0  ;;  %1832 = vst.msk [vmem:[#allocation3 + $0x18] sm:$0xff] %vm1828_vm9, %v1643_v2  ;;  %v1904_v38 = vld [vmem:[#allocation2 + $0x6a] sm:$0xff]  ;;  %1845 = vst.msk [vmem:[#allocation3 + $0x80] sm:$0xff] %vm1828_vm9, %v1669_v22 }
 0x180   : > { %2033 = vrot.lane.b32.xlu0 %v1899_v28, %s6429_s0  ;;  %v1671_v13 = vpop.permute.xlu1 %1670  ;;  %v1905_v28 = vld [vmem:[#allocation2 + $0x7a] sm:$0xff]  ;;  %v1673_v44 = vpop.permute.xlu0 %1672 }
 0x181   : > { %2035 = vrot.lane.b32.xlu1 %v1900_v62, %s6429_s0  ;;  %1846 = vst.msk [vmem:[#allocation3 + $0x88] sm:$0xff] %vm1828_vm9, %v1671_v13  ;;  %v1906_v62 = vld [vmem:[#allocation2 + $0x82] sm:$0xff]  ;;  %1847 = vst.msk [vmem:[#allocation3 + $0x90] sm:$0xff] %vm1828_vm9, %v1673_v44 }
 0x184   : > { %2037 = vrot.lane.b32.xlu0 %v1901_v50, %s6429_s0  ;;  %v1675_v2 = vpop.permute.xlu1 %1674  ;;  %v1907_v50 = vld [vmem:[#allocation2 + $0x8a] sm:$0xff]  ;;  %v1677_v22 = vpop.permute.xlu0 %1676 }
 0x185   : > { %2039 = vrot.lane.b32.xlu1 %v1902_v55, %s6429_s0  ;;  %1848 = vst.msk [vmem:[#allocation3 + $0x98] sm:$0xff] %vm1828_vm9, %v1675_v2  ;;  %v1908_v55 = vld [vmem:[#allocation2 + $0x92] sm:$0xff]  ;;  %1849 = vst.msk [vmem:[#allocation3 + $0xa0] sm:$0xff] %vm1828_vm9, %v1677_v22 }
 0x188   : > { %2041 = vrot.lane.b32.xlu0 %v1903_v46, %s6429_s0  ;;  %v1679_v13 = vpop.permute.xlu1 %1678  ;;  %v1909_v46 = vld [vmem:[#allocation2 + $0xa2] sm:$0xff]  ;;  %v1681_v44 = vpop.permute.xlu0 %1680 }
 0x189   : > { %2043 = vrot.lane.b32.xlu1 %v1904_v38, %s6429_s0  ;;  %1850 = vst.msk [vmem:[#allocation3 + $0xa8] sm:$0xff] %vm1828_vm9, %v1679_v13  ;;  %v1910_v38 = vld [vmem:[#allocation2 + $0xaa] sm:$0xff]  ;;  %1851 = vst.msk [vmem:[#allocation3 + $0xb0] sm:$0xff] %vm1828_vm9, %v1681_v44 }
 0x18c   : > { %2045 = vrot.lane.b32.xlu0 %v1905_v28, %s6429_s0  ;;  %v1683_v2 = vpop.permute.xlu1 %1682  ;;  %v1911_v28 = vld [vmem:[#allocation2 + $0xb2] sm:$0xff]  ;;  %v1685_v22 = vpop.permute.xlu0 %1684 }
 0x18d   : > { %2047 = vrot.lane.b32.xlu1 %v1906_v62, %s6429_s0  ;;  %1852 = vst.msk [vmem:[#allocation3 + $0xb8] sm:$0xff] %vm1828_vm9, %v1683_v2  ;;  %v1912_v62 = vld [vmem:[#allocation2 + $0xba] sm:$0xff]  ;;  %1853 = vst.msk [vmem:[#allocation3 + $0xc0] sm:$0xff] %vm1828_vm9, %v1685_v22 }
 0x190   : > { %2049 = vrot.lane.b32.xlu0 %v1907_v50, %s6429_s0  ;;  %v1687_v13 = vpop.permute.xlu1 %1686  ;;  %v1913_v50 = vld [vmem:[#allocation2 + $0xca] sm:$0xff]  ;;  %v1689_v44 = vpop.permute.xlu0 %1688 }
 0x191   : > { %2051 = vrot.lane.b32.xlu1 %v1908_v55, %s6429_s0  ;;  %1854 = vst.msk [vmem:[#allocation3 + $0xc8] sm:$0xff] %vm1828_vm9, %v1687_v13  ;;  %v1914_v55 = vld [vmem:[#allocation2 + $0xd2] sm:$0xff]  ;;  %1855 = vst.msk [vmem:[#allocation3 + $0xd0] sm:$0xff] %vm1828_vm9, %v1689_v44 }
 0x194   : > { %2053 = vrot.lane.b32.xlu0 %v1909_v46, %s6429_s0  ;;  %v1691_v2 = vpop.permute.xlu1 %1690  ;;  %v1915_v46 = vld [vmem:[#allocation2 + $0xda] sm:$0xff]  ;;  %v1693_v22 = vpop.permute.xlu0 %1692 }
 0x195   : > { %2055 = vrot.lane.b32.xlu1 %v1910_v38, %s6429_s0  ;;  %1856 = vst.msk [vmem:[#allocation3 + $0xd8] sm:$0xff] %vm1828_vm9, %v1691_v2  ;;  %v1916_v38 = vld [vmem:[#allocation2 + $0xe2] sm:$0xff]  ;;  %1857 = vst.msk [vmem:[#allocation3 + $0xe0] sm:$0xff] %vm1828_vm9, %v1693_v22 }
 0x198   : > { %2057 = vrot.lane.b32.xlu0 %v1911_v28, %s6429_s0  ;;  %v1695_v13 = vpop.permute.xlu1 %1694  ;;  %v1917_v28 = vld [vmem:[#allocation2 + $0xf2] sm:$0xff]  ;;  %v1697_v44 = vpop.permute.xlu0 %1696 }
 0x199   : > { %2059 = vrot.lane.b32.xlu1 %v1912_v62, %s6429_s0  ;;  %1858 = vst.msk [vmem:[#allocation3 + $0xe8] sm:$0xff] %vm1828_vm9, %v1695_v13  ;;  %v1918_v62 = vld [vmem:[#allocation2 + $0xfa] sm:$0xff]  ;;  %1859 = vst.msk [vmem:[#allocation3 + $0xf0] sm:$0xff] %vm1828_vm9, %v1697_v44 }
 0x19c   : > { %2061 = vrot.lane.b32.xlu0 %v1913_v50, %s6429_s0  ;;  %v1699_v2 = vpop.permute.xlu1 %1698  ;;  %v1919_v50 = vld [vmem:[#allocation2 + $0x102] sm:$0xff]  ;;  %v1701_v22 = vpop.permute.xlu0 %1700 }
 0x19d   : > { %2063 = vrot.lane.b32.xlu1 %v1914_v55, %s6429_s0  ;;  %1860 = vst.msk [vmem:[#allocation3 + $0xf8] sm:$0xff] %vm1828_vm9, %v1699_v2  ;;  %v1920_v55 = vld [vmem:[#allocation2 + $0x10a] sm:$0xff]  ;;  %1861 = vst.msk [vmem:[#allocation3 + $0x100] sm:$0xff] %vm1828_vm9, %v1701_v22 }
 0x1a0   : > { %2065 = vrot.lane.b32.xlu0 %v1915_v46, %s6429_s0  ;;  %v1703_v13 = vpop.permute.xlu1 %1702  ;;  %v1921_v46 = vld [vmem:[#allocation2 + $0x11a] sm:$0xff] }
 0x1a1   : > { %2067 = vrot.lane.b32.xlu1 %v1916_v38, %s6429_s0  ;;  %1862 = vst.msk [vmem:[#allocation3 + $0x108] sm:$0xff] %vm1828_vm9, %v1703_v13  ;;  %v1922_v38 = vld [vmem:[#allocation2 + $0x122] sm:$0xff] }
 0x1a4   : > { %2069 = vrot.lane.b32.xlu0 %v1917_v28, %s6429_s0  ;;  %v1923_v28 = vld [vmem:[#allocation2 + $0x12a] sm:$0xff] }
 0x1a5   : > { %2071 = vrot.lane.b32.xlu1 %v1918_v62, %s6429_s0  ;;  %v1924_v62 = vld [vmem:[#allocation2 + $0x132] sm:$0xff] }
 0x1a8   : > { %2073 = vrot.lane.b32.xlu0 %v1919_v50, %s6429_s0  ;;  %v1707_v2 = vpop.permute.xlu1 %1706  ;;  %v1925_v50 = vld [vmem:[#allocation2 + $0x142] sm:$0xff] }
 0x1a9   : > { %2075 = vrot.lane.b32.xlu1 %v1920_v55, %s6429_s0  ;;  %1864 = vst.msk [vmem:[#allocation3 + $0x118] sm:$0xff] %vm1828_vm9, %v1707_v2  ;;  %v1926_v55 = vld [vmem:[#allocation2 + $0x14a] sm:$0xff] }
 0x1aa   : > { %v1705_v44 = vpop.permute.xlu0 %1704 }
 0x1ab   : > { %1863 = vst.msk [vmem:[#allocation3 + $0x110] sm:$0xff] %vm1828_vm9, %v1705_v44 }
 0x1ac   : > { %2077 = vrot.lane.b32.xlu0 %v1921_v46, %s6429_s0  ;;  %v1711_v13 = vpop.permute.xlu1 %1710  ;;  %v1927_v46 = vld [vmem:[#allocation2 + $0x152] sm:$0xff] }
 0x1ad   : > { %2079 = vrot.lane.b32.xlu1 %v1922_v38, %s6429_s0  ;;  %1866 = vst.msk [vmem:[#allocation3 + $0x128] sm:$0xff] %vm1828_vm9, %v1711_v13  ;;  %v1928_v38 = vld [vmem:[#allocation2 + $0x15a] sm:$0xff] }
 0x1ae   : > { %v1709_v22 = vpop.permute.xlu0 %1708 }
 0x1af   : > { %1865 = vst.msk [vmem:[#allocation3 + $0x120] sm:$0xff] %vm1828_vm9, %v1709_v22 }
 0x1b0   : > { %2081 = vrot.lane.b32.xlu0 %v1923_v28, %s6429_s0  ;;  %v1715_v2 = vpop.permute.xlu1 %1714  ;;  %v1929_v28 = vld [vmem:[#allocation2 + $0x16a] sm:$0xff] }
 0x1b1   : > { %2083 = vrot.lane.b32.xlu1 %v1924_v62, %s6429_s0  ;;  %1868 = vst.msk [vmem:[#allocation3 + $0x138] sm:$0xff] %vm1828_vm9, %v1715_v2  ;;  %v1930_v62 = vld [vmem:[#allocation2 + $0x172] sm:$0xff] }
 0x1b2   : > { %v1713_v44 = vpop.permute.xlu0 %1712 }
 0x1b3   : > { %1867 = vst.msk [vmem:[#allocation3 + $0x130] sm:$0xff] %vm1828_vm9, %v1713_v44 }
 0x1b4   : > { %2085 = vrot.lane.b32.xlu0 %v1925_v50, %s6429_s0  ;;  %v1719_v13 = vpop.permute.xlu1 %1718  ;;  %v1931_v50 = vld [vmem:[#allocation2 + $0x17a] sm:$0xff] }
 0x1b5   : > { %2087 = vrot.lane.b32.xlu1 %v1926_v55, %s6429_s0  ;;  %1870 = vst.msk [vmem:[#allocation3 + $0x148] sm:$0xff] %vm1828_vm9, %v1719_v13  ;;  %v1932_v55 = vld [vmem:[#allocation2 + $0x182] sm:$0xff] }
 0x1b6   : > { %v1717_v22 = vpop.permute.xlu0 %1716 }
 0x1b7   : > { %1869 = vst.msk [vmem:[#allocation3 + $0x140] sm:$0xff] %vm1828_vm9, %v1717_v22 }
 0x1b8   : > { %2089 = vrot.lane.b32.xlu0 %v1927_v46, %s6429_s0  ;;  %v1933_v46 = vld [vmem:[#allocation2 + $0x192] sm:$0xff] }
 0x1b9   : > { %2091 = vrot.lane.b32.xlu1 %v1928_v38, %s6429_s0  ;;  %v1934_v38 = vld [vmem:[#allocation2 + $0x19a] sm:$0xff] }
 0x1ba   : > { %v1721_v44 = vpop.permute.xlu0 %1720 }
 0x1bb   : > { %v1723_v2 = vpop.permute.xlu1 %1722  ;;  %1871 = vst.msk [vmem:[#allocation3 + $0x150] sm:$0xff] %vm1828_vm9, %v1721_v44 }
 0x1bc   : > { %1872 = vst.msk [vmem:[#allocation3 + $0x158] sm:$0xff] %vm1828_vm9, %v1723_v2  ;;  %2093 = vrot.lane.b32.xlu0 %v1929_v28, %s6429_s0  ;;  %v1935_v28 = vld [vmem:[#allocation2 + $0x1a2] sm:$0xff] }
 0x1bd   : > { %2095 = vrot.lane.b32.xlu1 %v1930_v62, %s6429_s0  ;;  %v1936_v62 = vld [vmem:[#allocation2 + $0x1aa] sm:$0xff] }
 0x1be   : > { %v1725_v22 = vpop.permute.xlu0 %1724 }
 0x1bf   : > { %v1727_v13 = vpop.permute.xlu1 %1726  ;;  %1873 = vst.msk [vmem:[#allocation3 + $0x160] sm:$0xff] %vm1828_vm9, %v1725_v22 }
 0x1c0   : > { %1874 = vst.msk [vmem:[#allocation3 + $0x168] sm:$0xff] %vm1828_vm9, %v1727_v13  ;;  %2097 = vrot.lane.b32.xlu0 %v1931_v50, %s6429_s0  ;;  %v1937_v50 = vld [vmem:[#allocation2 + $0x1ba] sm:$0xff] }
 0x1c1   : > { %2099 = vrot.lane.b32.xlu1 %v1932_v55, %s6429_s0  ;;  %v1938_v55 = vld [vmem:[#allocation2 + $0x1c2] sm:$0xff] }
 0x1c2   : > { %v1729_v44 = vpop.permute.xlu0 %1728 }
 0x1c3   : > { %v1731_v2 = vpop.permute.xlu1 %1730  ;;  %1875 = vst.msk [vmem:[#allocation3 + $0x170] sm:$0xff] %vm1828_vm9, %v1729_v44 }
 0x1c4   : > { %1876 = vst.msk [vmem:[#allocation3 + $0x178] sm:$0xff] %vm1828_vm9, %v1731_v2  ;;  %2101 = vrot.lane.b32.xlu0 %v1933_v46, %s6429_s0  ;;  %v1939_v46 = vld [vmem:[#allocation2 + $0x1ca] sm:$0xff] }
 0x1c5   : > { %2103 = vrot.lane.b32.xlu1 %v1934_v38, %s6429_s0  ;;  %v1940_v38 = vld [vmem:[#allocation2 + $0x1d2] sm:$0xff] }
 0x1c6   : > { %v1733_v22 = vpop.permute.xlu0 %1732 }
 0x1c7   : > { %v1735_v13 = vpop.permute.xlu1 %1734  ;;  %1877 = vst.msk [vmem:[#allocation3 + $0x180] sm:$0xff] %vm1828_vm9, %v1733_v22 }
 0x1c8   : > { %1878 = vst.msk [vmem:[#allocation3 + $0x188] sm:$0xff] %vm1828_vm9, %v1735_v13  ;;  %2105 = vrot.lane.b32.xlu0 %v1935_v28, %s6429_s0  ;;  %v1941_v28 = vld [vmem:[#allocation2 + $0x1e2] sm:$0xff] }
 0x1c9   : > { %2107 = vrot.lane.b32.xlu1 %v1936_v62, %s6429_s0  ;;  %v1942_v62 = vld [vmem:[#allocation2 + $0x1ea] sm:$0xff] }
 0x1ca   : > { %v1737_v44 = vpop.permute.xlu0 %1736 }
 0x1cb   : > { %v1739_v2 = vpop.permute.xlu1 %1738  ;;  %1879 = vst.msk [vmem:[#allocation3 + $0x190] sm:$0xff] %vm1828_vm9, %v1737_v44 }
 0x1cc   : > { %1880 = vst.msk [vmem:[#allocation3 + $0x198] sm:$0xff] %vm1828_vm9, %v1739_v2  ;;  %2109 = vrot.lane.b32.xlu0 %v1937_v50, %s6429_s0  ;;  %v1943_v50 = vld [vmem:[#allocation2 + $0x1f2] sm:$0xff] }
 0x1cd   : > { %2111 = vrot.lane.b32.xlu1 %v1938_v55, %s6429_s0  ;;  %v1944_v55 = vld [vmem:[#allocation2 + $0x1fa] sm:$0xff] }
 0x1ce   : > { %v1741_v22 = vpop.permute.xlu0 %1740 }
 0x1cf   : > { %v1743_v13 = vpop.permute.xlu1 %1742  ;;  %1881 = vst.msk [vmem:[#allocation3 + $0x1a0] sm:$0xff] %vm1828_vm9, %v1741_v22 }
 0x1d0   : > { %1882 = vst.msk [vmem:[#allocation3 + $0x1a8] sm:$0xff] %vm1828_vm9, %v1743_v13  ;;  %2113 = vrot.lane.b32.xlu0 %v1939_v46, %s6429_s0  ;;  %v1945_v46 = vld [vmem:[#allocation2 + $0x20a] sm:$0xff] }
 0x1d1   : > { %2115 = vrot.lane.b32.xlu1 %v1940_v38, %s6429_s0  ;;  %v1946_v38 = vld [vmem:[#allocation2 + $0x212] sm:$0xff] }
 0x1d2   : > { %v1745_v44 = vpop.permute.xlu0 %1744 }
 0x1d3   : > { %v1747_v2 = vpop.permute.xlu1 %1746  ;;  %1883 = vst.msk [vmem:[#allocation3 + $0x1b0] sm:$0xff] %vm1828_vm9, %v1745_v44 }
 0x1d4   : > { %1884 = vst.msk [vmem:[#allocation3 + $0x1b8] sm:$0xff] %vm1828_vm9, %v1747_v2  ;;  %2117 = vrot.lane.b32.xlu0 %v1941_v28, %s6429_s0  ;;  %v1947_v28 = vld [vmem:[#allocation2 + $0x21a] sm:$0xff] }
 0x1d5   : > { %2119 = vrot.lane.b32.xlu1 %v1942_v62, %s6429_s0  ;;  %v1948_v62 = vld [vmem:[#allocation2 + $0x222] sm:$0xff] }
 0x1d6   : > { %v1749_v22 = vpop.permute.xlu0 %1748 }
 0x1d7   : > { %v1751_v13 = vpop.permute.xlu1 %1750  ;;  %1885 = vst.msk [vmem:[#allocation3 + $0x1c0] sm:$0xff] %vm1828_vm9, %v1749_v22 }
 0x1d8   : > { %1886 = vst.msk [vmem:[#allocation3 + $0x1c8] sm:$0xff] %vm1828_vm9, %v1751_v13  ;;  %2121 = vrot.lane.b32.xlu0 %v1943_v50, %s6429_s0 }
 0x1d9   : > { %2123 = vrot.lane.b32.xlu1 %v1944_v55, %s6429_s0  ;;  %v6292_v55 = vld [vmem:[%s6635_s22 + $0x70] sm:$0xff]  ;;  %s6431_s22 = smov 16  }
 0x1da   : > { %v1753_v44 = vpop.permute.xlu0 %1752  ;;  %v593_v50 = vadd.f32 %v6292_v55, %v7596_v47  ;;  %v641_v43 = vadd.f32 %v6292_v55, %v7652_v25  ;;  %v594_v47 = vadd.f32 %v7669_v24, %v7655_v27  ;;  %v642_v25 = vadd.f32 %v7689_v35, %v7655_v27  ;;  %v1952_v35 = vld [vmem:[#allocation2 + $0x24a] sm:$0xff] }
 0x1db   : > { %v1755_v2 = vpop.permute.xlu1 %1754  ;;  %1887 = vst.msk [vmem:[#allocation3 + $0x1d0] sm:$0xff] %vm1828_vm9, %v1753_v44  ;;  %v1950_v44 = vld [vmem:[#allocation2 + $0x23a] sm:$0xff] }
 0x1dc   : > { %1888 = vst.msk [vmem:[#allocation3 + $0x1d8] sm:$0xff] %vm1828_vm9, %v1755_v2  ;;  %2125 = vrot.lane.b32.xlu0 %v1945_v46, %s6429_s0  ;;  %v610_v27 = vsub.f32 %v594_v47, %v7685_v34  ;;  %v658_v24 = vadd.f32 %v642_v25, %v7685_v34  ;;  %v1954_v34 = vld [vmem:[#allocation2 + $0x262] sm:$0xff] }
 0x1dd   : > { %2127 = vrot.lane.b32.xlu1 %v1946_v38, %s6429_s0  ;;  %v6293_v38 = vld [vmem:[%s6639_s10 + $0x70] sm:$0xff]  ;;  %s6432_s10 = smov 20  }
 0x1de   : > { %v1757_v22 = vpop.permute.xlu0 %1756  ;;  %v609_v2 = vsub.f32 %v593_v50, %v6293_v38  ;;  %v657_v46 = vadd.f32 %v6293_v38, %v641_v43  ;;  %v626_v43 = vmul.f32 0.5, %v610_v27  ;;  %v2280_v38 = vld [vmem:[#allocation2 + $0x30] sm:$0xff] }
 0x1df   : > { %v1759_v13 = vpop.permute.xlu1 %1758  ;;  %1889 = vst.msk [vmem:[#allocation3 + $0x1e0] sm:$0xff] %vm1828_vm9, %v1757_v22  ;;  %v1955_v22 = vld [vmem:[#allocation2 + $0x26a] sm:$0xff] }
 0x1e0   : > { %1890 = vst.msk [vmem:[#allocation3 + $0x1e8] sm:$0xff] %vm1828_vm9, %v1759_v13  ;;  %2129 = vrot.lane.b32.xlu0 %v1947_v28, %s6429_s0  ;;  %v625_v3 = vmul.f32 0.5, %v609_v2  ;;  %v673_v58 = vmul.f32 0.5, %v657_v46  ;;  %v1956_v13 = vld [vmem:[#allocation2 + $0x272] sm:$0xff]  ;;  %v2279_v2 = vld [vmem:[#allocation2 + $0x28] sm:$0xff] }
 0x1e1   : > { %2131 = vrot.lane.b32.xlu1 %v1948_v62, %s6429_s0  ;;  %v674_v62 = vmul.f32 0.5, %v658_v24  ;;  %1251 = vst.msk [vmem:[#allocation2 + $0x295] sm:$0x10] %vm943_vm1, %v626_v43 }
 0x1e2   : > { %v1761_v12 = vpop.permute.xlu0 %1760  ;;  %941 = vst.msk [vmem:[#allocation2 + $0x285] sm:$0x8] %vm906_vm7, %v673_v58  ;;  %923 = vst.msk [vmem:[#allocation2 + $0x284] sm:$0x8] %vm906_vm7, %v625_v3 }
 0x1e3   : > { %v1763_v23 = vpop.permute.xlu1 %1762  ;;  %1891 = vst.msk [vmem:[#allocation3 + $0x1f0] sm:$0xff] %vm1828_vm9, %v1761_v12  ;;  %v1951_v12 = vld [vmem:[#allocation2 + $0x242] sm:$0xff] }
 0x1e4   : > { %1892 = vst.msk [vmem:[#allocation3 + $0x1f8] sm:$0xff] %vm1828_vm9, %v1763_v23  ;;  %2133 = vrot.lane.b32.xlu0 %v1949_v42, %s6429_s0  ;;  %vm4525_vm9 = vcmask 294144  }
 0x1e5   : > { %2135 = vrot.lane.b32.xlu1 %v1950_v44, %s6429_s0  ;;  %960 = vst.msk [vmem:[#allocation2 + $0x285] sm:$0x10] %vm943_vm1, %v625_v3  ;;  %978 = vst.msk [vmem:[#allocation2 + $0x286] sm:$0x10] %vm943_vm1, %v673_v58 }
 0x1e6   : > { %997 = vst.msk [vmem:[#allocation2 + $0x286] sm:$0x20] %vm980_vm2, %v625_v3  ;;  %1015 = vst.msk [vmem:[#allocation2 + $0x287] sm:$0x20] %vm980_vm2, %v673_v58  ;;  %v2022_v42 = vpop.permute.xlu0 %2021 }
 0x1e7   : > { %1034 = vst.msk [vmem:[#allocation2 + $0x287] sm:$0x40] %vm1017_vm3, %v625_v3  ;;  %1052 = vst.msk [vmem:[#allocation2 + $0x288] sm:$0x40] %vm1017_vm3, %v673_v58  ;;  %v2024_v23 = vpop.permute.xlu1 %2023 }
 0x1e8   : > { %1071 = vst.msk [vmem:[#allocation2 + $0x288] sm:$0x80] %vm1054_vm4, %v625_v3  ;;  %1089 = vst.msk [vmem:[#allocation2 + $0x289] sm:$0x80] %vm1054_vm4, %v673_v58  ;;  %2137 = vrot.lane.b32.xlu0 %v1951_v12, %s6429_s0 }
 0x1e9   : > { %812 = vst.msk [vmem:[#allocation2 + $0x281] sm:$0x1] %vm759_vm0, %v625_v3  ;;  %830 = vst.msk [vmem:[#allocation2 + $0x282] sm:$0x1] %vm759_vm0, %v673_v58  ;;  %2139 = vrot.lane.b32.xlu1 %v1952_v35, %s6429_s0 }
 0x1ea   : > { %849 = vst.msk [vmem:[#allocation2 + $0x282] sm:$0x2] %vm832_vm5, %v625_v3  ;;  %867 = vst.msk [vmem:[#allocation2 + $0x283] sm:$0x2] %vm832_vm5, %v673_v58  ;;  %v2026_v28 = vpop.permute.xlu0 %2025 }
 0x1eb   : > { %886 = vst.msk [vmem:[#allocation2 + $0x283] sm:$0x4] %vm869_vm6, %v625_v3  ;;  %904 = vst.msk [vmem:[#allocation2 + $0x284] sm:$0x4] %vm869_vm6, %v673_v58  ;;  %v1953_v58 = vld [vmem:[#allocation2 + $0x25a] sm:$0xff]  ;;  %v2028_v3 = vpop.permute.xlu1 %2027 }
 0x1ec   : > { %2215 = vst.msk [vmem:[#allocation3 + $0x8] sm:$0xff] %vm2213_vm10, %v2024_v23  ;;  %2214 = vst.msk [vmem:[#allocation3] sm:$0xff] %vm2213_vm10, %v2022_v42  ;;  %2141 = vrot.lane.b32.xlu0 %v1953_v58, %s6429_s0  ;;  %v9604_v58 = vld [vmem:[#allocation16_spill] sm:$0xff] }
 0x1ed   : > { %1233 = vst.msk [vmem:[#allocation2 + $0x295] sm:$0x8] %vm906_vm7, %v674_v62  ;;  %1215 = vst.msk [vmem:[#allocation2 + $0x294] sm:$0x8] %vm906_vm7, %v626_v43  ;;  %2143 = vrot.lane.b32.xlu1 %v1954_v34, %s6429_s0  ;;  %v9603_v34 = vld [vmem:[#allocation15_spill] sm:$0xff] }
 0x1ee   : > { %1269 = vst.msk [vmem:[#allocation2 + $0x296] sm:$0x10] %vm943_vm1, %v674_v62  ;;  %v2030_v50 = vpop.permute.xlu0 %2029 }
 0x1ef   : > { %1287 = vst.msk [vmem:[#allocation2 + $0x296] sm:$0x20] %vm980_vm2, %v626_v43  ;;  %1305 = vst.msk [vmem:[#allocation2 + $0x297] sm:$0x20] %vm980_vm2, %v674_v62  ;;  %v2032_v55 = vpop.permute.xlu1 %2031 }
 0x1f0   : > { %1323 = vst.msk [vmem:[#allocation2 + $0x297] sm:$0x40] %vm1017_vm3, %v626_v43  ;;  %1341 = vst.msk [vmem:[#allocation2 + $0x298] sm:$0x40] %vm1017_vm3, %v674_v62  ;;  %2145 = vrot.lane.b32.xlu0 %v1955_v22, %s6429_s0  ;;  %v9606_v22 = vld [vmem:[#allocation18_spill] sm:$0xff] }
 0x1f1   : > { %1359 = vst.msk [vmem:[#allocation2 + $0x298] sm:$0x80] %vm1054_vm4, %v626_v43  ;;  %1377 = vst.msk [vmem:[#allocation2 + $0x299] sm:$0x80] %vm1054_vm4, %v674_v62  ;;  %2147 = vrot.lane.b32.xlu1 %v1956_v13, %s6429_s0  ;;  %v9605_v13 = vld [vmem:[#allocation17_spill] sm:$0xff]  ;;  %s9615_s0 = sshll.u32 %s6409_s27, 3 }
 0x1f2   : > { %1107 = vst.msk [vmem:[#allocation2 + $0x291] sm:$0x1] %vm759_vm0, %v626_v43  ;;  %1125 = vst.msk [vmem:[#allocation2 + $0x292] sm:$0x1] %vm759_vm0, %v674_v62  ;;  %v2034_v44 = vpop.permute.xlu0 %2033 }
 0x1f3   : > { %1143 = vst.msk [vmem:[#allocation2 + $0x292] sm:$0x2] %vm832_vm5, %v626_v43  ;;  %1161 = vst.msk [vmem:[#allocation2 + $0x293] sm:$0x2] %vm832_vm5, %v674_v62  ;;  %v2036_v46 = vpop.permute.xlu1 %2035 }
 0x1f4   : > { %1179 = vst.msk [vmem:[#allocation2 + $0x293] sm:$0x4] %vm869_vm6, %v626_v43  ;;  %1197 = vst.msk [vmem:[#allocation2 + $0x294] sm:$0x4] %vm869_vm6, %v674_v62  ;;  %2407 = vrot.lane.b32.xlu0 %v2279_v2, %s6430_s1  ;;  %v9608_v2 = vld [vmem:[#allocation20_spill] sm:$0xff] }
 0x1f5   : > { %2217 = vst.msk [vmem:[#allocation3 + $0x18] sm:$0xff] %vm2213_vm10, %v2028_v3  ;;  %2216 = vst.msk [vmem:[#allocation3 + $0x10] sm:$0xff] %vm2213_vm10, %v2026_v28  ;;  %2409 = vrot.lane.b32.xlu1 %v2280_v38, %s6430_s1  ;;  %v9607_v38 = vld [vmem:[#allocation19_spill] sm:$0xff] }
 0x1f6   : > { %2219 = vst.msk [vmem:[#allocation3 + $0x28] sm:$0xff] %vm2213_vm10, %v2032_v55  ;;  %2218 = vst.msk [vmem:[#allocation3 + $0x20] sm:$0xff] %vm2213_vm10, %v2030_v50  ;;  %v2038_v25 = vpop.permute.xlu0 %2037 }
 0x1f7   : > { %2221 = vst.msk [vmem:[#allocation3 + $0x38] sm:$0xff] %vm2213_vm10, %v2036_v46  ;;  %2220 = vst.msk [vmem:[#allocation3 + $0x30] sm:$0xff] %vm2213_vm10, %v2034_v44  ;;  %v2040_v47 = vpop.permute.xlu1 %2039 }
 0x1f8   : > { %2223 = vst.msk [vmem:[#allocation3 + $0x48] sm:$0xff] %vm2213_vm10, %v2040_v47  ;;  %2222 = vst.msk [vmem:[#allocation3 + $0x40] sm:$0xff] %vm2213_vm10, %v2038_v25  ;;  %2411 = vrot.lane.b32.xlu0 %v7000_v16, %s6430_s1  ;;  %v9609_v47 = vld [vmem:[#allocation21_spill] sm:$0xff]  ;;  %v9610_v25 = vld [vmem:[#allocation22_spill] sm:$0xff] }
 0x1f9   : > { %2413 = vrot.lane.b32.xlu1 %v6972_v11, %s6430_s1 }
 0x1fa   : > { %v2042_v24 = vpop.permute.xlu0 %2041 }
 0x1fb   : > { %v2044_v27 = vpop.permute.xlu1 %2043  ;;  %2224 = vst.msk [vmem:[#allocation3 + $0x50] sm:$0xff] %vm2213_vm10, %v2042_v24 }
 0x1fc   : > { %2225 = vst.msk [vmem:[#allocation3 + $0x58] sm:$0xff] %vm2213_vm10, %v2044_v27  ;;  %2415 = vrot.lane.b32.xlu0 %v7014_v30, %s6430_s1 }
 0x1fd   : > { %2417 = vrot.lane.b32.xlu1 %v7012_v29, %s6430_s1 }
 0x1fe   : > { %v2046_v12 = vpop.permute.xlu0 %2045 }
 0x1ff   : > { %v2048_v35 = vpop.permute.xlu1 %2047  ;;  %2226 = vst.msk [vmem:[#allocation3 + $0x60] sm:$0xff] %vm2213_vm10, %v2046_v12  ;;  %v9612_v12 = vld [vmem:[#allocation24_spill] sm:$0xff] }
 0x200   : > { %2227 = vst.msk [vmem:[#allocation3 + $0x68] sm:$0xff] %vm2213_vm10, %v2048_v35  ;;  %2419 = vrot.lane.b32.xlu0 %v7139_v1, %s6430_s1  ;;  %v9611_v35 = vld [vmem:[#allocation23_spill] sm:$0xff] }
 0x201   : > { %2421 = vrot.lane.b32.xlu1 %v7130_v57, %s6430_s1 }
 0x202   : > { %v2050_v16 = vpop.permute.xlu0 %2049 }
 0x203   : > { %v2052_v11 = vpop.permute.xlu1 %2051  ;;  %2228 = vst.msk [vmem:[#allocation3 + $0x70] sm:$0xff] %vm2213_vm10, %v2050_v16 }
 0x204   : > { %2229 = vst.msk [vmem:[#allocation3 + $0x78] sm:$0xff] %vm2213_vm10, %v2052_v11  ;;  %2423 = vrot.lane.b32.xlu0 %v7166_v10, %s6430_s1 }
 0x205   : > { %2425 = vrot.lane.b32.xlu1 %v7162_v59, %s6430_s1 }
 0x206   : > { %v2054_v30 = vpop.permute.xlu0 %2053 }
 0x207   : > { %v2056_v29 = vpop.permute.xlu1 %2055  ;;  %2230 = vst.msk [vmem:[#allocation3 + $0x80] sm:$0xff] %vm2213_vm10, %v2054_v30  ;;  %v9614_v30 = vld [vmem:[#allocation26_spill] sm:$0xff] }
 0x208   : > { %2231 = vst.msk [vmem:[#allocation3 + $0x88] sm:$0xff] %vm2213_vm10, %v2056_v29  ;;  %2427 = vrot.lane.b32.xlu0 %v7175_v19, %s6430_s1  ;;  %v9613_v29 = vld [vmem:[#allocation25_spill] sm:$0xff] }
 0x209   : > { %2429 = vrot.lane.b32.xlu1 %v7173_v18, %s6430_s1 }
 0x20a   : > { %v2058_v1 = vpop.permute.xlu0 %2057 }
 0x20b   : > { %v2060_v57 = vpop.permute.xlu1 %2059  ;;  %2232 = vst.msk [vmem:[#allocation3 + $0x90] sm:$0xff] %vm2213_vm10, %v2058_v1  ;;  %v2339_v1 = vld [vmem:[#allocation2 + $0x280] sm:$0xff] }
 0x20c   : > { %2233 = vst.msk [vmem:[#allocation3 + $0x98] sm:$0xff] %vm2213_vm10, %v2060_v57  ;;  %2431 = vrot.lane.b32.xlu0 %v7324_v7, %s6430_s1  ;;  %v2340_v57 = vld [vmem:[#allocation2 + $0x288] sm:$0xff] }
 0x20d   : > { %2433 = vrot.lane.b32.xlu1 %v7322_v6, %s6430_s1 }
 0x20e   : > { %v2062_v10 = vpop.permute.xlu0 %2061 }
 0x20f   : > { %v2064_v59 = vpop.permute.xlu1 %2063  ;;  %2234 = vst.msk [vmem:[#allocation3 + $0xa0] sm:$0xff] %vm2213_vm10, %v2062_v10 }
 0x210   : > { %2235 = vst.msk [vmem:[#allocation3 + $0xa8] sm:$0xff] %vm2213_vm10, %v2064_v59  ;;  %2435 = vrot.lane.b32.xlu0 %v7339_v17, %s6430_s1 }
 0x211   : > { %2437 = vrot.lane.b32.xlu1 %v7337_v15, %s6430_s1 }
 0x212   : > { %v2066_v19 = vpop.permute.xlu0 %2065 }
 0x213   : > { %v2068_v18 = vpop.permute.xlu1 %2067  ;;  %2236 = vst.msk [vmem:[#allocation3 + $0xb0] sm:$0xff] %vm2213_vm10, %v2066_v19  ;;  %v2341_v19 = vld [vmem:[#allocation2 + $0x290] sm:$0xff] }
 0x214   : > { %2237 = vst.msk [vmem:[#allocation3 + $0xb8] sm:$0xff] %vm2213_vm10, %v2068_v18  ;;  %2439 = vrot.lane.b32.xlu0 %v7446_v45, %s6430_s1  ;;  %v2342_v18 = vld [vmem:[#allocation2 + $0x298] sm:$0xff] }
 0x215   : > { %2441 = vrot.lane.b32.xlu1 %v7371_v26, %s6430_s1 }
 0x216   : > { %v2070_v7 = vpop.permute.xlu0 %2069 }
 0x217   : > { %v2072_v6 = vpop.permute.xlu1 %2071  ;;  %2238 = vst.msk [vmem:[#allocation3 + $0xc0] sm:$0xff] %vm2213_vm10, %v2070_v7 }
 0x218   : > { %2239 = vst.msk [vmem:[#allocation3 + $0xc8] sm:$0xff] %vm2213_vm10, %v2072_v6  ;;  %2443 = vrot.lane.b32.xlu0 %v7485_v0, %s6430_s1 }
 0x219   : > { %2445 = vrot.lane.b32.xlu1 %v7462_v54, %s6430_s1 }
 0x21a   : > { %v2074_v17 = vpop.permute.xlu0 %2073 }
 0x21b   : > { %v2076_v15 = vpop.permute.xlu1 %2075  ;;  %2240 = vst.msk [vmem:[#allocation3 + $0xd0] sm:$0xff] %vm2213_vm10, %v2074_v17  ;;  %v2664_v17 = vld [vmem:[#allocation2 + $0x29] sm:$0xff] }
 0x21c   : > { %2241 = vst.msk [vmem:[#allocation3 + $0xd8] sm:$0xff] %vm2213_vm10, %v2076_v15  ;;  %2447 = vrot.lane.b32.xlu0 %v7501_v8, %s6430_s1  ;;  %v2665_v15 = vld [vmem:[#allocation2 + $0x31] sm:$0xff] }
 0x21d   : > { %2449 = vrot.lane.b32.xlu1 %v7499_v5, %s6430_s1 }
 0x21e   : > { %v2078_v45 = vpop.permute.xlu0 %2077 }
 0x21f   : > { %v2080_v26 = vpop.permute.xlu1 %2079  ;;  %2242 = vst.msk [vmem:[#allocation3 + $0xe0] sm:$0xff] %vm2213_vm10, %v2078_v45 }
 0x220   : > { %2243 = vst.msk [vmem:[#allocation3 + $0xe8] sm:$0xff] %vm2213_vm10, %v2080_v26  ;;  %2451 = vrot.lane.b32.xlu0 %v7585_v40, %s6430_s1 }
 0x221   : > { %2453 = vrot.lane.b32.xlu1 %v7583_v39, %s6430_s1 }
 0x222   : > { %v2082_v0 = vpop.permute.xlu0 %2081 }
 0x223   : > { %v2084_v54 = vpop.permute.xlu1 %2083  ;;  %2244 = vst.msk [vmem:[#allocation3 + $0xf0] sm:$0xff] %vm2213_vm10, %v2082_v0  ;;  %v2666_v0 = vld [vmem:[#allocation2 + $0x39] sm:$0xff] }
 0x224   : > { %2245 = vst.msk [vmem:[#allocation3 + $0xf8] sm:$0xff] %vm2213_vm10, %v2084_v54  ;;  %2455 = vrot.lane.b32.xlu0 %v7628_v20, %s6430_s1  ;;  %v2667_v54 = vld [vmem:[#allocation2 + $0x41] sm:$0xff] }
 0x225   : > { %2457 = vrot.lane.b32.xlu1 %v7621_v4, %s6430_s1 }
 0x226   : > { %v2086_v8 = vpop.permute.xlu0 %2085 }
 0x227   : > { %v2088_v5 = vpop.permute.xlu1 %2087  ;;  %2246 = vst.msk [vmem:[#allocation3 + $0x100] sm:$0xff] %vm2213_vm10, %v2086_v8 }
 0x228   : > { %2247 = vst.msk [vmem:[#allocation3 + $0x108] sm:$0xff] %vm2213_vm10, %v2088_v5  ;;  %2459 = vrot.lane.b32.xlu0 %v7721_v32, %s6430_s1 }
 0x229   : > { %2461 = vrot.lane.b32.xlu1 %v7691_v37, %s6430_s1 }
 0x22a   : > { %v2090_v40 = vpop.permute.xlu0 %2089 }
 0x22b   : > { %v2092_v39 = vpop.permute.xlu1 %2091  ;;  %2248 = vst.msk [vmem:[#allocation3 + $0x110] sm:$0xff] %vm2213_vm10, %v2090_v40  ;;  %v2668_v40 = vld [vmem:[#allocation2 + $0x51] sm:$0xff] }
 0x22c   : > { %2249 = vst.msk [vmem:[#allocation3 + $0x118] sm:$0xff] %vm2213_vm10, %v2092_v39  ;;  %2463 = vrot.lane.b32.xlu0 %v7752_v61, %s6430_s1  ;;  %v2669_v39 = vld [vmem:[#allocation2 + $0x59] sm:$0xff] }
 0x22d   : > { %2465 = vrot.lane.b32.xlu1 %v7748_v51, %s6430_s1 }
 0x22e   : > { %v2094_v20 = vpop.permute.xlu0 %2093 }
 0x22f   : > { %v2096_v4 = vpop.permute.xlu1 %2095  ;;  %2250 = vst.msk [vmem:[#allocation3 + $0x120] sm:$0xff] %vm2213_vm10, %v2094_v20 }
 0x230   : > { %2251 = vst.msk [vmem:[#allocation3 + $0x128] sm:$0xff] %vm2213_vm10, %v2096_v4  ;;  %2467 = vrot.lane.b32.xlu0 %v7786_v60, %s6430_s1 }
 0x231   : > { %2469 = vrot.lane.b32.xlu1 %v7782_v41, %s6430_s1 }
 0x232   : > { %v2098_v32 = vpop.permute.xlu0 %2097 }
 0x233   : > { %v2100_v37 = vpop.permute.xlu1 %2099  ;;  %2252 = vst.msk [vmem:[#allocation3 + $0x130] sm:$0xff] %vm2213_vm10, %v2098_v32  ;;  %v2670_v32 = vld [vmem:[#allocation2 + $0x61] sm:$0xff] }
 0x234   : > { %2253 = vst.msk [vmem:[#allocation3 + $0x138] sm:$0xff] %vm2213_vm10, %v2100_v37  ;;  %2471 = vrot.lane.b32.xlu0 %v7796_v14, %s6430_s1  ;;  %v2671_v37 = vld [vmem:[#allocation2 + $0x69] sm:$0xff] }
 0x235   : > { %2473 = vrot.lane.b32.xlu1 %v7792_v9, %s6430_s1 }
 0x236   : > { %v2102_v61 = vpop.permute.xlu0 %2101 }
 0x237   : > { %v2104_v51 = vpop.permute.xlu1 %2103  ;;  %2254 = vst.msk [vmem:[#allocation3 + $0x140] sm:$0xff] %vm2213_vm10, %v2102_v61 }
 0x238   : > { %2255 = vst.msk [vmem:[#allocation3 + $0x148] sm:$0xff] %vm2213_vm10, %v2104_v51  ;;  %2475 = vrot.lane.b32.xlu0 %v7806_v52, %s6430_s1 }
 0x239   : > { %2477 = vrot.lane.b32.xlu1 %v7802_v21, %s6430_s1 }
 0x23a   : > { %v2106_v60 = vpop.permute.xlu0 %2105 }
 0x23b   : > { %v2108_v41 = vpop.permute.xlu1 %2107  ;;  %2256 = vst.msk [vmem:[#allocation3 + $0x150] sm:$0xff] %vm2213_vm10, %v2106_v60  ;;  %v2672_v60 = vld [vmem:[#allocation2 + $0x79] sm:$0xff] }
 0x23c   : > { %2257 = vst.msk [vmem:[#allocation3 + $0x158] sm:$0xff] %vm2213_vm10, %v2108_v41  ;;  %2479 = vrot.lane.b32.xlu0 %v7816_v31, %s6430_s1  ;;  %v2673_v41 = vld [vmem:[#allocation2 + $0x81] sm:$0xff] }
 0x23d   : > { %2481 = vrot.lane.b32.xlu1 %v7812_v53, %s6430_s1 }
 0x23e   : > { %v2110_v14 = vpop.permute.xlu0 %2109 }
 0x23f   : > { %v2112_v9 = vpop.permute.xlu1 %2111  ;;  %2258 = vst.msk [vmem:[#allocation3 + $0x160] sm:$0xff] %vm2213_vm10, %v2110_v14 }
 0x240   : > { %2259 = vst.msk [vmem:[#allocation3 + $0x168] sm:$0xff] %vm2213_vm10, %v2112_v9  ;;  %2483 = vrot.lane.b32.xlu0 %v7826_v63, %s6430_s1 }
 0x241   : > { %2485 = vrot.lane.b32.xlu1 %v7822_v33, %s6430_s1 }
 0x242   : > { %v2114_v52 = vpop.permute.xlu0 %2113 }
 0x243   : > { %v2116_v21 = vpop.permute.xlu1 %2115  ;;  %2260 = vst.msk [vmem:[#allocation3 + $0x170] sm:$0xff] %vm2213_vm10, %v2114_v52  ;;  %v2674_v52 = vld [vmem:[#allocation2 + $0x89] sm:$0xff] }
 0x244   : > { %2261 = vst.msk [vmem:[#allocation3 + $0x178] sm:$0xff] %vm2213_vm10, %v2116_v21  ;;  %2487 = vrot.lane.b32.xlu0 %v7836_v48, %s6430_s1  ;;  %v9600_v48 = vld [vmem:[#allocation12_spill] sm:$0xff]  ;;  %v2675_v21 = vld [vmem:[#allocation2 + $0x91] sm:$0xff] }
 0x245   : > { %2489 = vrot.lane.b32.xlu1 %v7832_v36, %s6430_s1  ;;  %v9599_v36 = vld [vmem:[#allocation11_spill] sm:$0xff] }
 0x246   : > { %v2118_v31 = vpop.permute.xlu0 %2117 }
 0x247   : > { %v2120_v53 = vpop.permute.xlu1 %2119  ;;  %2262 = vst.msk [vmem:[#allocation3 + $0x180] sm:$0xff] %vm2213_vm10, %v2118_v31 }
 0x248   : > { %2263 = vst.msk [vmem:[#allocation3 + $0x188] sm:$0xff] %vm2213_vm10, %v2120_v53  ;;  %2491 = vrot.lane.b32.xlu0 %v7846_v56, %s6430_s1  ;;  %v9602_v56 = vld [vmem:[#allocation14_spill] sm:$0xff] }
 0x249   : > { %2493 = vrot.lane.b32.xlu1 %v7842_v49, %s6430_s1  ;;  %v9601_v49 = vld [vmem:[#allocation13_spill] sm:$0xff] }
 0x24a   : > { %v2122_v63 = vpop.permute.xlu0 %2121 }
 0x24b   : > { %v2124_v33 = vpop.permute.xlu1 %2123  ;;  %2264 = vst.msk [vmem:[#allocation3 + $0x190] sm:$0xff] %vm2213_vm10, %v2122_v63  ;;  %v2676_v63 = vld [vmem:[#allocation2 + $0xa1] sm:$0xff] }
 0x24c   : > { %2265 = vst.msk [vmem:[#allocation3 + $0x198] sm:$0xff] %vm2213_vm10, %v2124_v33  ;;  %2495 = vrot.lane.b32.xlu0 %v9600_v48, %s6430_s1  ;;  %v2677_v33 = vld [vmem:[#allocation2 + $0xa9] sm:$0xff] }
 0x24d   : > { %2497 = vrot.lane.b32.xlu1 %v9599_v36, %s6430_s1 }
 0x24e   : > { %v2126_v42 = vpop.permute.xlu0 %2125 }
 0x24f   : > { %v2128_v23 = vpop.permute.xlu1 %2127  ;;  %2266 = vst.msk [vmem:[#allocation3 + $0x1a0] sm:$0xff] %vm2213_vm10, %v2126_v42  ;;  %v2678_v42 = vld [vmem:[#allocation2 + $0xb1] sm:$0xff] }
 0x250   : > { %2267 = vst.msk [vmem:[#allocation3 + $0x1a8] sm:$0xff] %vm2213_vm10, %v2128_v23  ;;  %2499 = vrot.lane.b32.xlu0 %v9602_v56, %s6430_s1  ;;  %v2679_v23 = vld [vmem:[#allocation2 + $0xb9] sm:$0xff] }
 0x251   : > { %2501 = vrot.lane.b32.xlu1 %v9601_v49, %s6430_s1 }
 0x252   : > { %v2130_v62 = vpop.permute.xlu0 %2129 }
 0x253   : > { %v2132_v43 = vpop.permute.xlu1 %2131  ;;  %2268 = vst.msk [vmem:[#allocation3 + $0x1b0] sm:$0xff] %vm2213_vm10, %v2130_v62  ;;  %v2680_v62 = vld [vmem:[#allocation2 + $0xc9] sm:$0xff] }
 0x254   : > { %2269 = vst.msk [vmem:[#allocation3 + $0x1b8] sm:$0xff] %vm2213_vm10, %v2132_v43  ;;  %2503 = vrot.lane.b32.xlu0 %v9604_v58, %s6430_s1  ;;  %v2681_v43 = vld [vmem:[#allocation2 + $0xd1] sm:$0xff] }
 0x255   : > { %2505 = vrot.lane.b32.xlu1 %v9603_v34, %s6430_s1 }
 0x256   : > { %v2134_v28 = vpop.permute.xlu0 %2133 }
 0x257   : > { %v2136_v3 = vpop.permute.xlu1 %2135  ;;  %2270 = vst.msk [vmem:[#allocation3 + $0x1c0] sm:$0xff] %vm2213_vm10, %v2134_v28  ;;  %v2682_v28 = vld [vmem:[#allocation2 + $0xd9] sm:$0xff] }
 0x258   : > { %2271 = vst.msk [vmem:[#allocation3 + $0x1c8] sm:$0xff] %vm2213_vm10, %v2136_v3  ;;  %2507 = vrot.lane.b32.xlu0 %v9606_v22, %s6430_s1  ;;  %v2683_v3 = vld [vmem:[#allocation2 + $0xe1] sm:$0xff] }
 0x259   : > { %2509 = vrot.lane.b32.xlu1 %v9605_v13, %s6430_s1 }
 0x25a   : > { %v2138_v50 = vpop.permute.xlu0 %2137 }
 0x25b   : > { %v2140_v55 = vpop.permute.xlu1 %2139  ;;  %2272 = vst.msk [vmem:[#allocation3 + $0x1d0] sm:$0xff] %vm2213_vm10, %v2138_v50  ;;  %v2684_v50 = vld [vmem:[#allocation2 + $0xf1] sm:$0xff] }
 0x25c   : > { %2273 = vst.msk [vmem:[#allocation3 + $0x1d8] sm:$0xff] %vm2213_vm10, %v2140_v55  ;;  %2511 = vrot.lane.b32.xlu0 %v9608_v2, %s6430_s1  ;;  %v2685_v55 = vld [vmem:[#allocation2 + $0xf9] sm:$0xff] }
 0x25d   : > { %2513 = vrot.lane.b32.xlu1 %v9607_v38, %s6430_s1 }
 0x25e   : > { %v2142_v44 = vpop.permute.xlu0 %2141 }
 0x25f   : > { %v2144_v46 = vpop.permute.xlu1 %2143  ;;  %2274 = vst.msk [vmem:[#allocation3 + $0x1e0] sm:$0xff] %vm2213_vm10, %v2142_v44  ;;  %v2686_v44 = vld [vmem:[#allocation2 + $0x101] sm:$0xff] }
 0x260   : > { %2275 = vst.msk [vmem:[#allocation3 + $0x1e8] sm:$0xff] %vm2213_vm10, %v2144_v46  ;;  %2515 = vrot.lane.b32.xlu0 %v9610_v25, %s6430_s1  ;;  %v2687_v46 = vld [vmem:[#allocation2 + $0x109] sm:$0xff] }
 0x261   : > { %2517 = vrot.lane.b32.xlu1 %v9609_v47, %s6430_s1 }
 0x262   : > { %v2146_v24 = vpop.permute.xlu0 %2145 }
 0x263   : > { %v2148_v27 = vpop.permute.xlu1 %2147  ;;  %2276 = vst.msk [vmem:[#allocation3 + $0x1f0] sm:$0xff] %vm2213_vm10, %v2146_v24  ;;  %v2688_v24 = vld [vmem:[#allocation2 + $0x119] sm:$0xff] }
 0x264   : > { %2277 = vst.msk [vmem:[#allocation3 + $0x1f8] sm:$0xff] %vm2213_vm10, %v2148_v27  ;;  %2519 = vrot.lane.b32.xlu0 %v9612_v12, %s6430_s1  ;;  %v2689_v27 = vld [vmem:[#allocation2 + $0x121] sm:$0xff]  ;;  %vm4666_vm10 = vcmask 293888  }
 0x265   : > { %2521 = vrot.lane.b32.xlu1 %v9611_v35, %s6430_s1 }
 0x266   : > { %v2408_v16 = vpop.permute.xlu0 %2407 }
 0x267   : > { %v2410_v11 = vpop.permute.xlu1 %2409  ;;  %2600 = vst.msk [vmem:[#allocation3] sm:$0xff] %vm2599_vm11, %v2408_v16  ;;  %v2690_v16 = vld [vmem:[#allocation2 + $0x129] sm:$0xff] }
 0x268   : > { %2601 = vst.msk [vmem:[#allocation3 + $0x8] sm:$0xff] %vm2599_vm11, %v2410_v11  ;;  %2523 = vrot.lane.b32.xlu0 %v9614_v30, %s6430_s1  ;;  %v2691_v11 = vld [vmem:[#allocation2 + $0x131] sm:$0xff] }
 0x269   : > { %2525 = vrot.lane.b32.xlu1 %v9613_v29, %s6430_s1 }
 0x26a   : > { %v2412_v10 = vpop.permute.xlu0 %2411 }
 0x26b   : > { %v2414_v59 = vpop.permute.xlu1 %2413  ;;  %2602 = vst.msk [vmem:[#allocation3 + $0x10] sm:$0xff] %vm2599_vm11, %v2412_v10 }
 0x26c   : > { %2603 = vst.msk [vmem:[#allocation3 + $0x18] sm:$0xff] %vm2599_vm11, %v2414_v59  ;;  %2527 = vrot.lane.b32.xlu0 %v2339_v1, %s6430_s1  ;;  %v2692_v1 = vld [vmem:[#allocation2 + $0x141] sm:$0xff] }
 0x26d   : > { %2529 = vrot.lane.b32.xlu1 %v2340_v57, %s6430_s1  ;;  %v2693_v57 = vld [vmem:[#allocation2 + $0x149] sm:$0xff] }
 0x26e   : > { %v2416_v7 = vpop.permute.xlu0 %2415 }
 0x26f   : > { %v2418_v6 = vpop.permute.xlu1 %2417  ;;  %2604 = vst.msk [vmem:[#allocation3 + $0x20] sm:$0xff] %vm2599_vm11, %v2416_v7 }
 0x270   : > { %2605 = vst.msk [vmem:[#allocation3 + $0x28] sm:$0xff] %vm2599_vm11, %v2418_v6  ;;  %2531 = vrot.lane.b32.xlu0 %v2341_v19, %s6430_s1  ;;  %v2694_v19 = vld [vmem:[#allocation2 + $0x151] sm:$0xff] }
 0x271   : > { %2533 = vrot.lane.b32.xlu1 %v2342_v18, %s6430_s1  ;;  %v2695_v18 = vld [vmem:[#allocation2 + $0x159] sm:$0xff]  ;;  %s709_s1 = sadd.s32 8, %s9615_s0 }
 0x272   : > { %v2420_v45 = vpop.permute.xlu0 %2419  ;;  %p710_p1 = scmp.lt.s32.totalorder %s709_s1, 15 }
 0x273   : > { %v2422_v26 = vpop.permute.xlu1 %2421  ;;  %2606 = vst.msk [vmem:[#allocation3 + $0x30] sm:$0xff] %vm2599_vm11, %v2420_v45 }
 0x274   : > { %2607 = vst.msk [vmem:[#allocation3 + $0x38] sm:$0xff] %vm2599_vm11, %v2422_v26  ;;  %2792 = vrot.lane.b32.xlu0 %v2664_v17, %s6431_s22  ;;  %v2696_v17 = vld [vmem:[#allocation2 + $0x169] sm:$0xff]  ;;  %s9633_s1 = smov (!%p710_p1, %s709_s1), 15 }
 0x275   : > { %2794 = vrot.lane.b32.xlu1 %v2665_v15, %s6431_s22  ;;  %v2697_v15 = vld [vmem:[#allocation2 + $0x171] sm:$0xff] }
 0x276   : > { %v2424_v8 = vpop.permute.xlu0 %2423 }
 0x277   : > { %v2426_v5 = vpop.permute.xlu1 %2425  ;;  %2608 = vst.msk [vmem:[#allocation3 + $0x40] sm:$0xff] %vm2599_vm11, %v2424_v8 }
 0x278   : > { %2609 = vst.msk [vmem:[#allocation3 + $0x48] sm:$0xff] %vm2599_vm11, %v2426_v5  ;;  %2796 = vrot.lane.b32.xlu0 %v2666_v0, %s6431_s22  ;;  %v2698_v0 = vld [vmem:[#allocation2 + $0x179] sm:$0xff] }
 0x279   : > { %2798 = vrot.lane.b32.xlu1 %v2667_v54, %s6431_s22  ;;  %v2699_v54 = vld [vmem:[#allocation2 + $0x181] sm:$0xff] }
 0x27a   : > { %v2428_v20 = vpop.permute.xlu0 %2427 }
 0x27b   : > { %v2430_v4 = vpop.permute.xlu1 %2429  ;;  %2610 = vst.msk [vmem:[#allocation3 + $0x50] sm:$0xff] %vm2599_vm11, %v2428_v20 }
 0x27c   : > { %2611 = vst.msk [vmem:[#allocation3 + $0x58] sm:$0xff] %vm2599_vm11, %v2430_v4  ;;  %2800 = vrot.lane.b32.xlu0 %v2668_v40, %s6431_s22  ;;  %v2700_v40 = vld [vmem:[#allocation2 + $0x191] sm:$0xff] }
 0x27d   : > { %2802 = vrot.lane.b32.xlu1 %v2669_v39, %s6431_s22  ;;  %v2701_v39 = vld [vmem:[#allocation2 + $0x199] sm:$0xff] }
 0x27e   : > { %v2432_v61 = vpop.permute.xlu0 %2431 }
 0x27f   : > { %v2434_v51 = vpop.permute.xlu1 %2433  ;;  %2612 = vst.msk [vmem:[#allocation3 + $0x60] sm:$0xff] %vm2599_vm11, %v2432_v61 }
 0x280   : > { %2613 = vst.msk [vmem:[#allocation3 + $0x68] sm:$0xff] %vm2599_vm11, %v2434_v51  ;;  %2804 = vrot.lane.b32.xlu0 %v2670_v32, %s6431_s22  ;;  %v2702_v32 = vld [vmem:[#allocation2 + $0x1a1] sm:$0xff] }
 0x281   : > { %2806 = vrot.lane.b32.xlu1 %v2671_v37, %s6431_s22  ;;  %v2703_v37 = vld [vmem:[#allocation2 + $0x1a9] sm:$0xff] }
 0x282   : > { %v2436_v14 = vpop.permute.xlu0 %2435 }
 0x283   : > { %v2438_v9 = vpop.permute.xlu1 %2437  ;;  %2614 = vst.msk [vmem:[#allocation3 + $0x70] sm:$0xff] %vm2599_vm11, %v2436_v14 }
 0x284   : > { %2615 = vst.msk [vmem:[#allocation3 + $0x78] sm:$0xff] %vm2599_vm11, %v2438_v9  ;;  %2808 = vrot.lane.b32.xlu0 %v2672_v60, %s6431_s22  ;;  %v2704_v60 = vld [vmem:[#allocation2 + $0x1b9] sm:$0xff] }
 0x285   : > { %2810 = vrot.lane.b32.xlu1 %v2673_v41, %s6431_s22  ;;  %v2705_v41 = vld [vmem:[#allocation2 + $0x1c1] sm:$0xff] }
 0x286   : > { %v2440_v31 = vpop.permute.xlu0 %2439 }
 0x287   : > { %v2442_v53 = vpop.permute.xlu1 %2441  ;;  %2616 = vst.msk [vmem:[#allocation3 + $0x80] sm:$0xff] %vm2599_vm11, %v2440_v31 }
 0x288   : > { %2617 = vst.msk [vmem:[#allocation3 + $0x88] sm:$0xff] %vm2599_vm11, %v2442_v53  ;;  %2812 = vrot.lane.b32.xlu0 %v2674_v52, %s6431_s22  ;;  %v2706_v52 = vld [vmem:[#allocation2 + $0x1c9] sm:$0xff] }
 0x289   : > { %2814 = vrot.lane.b32.xlu1 %v2675_v21, %s6431_s22  ;;  %v2707_v21 = vld [vmem:[#allocation2 + $0x1d1] sm:$0xff] }
 0x28a   : > { %v2444_v48 = vpop.permute.xlu0 %2443 }
 0x28b   : > { %v2446_v36 = vpop.permute.xlu1 %2445  ;;  %2618 = vst.msk [vmem:[#allocation3 + $0x90] sm:$0xff] %vm2599_vm11, %v2444_v48 }
 0x28c   : > { %2619 = vst.msk [vmem:[#allocation3 + $0x98] sm:$0xff] %vm2599_vm11, %v2446_v36  ;;  %2816 = vrot.lane.b32.xlu0 %v2676_v63, %s6431_s22  ;;  %v2708_v63 = vld [vmem:[#allocation2 + $0x1e1] sm:$0xff] }
 0x28d   : > { %2818 = vrot.lane.b32.xlu1 %v2677_v33, %s6431_s22  ;;  %v2709_v33 = vld [vmem:[#allocation2 + $0x1e9] sm:$0xff] }
 0x28e   : > { %v2448_v56 = vpop.permute.xlu0 %2447 }
 0x28f   : > { %v2450_v49 = vpop.permute.xlu1 %2449  ;;  %2620 = vst.msk [vmem:[#allocation3 + $0xa0] sm:$0xff] %vm2599_vm11, %v2448_v56 }
 0x290   : > { %2621 = vst.msk [vmem:[#allocation3 + $0xa8] sm:$0xff] %vm2599_vm11, %v2450_v49  ;;  %2820 = vrot.lane.b32.xlu0 %v2678_v42, %s6431_s22  ;;  %v2710_v42 = vld [vmem:[#allocation2 + $0x1f1] sm:$0xff] }
 0x291   : > { %2822 = vrot.lane.b32.xlu1 %v2679_v23, %s6431_s22  ;;  %v2711_v23 = vld [vmem:[#allocation2 + $0x1f9] sm:$0xff] }
 0x292   : > { %v2452_v58 = vpop.permute.xlu0 %2451 }
 0x293   : > { %v2454_v34 = vpop.permute.xlu1 %2453  ;;  %2622 = vst.msk [vmem:[#allocation3 + $0xb0] sm:$0xff] %vm2599_vm11, %v2452_v58 }
 0x294   : > { %2623 = vst.msk [vmem:[#allocation3 + $0xb8] sm:$0xff] %vm2599_vm11, %v2454_v34  ;;  %2824 = vrot.lane.b32.xlu0 %v2680_v62, %s6431_s22  ;;  %v2712_v62 = vld [vmem:[#allocation2 + $0x209] sm:$0xff] }
 0x295   : > { %2826 = vrot.lane.b32.xlu1 %v2681_v43, %s6431_s22  ;;  %v2713_v43 = vld [vmem:[#allocation2 + $0x211] sm:$0xff] }
 0x296   : > { %v2456_v22 = vpop.permute.xlu0 %2455 }
 0x297   : > { %v2458_v13 = vpop.permute.xlu1 %2457  ;;  %2624 = vst.msk [vmem:[#allocation3 + $0xc0] sm:$0xff] %vm2599_vm11, %v2456_v22 }
 0x298   : > { %2625 = vst.msk [vmem:[#allocation3 + $0xc8] sm:$0xff] %vm2599_vm11, %v2458_v13  ;;  %2828 = vrot.lane.b32.xlu0 %v2682_v28, %s6431_s22  ;;  %v2714_v28 = vld [vmem:[#allocation2 + $0x219] sm:$0xff] }
 0x299   : > { %2830 = vrot.lane.b32.xlu1 %v2683_v3, %s6431_s22  ;;  %v2715_v3 = vld [vmem:[#allocation2 + $0x221] sm:$0xff] }
 0x29a   : > { %v2460_v2 = vpop.permute.xlu0 %2459 }
 0x29b   : > { %v2462_v38 = vpop.permute.xlu1 %2461  ;;  %2626 = vst.msk [vmem:[#allocation3 + $0xd0] sm:$0xff] %vm2599_vm11, %v2460_v2 }
 0x29c   : > { %2627 = vst.msk [vmem:[#allocation3 + $0xd8] sm:$0xff] %vm2599_vm11, %v2462_v38  ;;  %2832 = vrot.lane.b32.xlu0 %v2684_v50, %s6431_s22  ;;  %v2716_v50 = vld [vmem:[#allocation2 + $0x231] sm:$0xff] }
 0x29d   : > { %2834 = vrot.lane.b32.xlu1 %v2685_v55, %s6431_s22  ;;  %v2717_v55 = vld [vmem:[#allocation2 + $0x239] sm:$0xff] }
 0x29e   : > { %v2464_v25 = vpop.permute.xlu0 %2463 }
 0x29f   : > { %v2466_v47 = vpop.permute.xlu1 %2465  ;;  %2628 = vst.msk [vmem:[#allocation3 + $0xe0] sm:$0xff] %vm2599_vm11, %v2464_v25 }
 0x2a0   : > { %2629 = vst.msk [vmem:[#allocation3 + $0xe8] sm:$0xff] %vm2599_vm11, %v2466_v47  ;;  %2836 = vrot.lane.b32.xlu0 %v2686_v44, %s6431_s22  ;;  %v2718_v44 = vld [vmem:[#allocation2 + $0x241] sm:$0xff] }
 0x2a1   : > { %2838 = vrot.lane.b32.xlu1 %v2687_v46, %s6431_s22  ;;  %v2719_v46 = vld [vmem:[#allocation2 + $0x249] sm:$0xff] }
 0x2a2   : > { %v2468_v12 = vpop.permute.xlu0 %2467 }
 0x2a3   : > { %v2470_v35 = vpop.permute.xlu1 %2469  ;;  %2630 = vst.msk [vmem:[#allocation3 + $0xf0] sm:$0xff] %vm2599_vm11, %v2468_v12 }
 0x2a4   : > { %2631 = vst.msk [vmem:[#allocation3 + $0xf8] sm:$0xff] %vm2599_vm11, %v2470_v35  ;;  %2840 = vrot.lane.b32.xlu0 %v2688_v24, %s6431_s22  ;;  %v2720_v24 = vld [vmem:[#allocation2 + $0x259] sm:$0xff] }
 0x2a5   : > { %2842 = vrot.lane.b32.xlu1 %v2689_v27, %s6431_s22  ;;  %v2721_v27 = vld [vmem:[#allocation2 + $0x261] sm:$0xff] }
 0x2a6   : > { %v2472_v30 = vpop.permute.xlu0 %2471 }
 0x2a7   : > { %v2474_v29 = vpop.permute.xlu1 %2473  ;;  %2632 = vst.msk [vmem:[#allocation3 + $0x100] sm:$0xff] %vm2599_vm11, %v2472_v30 }
 0x2a8   : > { %2633 = vst.msk [vmem:[#allocation3 + $0x108] sm:$0xff] %vm2599_vm11, %v2474_v29  ;;  %2844 = vrot.lane.b32.xlu0 %v2690_v16, %s6431_s22  ;;  %v2722_v16 = vld [vmem:[#allocation2 + $0x269] sm:$0xff] }
 0x2a9   : > { %2846 = vrot.lane.b32.xlu1 %v2691_v11, %s6431_s22  ;;  %v2723_v11 = vld [vmem:[#allocation2 + $0x271] sm:$0xff] }
 0x2aa   : > { %v2476_v10 = vpop.permute.xlu0 %2475 }
 0x2ab   : > { %v2478_v59 = vpop.permute.xlu1 %2477  ;;  %2634 = vst.msk [vmem:[#allocation3 + $0x110] sm:$0xff] %vm2599_vm11, %v2476_v10 }
 0x2ac   : > { %2635 = vst.msk [vmem:[#allocation3 + $0x118] sm:$0xff] %vm2599_vm11, %v2478_v59  ;;  %2848 = vrot.lane.b32.xlu0 %v2692_v1, %s6431_s22  ;;  %v2724_v1 = vld [vmem:[#allocation2 + $0x281] sm:$0xff] }
 0x2ad   : > { %2850 = vrot.lane.b32.xlu1 %v2693_v57, %s6431_s22  ;;  %v2725_v57 = vld [vmem:[#allocation2 + $0x289] sm:$0xff] }
 0x2ae   : > { %v2480_v7 = vpop.permute.xlu0 %2479 }
 0x2af   : > { %v2482_v6 = vpop.permute.xlu1 %2481  ;;  %2636 = vst.msk [vmem:[#allocation3 + $0x120] sm:$0xff] %vm2599_vm11, %v2480_v7 }
 0x2b0   : > { %2637 = vst.msk [vmem:[#allocation3 + $0x128] sm:$0xff] %vm2599_vm11, %v2482_v6  ;;  %2852 = vrot.lane.b32.xlu0 %v2694_v19, %s6431_s22  ;;  %v2726_v19 = vld [vmem:[#allocation2 + $0x291] sm:$0xff] }
 0x2b1   : > { %2854 = vrot.lane.b32.xlu1 %v2695_v18, %s6431_s22  ;;  %v2727_v18 = vld [vmem:[#allocation2 + $0x299] sm:$0xff] }
 0x2b2   : > { %v2484_v45 = vpop.permute.xlu0 %2483 }
 0x2b3   : > { %v2486_v26 = vpop.permute.xlu1 %2485  ;;  %2638 = vst.msk [vmem:[#allocation3 + $0x130] sm:$0xff] %vm2599_vm11, %v2484_v45 }
 0x2b4   : > { %2639 = vst.msk [vmem:[#allocation3 + $0x138] sm:$0xff] %vm2599_vm11, %v2486_v26  ;;  %2856 = vrot.lane.b32.xlu0 %v2696_v17, %s6431_s22  ;;  %v3049_v17 = vld [vmem:[#allocation2 + $0x2a] sm:$0xff] }
 0x2b5   : > { %2858 = vrot.lane.b32.xlu1 %v2697_v15, %s6431_s22  ;;  %v3050_v15 = vld [vmem:[#allocation2 + $0x32] sm:$0xff] }
 0x2b6   : > { %v2488_v8 = vpop.permute.xlu0 %2487 }
 0x2b7   : > { %v2490_v5 = vpop.permute.xlu1 %2489  ;;  %2640 = vst.msk [vmem:[#allocation3 + $0x140] sm:$0xff] %vm2599_vm11, %v2488_v8 }
 0x2b8   : > { %2641 = vst.msk [vmem:[#allocation3 + $0x148] sm:$0xff] %vm2599_vm11, %v2490_v5  ;;  %2860 = vrot.lane.b32.xlu0 %v2698_v0, %s6431_s22  ;;  %v3051_v0 = vld [vmem:[#allocation2 + $0x3a] sm:$0xff] }
 0x2b9   : > { %2862 = vrot.lane.b32.xlu1 %v2699_v54, %s6431_s22  ;;  %v3052_v54 = vld [vmem:[#allocation2 + $0x42] sm:$0xff] }
 0x2ba   : > { %v2492_v20 = vpop.permute.xlu0 %2491 }
 0x2bb   : > { %v2494_v4 = vpop.permute.xlu1 %2493  ;;  %2642 = vst.msk [vmem:[#allocation3 + $0x150] sm:$0xff] %vm2599_vm11, %v2492_v20 }
 0x2bc   : > { %2643 = vst.msk [vmem:[#allocation3 + $0x158] sm:$0xff] %vm2599_vm11, %v2494_v4  ;;  %2864 = vrot.lane.b32.xlu0 %v2700_v40, %s6431_s22  ;;  %v8438_v40 = vld [vmem:[#allocation2 + $0x52] sm:$0xff] }
 0x2bd   : > { %2866 = vrot.lane.b32.xlu1 %v2701_v39, %s6431_s22  ;;  %v8436_v39 = vld [vmem:[#allocation2 + $0x5a] sm:$0xff] }
 0x2be   : > { %v2496_v61 = vpop.permute.xlu0 %2495 }
 0x2bf   : > { %v2498_v51 = vpop.permute.xlu1 %2497  ;;  %2644 = vst.msk [vmem:[#allocation3 + $0x160] sm:$0xff] %vm2599_vm11, %v2496_v61 }
 0x2c0   : > { %2645 = vst.msk [vmem:[#allocation3 + $0x168] sm:$0xff] %vm2599_vm11, %v2498_v51  ;;  %2868 = vrot.lane.b32.xlu0 %v2702_v32, %s6431_s22  ;;  %v8448_v32 = vld [vmem:[#allocation2 + $0x62] sm:$0xff] }
 0x2c1   : > { %2870 = vrot.lane.b32.xlu1 %v2703_v37, %s6431_s22  ;;  %v8446_v37 = vld [vmem:[#allocation2 + $0x6a] sm:$0xff] }
 0x2c2   : > { %v2500_v14 = vpop.permute.xlu0 %2499 }
 0x2c3   : > { %v2502_v9 = vpop.permute.xlu1 %2501  ;;  %2646 = vst.msk [vmem:[#allocation3 + $0x170] sm:$0xff] %vm2599_vm11, %v2500_v14 }
 0x2c4   : > { %2647 = vst.msk [vmem:[#allocation3 + $0x178] sm:$0xff] %vm2599_vm11, %v2502_v9  ;;  %2872 = vrot.lane.b32.xlu0 %v2704_v60, %s6431_s22  ;;  %v8458_v60 = vld [vmem:[#allocation2 + $0x7a] sm:$0xff] }
 0x2c5   : > { %2874 = vrot.lane.b32.xlu1 %v2705_v41, %s6431_s22  ;;  %v8456_v41 = vld [vmem:[#allocation2 + $0x82] sm:$0xff] }
 0x2c6   : > { %v2504_v31 = vpop.permute.xlu0 %2503 }
 0x2c7   : > { %v2506_v53 = vpop.permute.xlu1 %2505  ;;  %2648 = vst.msk [vmem:[#allocation3 + $0x180] sm:$0xff] %vm2599_vm11, %v2504_v31 }
 0x2c8   : > { %2649 = vst.msk [vmem:[#allocation3 + $0x188] sm:$0xff] %vm2599_vm11, %v2506_v53  ;;  %2876 = vrot.lane.b32.xlu0 %v2706_v52, %s6431_s22  ;;  %v8468_v52 = vld [vmem:[#allocation2 + $0x8a] sm:$0xff] }
 0x2c9   : > { %2878 = vrot.lane.b32.xlu1 %v2707_v21, %s6431_s22  ;;  %v8466_v21 = vld [vmem:[#allocation2 + $0x92] sm:$0xff] }
 0x2ca   : > { %v2508_v48 = vpop.permute.xlu0 %2507 }
 0x2cb   : > { %v2510_v36 = vpop.permute.xlu1 %2509  ;;  %2650 = vst.msk [vmem:[#allocation3 + $0x190] sm:$0xff] %vm2599_vm11, %v2508_v48 }
 0x2cc   : > { %2651 = vst.msk [vmem:[#allocation3 + $0x198] sm:$0xff] %vm2599_vm11, %v2510_v36  ;;  %2880 = vrot.lane.b32.xlu0 %v2708_v63, %s6431_s22  ;;  %v8478_v63 = vld [vmem:[#allocation2 + $0xa2] sm:$0xff] }
 0x2cd   : > { %2882 = vrot.lane.b32.xlu1 %v2709_v33, %s6431_s22  ;;  %v8476_v33 = vld [vmem:[#allocation2 + $0xaa] sm:$0xff] }
 0x2ce   : > { %v2512_v56 = vpop.permute.xlu0 %2511 }
 0x2cf   : > { %v2514_v49 = vpop.permute.xlu1 %2513  ;;  %2652 = vst.msk [vmem:[#allocation3 + $0x1a0] sm:$0xff] %vm2599_vm11, %v2512_v56 }
 0x2d0   : > { %2653 = vst.msk [vmem:[#allocation3 + $0x1a8] sm:$0xff] %vm2599_vm11, %v2514_v49  ;;  %2884 = vrot.lane.b32.xlu0 %v2710_v42, %s6431_s22  ;;  %v8488_v42 = vld [vmem:[#allocation2 + $0xb2] sm:$0xff] }
 0x2d1   : > { %2886 = vrot.lane.b32.xlu1 %v2711_v23, %s6431_s22  ;;  %v8486_v23 = vld [vmem:[#allocation2 + $0xba] sm:$0xff] }
 0x2d2   : > { %v2516_v58 = vpop.permute.xlu0 %2515 }
 0x2d3   : > { %v2518_v34 = vpop.permute.xlu1 %2517  ;;  %2654 = vst.msk [vmem:[#allocation3 + $0x1b0] sm:$0xff] %vm2599_vm11, %v2516_v58 }
 0x2d4   : > { %2655 = vst.msk [vmem:[#allocation3 + $0x1b8] sm:$0xff] %vm2599_vm11, %v2518_v34  ;;  %2888 = vrot.lane.b32.xlu0 %v2712_v62, %s6431_s22  ;;  %v8496_v62 = vld [vmem:[#allocation2 + $0xca] sm:$0xff] }
 0x2d5   : > { %2890 = vrot.lane.b32.xlu1 %v2713_v43, %s6431_s22  ;;  %v3066_v43 = vld [vmem:[#allocation2 + $0xd2] sm:$0xff] }
 0x2d6   : > { %v2520_v22 = vpop.permute.xlu0 %2519 }
 0x2d7   : > { %v2522_v13 = vpop.permute.xlu1 %2521  ;;  %2656 = vst.msk [vmem:[#allocation3 + $0x1c0] sm:$0xff] %vm2599_vm11, %v2520_v22 }
 0x2d8   : > { %2657 = vst.msk [vmem:[#allocation3 + $0x1c8] sm:$0xff] %vm2599_vm11, %v2522_v13  ;;  %2892 = vrot.lane.b32.xlu0 %v2714_v28, %s6431_s22  ;;  %v8503_v28 = vld [vmem:[#allocation2 + $0xda] sm:$0xff] }
 0x2d9   : > { %2894 = vrot.lane.b32.xlu1 %v2715_v3, %s6431_s22  ;;  %v3068_v3 = vld [vmem:[#allocation2 + $0xe2] sm:$0xff] }
 0x2da   : > { %v2524_v2 = vpop.permute.xlu0 %2523 }
 0x2db   : > { %v2526_v38 = vpop.permute.xlu1 %2525  ;;  %2658 = vst.msk [vmem:[#allocation3 + $0x1d0] sm:$0xff] %vm2599_vm11, %v2524_v2 }
 0x2dc   : > { %2659 = vst.msk [vmem:[#allocation3 + $0x1d8] sm:$0xff] %vm2599_vm11, %v2526_v38  ;;  %2896 = vrot.lane.b32.xlu0 %v2716_v50, %s6431_s22  ;;  %v3069_v50 = vld [vmem:[#allocation2 + $0xf2] sm:$0xff] }
 0x2dd   : > { %2898 = vrot.lane.b32.xlu1 %v2717_v55, %s6431_s22  ;;  %v3070_v55 = vld [vmem:[#allocation2 + $0xfa] sm:$0xff] }
 0x2de   : > { %v2528_v25 = vpop.permute.xlu0 %2527 }
 0x2df   : > { %v2530_v47 = vpop.permute.xlu1 %2529  ;;  %2660 = vst.msk [vmem:[#allocation3 + $0x1e0] sm:$0xff] %vm2599_vm11, %v2528_v25 }
 0x2e0   : > { %2661 = vst.msk [vmem:[#allocation3 + $0x1e8] sm:$0xff] %vm2599_vm11, %v2530_v47  ;;  %2900 = vrot.lane.b32.xlu0 %v2718_v44, %s6431_s22  ;;  %v3071_v44 = vld [vmem:[#allocation2 + $0x102] sm:$0xff] }
 0x2e1   : > { %2902 = vrot.lane.b32.xlu1 %v2719_v46, %s6431_s22  ;;  %v3072_v46 = vld [vmem:[#allocation2 + $0x10a] sm:$0xff] }
 0x2e2   : > { %v2532_v12 = vpop.permute.xlu0 %2531 }
 0x2e3   : > { %v2534_v35 = vpop.permute.xlu1 %2533  ;;  %2662 = vst.msk [vmem:[#allocation3 + $0x1f0] sm:$0xff] %vm2599_vm11, %v2532_v12 }
 0x2e4   : > { %2663 = vst.msk [vmem:[#allocation3 + $0x1f8] sm:$0xff] %vm2599_vm11, %v2534_v35  ;;  %2904 = vrot.lane.b32.xlu0 %v2720_v24, %s6431_s22  ;;  %v3073_v24 = vld [vmem:[#allocation2 + $0x11a] sm:$0xff] }
 0x2e5   : > { %2906 = vrot.lane.b32.xlu1 %v2721_v27, %s6431_s22  ;;  %v3074_v27 = vld [vmem:[#allocation2 + $0x122] sm:$0xff] }
 0x2e6   : > { %v2793_v30 = vpop.permute.xlu0 %2792 }
 0x2e7   : > { %v2795_v29 = vpop.permute.xlu1 %2794  ;;  %2985 = vst.msk [vmem:[#allocation3] sm:$0xff] %vm2984_vm12, %v2793_v30 }
 0x2e8   : > { %2986 = vst.msk [vmem:[#allocation3 + $0x8] sm:$0xff] %vm2984_vm12, %v2795_v29  ;;  %2908 = vrot.lane.b32.xlu0 %v2722_v16, %s6431_s22  ;;  %v3075_v16 = vld [vmem:[#allocation2 + $0x12a] sm:$0xff] }
 0x2e9   : > { %2910 = vrot.lane.b32.xlu1 %v2723_v11, %s6431_s22  ;;  %v3076_v11 = vld [vmem:[#allocation2 + $0x132] sm:$0xff] }
 0x2ea   : > { %v2797_v10 = vpop.permute.xlu0 %2796 }
 0x2eb   : > { %v2799_v59 = vpop.permute.xlu1 %2798  ;;  %2987 = vst.msk [vmem:[#allocation3 + $0x10] sm:$0xff] %vm2984_vm12, %v2797_v10 }
 0x2ec   : > { %2988 = vst.msk [vmem:[#allocation3 + $0x18] sm:$0xff] %vm2984_vm12, %v2799_v59  ;;  %2912 = vrot.lane.b32.xlu0 %v2724_v1, %s6431_s22  ;;  %v3077_v1 = vld [vmem:[#allocation2 + $0x142] sm:$0xff] }
 0x2ed   : > { %2914 = vrot.lane.b32.xlu1 %v2725_v57, %s6431_s22  ;;  %v3078_v57 = vld [vmem:[#allocation2 + $0x14a] sm:$0xff] }
 0x2ee   : > { %v2801_v7 = vpop.permute.xlu0 %2800 }
 0x2ef   : > { %v2803_v6 = vpop.permute.xlu1 %2802  ;;  %2989 = vst.msk [vmem:[#allocation3 + $0x20] sm:$0xff] %vm2984_vm12, %v2801_v7 }
 0x2f0   : > { %2990 = vst.msk [vmem:[#allocation3 + $0x28] sm:$0xff] %vm2984_vm12, %v2803_v6  ;;  %2916 = vrot.lane.b32.xlu0 %v2726_v19, %s6431_s22  ;;  %v3079_v19 = vld [vmem:[#allocation2 + $0x152] sm:$0xff] }
 0x2f1   : > { %2918 = vrot.lane.b32.xlu1 %v2727_v18, %s6431_s22  ;;  %v3080_v18 = vld [vmem:[#allocation2 + $0x15a] sm:$0xff]  ;;  %s5937_s22 = sshll.u32 %s9633_s1, 4 }
 0x2f2   : > { %v2805_v45 = vpop.permute.xlu0 %2804  ;;  %s8850_s17 = scalar_lea.vmem %s6573_s12, %s5937_s22  ;;  %s8863_s12 = scalar_lea.vmem %s6621_s21, %s5937_s22 }
 0x2f3   : > { %v2807_v26 = vpop.permute.xlu1 %2806  ;;  %2991 = vst.msk [vmem:[#allocation3 + $0x30] sm:$0xff] %vm2984_vm12, %v2805_v45 }
 0x2f4   : > { %2992 = vst.msk [vmem:[#allocation3 + $0x38] sm:$0xff] %vm2984_vm12, %v2807_v26  ;;  %3177 = vrot.lane.b32.xlu0 %v3049_v17, %s6432_s10  ;;  %v3081_v17 = vld [vmem:[#allocation2 + $0x16a] sm:$0xff] }
 0x2f5   : > { %3179 = vrot.lane.b32.xlu1 %v3050_v15, %s6432_s10  ;;  %v3082_v15 = vld [vmem:[#allocation2 + $0x172] sm:$0xff] }
 0x2f6   : > { %v2809_v8 = vpop.permute.xlu0 %2808 }
 0x2f7   : > { %v2811_v5 = vpop.permute.xlu1 %2810  ;;  %2993 = vst.msk [vmem:[#allocation3 + $0x40] sm:$0xff] %vm2984_vm12, %v2809_v8 }
 0x2f8   : > { %2994 = vst.msk [vmem:[#allocation3 + $0x48] sm:$0xff] %vm2984_vm12, %v2811_v5  ;;  %3181 = vrot.lane.b32.xlu0 %v3051_v0, %s6432_s10  ;;  %v3083_v0 = vld [vmem:[#allocation2 + $0x17a] sm:$0xff] }
 0x2f9   : > { %3183 = vrot.lane.b32.xlu1 %v3052_v54, %s6432_s10  ;;  %v3084_v54 = vld [vmem:[#allocation2 + $0x182] sm:$0xff] }
 0x2fa   : > { %v2813_v20 = vpop.permute.xlu0 %2812 }
 0x2fb   : > { %v2815_v4 = vpop.permute.xlu1 %2814  ;;  %2995 = vst.msk [vmem:[#allocation3 + $0x50] sm:$0xff] %vm2984_vm12, %v2813_v20  ;;  %v3085_v20 = vld [vmem:[#allocation2 + $0x192] sm:$0xff] }
 0x2fc   : > { %2996 = vst.msk [vmem:[#allocation3 + $0x58] sm:$0xff] %vm2984_vm12, %v2815_v4  ;;  %3185 = vrot.lane.b32.xlu0 %v8438_v40, %s6432_s10  ;;  %v3086_v4 = vld [vmem:[#allocation2 + $0x19a] sm:$0xff] }
 0x2fd   : > { %3187 = vrot.lane.b32.xlu1 %v8436_v39, %s6432_s10 }
 0x2fe   : > { %v2817_v61 = vpop.permute.xlu0 %2816 }
 0x2ff   : > { %v2819_v51 = vpop.permute.xlu1 %2818  ;;  %2997 = vst.msk [vmem:[#allocation3 + $0x60] sm:$0xff] %vm2984_vm12, %v2817_v61 }
 0x300   : > { %2998 = vst.msk [vmem:[#allocation3 + $0x68] sm:$0xff] %vm2984_vm12, %v2819_v51  ;;  %3189 = vrot.lane.b32.xlu0 %v8448_v32, %s6432_s10 }
 0x301   : > { %3191 = vrot.lane.b32.xlu1 %v8446_v37, %s6432_s10 }
 0x302   : > { %v2821_v14 = vpop.permute.xlu0 %2820 }
 0x303   : > { %v2823_v9 = vpop.permute.xlu1 %2822  ;;  %2999 = vst.msk [vmem:[#allocation3 + $0x70] sm:$0xff] %vm2984_vm12, %v2821_v14  ;;  %v3087_v14 = vld [vmem:[#allocation2 + $0x1a2] sm:$0xff] }
 0x304   : > { %3000 = vst.msk [vmem:[#allocation3 + $0x78] sm:$0xff] %vm2984_vm12, %v2823_v9  ;;  %3193 = vrot.lane.b32.xlu0 %v8458_v60, %s6432_s10  ;;  %v3088_v9 = vld [vmem:[#allocation2 + $0x1aa] sm:$0xff] }
 0x305   : > { %3195 = vrot.lane.b32.xlu1 %v8456_v41, %s6432_s10 }
 0x306   : > { %v2825_v31 = vpop.permute.xlu0 %2824 }
 0x307   : > { %v2827_v53 = vpop.permute.xlu1 %2826  ;;  %3001 = vst.msk [vmem:[#allocation3 + $0x80] sm:$0xff] %vm2984_vm12, %v2825_v31 }
 0x308   : > { %3002 = vst.msk [vmem:[#allocation3 + $0x88] sm:$0xff] %vm2984_vm12, %v2827_v53  ;;  %3197 = vrot.lane.b32.xlu0 %v8468_v52, %s6432_s10 }
 0x309   : > { %3199 = vrot.lane.b32.xlu1 %v8466_v21, %s6432_s10 }
 0x30a   : > { %v2829_v48 = vpop.permute.xlu0 %2828 }
 0x30b   : > { %v2831_v36 = vpop.permute.xlu1 %2830  ;;  %3003 = vst.msk [vmem:[#allocation3 + $0x90] sm:$0xff] %vm2984_vm12, %v2829_v48  ;;  %v3089_v48 = vld [vmem:[#allocation2 + $0x1ba] sm:$0xff] }
 0x30c   : > { %3004 = vst.msk [vmem:[#allocation3 + $0x98] sm:$0xff] %vm2984_vm12, %v2831_v36  ;;  %3201 = vrot.lane.b32.xlu0 %v8478_v63, %s6432_s10  ;;  %v3090_v36 = vld [vmem:[#allocation2 + $0x1c2] sm:$0xff] }
 0x30d   : > { %3203 = vrot.lane.b32.xlu1 %v8476_v33, %s6432_s10 }
 0x30e   : > { %v2833_v56 = vpop.permute.xlu0 %2832 }
 0x30f   : > { %v2835_v49 = vpop.permute.xlu1 %2834  ;;  %3005 = vst.msk [vmem:[#allocation3 + $0xa0] sm:$0xff] %vm2984_vm12, %v2833_v56 }
 0x310   : > { %3006 = vst.msk [vmem:[#allocation3 + $0xa8] sm:$0xff] %vm2984_vm12, %v2835_v49  ;;  %3205 = vrot.lane.b32.xlu0 %v8488_v42, %s6432_s10 }
 0x311   : > { %3207 = vrot.lane.b32.xlu1 %v8486_v23, %s6432_s10 }
 0x312   : > { %v2837_v58 = vpop.permute.xlu0 %2836 }
 0x313   : > { %v2839_v34 = vpop.permute.xlu1 %2838  ;;  %3007 = vst.msk [vmem:[#allocation3 + $0xb0] sm:$0xff] %vm2984_vm12, %v2837_v58 }
 0x314   : > { %3008 = vst.msk [vmem:[#allocation3 + $0xb8] sm:$0xff] %vm2984_vm12, %v2839_v34  ;;  %3209 = vrot.lane.b32.xlu0 %v8496_v62, %s6432_s10  ;;  %v3091_v34 = vld [vmem:[#allocation2 + $0x1ca] sm:$0xff] }
 0x315   : > { %3211 = vrot.lane.b32.xlu1 %v3066_v43, %s6432_s10  ;;  %v3092_v43 = vld [vmem:[#allocation2 + $0x1d2] sm:$0xff] }
 0x316   : > { %v2841_v22 = vpop.permute.xlu0 %2840 }
 0x317   : > { %v2843_v13 = vpop.permute.xlu1 %2842  ;;  %3009 = vst.msk [vmem:[#allocation3 + $0xc0] sm:$0xff] %vm2984_vm12, %v2841_v22  ;;  %v3093_v22 = vld [vmem:[#allocation2 + $0x1e2] sm:$0xff] }
 0x318   : > { %3010 = vst.msk [vmem:[#allocation3 + $0xc8] sm:$0xff] %vm2984_vm12, %v2843_v13  ;;  %3213 = vrot.lane.b32.xlu0 %v8503_v28, %s6432_s10  ;;  %v3094_v13 = vld [vmem:[#allocation2 + $0x1ea] sm:$0xff] }
 0x319   : > { %3215 = vrot.lane.b32.xlu1 %v3068_v3, %s6432_s10 }
 0x31a   : > { %v2845_v2 = vpop.permute.xlu0 %2844 }
 0x31b   : > { %v2847_v38 = vpop.permute.xlu1 %2846  ;;  %3011 = vst.msk [vmem:[#allocation3 + $0xd0] sm:$0xff] %vm2984_vm12, %v2845_v2  ;;  %v3095_v2 = vld [vmem:[#allocation2 + $0x1f2] sm:$0xff] }
 0x31c   : > { %3012 = vst.msk [vmem:[#allocation3 + $0xd8] sm:$0xff] %vm2984_vm12, %v2847_v38  ;;  %3217 = vrot.lane.b32.xlu0 %v3069_v50, %s6432_s10  ;;  %v3096_v38 = vld [vmem:[#allocation2 + $0x1fa] sm:$0xff] }
 0x31d   : > { %3219 = vrot.lane.b32.xlu1 %v3070_v55, %s6432_s10 }
 0x31e   : > { %v2849_v25 = vpop.permute.xlu0 %2848 }
 0x31f   : > { %v2851_v47 = vpop.permute.xlu1 %2850  ;;  %3013 = vst.msk [vmem:[#allocation3 + $0xe0] sm:$0xff] %vm2984_vm12, %v2849_v25  ;;  %v3097_v25 = vld [vmem:[#allocation2 + $0x20a] sm:$0xff] }
 0x320   : > { %3014 = vst.msk [vmem:[#allocation3 + $0xe8] sm:$0xff] %vm2984_vm12, %v2851_v47  ;;  %3221 = vrot.lane.b32.xlu0 %v3071_v44, %s6432_s10  ;;  %v3098_v47 = vld [vmem:[#allocation2 + $0x212] sm:$0xff] }
 0x321   : > { %3223 = vrot.lane.b32.xlu1 %v3072_v46, %s6432_s10 }
 0x322   : > { %v2853_v12 = vpop.permute.xlu0 %2852 }
 0x323   : > { %v2855_v35 = vpop.permute.xlu1 %2854  ;;  %3015 = vst.msk [vmem:[#allocation3 + $0xf0] sm:$0xff] %vm2984_vm12, %v2853_v12  ;;  %v3099_v12 = vld [vmem:[#allocation2 + $0x21a] sm:$0xff] }
 0x324   : > { %3016 = vst.msk [vmem:[#allocation3 + $0xf8] sm:$0xff] %vm2984_vm12, %v2855_v35  ;;  %3225 = vrot.lane.b32.xlu0 %v3073_v24, %s6432_s10  ;;  %v3100_v35 = vld [vmem:[#allocation2 + $0x222] sm:$0xff] }
 0x325   : > { %3227 = vrot.lane.b32.xlu1 %v3074_v27, %s6432_s10 }
 0x326   : > { %v2857_v30 = vpop.permute.xlu0 %2856 }
 0x327   : > { %v2859_v29 = vpop.permute.xlu1 %2858  ;;  %3017 = vst.msk [vmem:[#allocation3 + $0x100] sm:$0xff] %vm2984_vm12, %v2857_v30  ;;  %v3101_v30 = vld [vmem:[#allocation2 + $0x232] sm:$0xff] }
 0x328   : > { %3018 = vst.msk [vmem:[#allocation3 + $0x108] sm:$0xff] %vm2984_vm12, %v2859_v29  ;;  %3229 = vrot.lane.b32.xlu0 %v3075_v16, %s6432_s10  ;;  %v3102_v29 = vld [vmem:[#allocation2 + $0x23a] sm:$0xff] }
 0x329   : > { %3231 = vrot.lane.b32.xlu1 %v3076_v11, %s6432_s10 }
 0x32a   : > { %v2861_v10 = vpop.permute.xlu0 %2860 }
 0x32b   : > { %v2863_v59 = vpop.permute.xlu1 %2862  ;;  %3019 = vst.msk [vmem:[#allocation3 + $0x110] sm:$0xff] %vm2984_vm12, %v2861_v10  ;;  %v3103_v10 = vld [vmem:[#allocation2 + $0x242] sm:$0xff] }
 0x32c   : > { %3020 = vst.msk [vmem:[#allocation3 + $0x118] sm:$0xff] %vm2984_vm12, %v2863_v59  ;;  %3233 = vrot.lane.b32.xlu0 %v3077_v1, %s6432_s10  ;;  %v3104_v59 = vld [vmem:[#allocation2 + $0x24a] sm:$0xff] }
 0x32d   : > { %3235 = vrot.lane.b32.xlu1 %v3078_v57, %s6432_s10 }
 0x32e   : > { %v2865_v7 = vpop.permute.xlu0 %2864 }
 0x32f   : > { %v2867_v6 = vpop.permute.xlu1 %2866  ;;  %3021 = vst.msk [vmem:[#allocation3 + $0x120] sm:$0xff] %vm2984_vm12, %v2865_v7  ;;  %v3105_v7 = vld [vmem:[#allocation2 + $0x25a] sm:$0xff] }
 0x330   : > { %3022 = vst.msk [vmem:[#allocation3 + $0x128] sm:$0xff] %vm2984_vm12, %v2867_v6  ;;  %3237 = vrot.lane.b32.xlu0 %v3079_v19, %s6432_s10  ;;  %v3106_v6 = vld [vmem:[#allocation2 + $0x262] sm:$0xff] }
 0x331   : > { %3239 = vrot.lane.b32.xlu1 %v3080_v18, %s6432_s10 }
 0x332   : > { %v2869_v45 = vpop.permute.xlu0 %2868 }
 0x333   : > { %v2871_v26 = vpop.permute.xlu1 %2870  ;;  %3023 = vst.msk [vmem:[#allocation3 + $0x130] sm:$0xff] %vm2984_vm12, %v2869_v45  ;;  %v3107_v45 = vld [vmem:[#allocation2 + $0x26a] sm:$0xff] }
 0x334   : > { %3024 = vst.msk [vmem:[#allocation3 + $0x138] sm:$0xff] %vm2984_vm12, %v2871_v26  ;;  %3241 = vrot.lane.b32.xlu0 %v3081_v17, %s6432_s10  ;;  %v3108_v26 = vld [vmem:[#allocation2 + $0x272] sm:$0xff] }
 0x335   : > { %3243 = vrot.lane.b32.xlu1 %v3082_v15, %s6432_s10 }
 0x336   : > { %v2873_v8 = vpop.permute.xlu0 %2872 }
 0x337   : > { %v2875_v5 = vpop.permute.xlu1 %2874  ;;  %3025 = vst.msk [vmem:[#allocation3 + $0x140] sm:$0xff] %vm2984_vm12, %v2873_v8  ;;  %v3109_v8 = vld [vmem:[#allocation2 + $0x282] sm:$0xff] }
 0x338   : > { %3026 = vst.msk [vmem:[#allocation3 + $0x148] sm:$0xff] %vm2984_vm12, %v2875_v5  ;;  %3245 = vrot.lane.b32.xlu0 %v3083_v0, %s6432_s10  ;;  %v3110_v5 = vld [vmem:[#allocation2 + $0x28a] sm:$0xff] }
 0x339   : > { %3247 = vrot.lane.b32.xlu1 %v3084_v54, %s6432_s10 }
 0x33a   : > { %v2877_v61 = vpop.permute.xlu0 %2876 }
 0x33b   : > { %v2879_v51 = vpop.permute.xlu1 %2878  ;;  %3027 = vst.msk [vmem:[#allocation3 + $0x150] sm:$0xff] %vm2984_vm12, %v2877_v61  ;;  %v3111_v61 = vld [vmem:[#allocation2 + $0x292] sm:$0xff] }
 0x33c   : > { %3028 = vst.msk [vmem:[#allocation3 + $0x158] sm:$0xff] %vm2984_vm12, %v2879_v51  ;;  %3249 = vrot.lane.b32.xlu0 %v3085_v20, %s6432_s10  ;;  %v3112_v51 = vld [vmem:[#allocation2 + $0x29a] sm:$0xff] }
 0x33d   : > { %3251 = vrot.lane.b32.xlu1 %v3086_v4, %s6432_s10 }
 0x33e   : > { %v2881_v31 = vpop.permute.xlu0 %2880 }
 0x33f   : > { %v2883_v53 = vpop.permute.xlu1 %2882  ;;  %3029 = vst.msk [vmem:[#allocation3 + $0x160] sm:$0xff] %vm2984_vm12, %v2881_v31  ;;  %v3435_v31 = vld [vmem:[#allocation2 + $0x50] sm:$0xff] }
 0x340   : > { %3030 = vst.msk [vmem:[#allocation3 + $0x168] sm:$0xff] %vm2984_vm12, %v2883_v53  ;;  %3253 = vrot.lane.b32.xlu0 %v3087_v14, %s6432_s10  ;;  %v3436_v53 = vld [vmem:[#allocation2 + $0x58] sm:$0xff] }
 0x341   : > { %3255 = vrot.lane.b32.xlu1 %v3088_v9, %s6432_s10 }
 0x342   : > { %v2885_v56 = vpop.permute.xlu0 %2884 }
 0x343   : > { %v2887_v49 = vpop.permute.xlu1 %2886  ;;  %3031 = vst.msk [vmem:[#allocation3 + $0x170] sm:$0xff] %vm2984_vm12, %v2885_v56  ;;  %v3437_v56 = vld [vmem:[#allocation2 + $0x60] sm:$0xff] }
 0x344   : > { %3032 = vst.msk [vmem:[#allocation3 + $0x178] sm:$0xff] %vm2984_vm12, %v2887_v49  ;;  %3257 = vrot.lane.b32.xlu0 %v3089_v48, %s6432_s10  ;;  %v3438_v49 = vld [vmem:[#allocation2 + $0x68] sm:$0xff] }
 0x345   : > { %3259 = vrot.lane.b32.xlu1 %v3090_v36, %s6432_s10 }
 0x346   : > { %v2889_v3 = vpop.permute.xlu0 %2888 }
 0x347   : > { %v2891_v58 = vpop.permute.xlu1 %2890  ;;  %3033 = vst.msk [vmem:[#allocation3 + $0x180] sm:$0xff] %vm2984_vm12, %v2889_v3  ;;  %v3439_v3 = vld [vmem:[#allocation2 + $0x78] sm:$0xff] }
 0x348   : > { %3034 = vst.msk [vmem:[#allocation3 + $0x188] sm:$0xff] %vm2984_vm12, %v2891_v58  ;;  %3261 = vrot.lane.b32.xlu0 %v3091_v34, %s6432_s10  ;;  %v3440_v58 = vld [vmem:[#allocation2 + $0x80] sm:$0xff] }
 0x349   : > { %3263 = vrot.lane.b32.xlu1 %v3092_v43, %s6432_s10 }
 0x34a   : > { %v2893_v50 = vpop.permute.xlu0 %2892 }
 0x34b   : > { %v2895_v55 = vpop.permute.xlu1 %2894  ;;  %3035 = vst.msk [vmem:[#allocation3 + $0x190] sm:$0xff] %vm2984_vm12, %v2893_v50  ;;  %v3441_v50 = vld [vmem:[#allocation2 + $0x88] sm:$0xff] }
 0x34c   : > { %3036 = vst.msk [vmem:[#allocation3 + $0x198] sm:$0xff] %vm2984_vm12, %v2895_v55  ;;  %3265 = vrot.lane.b32.xlu0 %v3093_v22, %s6432_s10  ;;  %v3442_v55 = vld [vmem:[#allocation2 + $0x90] sm:$0xff] }
 0x34d   : > { %3267 = vrot.lane.b32.xlu1 %v3094_v13, %s6432_s10 }
 0x34e   : > { %v2897_v44 = vpop.permute.xlu0 %2896 }
 0x34f   : > { %v2899_v46 = vpop.permute.xlu1 %2898  ;;  %3037 = vst.msk [vmem:[#allocation3 + $0x1a0] sm:$0xff] %vm2984_vm12, %v2897_v44  ;;  %v3443_v44 = vld [vmem:[#allocation2 + $0xa0] sm:$0xff] }
 0x350   : > { %3038 = vst.msk [vmem:[#allocation3 + $0x1a8] sm:$0xff] %vm2984_vm12, %v2899_v46  ;;  %3269 = vrot.lane.b32.xlu0 %v3095_v2, %s6432_s10  ;;  %v3444_v46 = vld [vmem:[#allocation2 + $0xa8] sm:$0xff] }
 0x351   : > { %3271 = vrot.lane.b32.xlu1 %v3096_v38, %s6432_s10 }
 0x352   : > { %v2901_v24 = vpop.permute.xlu0 %2900 }
 0x353   : > { %v2903_v27 = vpop.permute.xlu1 %2902  ;;  %3039 = vst.msk [vmem:[#allocation3 + $0x1b0] sm:$0xff] %vm2984_vm12, %v2901_v24  ;;  %v3445_v24 = vld [vmem:[#allocation2 + $0xb0] sm:$0xff] }
 0x354   : > { %3040 = vst.msk [vmem:[#allocation3 + $0x1b8] sm:$0xff] %vm2984_vm12, %v2903_v27  ;;  %3273 = vrot.lane.b32.xlu0 %v3097_v25, %s6432_s10  ;;  %v3446_v27 = vld [vmem:[#allocation2 + $0xb8] sm:$0xff] }
 0x355   : > { %3275 = vrot.lane.b32.xlu1 %v3098_v47, %s6432_s10 }
 0x356   : > { %v2905_v16 = vpop.permute.xlu0 %2904 }
 0x357   : > { %v2907_v11 = vpop.permute.xlu1 %2906  ;;  %3041 = vst.msk [vmem:[#allocation3 + $0x1c0] sm:$0xff] %vm2984_vm12, %v2905_v16  ;;  %v3447_v16 = vld [vmem:[#allocation2 + $0xc8] sm:$0xff] }
 0x358   : > { %3042 = vst.msk [vmem:[#allocation3 + $0x1c8] sm:$0xff] %vm2984_vm12, %v2907_v11  ;;  %3277 = vrot.lane.b32.xlu0 %v3099_v12, %s6432_s10  ;;  %v3448_v11 = vld [vmem:[#allocation2 + $0xd0] sm:$0xff] }
 0x359   : > { %3279 = vrot.lane.b32.xlu1 %v3100_v35, %s6432_s10 }
 0x35a   : > { %v2909_v1 = vpop.permute.xlu0 %2908 }
 0x35b   : > { %v2911_v57 = vpop.permute.xlu1 %2910  ;;  %3043 = vst.msk [vmem:[#allocation3 + $0x1d0] sm:$0xff] %vm2984_vm12, %v2909_v1  ;;  %v3449_v1 = vld [vmem:[#allocation2 + $0xd8] sm:$0xff] }
 0x35c   : > { %3044 = vst.msk [vmem:[#allocation3 + $0x1d8] sm:$0xff] %vm2984_vm12, %v2911_v57  ;;  %3281 = vrot.lane.b32.xlu0 %v3101_v30, %s6432_s10  ;;  %v3450_v57 = vld [vmem:[#allocation2 + $0xe0] sm:$0xff] }
 0x35d   : > { %3283 = vrot.lane.b32.xlu1 %v3102_v29, %s6432_s10 }
 0x35e   : > { %v2913_v19 = vpop.permute.xlu0 %2912 }
 0x35f   : > { %v2915_v18 = vpop.permute.xlu1 %2914  ;;  %3045 = vst.msk [vmem:[#allocation3 + $0x1e0] sm:$0xff] %vm2984_vm12, %v2913_v19  ;;  %v3451_v19 = vld [vmem:[#allocation2 + $0xf0] sm:$0xff] }
 0x360   : > { %3046 = vst.msk [vmem:[#allocation3 + $0x1e8] sm:$0xff] %vm2984_vm12, %v2915_v18  ;;  %3285 = vrot.lane.b32.xlu0 %v3103_v10, %s6432_s10  ;;  %v3452_v18 = vld [vmem:[#allocation2 + $0xf8] sm:$0xff] }
 0x361   : > { %3287 = vrot.lane.b32.xlu1 %v3104_v59, %s6432_s10 }
 0x362   : > { %v2917_v17 = vpop.permute.xlu0 %2916 }
 0x363   : > { %v2919_v15 = vpop.permute.xlu1 %2918  ;;  %3047 = vst.msk [vmem:[#allocation3 + $0x1f0] sm:$0xff] %vm2984_vm12, %v2917_v17  ;;  %v3453_v17 = vld [vmem:[#allocation2 + $0x100] sm:$0xff] }
 0x364   : > { %3048 = vst.msk [vmem:[#allocation3 + $0x1f8] sm:$0xff] %vm2984_vm12, %v2919_v15  ;;  %3289 = vrot.lane.b32.xlu0 %v3105_v7, %s6432_s10  ;;  %v3454_v15 = vld [vmem:[#allocation2 + $0x108] sm:$0xff] }
 0x365   : > { %3291 = vrot.lane.b32.xlu1 %v3106_v6, %s6432_s10 }
 0x366   : > { %v3178_v0 = vpop.permute.xlu0 %3177 }
 0x367   : > { %v3180_v54 = vpop.permute.xlu1 %3179  ;;  %3370 = vst.msk [vmem:[#allocation3] sm:$0xff] %vm3369_vm13, %v3178_v0  ;;  %v3455_v0 = vld [vmem:[#allocation2 + $0x118] sm:$0xff] }
 0x368   : > { %3371 = vst.msk [vmem:[#allocation3 + $0x8] sm:$0xff] %vm3369_vm13, %v3180_v54  ;;  %3293 = vrot.lane.b32.xlu0 %v3107_v45, %s6432_s10  ;;  %v3456_v54 = vld [vmem:[#allocation2 + $0x120] sm:$0xff] }
 0x369   : > { %3295 = vrot.lane.b32.xlu1 %v3108_v26, %s6432_s10 }
 0x36a   : > { %v3182_v20 = vpop.permute.xlu0 %3181 }
 0x36b   : > { %v3184_v4 = vpop.permute.xlu1 %3183  ;;  %3372 = vst.msk [vmem:[#allocation3 + $0x10] sm:$0xff] %vm3369_vm13, %v3182_v20  ;;  %v3457_v20 = vld [vmem:[#allocation2 + $0x128] sm:$0xff] }
 0x36c   : > { %3373 = vst.msk [vmem:[#allocation3 + $0x18] sm:$0xff] %vm3369_vm13, %v3184_v4  ;;  %3297 = vrot.lane.b32.xlu0 %v3109_v8, %s6432_s10  ;;  %v3458_v4 = vld [vmem:[#allocation2 + $0x130] sm:$0xff] }
 0x36d   : > { %3299 = vrot.lane.b32.xlu1 %v3110_v5, %s6432_s10 }
 0x36e   : > { %v3186_v14 = vpop.permute.xlu0 %3185 }
 0x36f   : > { %v3188_v9 = vpop.permute.xlu1 %3187  ;;  %3374 = vst.msk [vmem:[#allocation3 + $0x20] sm:$0xff] %vm3369_vm13, %v3186_v14  ;;  %v3459_v14 = vld [vmem:[#allocation2 + $0x140] sm:$0xff] }
 0x370   : > { %3375 = vst.msk [vmem:[#allocation3 + $0x28] sm:$0xff] %vm3369_vm13, %v3188_v9  ;;  %3301 = vrot.lane.b32.xlu0 %v3111_v61, %s6432_s10  ;;  %v3460_v9 = vld [vmem:[#allocation2 + $0x148] sm:$0xff] }
 0x371   : > { %3303 = vrot.lane.b32.xlu1 %v3112_v51, %s6432_s10  ;;  %s8842_s10 = scalar_lea.vmem %s6567_s16, %s5937_s22  ;;  %s8854_s16 = scalar_lea.vmem %s6615_s13, %s5937_s22 }
 0x372   : > { %v3190_v48 = vpop.permute.xlu0 %3189  ;;  %s747_s13 = scalar_select %p746_p2, 1, 0 }
 0x373   : > { %v3192_v36 = vpop.permute.xlu1 %3191  ;;  %3376 = vst.msk [vmem:[#allocation3 + $0x30] sm:$0xff] %vm3369_vm13, %v3190_v48  ;;  %v3461_v48 = vld [vmem:[#allocation2 + $0x150] sm:$0xff] }
 0x374   : > { %3377 = vst.msk [vmem:[#allocation3 + $0x38] sm:$0xff] %vm3369_vm13, %v3192_v36  ;;  %3563 = vrot.lane.b32.xlu0 %v3435_v31, %s6433_s9  ;;  %v3462_v36 = vld [vmem:[#allocation2 + $0x158] sm:$0xff]  ;;  %s748_s23 = scvt.s32.f32 %s747_s13 }
 0x375   : > { %3565 = vrot.lane.b32.xlu1 %v3436_v53, %s6433_s9 }
 0x376   : > { %v3194_v34 = vpop.permute.xlu0 %3193 }
 0x377   : > { %v3196_v43 = vpop.permute.xlu1 %3195  ;;  %3378 = vst.msk [vmem:[#allocation3 + $0x40] sm:$0xff] %vm3369_vm13, %v3194_v34  ;;  %v3463_v34 = vld [vmem:[#allocation2 + $0x168] sm:$0xff] }
 0x378   : > { %3379 = vst.msk [vmem:[#allocation3 + $0x48] sm:$0xff] %vm3369_vm13, %v3196_v43  ;;  %3567 = vrot.lane.b32.xlu0 %v3437_v56, %s6433_s9  ;;  %v3464_v43 = vld [vmem:[#allocation2 + $0x170] sm:$0xff] }
 0x379   : > { %3569 = vrot.lane.b32.xlu1 %v3438_v49, %s6433_s9 }
 0x37a   : > { %v3198_v22 = vpop.permute.xlu0 %3197 }
 0x37b   : > { %v3200_v13 = vpop.permute.xlu1 %3199  ;;  %3380 = vst.msk [vmem:[#allocation3 + $0x50] sm:$0xff] %vm3369_vm13, %v3198_v22  ;;  %v3465_v22 = vld [vmem:[#allocation2 + $0x178] sm:$0xff] }
 0x37c   : > { %3381 = vst.msk [vmem:[#allocation3 + $0x58] sm:$0xff] %vm3369_vm13, %v3200_v13  ;;  %3571 = vrot.lane.b32.xlu0 %v3439_v3, %s6433_s9  ;;  %v3466_v13 = vld [vmem:[#allocation2 + $0x180] sm:$0xff] }
 0x37d   : > { %3573 = vrot.lane.b32.xlu1 %v3440_v58, %s6433_s9 }
 0x37e   : > { %v3202_v2 = vpop.permute.xlu0 %3201 }
 0x37f   : > { %v3204_v38 = vpop.permute.xlu1 %3203  ;;  %3382 = vst.msk [vmem:[#allocation3 + $0x60] sm:$0xff] %vm3369_vm13, %v3202_v2  ;;  %v3467_v2 = vld [vmem:[#allocation2 + $0x190] sm:$0xff] }
 0x380   : > { %3383 = vst.msk [vmem:[#allocation3 + $0x68] sm:$0xff] %vm3369_vm13, %v3204_v38  ;;  %3575 = vrot.lane.b32.xlu0 %v3441_v50, %s6433_s9  ;;  %v3468_v38 = vld [vmem:[#allocation2 + $0x198] sm:$0xff] }
 0x381   : > { %3577 = vrot.lane.b32.xlu1 %v3442_v55, %s6433_s9 }
 0x382   : > { %v3206_v25 = vpop.permute.xlu0 %3205 }
 0x383   : > { %v3208_v47 = vpop.permute.xlu1 %3207  ;;  %3384 = vst.msk [vmem:[#allocation3 + $0x70] sm:$0xff] %vm3369_vm13, %v3206_v25  ;;  %v3469_v25 = vld [vmem:[#allocation2 + $0x1a0] sm:$0xff] }
 0x384   : > { %3385 = vst.msk [vmem:[#allocation3 + $0x78] sm:$0xff] %vm3369_vm13, %v3208_v47  ;;  %3579 = vrot.lane.b32.xlu0 %v3443_v44, %s6433_s9  ;;  %v3470_v47 = vld [vmem:[#allocation2 + $0x1a8] sm:$0xff] }
 0x385   : > { %3581 = vrot.lane.b32.xlu1 %v3444_v46, %s6433_s9 }
 0x386   : > { %v3210_v12 = vpop.permute.xlu0 %3209 }
 0x387   : > { %v3212_v35 = vpop.permute.xlu1 %3211  ;;  %3386 = vst.msk [vmem:[#allocation3 + $0x80] sm:$0xff] %vm3369_vm13, %v3210_v12  ;;  %v3471_v12 = vld [vmem:[#allocation2 + $0x1b8] sm:$0xff] }
 0x388   : > { %3387 = vst.msk [vmem:[#allocation3 + $0x88] sm:$0xff] %vm3369_vm13, %v3212_v35  ;;  %3583 = vrot.lane.b32.xlu0 %v3445_v24, %s6433_s9  ;;  %v3472_v35 = vld [vmem:[#allocation2 + $0x1c0] sm:$0xff] }
 0x389   : > { %3585 = vrot.lane.b32.xlu1 %v3446_v27, %s6433_s9 }
 0x38a   : > { %v3214_v30 = vpop.permute.xlu0 %3213 }
 0x38b   : > { %v3216_v29 = vpop.permute.xlu1 %3215  ;;  %3388 = vst.msk [vmem:[#allocation3 + $0x90] sm:$0xff] %vm3369_vm13, %v3214_v30  ;;  %v3473_v30 = vld [vmem:[#allocation2 + $0x1c8] sm:$0xff] }
 0x38c   : > { %3389 = vst.msk [vmem:[#allocation3 + $0x98] sm:$0xff] %vm3369_vm13, %v3216_v29  ;;  %3587 = vrot.lane.b32.xlu0 %v3447_v16, %s6433_s9  ;;  %v3474_v29 = vld [vmem:[#allocation2 + $0x1d0] sm:$0xff] }
 0x38d   : > { %3589 = vrot.lane.b32.xlu1 %v3448_v11, %s6433_s9 }
 0x38e   : > { %v3218_v10 = vpop.permute.xlu0 %3217 }
 0x38f   : > { %v3220_v59 = vpop.permute.xlu1 %3219  ;;  %3390 = vst.msk [vmem:[#allocation3 + $0xa0] sm:$0xff] %vm3369_vm13, %v3218_v10  ;;  %v3475_v10 = vld [vmem:[#allocation2 + $0x1e0] sm:$0xff] }
 0x390   : > { %3391 = vst.msk [vmem:[#allocation3 + $0xa8] sm:$0xff] %vm3369_vm13, %v3220_v59  ;;  %3591 = vrot.lane.b32.xlu0 %v3449_v1, %s6433_s9  ;;  %v3476_v59 = vld [vmem:[#allocation2 + $0x1e8] sm:$0xff] }
 0x391   : > { %3593 = vrot.lane.b32.xlu1 %v3450_v57, %s6433_s9 }
 0x392   : > { %v3222_v7 = vpop.permute.xlu0 %3221 }
 0x393   : > { %v3224_v6 = vpop.permute.xlu1 %3223  ;;  %3392 = vst.msk [vmem:[#allocation3 + $0xb0] sm:$0xff] %vm3369_vm13, %v3222_v7  ;;  %v3477_v7 = vld [vmem:[#allocation2 + $0x1f0] sm:$0xff] }
 0x394   : > { %3393 = vst.msk [vmem:[#allocation3 + $0xb8] sm:$0xff] %vm3369_vm13, %v3224_v6  ;;  %3595 = vrot.lane.b32.xlu0 %v3451_v19, %s6433_s9  ;;  %v3478_v6 = vld [vmem:[#allocation2 + $0x1f8] sm:$0xff] }
 0x395   : > { %3597 = vrot.lane.b32.xlu1 %v3452_v18, %s6433_s9 }
 0x396   : > { %v3226_v45 = vpop.permute.xlu0 %3225 }
 0x397   : > { %v3228_v26 = vpop.permute.xlu1 %3227  ;;  %3394 = vst.msk [vmem:[#allocation3 + $0xc0] sm:$0xff] %vm3369_vm13, %v3226_v45  ;;  %v3479_v45 = vld [vmem:[#allocation2 + $0x208] sm:$0xff] }
 0x398   : > { %3395 = vst.msk [vmem:[#allocation3 + $0xc8] sm:$0xff] %vm3369_vm13, %v3228_v26  ;;  %3599 = vrot.lane.b32.xlu0 %v3453_v17, %s6433_s9  ;;  %v3480_v26 = vld [vmem:[#allocation2 + $0x210] sm:$0xff] }
 0x399   : > { %3601 = vrot.lane.b32.xlu1 %v3454_v15, %s6433_s9 }
 0x39a   : > { %v3230_v8 = vpop.permute.xlu0 %3229 }
 0x39b   : > { %v3232_v5 = vpop.permute.xlu1 %3231  ;;  %3396 = vst.msk [vmem:[#allocation3 + $0xd0] sm:$0xff] %vm3369_vm13, %v3230_v8  ;;  %v4655_v8 = vld [vmem:[%s9550_s4 + $0x8] sm:$0xff] }
 0x39c   : > { %3397 = vst.msk [vmem:[#allocation3 + $0xd8] sm:$0xff] %vm3369_vm13, %v3232_v5  ;;  %3603 = vrot.lane.b32.xlu0 %v3455_v0, %s6433_s9  ;;  %v4654_v5 = vld [vmem:[%s9550_s4] sm:$0xff] }
 0x39d   : > { %3605 = vrot.lane.b32.xlu1 %v3456_v54, %s6433_s9 }
 0x39e   : > { %v3234_v61 = vpop.permute.xlu0 %3233 }
 0x39f   : > { %v3236_v51 = vpop.permute.xlu1 %3235  ;;  %3398 = vst.msk [vmem:[#allocation3 + $0xe0] sm:$0xff] %vm3369_vm13, %v3234_v61 }
 0x3a0   : > { %3399 = vst.msk [vmem:[#allocation3 + $0xe8] sm:$0xff] %vm3369_vm13, %v3236_v51  ;;  %3607 = vrot.lane.b32.xlu0 %v3457_v20, %s6433_s9  ;;  %v3482_v20 = vld [vmem:[#allocation2 + $0x220] sm:$0xff]  ;;  %v3481_v51 = vld [vmem:[#allocation2 + $0x218] sm:$0xff] }
 0x3a1   : > { %3609 = vrot.lane.b32.xlu1 %v3458_v4, %s6433_s9  ;;  %v6193_v4 = vpack.c.bf16 %v4655_v8, %v4654_v5  ;;  %v6295_v8 = vld [vmem:[#allocation2 + $0xe2] sm:$0xff] }
 0x3a2   : > { %v3238_v31 = vpop.permute.xlu0 %3237 }
 0x3a3   : > { %v3240_v53 = vpop.permute.xlu1 %3239  ;;  %3400 = vst.msk [vmem:[#allocation3 + $0xf0] sm:$0xff] %vm3369_vm13, %v3238_v31  ;;  %6194 = vmatprep.subr.bf16.mxu0 %v6193_v4  ;;  %6201 = vmatprep.subr.bf16.mxu1 %v6193_v4 }
 0x3a4   : > { %3401 = vst.msk [vmem:[#allocation3 + $0xf8] sm:$0xff] %vm3369_vm13, %v3240_v53  ;;  %3611 = vrot.lane.b32.xlu0 %v3459_v14, %s6433_s9  ;;  %6196 = vmatpush3.bf16.msra.mxu0 %v6193_v4  ;;  %v4656_v14 = vld [vmem:[%s9550_s4 + $0x10] sm:$0xff]  ;;  %v4657_v53 = vld [vmem:[%s9550_s4 + $0x18] sm:$0xff] }
 0x3a5   : > { %3613 = vrot.lane.b32.xlu1 %v3460_v9, %s6433_s9  ;;  %6204 = vmatpush3.bf16.msra.mxu1 %v6193_v4  ;;  %v6197_v31 = vpack.c.bf16 %v4657_v53, %v4656_v14  ;;  %v3837_v4 = vld [vmem:[#allocation2 + $0xf9] sm:$0xff] }
 0x3a6   : > { %v3242_v56 = vpop.permute.xlu0 %3241 }
 0x3a7   : > { %v3244_v49 = vpop.permute.xlu1 %3243  ;;  %3402 = vst.msk [vmem:[#allocation3 + $0x100] sm:$0xff] %vm3369_vm13, %v3242_v56  ;;  %6198 = vmatprep.subr.bf16.mxu0 %v6197_v31  ;;  %6202 = vmatprep.subr.bf16.mxu1 %v6197_v31 }
 0x3a8   : > { %3403 = vst.msk [vmem:[#allocation3 + $0x108] sm:$0xff] %vm3369_vm13, %v3244_v49  ;;  %3615 = vrot.lane.b32.xlu0 %v3461_v48, %s6433_s9  ;;  %v3483_v48 = vld [vmem:[#allocation2 + $0x230] sm:$0xff]  ;;  %6200 = vmatpush3.bf16.msra.mxu0 %v6197_v31 }
 0x3a9   : > { %3617 = vrot.lane.b32.xlu1 %v3462_v36, %s6433_s9  ;;  %v3820_v36 = vld [vmem:[#allocation2 + $0x51] sm:$0xff]  ;;  %6205 = vmatpush3.bf16.msra.mxu1 %v6197_v31  ;;  %v4223_v31 = vld [vmem:[#allocation2 + $0x102] sm:$0xff] }
 0x3aa   : > { %v3246_v3 = vpop.permute.xlu0 %3245 }
 0x3ab   : > { %v3248_v58 = vpop.permute.xlu1 %3247  ;;  %3404 = vst.msk [vmem:[#allocation3 + $0x110] sm:$0xff] %vm3369_vm13, %v3246_v3 }
 0x3ac   : > { %3405 = vst.msk [vmem:[#allocation3 + $0x118] sm:$0xff] %vm3369_vm13, %v3248_v58  ;;  %3619 = vrot.lane.b32.xlu0 %v3463_v34, %s6433_s9  ;;  %v3821_v34 = vld [vmem:[#allocation2 + $0x59] sm:$0xff] }
 0x3ad   : > { %3621 = vrot.lane.b32.xlu1 %v3464_v43, %s6433_s9  ;;  %v4658_v43 = vld [vmem:[%s9550_s4 + $0x20] sm:$0xf] }
 0x3ae   : > { %v3250_v50 = vpop.permute.xlu0 %3249  ;;  %6095 = vmatprep.subr.msk.mxu0 %vm4859_vm14, %v4658_v43  ;;  %6203 = vmatprep.subr.msk.mxu1 %vm4859_vm14, %v4658_v43 }
 0x3af   : > { %v3252_v55 = vpop.permute.xlu1 %3251  ;;  %3406 = vst.msk [vmem:[#allocation3 + $0x120] sm:$0xff] %vm3369_vm13, %v3250_v50  ;;  %6096 = vmatpush3.msk.msra.mxu0 %vm4859_vm14, %v4658_v43  ;;  %6206 = vmatpush3.msk.msra.mxu1 %vm4859_vm14, %v4658_v43  ;;  %v3823_v50 = vld [vmem:[#allocation2 + $0x69] sm:$0xff] }
 0x3b0   : > { %3407 = vst.msk [vmem:[#allocation3 + $0x128] sm:$0xff] %vm3369_vm13, %v3252_v55  ;;  %3623 = vrot.lane.b32.xlu0 %v3465_v22, %s6433_s9  ;;  %v4224_v43 = vld [vmem:[#allocation2 + $0x10a] sm:$0xff] }
 0x3b1   : > { %3625 = vrot.lane.b32.xlu1 %v3466_v13, %s6433_s9  ;;  %v3822_v13 = vld [vmem:[#allocation2 + $0x61] sm:$0xff] }
 0x3b2   : > { %v3254_v44 = vpop.permute.xlu0 %3253 }
 0x3b3   : > { %v3256_v46 = vpop.permute.xlu1 %3255  ;;  %3408 = vst.msk [vmem:[#allocation3 + $0x130] sm:$0xff] %vm3369_vm13, %v3254_v44 }
 0x3b4   : > { %3409 = vst.msk [vmem:[#allocation3 + $0x138] sm:$0xff] %vm3369_vm13, %v3256_v46  ;;  %3627 = vrot.lane.b32.xlu0 %v3467_v2, %s6433_s9 }
 0x3b5   : > { %3629 = vrot.lane.b32.xlu1 %v3468_v38, %s6433_s9 }
 0x3b6   : > { %v3258_v24 = vpop.permute.xlu0 %3257 }
 0x3b7   : > { %v3260_v27 = vpop.permute.xlu1 %3259  ;;  %3410 = vst.msk [vmem:[#allocation3 + $0x140] sm:$0xff] %vm3369_vm13, %v3258_v24 }
 0x3b8   : > { %3411 = vst.msk [vmem:[#allocation3 + $0x148] sm:$0xff] %vm3369_vm13, %v3260_v27  ;;  %3631 = vrot.lane.b32.xlu0 %v3469_v25, %s6433_s9 }
 0x3b9   : > { %3633 = vrot.lane.b32.xlu1 %v3470_v47, %s6433_s9 }
 0x3ba   : > { %v3262_v16 = vpop.permute.xlu0 %3261 }
 0x3bb   : > { %v3264_v11 = vpop.permute.xlu1 %3263  ;;  %3412 = vst.msk [vmem:[#allocation3 + $0x150] sm:$0xff] %vm3369_vm13, %v3262_v16 }
 0x3bc   : > { %3413 = vst.msk [vmem:[#allocation3 + $0x158] sm:$0xff] %vm3369_vm13, %v3264_v11  ;;  %3635 = vrot.lane.b32.xlu0 %v3471_v12, %s6433_s9 }
 0x3bd   : > { %3637 = vrot.lane.b32.xlu1 %v3472_v35, %s6433_s9 }
 0x3be   : > { %v3266_v1 = vpop.permute.xlu0 %3265 }
 0x3bf   : > { %v3268_v57 = vpop.permute.xlu1 %3267  ;;  %3414 = vst.msk [vmem:[#allocation3 + $0x160] sm:$0xff] %vm3369_vm13, %v3266_v1 }
 0x3c0   : > { %3415 = vst.msk [vmem:[#allocation3 + $0x168] sm:$0xff] %vm3369_vm13, %v3268_v57  ;;  %3639 = vrot.lane.b32.xlu0 %v3473_v30, %s6433_s9 }
 0x3c1   : > { %3641 = vrot.lane.b32.xlu1 %v3474_v29, %s6433_s9 }
 0x3c2   : > { %v3270_v19 = vpop.permute.xlu0 %3269 }
 0x3c3   : > { %v3272_v18 = vpop.permute.xlu1 %3271  ;;  %3416 = vst.msk [vmem:[#allocation3 + $0x170] sm:$0xff] %vm3369_vm13, %v3270_v19 }
 0x3c4   : > { %3417 = vst.msk [vmem:[#allocation3 + $0x178] sm:$0xff] %vm3369_vm13, %v3272_v18  ;;  %3643 = vrot.lane.b32.xlu0 %v3475_v10, %s6433_s9 }
 0x3c5   : > { %3645 = vrot.lane.b32.xlu1 %v3476_v59, %s6433_s9 }
 0x3c6   : > { %v3274_v17 = vpop.permute.xlu0 %3273 }
 0x3c7   : > { %v3276_v15 = vpop.permute.xlu1 %3275  ;;  %3418 = vst.msk [vmem:[#allocation3 + $0x180] sm:$0xff] %vm3369_vm13, %v3274_v17 }
 0x3c8   : > { %3419 = vst.msk [vmem:[#allocation3 + $0x188] sm:$0xff] %vm3369_vm13, %v3276_v15  ;;  %3647 = vrot.lane.b32.xlu0 %v3477_v7, %s6433_s9 }
 0x3c9   : > { %3649 = vrot.lane.b32.xlu1 %v3478_v6, %s6433_s9 }
 0x3ca   : > { %v3278_v0 = vpop.permute.xlu0 %3277 }
 0x3cb   : > { %v3280_v54 = vpop.permute.xlu1 %3279  ;;  %3420 = vst.msk [vmem:[#allocation3 + $0x190] sm:$0xff] %vm3369_vm13, %v3278_v0 }
 0x3cc   : > { %3421 = vst.msk [vmem:[#allocation3 + $0x198] sm:$0xff] %vm3369_vm13, %v3280_v54  ;;  %3651 = vrot.lane.b32.xlu0 %v3479_v45, %s6433_s9 }
 0x3cd   : > { %3653 = vrot.lane.b32.xlu1 %v3480_v26, %s6433_s9  ;;  %v3835_v26 = vld [vmem:[#allocation2 + $0xe1] sm:$0xff] }
 0x3ce   : > { %v3282_v9 = vpop.permute.xlu0 %3281 }
 0x3cf   : > { %v3284_v61 = vpop.permute.xlu1 %3283  ;;  %3422 = vst.msk [vmem:[#allocation3 + $0x1a0] sm:$0xff] %vm3369_vm13, %v3282_v9  ;;  %v4222_v9 = vld [vmem:[#allocation2 + $0xfa] sm:$0xff] }
 0x3d0   : > { %3423 = vst.msk [vmem:[#allocation3 + $0x1a8] sm:$0xff] %vm3369_vm13, %v3284_v61  ;;  %3655 = vrot.lane.b32.xlu0 %v3481_v51, %s6433_s9  ;;  %v3838_v61 = vld [vmem:[#allocation2 + $0x101] sm:$0xff] }
 0x3d1   : > { %3657 = vrot.lane.b32.xlu1 %v3482_v20, %s6433_s9 }
 0x3d2   : > { %v3286_v56 = vpop.permute.xlu0 %3285 }
 0x3d3   : > { %v3288_v49 = vpop.permute.xlu1 %3287  ;;  %3424 = vst.msk [vmem:[#allocation3 + $0x1b0] sm:$0xff] %vm3369_vm13, %v3286_v56  ;;  %v3840_v56 = vld [vmem:[#allocation2 + $0x119] sm:$0xff] }
 0x3d4   : > { %3425 = vst.msk [vmem:[#allocation3 + $0x1b8] sm:$0xff] %vm3369_vm13, %v3288_v49  ;;  %3659 = vrot.lane.b32.xlu0 %v3483_v48, %s6433_s9 }
 0x3d5   : > { %3948 = vrot.lane.b32.xlu1 %v3820_v36, %s6434_s18  ;;  %v3839_v36 = vld [vmem:[#allocation2 + $0x109] sm:$0xff] }
 0x3d6   : > { %v3290_v3 = vpop.permute.xlu0 %3289 }
 0x3d7   : > { %v3292_v58 = vpop.permute.xlu1 %3291  ;;  %3426 = vst.msk [vmem:[#allocation3 + $0x1c0] sm:$0xff] %vm3369_vm13, %v3290_v3  ;;  %v4225_v3 = vld [vmem:[#allocation2 + $0x11a] sm:$0xff] }
 0x3d8   : > { %3427 = vst.msk [vmem:[#allocation3 + $0x1c8] sm:$0xff] %vm3369_vm13, %v3292_v58  ;;  %3950 = vrot.lane.b32.xlu0 %v3821_v34, %s6434_s18 }
 0x3d9   : > { %4333 = vrot.lane.b32.xlu1 %v8438_v40, %s6435_s20  ;;  %v3824_v40 = vld [vmem:[#allocation2 + $0x79] sm:$0xff] }
 0x3da   : > { %v3294_v55 = vpop.permute.xlu0 %3293 }
 0x3db   : > { %v3296_v22 = vpop.permute.xlu1 %3295  ;;  %3428 = vst.msk [vmem:[#allocation3 + $0x1d0] sm:$0xff] %vm3369_vm13, %v3294_v55 }
 0x3dc   : > { %3429 = vst.msk [vmem:[#allocation3 + $0x1d8] sm:$0xff] %vm3369_vm13, %v3296_v22  ;;  %4335 = vrot.lane.b32.xlu0 %v8436_v39, %s6435_s20  ;;  %v3825_v39 = vld [vmem:[#allocation2 + $0x81] sm:$0xff] }
 0x3dd   : > { %3952 = vrot.lane.b32.xlu1 %v3822_v13, %s6434_s18  ;;  %v3841_v13 = vld [vmem:[#allocation2 + $0x121] sm:$0xff] }
 0x3de   : > { %v3298_v2 = vpop.permute.xlu0 %3297 }
 0x3df   : > { %v3300_v38 = vpop.permute.xlu1 %3299  ;;  %3430 = vst.msk [vmem:[#allocation3 + $0x1e0] sm:$0xff] %vm3369_vm13, %v3298_v2 }
 0x3e0   : > { %3431 = vst.msk [vmem:[#allocation3 + $0x1e8] sm:$0xff] %vm3369_vm13, %v3300_v38  ;;  %3954 = vrot.lane.b32.xlu0 %v3823_v50, %s6434_s18  ;;  %v3842_v50 = vld [vmem:[#allocation2 + $0x129] sm:$0xff] }
 0x3e1   : > { %4337 = vrot.lane.b32.xlu1 %v8448_v32, %s6435_s20  ;;  %v3826_v32 = vld [vmem:[#allocation2 + $0x89] sm:$0xff] }
 0x3e2   : > { %v3302_v44 = vpop.permute.xlu0 %3301  ;;  %v4226_v38 = vld [vmem:[#allocation2 + $0x122] sm:$0xff] }
 0x3e3   : > { %v3304_v46 = vpop.permute.xlu1 %3303  ;;  %3432 = vst.msk [vmem:[#allocation3 + $0x1f0] sm:$0xff] %vm3369_vm13, %v3302_v44  ;;  %v3843_v44 = vld [vmem:[#allocation2 + $0x131] sm:$0xff] }
 0x3e4   : > { %3433 = vst.msk [vmem:[#allocation3 + $0x1f8] sm:$0xff] %vm3369_vm13, %v3304_v46  ;;  %4339 = vrot.lane.b32.xlu0 %v8446_v37, %s6435_s20  ;;  %v3827_v37 = vld [vmem:[#allocation2 + $0x91] sm:$0xff] }
 0x3e5   : > { %3956 = vrot.lane.b32.xlu1 %v3824_v40, %s6434_s18  ;;  %v4227_v46 = vld [vmem:[#allocation2 + $0x12a] sm:$0xff] }
 0x3e6   : > { %v3564_v25 = vpop.permute.xlu0 %3563 }
 0x3e7   : > { %v3566_v47 = vpop.permute.xlu1 %3565  ;;  %3756 = vst.msk [vmem:[#allocation3] sm:$0xff] %vm3755_vm15, %v3564_v25  ;;  %v4228_v25 = vld [vmem:[#allocation2 + $0x132] sm:$0xff] }
 0x3e8   : > { %3757 = vst.msk [vmem:[#allocation3 + $0x8] sm:$0xff] %vm3755_vm15, %v3566_v47  ;;  %3958 = vrot.lane.b32.xlu0 %v3825_v39, %s6434_s18 }
 0x3e9   : > { %4341 = vrot.lane.b32.xlu1 %v8458_v60, %s6435_s20  ;;  %v3828_v60 = vld [vmem:[#allocation2 + $0xa1] sm:$0xff] }
 0x3ea   : > { %v3568_v24 = vpop.permute.xlu0 %3567 }
 0x3eb   : > { %v3570_v27 = vpop.permute.xlu1 %3569  ;;  %3758 = vst.msk [vmem:[#allocation3 + $0x10] sm:$0xff] %vm3755_vm15, %v3568_v24 }
 0x3ec   : > { %3759 = vst.msk [vmem:[#allocation3 + $0x18] sm:$0xff] %vm3755_vm15, %v3570_v27  ;;  %4343 = vrot.lane.b32.xlu0 %v8456_v41, %s6435_s20  ;;  %v3829_v41 = vld [vmem:[#allocation2 + $0xa9] sm:$0xff] }
 0x3ed   : > { %3960 = vrot.lane.b32.xlu1 %v3826_v32, %s6434_s18  ;;  %v3852_v32 = vld [vmem:[#allocation2 + $0x191] sm:$0xff] }
 0x3ee   : > { %v3572_v12 = vpop.permute.xlu0 %3571 }
 0x3ef   : > { %v3574_v35 = vpop.permute.xlu1 %3573  ;;  %3760 = vst.msk [vmem:[#allocation3 + $0x20] sm:$0xff] %vm3755_vm15, %v3572_v12 }
 0x3f0   : > { %3761 = vst.msk [vmem:[#allocation3 + $0x28] sm:$0xff] %vm3755_vm15, %v3574_v35  ;;  %3962 = vrot.lane.b32.xlu0 %v3827_v37, %s6434_s18  ;;  %v3853_v37 = vld [vmem:[#allocation2 + $0x199] sm:$0xff] }
 0x3f1   : > { %4345 = vrot.lane.b32.xlu1 %v8468_v52, %s6435_s20  ;;  %v3830_v52 = vld [vmem:[#allocation2 + $0xb1] sm:$0xff] }
 0x3f2   : > { %v3576_v16 = vpop.permute.xlu0 %3575 }
 0x3f3   : > { %v3578_v11 = vpop.permute.xlu1 %3577  ;;  %3762 = vst.msk [vmem:[#allocation3 + $0x30] sm:$0xff] %vm3755_vm15, %v3576_v16  ;;  %v3844_v16 = vld [vmem:[#allocation2 + $0x141] sm:$0xff] }
 0x3f4   : > { %3763 = vst.msk [vmem:[#allocation3 + $0x38] sm:$0xff] %vm3755_vm15, %v3578_v11  ;;  %4347 = vrot.lane.b32.xlu0 %v8466_v21, %s6435_s20  ;;  %v3831_v21 = vld [vmem:[#allocation2 + $0xb9] sm:$0xff] }
 0x3f5   : > { %3964 = vrot.lane.b32.xlu1 %v3828_v60, %s6434_s18  ;;  %v6297_v60 = vld [vmem:[#allocation2 + $0x192] sm:$0xff]  ;;  %v4238_v11 = vld [vmem:[#allocation2 + $0x19a] sm:$0xff] }
 0x3f6   : > { %v3580_v30 = vpop.permute.xlu0 %3579 }
 0x3f7   : > { %v3582_v29 = vpop.permute.xlu1 %3581  ;;  %3764 = vst.msk [vmem:[#allocation3 + $0x40] sm:$0xff] %vm3755_vm15, %v3580_v30  ;;  %v4229_v30 = vld [vmem:[#allocation2 + $0x142] sm:$0xff] }
 0x3f8   : > { %3765 = vst.msk [vmem:[#allocation3 + $0x48] sm:$0xff] %vm3755_vm15, %v3582_v29  ;;  %3966 = vrot.lane.b32.xlu0 %v3829_v41, %s6434_s18 }
 0x3f9   : > { %4349 = vrot.lane.b32.xlu1 %v8478_v63, %s6435_s20  ;;  %v3832_v63 = vld [vmem:[#allocation2 + $0xc9] sm:$0xff] }
 0x3fa   : > { %v3584_v1 = vpop.permute.xlu0 %3583 }
 0x3fb   : > { %v3586_v57 = vpop.permute.xlu1 %3585  ;;  %3766 = vst.msk [vmem:[#allocation3 + $0x50] sm:$0xff] %vm3755_vm15, %v3584_v1 }
 0x3fc   : > { %3767 = vst.msk [vmem:[#allocation3 + $0x58] sm:$0xff] %vm3755_vm15, %v3586_v57  ;;  %4351 = vrot.lane.b32.xlu0 %v8476_v33, %s6435_s20  ;;  %v3833_v33 = vld [vmem:[#allocation2 + $0xd1] sm:$0xff] }
 0x3fd   : > { %3968 = vrot.lane.b32.xlu1 %v3830_v52, %s6434_s18  ;;  %v3845_v52 = vld [vmem:[#allocation2 + $0x149] sm:$0xff] }
 0x3fe   : > { %v3588_v10 = vpop.permute.xlu0 %3587 }
 0x3ff   : > { %v3590_v59 = vpop.permute.xlu1 %3589  ;;  %3768 = vst.msk [vmem:[#allocation3 + $0x60] sm:$0xff] %vm3755_vm15, %v3588_v10 }
 0x400   : > { %3769 = vst.msk [vmem:[#allocation3 + $0x68] sm:$0xff] %vm3755_vm15, %v3590_v59  ;;  %3970 = vrot.lane.b32.xlu0 %v3831_v21, %s6434_s18  ;;  %v4230_v21 = vld [vmem:[#allocation2 + $0x14a] sm:$0xff]  ;;  %v3854_v59 = vld [vmem:[#allocation2 + $0x1a1] sm:$0xff] }
 0x401   : > { %4353 = vrot.lane.b32.xlu1 %v8488_v42, %s6435_s20  ;;  %v3834_v42 = vld [vmem:[#allocation2 + $0xd9] sm:$0xff] }
 0x402   : > { %v3592_v19 = vpop.permute.xlu0 %3591 }
 0x403   : > { %v3594_v18 = vpop.permute.xlu1 %3593  ;;  %3770 = vst.msk [vmem:[#allocation3 + $0x70] sm:$0xff] %vm3755_vm15, %v3592_v19  ;;  %v3855_v19 = vld [vmem:[#allocation2 + $0x1a9] sm:$0xff] }
 0x404   : > { %3771 = vst.msk [vmem:[#allocation3 + $0x78] sm:$0xff] %vm3755_vm15, %v3594_v18  ;;  %4355 = vrot.lane.b32.xlu0 %v8486_v23, %s6435_s20  ;;  %v6294_v23 = vld [vmem:[#allocation2 + $0xd2] sm:$0xff]  ;;  %v4239_v18 = vld [vmem:[#allocation2 + $0x1a2] sm:$0xff] }
 0x405   : > { %3972 = vrot.lane.b32.xlu1 %v3832_v63, %s6434_s18 }
 0x406   : > { %v3596_v7 = vpop.permute.xlu0 %3595 }
 0x407   : > { %v3598_v6 = vpop.permute.xlu1 %3597  ;;  %3772 = vst.msk [vmem:[#allocation3 + $0x80] sm:$0xff] %vm3755_vm15, %v3596_v7  ;;  %v714_v7 = vld [vmem:[%s8842_s10] sm:$0xff] }
 0x408   : > { %3773 = vst.msk [vmem:[#allocation3 + $0x88] sm:$0xff] %vm3755_vm15, %v3598_v6  ;;  %3974 = vrot.lane.b32.xlu0 %v3833_v33, %s6434_s18 }
 0x409   : > { %4357 = vrot.lane.b32.xlu1 %v8496_v62, %s6435_s20  ;;  %v3836_v62 = vld [vmem:[#allocation2 + $0xf1] sm:$0xff] }
 0x40a   : > { %v3600_v17 = vpop.permute.xlu0 %3599 }
 0x40b   : > { %v3602_v15 = vpop.permute.xlu1 %3601  ;;  %3774 = vst.msk [vmem:[#allocation3 + $0x90] sm:$0xff] %vm3755_vm15, %v3600_v17  ;;  %v3846_v17 = vld [vmem:[#allocation2 + $0x151] sm:$0xff] }
 0x40c   : > { %3775 = vst.msk [vmem:[#allocation3 + $0x98] sm:$0xff] %vm3755_vm15, %v3602_v15  ;;  %4359 = vrot.lane.b32.xlu0 %v6294_v23, %s6435_s20  ;;  %v4240_v15 = vld [vmem:[#allocation2 + $0x1aa] sm:$0xff]  ;;  %v719_v23 = vld [vmem:[%s8850_s17] sm:$0xff] }
 0x40d   : > { %3976 = vrot.lane.b32.xlu1 %v3834_v42, %s6434_s18  ;;  %v716_v42 = vmax.f32 %v714_v7, 0.0  ;;  %v4243_v7 = vld [vmem:[#allocation2 + $0x1ca] sm:$0xff] }
 0x40e   : > { %v3604_v54 = vpop.permute.xlu0 %3603 }
 0x40f   : > { %v3606_v45 = vpop.permute.xlu1 %3605  ;;  %3776 = vst.msk [vmem:[#allocation3 + $0xa0] sm:$0xff] %vm3755_vm15, %v3604_v54  ;;  %v727_v54 = vsub.f32 %v716_v42, %v719_v23 }
 0x410   : > { %3777 = vst.msk [vmem:[#allocation3 + $0xa8] sm:$0xff] %vm3755_vm15, %v3606_v45  ;;  %3978 = vrot.lane.b32.xlu0 %v3835_v26, %s6434_s18 }
 0x411   : > { %4361 = vrot.lane.b32.xlu1 %v8503_v28, %s6435_s20  ;;  %v6296_v28 = vld [vmem:[#allocation2 + $0xf2] sm:$0xff] }
 0x412   : > { %v3608_v5 = vpop.permute.xlu0 %3607 }
 0x413   : > { %v3610_v0 = vpop.permute.xlu1 %3609  ;;  %3778 = vst.msk [vmem:[#allocation3 + $0xb0] sm:$0xff] %vm3755_vm15, %v3608_v5 }
 0x414   : > { %3779 = vst.msk [vmem:[#allocation3 + $0xb8] sm:$0xff] %vm3755_vm15, %v3610_v0  ;;  %4363 = vrot.lane.b32.xlu0 %v6295_v8, %s6435_s20  ;;  %v722_v0 = vld [vmem:[%s8854_s16] sm:$0xff] }
 0x415   : > { %3980 = vrot.lane.b32.xlu1 %v3836_v62, %s6434_s18  ;;  %v735_v62 = vadd.f32 %v719_v23, %v716_v42  ;;  %v729_v5 = vsub.f32 %v727_v54, %v722_v0  ;;  %v3859_v42 = vld [vmem:[#allocation2 + $0x1d1] sm:$0xff] }
 0x416   : > { %v3612_v51 = vpop.permute.xlu0 %3611 }
 0x417   : > { %v3614_v20 = vpop.permute.xlu1 %3613  ;;  %3780 = vst.msk [vmem:[#allocation3 + $0xc0] sm:$0xff] %vm3755_vm15, %v3612_v51  ;;  %v737_v8 = vsub.f32 %v735_v62, %v722_v0  ;;  %v725_v51 = vld [vmem:[%s8863_s12] sm:$0xff] }
 0x418   : > { %3781 = vst.msk [vmem:[#allocation3 + $0xc8] sm:$0xff] %vm3755_vm15, %v3614_v20  ;;  %3982 = vrot.lane.b32.xlu0 %v3837_v4, %s6434_s18  ;;  %v4231_v4 = vld [vmem:[#allocation2 + $0x152] sm:$0xff] }
 0x419   : > { %4365 = vrot.lane.b32.xlu1 %v6296_v28, %s6435_s20  ;;  %v3847_v20 = vld [vmem:[#allocation2 + $0x159] sm:$0xff] }
 0x41a   : > { %v3616_v53 = vpop.permute.xlu0 %3615 }
 0x41b   : > { %v3618_v14 = vpop.permute.xlu1 %3617  ;;  %3782 = vst.msk [vmem:[#allocation3 + $0xd0] sm:$0xff] %vm3755_vm15, %v3616_v53 }
 0x41c   : > { %3783 = vst.msk [vmem:[#allocation3 + $0xd8] sm:$0xff] %vm3755_vm15, %v3618_v14  ;;  %4367 = vrot.lane.b32.xlu0 %v4222_v9, %s6435_s20  ;;  %v731_v9 = vadd.f32 %v729_v5, %v725_v51  ;;  %v739_v14 = vsub.f32 %v737_v8, %v725_v51  ;;  %v4235_v5 = vld [vmem:[#allocation2 + $0x17a] sm:$0xff] }
 0x41d   : > { %3984 = vrot.lane.b32.xlu1 %v3838_v61, %s6434_s18  ;;  %v3851_v8 = vld [vmem:[#allocation2 + $0x181] sm:$0xff] }
 0x41e   : > { %v3620_v49 = vpop.permute.xlu0 %3619  ;;  %v733_v53 = vmul.f32 0.5, %v731_v9 }
 0x41f   : > { %v3622_v48 = vpop.permute.xlu1 %3621  ;;  %3784 = vst.msk [vmem:[#allocation3 + $0xe0] sm:$0xff] %vm3755_vm15, %v3620_v49  ;;  %v3856_v49 = vld [vmem:[#allocation2 + $0x1b9] sm:$0xff] }
 0x420   : > { %3785 = vst.msk [vmem:[#allocation3 + $0xe8] sm:$0xff] %vm3755_vm15, %v3622_v48  ;;  %3986 = vrot.lane.b32.xlu0 %v3839_v36, %s6434_s18  ;;  %v715_v36 = vld [vmem:[%s8842_s10 + $0x8] sm:$0xff]  ;;  %v4232_v48 = vld [vmem:[#allocation2 + $0x15a] sm:$0xff]  ;;  %s6009_s10 = sshll.u32 %s6413_s28, 1 }
 0x421   : > { %4369 = vrot.lane.b32.xlu1 %v4223_v31, %s6435_s20  ;;  %v741_v31 = vmul.f32 0.5, %v739_v14 }
 0x422   : > { %v3624_v58 = vpop.permute.xlu0 %3623 }
 0x423   : > { %v3626_v34 = vpop.permute.xlu1 %3625  ;;  %3786 = vst.msk [vmem:[#allocation3 + $0xf0] sm:$0xff] %vm3755_vm15, %v3624_v58 }
 0x424   : > { %3787 = vst.msk [vmem:[#allocation3 + $0xf8] sm:$0xff] %vm3755_vm15, %v3626_v34  ;;  %4371 = vrot.lane.b32.xlu0 %v4224_v43, %s6435_s20  ;;  %v717_v43 = vmax.f32 %v715_v36, 0.0  ;;  %v4245_v36 = vld [vmem:[#allocation2 + $0x1e2] sm:$0xff] }
 0x425   : > { %3988 = vrot.lane.b32.xlu1 %v3840_v56, %s6434_s18  ;;  %v8871_v56 = vstv %s748_s23 }
 0x426   : > { %v3628_v55 = vpop.permute.xlu0 %3627 }
 0x427   : > { %v3630_v22 = vpop.permute.xlu1 %3629  ;;  %3788 = vst.msk [vmem:[#allocation3 + $0x100] sm:$0xff] %vm3755_vm15, %v3628_v55  ;;  %v720_v55 = vld [vmem:[%s8850_s17 + $0x8] sm:$0xff] }
 0x428   : > { %3789 = vst.msk [vmem:[#allocation3 + $0x108] sm:$0xff] %vm3755_vm15, %v3630_v22  ;;  %3990 = vrot.lane.b32.xlu0 %v3841_v13, %s6434_s18  ;;  %v753_v13 = vmul.f32 %v8871_v56, %v733_v53  ;;  %v757_v22 = vmul.f32 %v8871_v56, %v741_v31  ;;  %v3861_v31 = vld [vmem:[#allocation2 + $0x1e9] sm:$0xff] }
 0x429   : > { %4373 = vrot.lane.b32.xlu1 %v4225_v3, %s6435_s20 }
 0x42a   : > { %v3632_v40 = vpop.permute.xlu0 %3631  ;;  %813 = vst.msk [vmem:[#allocation2 + $0x2a9] sm:$0x1] %vm759_vm0, %v753_v13  ;;  %831 = vst.msk [vmem:[#allocation2 + $0x2aa] sm:$0x1] %vm759_vm0, %v757_v22 }
 0x42b   : > { %v3634_v2 = vpop.permute.xlu1 %3633  ;;  %3790 = vst.msk [vmem:[#allocation3 + $0x110] sm:$0xff] %vm3755_vm15, %v3632_v40  ;;  %v3857_v40 = vld [vmem:[#allocation2 + $0x1c1] sm:$0xff] }
 0x42c   : > { %3791 = vst.msk [vmem:[#allocation3 + $0x118] sm:$0xff] %vm3755_vm15, %v3634_v2  ;;  %4375 = vrot.lane.b32.xlu0 %v4226_v38, %s6435_s20  ;;  %v723_v38 = vld [vmem:[%s8854_s16 + $0x8] sm:$0xff]  ;;  %v4241_v2 = vld [vmem:[#allocation2 + $0x1ba] sm:$0xff]  ;;  %s5747_s16 = sadd.s32 %s6409_s27, %s6009_s10  ;;  %s6436_s10 = smov [#allocation6]  }
 0x42d   : > { %3992 = vrot.lane.b32.xlu1 %v3842_v50, %s6434_s18  ;;  %v728_v50 = vsub.f32 %v717_v43, %v720_v55  ;;  %850 = vst.msk [vmem:[#allocation2 + $0x2aa] sm:$0x2] %vm832_vm5, %v753_v13  ;;  %868 = vst.msk [vmem:[#allocation2 + $0x2ab] sm:$0x2] %vm832_vm5, %v757_v22 }
 0x42e   : > { %v3636_v47 = vpop.permute.xlu0 %3635  ;;  %887 = vst.msk [vmem:[#allocation2 + $0x2ab] sm:$0x4] %vm869_vm6, %v753_v13  ;;  %905 = vst.msk [vmem:[#allocation2 + $0x2ac] sm:$0x4] %vm869_vm6, %v757_v22 }
 0x42f   : > { %v3638_v39 = vpop.permute.xlu1 %3637  ;;  %3792 = vst.msk [vmem:[#allocation3 + $0x120] sm:$0xff] %vm3755_vm15, %v3636_v47 }
 0x430   : > { %3793 = vst.msk [vmem:[#allocation3 + $0x128] sm:$0xff] %vm3755_vm15, %v3638_v39  ;;  %3994 = vrot.lane.b32.xlu0 %v3843_v44, %s6434_s18 }
 0x431   : > { %4377 = vrot.lane.b32.xlu1 %v4227_v46, %s6435_s20  ;;  %924 = vst.msk [vmem:[#allocation2 + $0x2ac] sm:$0x8] %vm906_vm7, %v753_v13  ;;  %942 = vst.msk [vmem:[#allocation2 + $0x2ad] sm:$0x8] %vm906_vm7, %v757_v22  ;;  %v730_v46 = vsub.f32 %v728_v50, %v723_v38 }
 0x432   : > { %v3640_v24 = vpop.permute.xlu0 %3639  ;;  %961 = vst.msk [vmem:[#allocation2 + $0x2ad] sm:$0x10] %vm943_vm1, %v753_v13  ;;  %979 = vst.msk [vmem:[#allocation2 + $0x2ae] sm:$0x10] %vm943_vm1, %v757_v22 }
 0x433   : > { %v3642_v27 = vpop.permute.xlu1 %3641  ;;  %3794 = vst.msk [vmem:[#allocation3 + $0x130] sm:$0xff] %vm3755_vm15, %v3640_v24 }
 0x434   : > { %3795 = vst.msk [vmem:[#allocation3 + $0x138] sm:$0xff] %vm3755_vm15, %v3642_v27  ;;  %4012 = vrot.lane.b32.xlu0 %v3852_v32, %s6434_s18  ;;  %v736_v32 = vadd.f32 %v720_v55, %v717_v43  ;;  %v4246_v43 = vld [vmem:[#allocation2 + $0x1ea] sm:$0xff]  ;;  %v4247_v55 = vld [vmem:[#allocation2 + $0x1f2] sm:$0xff] }
 0x435   : > { %4379 = vrot.lane.b32.xlu1 %v4228_v25, %s6435_s20  ;;  %998 = vst.msk [vmem:[#allocation2 + $0x2ae] sm:$0x20] %vm980_vm2, %v753_v13  ;;  %1016 = vst.msk [vmem:[#allocation2 + $0x2af] sm:$0x20] %vm980_vm2, %v757_v22  ;;  %v726_v25 = vld [vmem:[%s8863_s12 + $0x8] sm:$0xff]  ;;  %s6010_s12 = sshll.u32 %s5747_s16, 5 }
 0x436   : > { %v3644_v12 = vpop.permute.xlu0 %3643  ;;  %1035 = vst.msk [vmem:[#allocation2 + $0x2af] sm:$0x40] %vm1017_vm3, %v753_v13  ;;  %1053 = vst.msk [vmem:[#allocation2 + $0x2b0] sm:$0x40] %vm1017_vm3, %v757_v22  ;;  %v732_v27 = vadd.f32 %v730_v46, %v726_v25  ;;  %v738_v24 = vsub.f32 %v736_v32, %v723_v38  ;;  %v3864_v46 = vld [vmem:[#allocation2 + $0x209] sm:$0xff] }
 0x437   : > { %v3646_v35 = vpop.permute.xlu1 %3645  ;;  %3796 = vst.msk [vmem:[#allocation3 + $0x140] sm:$0xff] %vm3755_vm15, %v3644_v12  ;;  %v4249_v32 = vld [vmem:[#allocation2 + $0x20a] sm:$0xff] }
 0x438   : > { %3797 = vst.msk [vmem:[#allocation3 + $0x148] sm:$0xff] %vm3755_vm15, %v3646_v35  ;;  %4014 = vrot.lane.b32.xlu0 %v3853_v37, %s6434_s18  ;;  %v4242_v37 = vld [vmem:[#allocation2 + $0x1c2] sm:$0xff]  ;;  %v734_v12 = vmul.f32 0.5, %v732_v27 }
 0x439   : > { %4397 = vrot.lane.b32.xlu1 %v6297_v60, %s6435_s20  ;;  %1072 = vst.msk [vmem:[#allocation2 + $0x2b0] sm:$0x80] %vm1054_vm4, %v753_v13  ;;  %1090 = vst.msk [vmem:[#allocation2 + $0x2b1] sm:$0x80] %vm1054_vm4, %v757_v22  ;;  %v3848_v35 = vld [vmem:[#allocation2 + $0x169] sm:$0xff]  ;;  %v3863_v22 = vld [vmem:[#allocation2 + $0x1f9] sm:$0xff] }
 0x43a   : > { %v3648_v29 = vpop.permute.xlu0 %3647 }
 0x43b   : > { %v3650_v41 = vpop.permute.xlu1 %3649  ;;  %3798 = vst.msk [vmem:[#allocation3 + $0x150] sm:$0xff] %vm3755_vm15, %v3648_v29  ;;  %v754_v29 = vmul.f32 %v8871_v56, %v734_v12  ;;  %v3866_v12 = vld [vmem:[#allocation2 + $0x219] sm:$0xff] }
 0x43c   : > { %3799 = vst.msk [vmem:[#allocation3 + $0x158] sm:$0xff] %vm3755_vm15, %v3650_v41  ;;  %3996 = vrot.lane.b32.xlu0 %v3844_v16, %s6434_s18  ;;  %v740_v41 = vsub.f32 %v738_v24, %v726_v25  ;;  %v3865_v25 = vld [vmem:[#allocation2 + $0x211] sm:$0xff] }
 0x43d   : > { %4399 = vrot.lane.b32.xlu1 %v4238_v11, %s6435_s20  ;;  %1108 = vst.msk [vmem:[#allocation2 + $0x2b9] sm:$0x1] %vm759_vm0, %v754_v29 }
 0x43e   : > { %v3652_v1 = vpop.permute.xlu0 %3651  ;;  %1144 = vst.msk [vmem:[#allocation2 + $0x2ba] sm:$0x2] %vm832_vm5, %v754_v29 }
 0x43f   : > { %v3654_v57 = vpop.permute.xlu1 %3653  ;;  %3800 = vst.msk [vmem:[#allocation3 + $0x160] sm:$0xff] %vm3755_vm15, %v3652_v1 }
 0x440   : > { %3801 = vst.msk [vmem:[#allocation3 + $0x168] sm:$0xff] %vm3755_vm15, %v3654_v57  ;;  %3998 = vrot.lane.b32.xlu0 %v3845_v52, %s6434_s18  ;;  %v4233_v52 = vld [vmem:[#allocation2 + $0x16a] sm:$0xff] }
 0x441   : > { %4381 = vrot.lane.b32.xlu1 %v4229_v30, %s6435_s20  ;;  %v742_v30 = vmul.f32 0.5, %v740_v41  ;;  %v3849_v57 = vld [vmem:[#allocation2 + $0x171] sm:$0xff]  ;;  %1180 = vst.msk [vmem:[#allocation2 + $0x2bb] sm:$0x4] %vm869_vm6, %v754_v29  ;;  %v3867_v41 = vld [vmem:[#allocation2 + $0x221] sm:$0xff] }
 0x442   : > { %v3656_v63 = vpop.permute.xlu0 %3655  ;;  %1216 = vst.msk [vmem:[#allocation2 + $0x2bc] sm:$0x8] %vm906_vm7, %v754_v29 }
 0x443   : > { %v3658_v10 = vpop.permute.xlu1 %3657  ;;  %3802 = vst.msk [vmem:[#allocation3 + $0x170] sm:$0xff] %vm3755_vm15, %v3656_v63  ;;  %v4234_v63 = vld [vmem:[#allocation2 + $0x172] sm:$0xff] }
 0x444   : > { %3803 = vst.msk [vmem:[#allocation3 + $0x178] sm:$0xff] %vm3755_vm15, %v3658_v10  ;;  %4016 = vrot.lane.b32.xlu0 %v3854_v59, %s6434_s18  ;;  %v758_v10 = vmul.f32 %v8871_v56, %v742_v30 }
 0x445   : > { %4383 = vrot.lane.b32.xlu1 %v4230_v21, %s6435_s20  ;;  %1252 = vst.msk [vmem:[#allocation2 + $0x2bd] sm:$0x10] %vm943_vm1, %v754_v29 }
 0x446   : > { %v3660_v6 = vpop.permute.xlu0 %3659  ;;  %1288 = vst.msk [vmem:[#allocation2 + $0x2be] sm:$0x20] %vm980_vm2, %v754_v29  ;;  %1306 = vst.msk [vmem:[#allocation2 + $0x2bf] sm:$0x20] %vm980_vm2, %v758_v10 }
 0x447   : > { %v3949_v33 = vpop.permute.xlu1 %3948  ;;  %3804 = vst.msk [vmem:[#allocation3 + $0x180] sm:$0xff] %vm3755_vm15, %v3660_v6 }
 0x448   : > { %4141 = vst.msk [vmem:[#allocation3] sm:$0xff] %vm4140_vm8, %v3949_v33  ;;  %4018 = vrot.lane.b32.xlu0 %v3855_v19, %s6434_s18 }
 0x449   : > { %4401 = vrot.lane.b32.xlu1 %v4239_v18, %s6435_s20  ;;  %1324 = vst.msk [vmem:[#allocation2 + $0x2bf] sm:$0x40] %vm1017_vm3, %v754_v29  ;;  %1342 = vst.msk [vmem:[#allocation2 + $0x2c0] sm:$0x40] %vm1017_vm3, %v758_v10  ;;  %v3858_v18 = vld [vmem:[#allocation2 + $0x1c9] sm:$0xff] }
 0x44a   : > { %v3951_v45 = vpop.permute.xlu0 %3950  ;;  %1360 = vst.msk [vmem:[#allocation2 + $0x2c0] sm:$0x80] %vm1054_vm4, %v754_v29  ;;  %1378 = vst.msk [vmem:[#allocation2 + $0x2c1] sm:$0x80] %vm1054_vm4, %v758_v10  ;;  %v4251_v29 = vld [vmem:[#allocation2 + $0x21a] sm:$0xff] }
 0x44b   : > { %v4334_v26 = vpop.permute.xlu1 %4333  ;;  %4142 = vst.msk [vmem:[#allocation3 + $0x8] sm:$0xff] %vm4140_vm8, %v3951_v45  ;;  %v3850_v45 = vld [vmem:[#allocation2 + $0x179] sm:$0xff] }
 0x44c   : > { %4526 = vst.msk [vmem:[#allocation3] sm:$0xff] %vm4525_vm9, %v4334_v26  ;;  %4000 = vrot.lane.b32.xlu0 %v3846_v17, %s6434_s18  ;;  %v4244_v26 = vld [vmem:[#allocation2 + $0x1d2] sm:$0xff] }
 0x44d   : > { %4403 = vrot.lane.b32.xlu1 %v4240_v15, %s6435_s20  ;;  %1126 = vst.msk [vmem:[#allocation2 + $0x2ba] sm:$0x1] %vm759_vm0, %v758_v10  ;;  %vm5248_vm0 = vcmask 64512  }
 0x44e   : > { %v4336_v61 = vpop.permute.xlu0 %4335  ;;  %1162 = vst.msk [vmem:[#allocation2 + $0x2bb] sm:$0x2] %vm832_vm5, %v758_v10 }
 0x44f   : > { %v3953_v28 = vpop.permute.xlu1 %3952  ;;  %4527 = vst.msk [vmem:[#allocation3 + $0x8] sm:$0xff] %vm4525_vm9, %v4336_v61  ;;  %v3860_v61 = vld [vmem:[#allocation2 + $0x1e1] sm:$0xff] }
 0x450   : > { %4143 = vst.msk [vmem:[#allocation3 + $0x10] sm:$0xff] %vm4140_vm8, %v3953_v28  ;;  %4002 = vrot.lane.b32.xlu0 %v3847_v20, %s6434_s18  ;;  %v4236_v28 = vld [vmem:[#allocation2 + $0x182] sm:$0xff] }
 0x451   : > { %4385 = vrot.lane.b32.xlu1 %v4231_v4, %s6435_s20  ;;  %1198 = vst.msk [vmem:[#allocation2 + $0x2bc] sm:$0x4] %vm869_vm6, %v758_v10 }
 0x452   : > { %v3955_v58 = vpop.permute.xlu0 %3954  ;;  %1234 = vst.msk [vmem:[#allocation2 + $0x2bd] sm:$0x8] %vm906_vm7, %v758_v10 }
 0x453   : > { %v4338_v34 = vpop.permute.xlu1 %4337  ;;  %v4590_v3 = vld [vmem:[#allocation3] sm:$0xff]  ;;  %4144 = vst.msk [vmem:[#allocation3 + $0x18] sm:$0xff] %vm4140_vm8, %v3955_v58 }
 0x454   : > { %4528 = vst.msk [vmem:[#allocation3 + $0x10] sm:$0xff] %vm4525_vm9, %v4338_v34  ;;  %6097 = vmatprep.mubr.msk.f32.mxu0 %vm4666_vm10, %v4590_v3  ;;  %4020 = vrot.lane.b32.xlu0 %v3856_v49, %s6434_s18  ;;  %v3862_v34 = vld [vmem:[#allocation2 + $0x1f1] sm:$0xff] }
 0x455   : > { %4387 = vrot.lane.b32.xlu1 %v4232_v48, %s6435_s20  ;;  %1270 = vst.msk [vmem:[#allocation2 + $0x2be] sm:$0x10] %vm943_vm1, %v758_v10  ;;  %vm5382_vm1 = vcmask 57344  }
 0x456   : > { %v4340_v39 = vpop.permute.xlu0 %4339  ;;  %v4591_v47 = vld [vmem:[#allocation3 + $0x8] sm:$0xff] }
 0x457   : > { %v3957_v44 = vpop.permute.xlu1 %3956  ;;  %4529 = vst.msk [vmem:[#allocation3 + $0x18] sm:$0xff] %vm4525_vm9, %v4340_v39  ;;  %6098 = vmatmul.mubr.msk.f32.vlgmr.msra.gmra.mrb[0].mxu0 %vm4666_vm10, %v4591_v47 }
 0x458   : > { %4145 = vst.msk [vmem:[#allocation3 + $0x20] sm:$0xff] %vm4140_vm8, %v3957_v44  ;;  %4022 = vrot.lane.b32.xlu0 %v3857_v40, %s6434_s18  ;;  %v4248_v40 = vld [vmem:[#allocation2 + $0x1fa] sm:$0xff] }
 0x459   : > { %4405 = vrot.lane.b32.xlu1 %v4241_v2, %s6435_s20 }
 0x45a   : > { %v3959_v11 = vpop.permute.xlu0 %3958 }
 0x45b   : > { %v4342_v60 = vpop.permute.xlu1 %4341  ;;  %v4592_v16 = vld [vmem:[#allocation3 + $0x10] sm:$0xff]  ;;  %4146 = vst.msk [vmem:[#allocation3 + $0x28] sm:$0xff] %vm4140_vm8, %v3959_v11 }
 0x45c   : > { %4530 = vst.msk [vmem:[#allocation3 + $0x20] sm:$0xff] %vm4525_vm9, %v4342_v60  ;;  %6100 = vmatprep.mubr.msk.f32.mxu0 %vm4666_vm10, %v4592_v16  ;;  %4004 = vrot.lane.b32.xlu0 %v3848_v35, %s6434_s18  ;;  %v4250_v35 = vld [vmem:[#allocation2 + $0x212] sm:$0xff] }
 0x45d   : > { %4407 = vrot.lane.b32.xlu1 %v4242_v37, %s6435_s20 }
 0x45e   : > { %v4344_v21 = vpop.permute.xlu0 %4343  ;;  %v4593_v59 = vld [vmem:[#allocation3 + $0x18] sm:$0xff] }
 0x45f   : > { %v3961_v1 = vpop.permute.xlu1 %3960  ;;  %4531 = vst.msk [vmem:[#allocation3 + $0x28] sm:$0xff] %vm4525_vm9, %v4344_v21  ;;  %6101 = vmatmul.mubr.msk.f32.gmra.mrb[2].mxu0 %vm4666_vm10, %v4593_v59  ;;  %v3484_v21 = vld [vmem:[#allocation2 + $0x238] sm:$0xff] }
 0x460   : > { %4147 = vst.msk [vmem:[#allocation3 + $0x30] sm:$0xff] %vm4140_vm8, %v3961_v1  ;;  %4006 = vrot.lane.b32.xlu0 %v3849_v57, %s6434_s18  ;;  %v4252_v1 = vld [vmem:[#allocation2 + $0x222] sm:$0xff] }
 0x461   : > { %4389 = vrot.lane.b32.xlu1 %v4233_v52, %s6435_s20 }
 0x462   : > { %v3963_v33 = vpop.permute.xlu0 %3962 }
 0x463   : > { %v4346_v19 = vpop.permute.xlu1 %4345  ;;  %v4594_v6 = vld [vmem:[#allocation3 + $0x20] sm:$0xff]  ;;  %4148 = vst.msk [vmem:[#allocation3 + $0x38] sm:$0xff] %vm4140_vm8, %v3963_v33 }
 0x464   : > { %4532 = vst.msk [vmem:[#allocation3 + $0x30] sm:$0xff] %vm4525_vm9, %v4346_v19  ;;  %6103 = vmatprep.mubr.msk.f32.mxu0 %vm4666_vm10, %v4594_v6  ;;  %4024 = vrot.lane.b32.xlu0 %v3858_v18, %s6434_s18  ;;  %v3868_v18 = vld [vmem:[#allocation2 + $0x231] sm:$0xff]  ;;  %v3869_v19 = vld [vmem:[#allocation2 + $0x239] sm:$0xff] }
 0x465   : > { %4391 = vrot.lane.b32.xlu1 %v4234_v63, %s6435_s20 }
 0x466   : > { %v4348_v17 = vpop.permute.xlu0 %4347  ;;  %v4595_v23 = vld [vmem:[#allocation3 + $0x28] sm:$0xff] }
 0x467   : > { %v3965_v15 = vpop.permute.xlu1 %3964  ;;  %4533 = vst.msk [vmem:[#allocation3 + $0x38] sm:$0xff] %vm4525_vm9, %v4348_v17  ;;  %6104 = vmatmul.mubr.msk.f32.gmra.mrb[4].mxu0 %vm4666_vm10, %v4595_v23 }
 0x468   : > { %4149 = vst.msk [vmem:[#allocation3 + $0x40] sm:$0xff] %vm4140_vm8, %v3965_v15  ;;  %4026 = vrot.lane.b32.xlu0 %v3859_v42, %s6434_s18  ;;  %v4253_v42 = vld [vmem:[#allocation2 + $0x232] sm:$0xff]  ;;  %v4254_v15 = vld [vmem:[#allocation2 + $0x23a] sm:$0xff] }
 0x469   : > { %4409 = vrot.lane.b32.xlu1 %v4243_v7, %s6435_s20 }
 0x46a   : > { %v3967_v62 = vpop.permute.xlu0 %3966 }
 0x46b   : > { %v4350_v54 = vpop.permute.xlu1 %4349  ;;  %v4596_v0 = vld [vmem:[#allocation3 + $0x30] sm:$0xff]  ;;  %4150 = vst.msk [vmem:[#allocation3 + $0x48] sm:$0xff] %vm4140_vm8, %v3967_v62 }
 0x46c   : > { %4534 = vst.msk [vmem:[#allocation3 + $0x40] sm:$0xff] %vm4525_vm9, %v4350_v54  ;;  %6106 = vmatprep.mubr.msk.f32.mxu0 %vm4666_vm10, %v4596_v0  ;;  %4008 = vrot.lane.b32.xlu0 %v3850_v45, %s6434_s18  ;;  %v3485_v45 = vld [vmem:[#allocation2 + $0x240] sm:$0xff]  ;;  %v3486_v54 = vld [vmem:[#allocation2 + $0x248] sm:$0xff] }
 0x46d   : > { %4411 = vrot.lane.b32.xlu1 %v4244_v26, %s6435_s20 }
 0x46e   : > { %v4352_v20 = vpop.permute.xlu0 %4351  ;;  %v4597_v51 = vld [vmem:[#allocation3 + $0x38] sm:$0xff] }
 0x46f   : > { %v3969_v4 = vpop.permute.xlu1 %3968  ;;  %4535 = vst.msk [vmem:[#allocation3 + $0x48] sm:$0xff] %vm4525_vm9, %v4352_v20  ;;  %6107 = vmatmul.mubr.msk.f32.gmra.mrb[6].mxu0 %vm4666_vm10, %v4597_v51 }
 0x470   : > { %4151 = vst.msk [vmem:[#allocation3 + $0x50] sm:$0xff] %vm4140_vm8, %v3969_v4  ;;  %4010 = vrot.lane.b32.xlu0 %v3851_v8, %s6434_s18  ;;  %v3870_v8 = vld [vmem:[#allocation2 + $0x241] sm:$0xff]  ;;  %v3871_v4 = vld [vmem:[#allocation2 + $0x249] sm:$0xff] }
 0x471   : > { %4393 = vrot.lane.b32.xlu1 %v4235_v5, %s6435_s20 }
 0x472   : > { %v3971_v14 = vpop.permute.xlu0 %3970 }
 0x473   : > { %v4354_v9 = vpop.permute.xlu1 %4353  ;;  %v4598_v53 = vld [vmem:[#allocation3 + $0x40] sm:$0xff]  ;;  %4152 = vst.msk [vmem:[#allocation3 + $0x58] sm:$0xff] %vm4140_vm8, %v3971_v14 }
 0x474   : > { %4536 = vst.msk [vmem:[#allocation3 + $0x50] sm:$0xff] %vm4525_vm9, %v4354_v9  ;;  %6109 = vmatprep.mubr.msk.f32.mxu0 %vm4666_vm10, %v4598_v53  ;;  %4028 = vrot.lane.b32.xlu0 %v3860_v61, %s6434_s18  ;;  %v4255_v61 = vld [vmem:[#allocation2 + $0x242] sm:$0xff]  ;;  %v4256_v9 = vld [vmem:[#allocation2 + $0x24a] sm:$0xff] }
 0x475   : > { %4395 = vrot.lane.b32.xlu1 %v4236_v28, %s6435_s20 }
 0x476   : > { %v4356_v49 = vpop.permute.xlu0 %4355  ;;  %v4599_v56 = vld [vmem:[#allocation3 + $0x48] sm:$0xff] }
 0x477   : > { %v3973_v48 = vpop.permute.xlu1 %3972  ;;  %4537 = vst.msk [vmem:[#allocation3 + $0x58] sm:$0xff] %vm4525_vm9, %v4356_v49  ;;  %6110 = vmatmul.mubr.msk.f32.gmra.mrb[8].mxu0 %vm4666_vm10, %v4599_v56 }
 0x478   : > { %4153 = vst.msk [vmem:[#allocation3 + $0x60] sm:$0xff] %vm4140_vm8, %v3973_v48  ;;  %4030 = vrot.lane.b32.xlu0 %v3861_v31, %s6434_s18  ;;  %v3488_v48 = vld [vmem:[#allocation2 + $0x260] sm:$0xff] }
 0x479   : > { %4413 = vrot.lane.b32.xlu1 %v4245_v36, %s6435_s20  ;;  %v3487_v36 = vld [vmem:[#allocation2 + $0x258] sm:$0xff] }
 0x47a   : > { %v3975_v3 = vpop.permute.xlu0 %3974 }
 0x47b   : > { %v4358_v58 = vpop.permute.xlu1 %4357  ;;  %v4600_v13 = vld [vmem:[#allocation3 + $0x50] sm:$0xff]  ;;  %4154 = vst.msk [vmem:[#allocation3 + $0x68] sm:$0xff] %vm4140_vm8, %v3975_v3 }
 0x47c   : > { %4538 = vst.msk [vmem:[#allocation3 + $0x60] sm:$0xff] %vm4525_vm9, %v4358_v58  ;;  %6112 = vmatprep.mubr.msk.f32.mxu0 %vm4666_vm10, %v4600_v13  ;;  %4415 = vrot.lane.b32.xlu0 %v4246_v43, %s6435_s20  ;;  %v3873_v58 = vld [vmem:[#allocation2 + $0x261] sm:$0xff] }
 0x47d   : > { %4032 = vrot.lane.b32.xlu1 %v3862_v34, %s6434_s18  ;;  %v3872_v34 = vld [vmem:[#allocation2 + $0x259] sm:$0xff] }
 0x47e   : > { %v4360_v38 = vpop.permute.xlu0 %4359  ;;  %v4601_v2 = vld [vmem:[#allocation3 + $0x58] sm:$0xff] }
 0x47f   : > { %v3977_v50 = vpop.permute.xlu1 %3976  ;;  %4539 = vst.msk [vmem:[#allocation3 + $0x68] sm:$0xff] %vm4525_vm9, %v4360_v38  ;;  %6113 = vmatmul.mubr.msk.f32.gmra.mrb[10].mxu0 %vm4666_vm10, %v4601_v2 }
 0x480   : > { %4155 = vst.msk [vmem:[#allocation3 + $0x70] sm:$0xff] %vm4140_vm8, %v3977_v50  ;;  %4034 = vrot.lane.b32.xlu0 %v3863_v22, %s6434_s18  ;;  %v4258_v50 = vld [vmem:[#allocation2 + $0x262] sm:$0xff] }
 0x481   : > { %4417 = vrot.lane.b32.xlu1 %v4247_v55, %s6435_s20  ;;  %v4257_v55 = vld [vmem:[#allocation2 + $0x25a] sm:$0xff] }
 0x482   : > { %v3979_v39 = vpop.permute.xlu0 %3978 }
 0x483   : > { %v4362_v44 = vpop.permute.xlu1 %4361  ;;  %v4602_v47 = vld [vmem:[#allocation3 + $0x60] sm:$0xff]  ;;  %4156 = vst.msk [vmem:[#allocation3 + $0x78] sm:$0xff] %vm4140_vm8, %v3979_v39 }
 0x484   : > { %4540 = vst.msk [vmem:[#allocation3 + $0x70] sm:$0xff] %vm4525_vm9, %v4362_v44  ;;  %6115 = vmatprep.mubr.msk.f32.mxu0 %vm4666_vm10, %v4602_v47  ;;  %4419 = vrot.lane.b32.xlu0 %v4248_v40, %s6435_s20  ;;  %v3490_v44 = vld [vmem:[#allocation2 + $0x270] sm:$0xff] }
 0x485   : > { %4036 = vrot.lane.b32.xlu1 %v3864_v46, %s6434_s18  ;;  %v3489_v46 = vld [vmem:[#allocation2 + $0x268] sm:$0xff] }
 0x486   : > { %v4364_v24 = vpop.permute.xlu0 %4363  ;;  %v4603_v37 = vld [vmem:[#allocation3 + $0x68] sm:$0xff] }
 0x487   : > { %v3981_v27 = vpop.permute.xlu1 %3980  ;;  %4541 = vst.msk [vmem:[#allocation3 + $0x78] sm:$0xff] %vm4525_vm9, %v4364_v24  ;;  %6116 = vmatmul.mubr.msk.f32.gmra.mrb[12].mxu0 %vm4666_vm10, %v4603_v37 }
 0x488   : > { %4157 = vst.msk [vmem:[#allocation3 + $0x80] sm:$0xff] %vm4140_vm8, %v3981_v27  ;;  %4038 = vrot.lane.b32.xlu0 %v3865_v25, %s6434_s18  ;;  %v3875_v27 = vld [vmem:[#allocation2 + $0x271] sm:$0xff] }
 0x489   : > { %4421 = vrot.lane.b32.xlu1 %v4249_v32, %s6435_s20  ;;  %v3874_v32 = vld [vmem:[#allocation2 + $0x269] sm:$0xff] }
 0x48a   : > { %v3983_v11 = vpop.permute.xlu0 %3982 }
 0x48b   : > { %v4366_v60 = vpop.permute.xlu1 %4365  ;;  %v4604_v16 = vld [vmem:[#allocation3 + $0x70] sm:$0xff]  ;;  %4158 = vst.msk [vmem:[#allocation3 + $0x88] sm:$0xff] %vm4140_vm8, %v3983_v11 }
 0x48c   : > { %4542 = vst.msk [vmem:[#allocation3 + $0x80] sm:$0xff] %vm4525_vm9, %v4366_v60  ;;  %6118 = vmatprep.mubr.msk.f32.mxu0 %vm4666_vm10, %v4604_v16  ;;  %4423 = vrot.lane.b32.xlu0 %v4250_v35, %s6435_s20  ;;  %v4260_v60 = vld [vmem:[#allocation2 + $0x272] sm:$0xff] }
 0x48d   : > { %4040 = vrot.lane.b32.xlu1 %v3866_v12, %s6434_s18  ;;  %v4259_v12 = vld [vmem:[#allocation2 + $0x26a] sm:$0xff] }
 0x48e   : > { %v4368_v52 = vpop.permute.xlu0 %4367  ;;  %v4605_v57 = vld [vmem:[#allocation3 + $0x78] sm:$0xff] }
 0x48f   : > { %v3985_v30 = vpop.permute.xlu1 %3984  ;;  %4543 = vst.msk [vmem:[#allocation3 + $0x88] sm:$0xff] %vm4525_vm9, %v4368_v52  ;;  %6119 = vmatmul.mubr.msk.f32.gmra.mrb[14].mxu0 %vm4666_vm10, %v4605_v57 }
 0x490   : > { %4159 = vst.msk [vmem:[#allocation3 + $0x90] sm:$0xff] %vm4140_vm8, %v3985_v30  ;;  %4042 = vrot.lane.b32.xlu0 %v3867_v41, %s6434_s18  ;;  %v3492_v30 = vld [vmem:[#allocation2 + $0x288] sm:$0xff] }
 0x491   : > { %4425 = vrot.lane.b32.xlu1 %v4251_v29, %s6435_s20  ;;  %v3491_v29 = vld [vmem:[#allocation2 + $0x280] sm:$0xff] }
 0x492   : > { %v3987_v10 = vpop.permute.xlu0 %3986 }
 0x493   : > { %v4370_v59 = vpop.permute.xlu1 %4369  ;;  %v4606_v63 = vld [vmem:[#allocation3 + $0x80] sm:$0xff]  ;;  %4160 = vst.msk [vmem:[#allocation3 + $0x98] sm:$0xff] %vm4140_vm8, %v3987_v10 }
 0x494   : > { %4544 = vst.msk [vmem:[#allocation3 + $0x90] sm:$0xff] %vm4525_vm9, %v4370_v59  ;;  %6121 = vmatprep.mubr.msk.f32.mxu0 %vm4666_vm10, %v4606_v63  ;;  %4427 = vrot.lane.b32.xlu0 %v4252_v1, %s6435_s20  ;;  %v3877_v59 = vld [vmem:[#allocation2 + $0x289] sm:$0xff] }
 0x495   : > { %3661 = vrot.lane.b32.xlu1 %v3484_v21, %s6433_s9  ;;  %v3876_v21 = vld [vmem:[#allocation2 + $0x281] sm:$0xff] }
 0x496   : > { %v4372_v6 = vpop.permute.xlu0 %4371  ;;  %v4607_v7 = vld [vmem:[#allocation3 + $0x88] sm:$0xff] }
 0x497   : > { %v3989_v33 = vpop.permute.xlu1 %3988  ;;  %4545 = vst.msk [vmem:[#allocation3 + $0x98] sm:$0xff] %vm4525_vm9, %v4372_v6  ;;  %6122 = vmatmul.mubr.msk.f32.gmra.mrb[16].mxu0 %vm4666_vm10, %v4607_v7 }
 0x498   : > { %4161 = vst.msk [vmem:[#allocation3 + $0xa0] sm:$0xff] %vm4140_vm8, %v3989_v33  ;;  %4044 = vrot.lane.b32.xlu0 %v3868_v18, %s6434_s18  ;;  %v4262_v33 = vld [vmem:[#allocation2 + $0x28a] sm:$0xff] }
 0x499   : > { %4046 = vrot.lane.b32.xlu1 %v3869_v19, %s6434_s18  ;;  %v4261_v19 = vld [vmem:[#allocation2 + $0x282] sm:$0xff] }
 0x49a   : > { %v3991_v23 = vpop.permute.xlu0 %3990 }
 0x49b   : > { %v4374_v17 = vpop.permute.xlu1 %4373  ;;  %v4608_v26 = vld [vmem:[#allocation3 + $0x90] sm:$0xff]  ;;  %4162 = vst.msk [vmem:[#allocation3 + $0xa8] sm:$0xff] %vm4140_vm8, %v3991_v23 }
 0x49c   : > { %4546 = vst.msk [vmem:[#allocation3 + $0xa0] sm:$0xff] %vm4525_vm9, %v4374_v17  ;;  %6124 = vmatprep.mubr.msk.f32.mxu0 %vm4666_vm10, %v4608_v26  ;;  %4429 = vrot.lane.b32.xlu0 %v4253_v42, %s6435_s20  ;;  %v3494_v17 = vld [vmem:[#allocation2 + $0x298] sm:$0xff] }
 0x49d   : > { %4431 = vrot.lane.b32.xlu1 %v4254_v15, %s6435_s20  ;;  %v3493_v15 = vld [vmem:[#allocation2 + $0x290] sm:$0xff] }
 0x49e   : > { %v4376_v0 = vpop.permute.xlu0 %4375  ;;  %v4609_v5 = vld [vmem:[#allocation3 + $0x98] sm:$0xff] }
 0x49f   : > { %v3993_v62 = vpop.permute.xlu1 %3992  ;;  %4547 = vst.msk [vmem:[#allocation3 + $0xa8] sm:$0xff] %vm4525_vm9, %v4376_v0  ;;  %6125 = vmatmul.mubr.msk.f32.gmra.mrb[18].mxu0 %vm4666_vm10, %v4609_v5 }
 0x4a0   : > { %4163 = vst.msk [vmem:[#allocation3 + $0xb0] sm:$0xff] %vm4140_vm8, %v3993_v62  ;;  %3663 = vrot.lane.b32.xlu0 %v3485_v45, %s6433_s9  ;;  %v3879_v62 = vld [vmem:[#allocation2 + $0x299] sm:$0xff] }
 0x4a1   : > { %3665 = vrot.lane.b32.xlu1 %v3486_v54, %s6433_s9  ;;  %v3878_v54 = vld [vmem:[#allocation2 + $0x291] sm:$0xff] }
 0x4a2   : > { %v3995_v51 = vpop.permute.xlu0 %3994 }
 0x4a3   : > { %v4378_v20 = vpop.permute.xlu1 %4377  ;;  %v4610_v28 = vld [vmem:[#allocation3 + $0xa0] sm:$0xff]  ;;  %4164 = vst.msk [vmem:[#allocation3 + $0xb8] sm:$0xff] %vm4140_vm8, %v3995_v51 }
 0x4a4   : > { %4548 = vst.msk [vmem:[#allocation3 + $0xb0] sm:$0xff] %vm4525_vm9, %v4378_v20  ;;  %6127 = vmatprep.mubr.msk.f32.mxu0 %vm4666_vm10, %v4610_v28  ;;  %4048 = vrot.lane.b32.xlu0 %v3870_v8, %s6434_s18  ;;  %v4264_v20 = vld [vmem:[#allocation2 + $0x29a] sm:$0xff] }
 0x4a5   : > { %4050 = vrot.lane.b32.xlu1 %v3871_v4, %s6434_s18  ;;  %v4263_v4 = vld [vmem:[#allocation2 + $0x292] sm:$0xff] }
 0x4a6   : > { %v4013_v53 = vpop.permute.xlu0 %4012  ;;  %v4611_v31 = vld [vmem:[#allocation3 + $0xa8] sm:$0xff] }
 0x4a7   : > { %v4380_v14 = vpop.permute.xlu1 %4379  ;;  %4173 = vst.msk [vmem:[#allocation3 + $0x100] sm:$0xff] %vm4140_vm8, %v4013_v53  ;;  %6128 = vmatmul.mubr.msk.f32.gmra.mrb[20].mxu0 %vm4666_vm10, %v4611_v31 }
 0x4a8   : > { %4549 = vst.msk [vmem:[#allocation3 + $0xb8] sm:$0xff] %vm4525_vm9, %v4380_v14  ;;  %4433 = vrot.lane.b32.xlu0 %v4255_v61, %s6435_s20  ;;  %v3496_v14 = vld [vmem:[#allocation2 + $0x2b0] sm:$0xff] }
 0x4a9   : > { %4435 = vrot.lane.b32.xlu1 %v4256_v9, %s6435_s20  ;;  %v3495_v9 = vld [vmem:[#allocation2 + $0x2a8] sm:$0xff] }
 0x4aa   : > { %v4015_v56 = vpop.permute.xlu0 %4014 }
 0x4ab   : > { %v4398_v49 = vpop.permute.xlu1 %4397  ;;  %v4612_v43 = vld [vmem:[#allocation3 + $0xb0] sm:$0xff]  ;;  %4174 = vst.msk [vmem:[#allocation3 + $0x108] sm:$0xff] %vm4140_vm8, %v4015_v56 }
 0x4ac   : > { %4558 = vst.msk [vmem:[#allocation3 + $0x100] sm:$0xff] %vm4525_vm9, %v4398_v49  ;;  %6130 = vmatprep.mubr.msk.f32.mxu0 %vm4666_vm10, %v4612_v43  ;;  %3667 = vrot.lane.b32.xlu0 %v3487_v36, %s6433_s9  ;;  %v3881_v49 = vld [vmem:[#allocation2 + $0x2b1] sm:$0xff] }
 0x4ad   : > { %3669 = vrot.lane.b32.xlu1 %v3488_v48, %s6433_s9  ;;  %v3880_v48 = vld [vmem:[#allocation2 + $0x2a9] sm:$0xff] }
 0x4ae   : > { %v3997_v13 = vpop.permute.xlu0 %3996 }
 0x4af   : > { %v4400_v3 = vpop.permute.xlu1 %4399  ;;  %v4613_v22 = vld [vmem:[#allocation3 + $0xb8] sm:$0xff]  ;;  %4165 = vst.msk [vmem:[#allocation3 + $0xc0] sm:$0xff] %vm4140_vm8, %v3997_v13 }
 0x4b0   : > { %4559 = vst.msk [vmem:[#allocation3 + $0x108] sm:$0xff] %vm4525_vm9, %v4400_v3  ;;  %6131 = vmatmul.mubr.msk.f32.gmra.mrb[22].mxu0 %vm4666_vm10, %v4613_v22  ;;  %4052 = vrot.lane.b32.xlu0 %v3872_v34, %s6434_s18  ;;  %v4266_v3 = vld [vmem:[#allocation2 + $0x2b2] sm:$0xff] }
 0x4b1   : > { %4054 = vrot.lane.b32.xlu1 %v3873_v58, %s6434_s18  ;;  %v4265_v58 = vld [vmem:[#allocation2 + $0x2aa] sm:$0xff] }
 0x4b2   : > { %v3999_v2 = vpop.permute.xlu0 %3998 }
 0x4b3   : > { %v4382_v38 = vpop.permute.xlu1 %4381  ;;  %v4622_v40 = vld [vmem:[#allocation3 + $0x100] sm:$0xff]  ;;  %4166 = vst.msk [vmem:[#allocation3 + $0xc8] sm:$0xff] %vm4140_vm8, %v3999_v2 }
 0x4b4   : > { %4550 = vst.msk [vmem:[#allocation3 + $0xc0] sm:$0xff] %vm4525_vm9, %v4382_v38  ;;  %6145 = vmatprep.mubr.msk.f32.mxu1 %vm4666_vm10, %v4622_v40  ;;  %4437 = vrot.lane.b32.xlu0 %v4257_v55, %s6435_s20  ;;  %v3498_v38 = vld [vmem:[#allocation2 + $0x2c0] sm:$0xff] }
 0x4b5   : > { %4439 = vrot.lane.b32.xlu1 %v4258_v50, %s6435_s20  ;;  %v3497_v50 = vld [vmem:[#allocation2 + $0x2b8] sm:$0xff] }
 0x4b6   : > { %v4017_v47 = vpop.permute.xlu0 %4016 }
 0x4b7   : > { %v4384_v39 = vpop.permute.xlu1 %4383  ;;  %v4623_v25 = vld [vmem:[#allocation3 + $0x108] sm:$0xff]  ;;  %4175 = vst.msk [vmem:[#allocation3 + $0x110] sm:$0xff] %vm4140_vm8, %v4017_v47 }
 0x4b8   : > { %4551 = vst.msk [vmem:[#allocation3 + $0xc8] sm:$0xff] %vm4525_vm9, %v4384_v39  ;;  %6146 = vmatmul.mubr.msk.f32.vlgmr.msra.gmra.mrb[0].mxu1 %vm4666_vm10, %v4623_v25  ;;  %3671 = vrot.lane.b32.xlu0 %v3489_v46, %s6433_s9  ;;  %v3883_v39 = vld [vmem:[#allocation2 + $0x2c1] sm:$0xff] }
 0x4b9   : > { %3673 = vrot.lane.b32.xlu1 %v3490_v44, %s6433_s9  ;;  %v3882_v44 = vld [vmem:[#allocation2 + $0x2b9] sm:$0xff] }
 0x4ba   : > { %v4019_v37 = vpop.permute.xlu0 %4018 }
 0x4bb   : > { %v4402_v24 = vpop.permute.xlu1 %4401  ;;  %v4614_v35 = vld [vmem:[#allocation3 + $0xc0] sm:$0xff]  ;;  %4176 = vst.msk [vmem:[#allocation3 + $0x118] sm:$0xff] %vm4140_vm8, %v4019_v37 }
 0x4bc   : > { %4560 = vst.msk [vmem:[#allocation3 + $0x110] sm:$0xff] %vm4525_vm9, %v4402_v24  ;;  %6133 = vmatprep.mubr.msk.f32.mxu0 %vm4666_vm10, %v4614_v35  ;;  %4056 = vrot.lane.b32.xlu0 %v3874_v32, %s6434_s18  ;;  %v4268_v24 = vld [vmem:[#allocation2 + $0x2c2] sm:$0xff] }
 0x4bd   : > { %4058 = vrot.lane.b32.xlu1 %v3875_v27, %s6434_s18  ;;  %v4267_v27 = vld [vmem:[#allocation2 + $0x2ba] sm:$0xff] }
 0x4be   : > { %v4001_v16 = vpop.permute.xlu0 %4000 }
 0x4bf   : > { %v4404_v11 = vpop.permute.xlu1 %4403  ;;  %v4615_v41 = vld [vmem:[#allocation3 + $0xc8] sm:$0xff]  ;;  %4167 = vst.msk [vmem:[#allocation3 + $0xd0] sm:$0xff] %vm4140_vm8, %v4001_v16 }
 0x4c0   : > { %4561 = vst.msk [vmem:[#allocation3 + $0x118] sm:$0xff] %vm4525_vm9, %v4404_v11  ;;  %6134 = vmatmul.mubr.msk.f32.gmra.mrb[24].mxu0 %vm4666_vm10, %v4615_v41  ;;  %4441 = vrot.lane.b32.xlu0 %v4259_v12, %s6435_s20 }
 0x4c1   : > { %4443 = vrot.lane.b32.xlu1 %v4260_v60, %s6435_s20 }
 0x4c2   : > { %v4003_v57 = vpop.permute.xlu0 %4002 }
 0x4c3   : > { %v4386_v52 = vpop.permute.xlu1 %4385  ;;  %v4624_v1 = vld [vmem:[#allocation3 + $0x110] sm:$0xff]  ;;  %4168 = vst.msk [vmem:[#allocation3 + $0xd8] sm:$0xff] %vm4140_vm8, %v4003_v57 }
 0x4c4   : > { %4552 = vst.msk [vmem:[#allocation3 + $0xd0] sm:$0xff] %vm4525_vm9, %v4386_v52  ;;  %6148 = vmatprep.mubr.msk.f32.mxu1 %vm4666_vm10, %v4624_v1  ;;  %3675 = vrot.lane.b32.xlu0 %v3491_v29, %s6433_s9 }
 0x4c5   : > { %3677 = vrot.lane.b32.xlu1 %v3492_v30, %s6433_s9 }
 0x4c6   : > { %v4021_v63 = vpop.permute.xlu0 %4020 }
 0x4c7   : > { %v4388_v10 = vpop.permute.xlu1 %4387  ;;  %v4625_v18 = vld [vmem:[#allocation3 + $0x118] sm:$0xff]  ;;  %4177 = vst.msk [vmem:[#allocation3 + $0x120] sm:$0xff] %vm4140_vm8, %v4021_v63 }
 0x4c8   : > { %4553 = vst.msk [vmem:[#allocation3 + $0xd8] sm:$0xff] %vm4525_vm9, %v4388_v10  ;;  %6149 = vmatmul.mubr.msk.f32.gmra.mrb[2].mxu1 %vm4666_vm10, %v4625_v18  ;;  %4060 = vrot.lane.b32.xlu0 %v3876_v21, %s6434_s18 }
 0x4c9   : > { %4062 = vrot.lane.b32.xlu1 %v3877_v59, %s6434_s18 }
 0x4ca   : > { %v4023_v7 = vpop.permute.xlu0 %4022 }
 0x4cb   : > { %v4406_v6 = vpop.permute.xlu1 %4405  ;;  %v4616_v42 = vld [vmem:[#allocation3 + $0xd0] sm:$0xff]  ;;  %4178 = vst.msk [vmem:[#allocation3 + $0x128] sm:$0xff] %vm4140_vm8, %v4023_v7 }
 0x4cc   : > { %4562 = vst.msk [vmem:[#allocation3 + $0x120] sm:$0xff] %vm4525_vm9, %v4406_v6  ;;  %6136 = vmatprep.mubr.msk.f32.mxu0 %vm4666_vm10, %v4616_v42  ;;  %4445 = vrot.lane.b32.xlu0 %v4261_v19, %s6435_s20 }
 0x4cd   : > { %4447 = vrot.lane.b32.xlu1 %v4262_v33, %s6435_s20 }
 0x4ce   : > { %v4005_v26 = vpop.permute.xlu0 %4004 }
 0x4cf   : > { %v4408_v23 = vpop.permute.xlu1 %4407  ;;  %v4617_v45 = vld [vmem:[#allocation3 + $0xd8] sm:$0xff]  ;;  %4169 = vst.msk [vmem:[#allocation3 + $0xe0] sm:$0xff] %vm4140_vm8, %v4005_v26 }
 0x4d0   : > { %4563 = vst.msk [vmem:[#allocation3 + $0x128] sm:$0xff] %vm4525_vm9, %v4408_v23  ;;  %6137 = vmatmul.mubr.msk.f32.gmra.mrb[26].mxu0 %vm4666_vm10, %v4617_v45  ;;  %3679 = vrot.lane.b32.xlu0 %v3493_v15, %s6433_s9 }
 0x4d1   : > { %3681 = vrot.lane.b32.xlu1 %v3494_v17, %s6433_s9 }
 0x4d2   : > { %v4007_v5 = vpop.permute.xlu0 %4006 }
 0x4d3   : > { %v4390_v0 = vpop.permute.xlu1 %4389  ;;  %v4626_v8 = vld [vmem:[#allocation3 + $0x120] sm:$0xff]  ;;  %4170 = vst.msk [vmem:[#allocation3 + $0xe8] sm:$0xff] %vm4140_vm8, %v4007_v5 }
 0x4d4   : > { %4554 = vst.msk [vmem:[#allocation3 + $0xe0] sm:$0xff] %vm4525_vm9, %v4390_v0  ;;  %6151 = vmatprep.mubr.msk.f32.mxu1 %vm4666_vm10, %v4626_v8  ;;  %4064 = vrot.lane.b32.xlu0 %v3878_v54, %s6434_s18 }
 0x4d5   : > { %4066 = vrot.lane.b32.xlu1 %v3879_v62, %s6434_s18 }
 0x4d6   : > { %v4025_v28 = vpop.permute.xlu0 %4024 }
 0x4d7   : > { %v4392_v51 = vpop.permute.xlu1 %4391  ;;  %v4627_v61 = vld [vmem:[#allocation3 + $0x128] sm:$0xff]  ;;  %4179 = vst.msk [vmem:[#allocation3 + $0x130] sm:$0xff] %vm4140_vm8, %v4025_v28 }
 0x4d8   : > { %4555 = vst.msk [vmem:[#allocation3 + $0xe8] sm:$0xff] %vm4525_vm9, %v4392_v51  ;;  %6152 = vmatmul.mubr.msk.f32.gmra.mrb[4].mxu1 %vm4666_vm10, %v4627_v61  ;;  %4449 = vrot.lane.b32.xlu0 %v4263_v4, %s6435_s20 }
 0x4d9   : > { %4451 = vrot.lane.b32.xlu1 %v4264_v20, %s6435_s20 }
 0x4da   : > { %v4027_v31 = vpop.permute.xlu0 %4026 }
 0x4db   : > { %v4410_v53 = vpop.permute.xlu1 %4409  ;;  %v4618_v36 = vld [vmem:[#allocation3 + $0xe0] sm:$0xff]  ;;  %4180 = vst.msk [vmem:[#allocation3 + $0x138] sm:$0xff] %vm4140_vm8, %v4027_v31 }
 0x4dc   : > { %4564 = vst.msk [vmem:[#allocation3 + $0x130] sm:$0xff] %vm4525_vm9, %v4410_v53  ;;  %6139 = vmatprep.mubr.msk.f32.mxu0 %vm4666_vm10, %v4618_v36  ;;  %3683 = vrot.lane.b32.xlu0 %v3495_v9, %s6433_s9 }
 0x4dd   : > { %3685 = vrot.lane.b32.xlu1 %v3496_v14, %s6433_s9 }
 0x4de   : > { %v4009_v43 = vpop.permute.xlu0 %4008 }
 0x4df   : > { %v4412_v56 = vpop.permute.xlu1 %4411  ;;  %v4619_v34 = vld [vmem:[#allocation3 + $0xe8] sm:$0xff]  ;;  %4171 = vst.msk [vmem:[#allocation3 + $0xf0] sm:$0xff] %vm4140_vm8, %v4009_v43 }
 0x4e0   : > { %4565 = vst.msk [vmem:[#allocation3 + $0x138] sm:$0xff] %vm4525_vm9, %v4412_v56  ;;  %6140 = vmatmul.mubr.msk.f32.gmra.mrb[28].mxu0 %vm4666_vm10, %v4619_v34  ;;  %4068 = vrot.lane.b32.xlu0 %v3880_v48, %s6434_s18 }
 0x4e1   : > { %4070 = vrot.lane.b32.xlu1 %v3881_v49, %s6434_s18  ;;  %v9155_v49 = vld [vmem:[%s9551_s5] ss:$0 sm:$0xff] }
 0x4e2   : > { %v4011_v22 = vpop.permute.xlu0 %4010 }
 0x4e3   : > { %v4394_v13 = vpop.permute.xlu1 %4393  ;;  %v4628_v55 = vld [vmem:[#allocation3 + $0x130] sm:$0xff]  ;;  %4172 = vst.msk [vmem:[#allocation3 + $0xf8] sm:$0xff] %vm4140_vm8, %v4011_v22 }
 0x4e4   : > { %4556 = vst.msk [vmem:[#allocation3 + $0xf0] sm:$0xff] %vm4525_vm9, %v4394_v13  ;;  %6154 = vmatprep.mubr.msk.f32.mxu1 %vm4666_vm10, %v4628_v55  ;;  %4453 = vrot.lane.b32.xlu0 %v4265_v58, %s6435_s20 }
 0x4e5   : > { %4455 = vrot.lane.b32.xlu1 %v4266_v3, %s6435_s20 }
 0x4e6   : > { %v4029_v40 = vpop.permute.xlu0 %4028 }
 0x4e7   : > { %v4396_v2 = vpop.permute.xlu1 %4395  ;;  %v4629_v46 = vld [vmem:[#allocation3 + $0x138] sm:$0xff]  ;;  %4181 = vst.msk [vmem:[#allocation3 + $0x140] sm:$0xff] %vm4140_vm8, %v4029_v40 }
 0x4e8   : > { %4557 = vst.msk [vmem:[#allocation3 + $0xf8] sm:$0xff] %vm4525_vm9, %v4396_v2  ;;  %6155 = vmatmul.mubr.msk.f32.gmra.mrb[6].mxu1 %vm4666_vm10, %v4629_v46  ;;  %3687 = vrot.lane.b32.xlu0 %v3497_v50, %s6433_s9 }
 0x4e9   : > { %3689 = vrot.lane.b32.xlu1 %v3498_v38, %s6433_s9 }
 0x4ea   : > { %v4031_v47 = vpop.permute.xlu0 %4030 }
 0x4eb   : > { %v4414_v25 = vpop.permute.xlu1 %4413  ;;  %v4620_v32 = vld [vmem:[#allocation3 + $0xf0] sm:$0xff]  ;;  %4182 = vst.msk [vmem:[#allocation3 + $0x148] sm:$0xff] %vm4140_vm8, %v4031_v47 }
 0x4ec   : > { %4566 = vst.msk [vmem:[#allocation3 + $0x140] sm:$0xff] %vm4525_vm9, %v4414_v25  ;;  %6142 = vmatprep.mubr.msk.f32.mxu0 %vm4666_vm10, %v4620_v32  ;;  %4072 = vrot.lane.b32.xlu0 %v3882_v44, %s6434_s18 }
 0x4ed   : > { %4074 = vrot.lane.b32.xlu1 %v3883_v39, %s6434_s18  ;;  %s9345_s18 = sand.u32 1, %s6401_s25  }
 0x4ee   : > { %v4416_v37 = vpop.permute.xlu0 %4415  ;;  %s5924_s17 = sshll.u32 %s9345_s18, 1  ;;  %s5720_s1 = scalar_lea.sflag [#allocation7], %s9345_s18 }
 0x4ef   : > { %v4033_v35 = vpop.permute.xlu1 %4032  ;;  %v4621_v12 = vld [vmem:[#allocation3 + $0xf8] sm:$0xff]  ;;  %4567 = vst.msk [vmem:[#allocation3 + $0x148] sm:$0xff] %vm4525_vm9, %v4416_v37  ;;  %s343_s13 = scalar_lea.vmem [#allocation6], %s5924_s17  ;;  %s6303_s17 = sshll.u32 %s6436_s10, 4  ;;  %s6304_s17 = int_to_ptr.vmem [resolvable:$false] %s6303_s17 }
 0x4f0   : > { %4183 = vst.msk [vmem:[#allocation3 + $0x150] sm:$0xff] %vm4140_vm8, %v4033_v35  ;;  %6143 = vmatmul.mubr.msk.f32.gmra.mrb[30].mxu0 %vm4666_vm10, %v4621_v12  ;;  %4457 = vrot.lane.b32.xlu0 %v4267_v27, %s6435_s20  ;;  %s5751_s23 = sshll.u32 %s343_s13, 4  ;;  %s6305_s16 = scalar_lea.vmem %s6304_s17, 64  ;;  %s9461_s23 = int_to_ptr.vmem [resolvable:$true] %s5751_s23 }
 0x4f1   : > { %4459 = vrot.lane.b32.xlu1 %v4268_v24, %s6435_s20  ;;  %s5923_s20 = sshll.u32 %s9345_s18, 5  ;;  %s6299_s22 = scalar_lea.vmem %s9461_s23, 32 }
 0x4f2   : > { %v4035_v60 = vpop.permute.xlu0 %4034  ;;  %s9354_s0 = scalar_lea.vmem [#allocation4], %s5923_s20  ;;  %s9459_s20 = scalar_lea.hbm %s9553_s7, %s6010_s12 }
 0x4f3   : > { %v4418_v11 = vpop.permute.xlu1 %4417  ;;  %v4630_v16 = vld [vmem:[#allocation3 + $0x140] sm:$0xff]  ;;  %4184 = vst.msk [vmem:[#allocation3 + $0x158] sm:$0xff] %vm4140_vm8, %v4035_v60  ;;  %p6300_p4 = scmp.ne.s32.totalorder %s9461_s23, %s6299_s22  ;;  %p6306_p7 = scmp.lt.s32.totalorder %s9461_s23, %s6304_s17 }
 0x4f4   : > { %4568 = vst.msk [vmem:[#allocation3 + $0x150] sm:$0xff] %vm4525_vm9, %v4418_v11  ;;  %6157 = vmatprep.mubr.msk.f32.mxu1 %vm4666_vm10, %v4630_v16  ;;  %p6307_p9 = scmp.lt.s32.totalorder %s6305_s16, %s6299_s22 }
 0x4f5   : > { %p6301_p5 = pnand %p6300_p4, %p6529_p3 }
 0x4f6   : > { %v4420_v41 = vpop.permute.xlu0 %4419  ;;  %v4631_v30 = vld [vmem:[#allocation3 + $0x148] sm:$0xff]  ;;  %p6308_p10 = por %p6307_p9, %p6306_p7 }
 0x4f7   : > { %v4037_v29 = vpop.permute.xlu1 %4036  ;;  %4569 = vst.msk [vmem:[#allocation3 + $0x158] sm:$0xff] %vm4525_vm9, %v4420_v41  ;;  %6158 = vmatmul.mubr.msk.f32.gmra.mrb[8].mxu1 %vm4666_vm10, %v4631_v30  ;;  %p6302_p6 = pneg %p6301_p5 }
 0x4f8   : > { %4185 = vst.msk [vmem:[#allocation3 + $0x160] sm:$0xff] %vm4140_vm8, %v4037_v29 }
 0x4f9   : > { %p6309_p11 = pnand %p6308_p10, %p6302_p6 }
 0x4fa   : > { %v4039_v52 = vpop.permute.xlu0 %4038 }
 0x4fb   : > { %v4422_v57 = vpop.permute.xlu1 %4421  ;;  %v4632_v1 = vld [vmem:[#allocation3 + $0x150] sm:$0xff]  ;;  %4186 = vst.msk [vmem:[#allocation3 + $0x168] sm:$0xff] %vm4140_vm8, %v4039_v52 }
 0x4fc   : > { %4570 = vst.msk [vmem:[#allocation3 + $0x160] sm:$0xff] %vm4525_vm9, %v4422_v57  ;;  %6160 = vmatprep.mubr.msk.f32.mxu1 %vm4666_vm10, %v4632_v1 }
 0x4fe   : > { %v4424_v21 = vpop.permute.xlu0 %4423  ;;  %v4633_v10 = vld [vmem:[#allocation3 + $0x158] sm:$0xff] }
 0x4ff   : > { %v4041_v59 = vpop.permute.xlu1 %4040  ;;  %4571 = vst.msk [vmem:[#allocation3 + $0x168] sm:$0xff] %vm4525_vm9, %v4424_v21  ;;  %6161 = vmatmul.mubr.msk.f32.gmra.mrb[10].mxu1 %vm4666_vm10, %v4633_v10 }
 0x500   : > { %4187 = vst.msk [vmem:[#allocation3 + $0x170] sm:$0xff] %vm4140_vm8, %v4041_v59 }
 0x502   : > { %v4043_v63 = vpop.permute.xlu0 %4042 }
 0x503   : > { %v4426_v18 = vpop.permute.xlu1 %4425  ;;  %v4634_v19 = vld [vmem:[#allocation3 + $0x160] sm:$0xff]  ;;  %4188 = vst.msk [vmem:[#allocation3 + $0x178] sm:$0xff] %vm4140_vm8, %v4043_v63 }
 0x504   : > { %4572 = vst.msk [vmem:[#allocation3 + $0x170] sm:$0xff] %vm4525_vm9, %v4426_v18  ;;  %6163 = vmatprep.mubr.msk.f32.mxu1 %vm4666_vm10, %v4634_v19 }
 0x506   : > { %v4428_v33 = vpop.permute.xlu0 %4427  ;;  %v4635_v7 = vld [vmem:[#allocation3 + $0x168] sm:$0xff] }
 0x507   : > { %v3662_v6 = vpop.permute.xlu1 %3661  ;;  %4573 = vst.msk [vmem:[#allocation3 + $0x178] sm:$0xff] %vm4525_vm9, %v4428_v33  ;;  %6164 = vmatmul.mubr.msk.f32.gmra.mrb[12].mxu1 %vm4666_vm10, %v4635_v7 }
 0x508   : > { %3805 = vst.msk [vmem:[#allocation3 + $0x188] sm:$0xff] %vm3755_vm15, %v3662_v6 }
 0x50a   : > { %v4045_v42 = vpop.permute.xlu0 %4044 }
 0x50b   : > { %v4047_v15 = vpop.permute.xlu1 %4046  ;;  %v4636_v17 = vld [vmem:[#allocation3 + $0x170] sm:$0xff]  ;;  %4189 = vst.msk [vmem:[#allocation3 + $0x180] sm:$0xff] %vm4140_vm8, %v4045_v42 }
 0x50c   : > { %4190 = vst.msk [vmem:[#allocation3 + $0x188] sm:$0xff] %vm4140_vm8, %v4047_v15  ;;  %6166 = vmatprep.mubr.msk.f32.mxu1 %vm4666_vm10, %v4636_v17 }
 0x50e   : > { %v4430_v23 = vpop.permute.xlu0 %4429  ;;  %v4637_v45 = vld [vmem:[#allocation3 + $0x178] sm:$0xff] }
 0x50f   : > { %v4432_v26 = vpop.permute.xlu1 %4431  ;;  %4574 = vst.msk [vmem:[#allocation3 + $0x180] sm:$0xff] %vm4525_vm9, %v4430_v23  ;;  %6167 = vmatmul.mubr.msk.f32.gmra.mrb[14].mxu1 %vm4666_vm10, %v4637_v45 }
 0x510   : > { %4575 = vst.msk [vmem:[#allocation3 + $0x188] sm:$0xff] %vm4525_vm9, %v4432_v26 }
 0x512   : > { %v3664_v54 = vpop.permute.xlu0 %3663 }
 0x513   : > { %v3666_v62 = vpop.permute.xlu1 %3665  ;;  %3806 = vst.msk [vmem:[#allocation3 + $0x190] sm:$0xff] %vm3755_vm15, %v3664_v54 }
 0x514   : > { %3807 = vst.msk [vmem:[#allocation3 + $0x198] sm:$0xff] %vm3755_vm15, %v3666_v62 }
 0x516   : > { %v4049_v0 = vpop.permute.xlu0 %4048  ;;  %v4638_v8 = vld [vmem:[#allocation3 + $0x180] sm:$0xff] }
 0x517   : > { %v4051_v5 = vpop.permute.xlu1 %4050  ;;  %v4639_v4 = vld [vmem:[#allocation3 + $0x188] sm:$0xff]  ;;  %4191 = vst.msk [vmem:[#allocation3 + $0x190] sm:$0xff] %vm4140_vm8, %v4049_v0  ;;  %6169 = vmatprep.mubr.msk.f32.mxu1 %vm4666_vm10, %v4638_v8 }
 0x518   : > { %4192 = vst.msk [vmem:[#allocation3 + $0x198] sm:$0xff] %vm4140_vm8, %v4051_v5  ;;  %6170 = vmatmul.mubr.msk.f32.gmra.mrb[16].mxu1 %vm4666_vm10, %v4639_v4 }
 0x51a   : > { %v4434_v20 = vpop.permute.xlu0 %4433 }
 0x51b   : > { %v4436_v51 = vpop.permute.xlu1 %4435  ;;  %4576 = vst.msk [vmem:[#allocation3 + $0x190] sm:$0xff] %vm4525_vm9, %v4434_v20 }
 0x51c   : > { %4577 = vst.msk [vmem:[#allocation3 + $0x198] sm:$0xff] %vm4525_vm9, %v4436_v51 }
 0x51e   : > { %v3668_v28 = vpop.permute.xlu0 %3667 }
 0x51f   : > { %v3670_v61 = vpop.permute.xlu1 %3669  ;;  %3808 = vst.msk [vmem:[#allocation3 + $0x1a0] sm:$0xff] %vm3755_vm15, %v3668_v28 }
 0x520   : > { %3809 = vst.msk [vmem:[#allocation3 + $0x1a8] sm:$0xff] %vm3755_vm15, %v3670_v61 }
 0x522   : > { %v4053_v9 = vpop.permute.xlu0 %4052  ;;  %v4640_v53 = vld [vmem:[#allocation3 + $0x190] sm:$0xff] }
 0x523   : > { %v4055_v14 = vpop.permute.xlu1 %4054  ;;  %v4641_v31 = vld [vmem:[#allocation3 + $0x198] sm:$0xff]  ;;  %4193 = vst.msk [vmem:[#allocation3 + $0x1a0] sm:$0xff] %vm4140_vm8, %v4053_v9  ;;  %6172 = vmatprep.mubr.msk.f32.mxu1 %vm4666_vm10, %v4640_v53 }
 0x524   : > { %4194 = vst.msk [vmem:[#allocation3 + $0x1a8] sm:$0xff] %vm4140_vm8, %v4055_v14  ;;  %6173 = vmatmul.mubr.msk.f32.gmra.mrb[18].mxu1 %vm4666_vm10, %v4641_v31 }
 0x526   : > { %v4438_v36 = vpop.permute.xlu0 %4437 }
 0x527   : > { %v4440_v48 = vpop.permute.xlu1 %4439  ;;  %4578 = vst.msk [vmem:[#allocation3 + $0x1a0] sm:$0xff] %vm4525_vm9, %v4438_v36 }
 0x528   : > { %4579 = vst.msk [vmem:[#allocation3 + $0x1a8] sm:$0xff] %vm4525_vm9, %v4440_v48 }
 0x52a   : > { %v6099_v56 = vpop.f32.mrb[0].mxu0  ;;  %v3672_v43 = vpop.permute.xlu0 %3671 }
 0x52b   : > { %v4935_v34 = vadd.f32 %v6099_v56, %v9155_v49  ;;  %3810 = vst.msk [vmem:[#allocation3 + $0x1b0] sm:$0xff] %vm3755_vm15, %v3672_v43  ;;  %v3674_v58 = vpop.permute.xlu1 %3673  ;;  %v4929_v3 = vpop.f32.mrb[1].mxu0 }
 0x52c   : > { %3811 = vst.msk [vmem:[#allocation3 + $0x1b8] sm:$0xff] %vm3755_vm15, %v3674_v58  ;;  %v4930_v13 = vadd.f32 %v9155_v49, %v4929_v3 }
 0x52d   : > { %v5250_v22 = vsel %vm5248_vm0, %v4935_v34, 0.0  ;;  %v5385_v55 = vmul.f32 %v4935_v34, %v4935_v34 }
 0x52e   : > { %v5249_v50 = vsel %vm5248_vm0, %v4930_v13, 0.0  ;;  %v5384_v38 = vmul.f32 %v4930_v13, %v4930_v13  ;;  %5582 = vxpose.xlu0.b32.start [1/16] (narrow) %v4930_v13, 8  ;;  %v4057_v2 = vpop.permute.xlu0 %4056  ;;  %v4642_v40 = vld [vmem:[#allocation3 + $0x1a0] sm:$0xff] }
 0x52f   : > { %v4643_v46 = vld [vmem:[#allocation3 + $0x1a8] sm:$0xff]  ;;  %v5449_v44 = vsel %vm5248_vm0, %v5385_v55, 0.0  ;;  %v5251_v39 = vadd.f32 %v5250_v22, %v5249_v50  ;;  %4195 = vst.msk [vmem:[#allocation3 + $0x1b0] sm:$0xff] %vm4140_vm8, %v4057_v2  ;;  %v4059_v47 = vpop.permute.xlu1 %4058  ;;  %6175 = vmatprep.mubr.msk.f32.mxu1 %vm4666_vm10, %v4642_v40 }
 0x530   : > { %v5448_v25 = vsel %vm5248_vm0, %v5384_v38, 0.0  ;;  %4196 = vst.msk [vmem:[#allocation3 + $0x1b8] sm:$0xff] %vm4140_vm8, %v4059_v47  ;;  %6176 = vmatmul.mubr.msk.f32.gmra.mrb[20].mxu1 %vm4666_vm10, %v4643_v46 }
 0x531   : > { %v5450_v32 = vadd.f32 %v5449_v44, %v5448_v25 }
 0x532   : > { %v6102_v27 = vpop.f32.mrb[2].mxu0  ;;  %5583 = vxpose.xlu0.b32.cont [2/16] (narrow) %v4935_v34, 8  ;;  %v4442_v24 = vpop.permute.xlu0 %4441 }
 0x533   : > { %v4945_v37 = vadd.f32 %v6102_v27, %v9155_v49  ;;  %4580 = vst.msk [vmem:[#allocation3 + $0x1b0] sm:$0xff] %vm4525_vm9, %v4442_v24  ;;  %v4444_v35 = vpop.permute.xlu1 %4443  ;;  %v4939_v12 = vpop.f32.mrb[3].mxu0 }
 0x534   : > { %4581 = vst.msk [vmem:[#allocation3 + $0x1b8] sm:$0xff] %vm4525_vm9, %v4444_v35  ;;  %v4940_v60 = vadd.f32 %v9155_v49, %v4939_v12 }
 0x535   : > { %v5387_v11 = vmul.f32 %v4945_v37, %v4945_v37  ;;  %v5254_v57 = vsel %vm5248_vm0, %v4945_v37, 0.0 }
 0x536   : > { %v5252_v16 = vsel %vm5248_vm0, %v4940_v60, 0.0  ;;  %v5386_v41 = vmul.f32 %v4940_v60, %v4940_v60  ;;  %5584 = vxpose.xlu0.b32.cont [3/16] (narrow) %v4940_v60, 8  ;;  %v3676_v29 = vpop.permute.xlu0 %3675 }
 0x537   : > { %v5253_v30 = vadd.f32 %v5252_v16, %v5251_v39  ;;  %3812 = vst.msk [vmem:[#allocation3 + $0x1c0] sm:$0xff] %vm3755_vm15, %v3676_v29  ;;  %v3678_v52 = vpop.permute.xlu1 %3677  ;;  %v5453_v10 = vsel %vm5248_vm0, %v5387_v11, 0.0 }
 0x538   : > { %v5451_v1 = vsel %vm5248_vm0, %v5386_v41, 0.0  ;;  %3813 = vst.msk [vmem:[#allocation3 + $0x1c8] sm:$0xff] %vm3755_vm15, %v3678_v52 }
 0x539   : > { %v5452_v21 = vadd.f32 %v5451_v1, %v5450_v32  ;;  %v5255_v59 = vadd.f32 %v5254_v57, %v5253_v30 }
 0x53a   : > { %5585 = vxpose.xlu0.b32.cont [4/16] (narrow) %v4945_v37, 8  ;;  %v4061_v63 = vpop.permute.xlu0 %4060  ;;  %v6105_v18 = vpop.f32.mrb[4].mxu0  ;;  %v4644_v19 = vld [vmem:[#allocation3 + $0x1b0] sm:$0xff] }
 0x53b   : > { %4197 = vst.msk [vmem:[#allocation3 + $0x1c0] sm:$0xff] %vm4140_vm8, %v4061_v63  ;;  %v4955_v33 = vadd.f32 %v6105_v18, %v9155_v49  ;;  %v4063_v6 = vpop.permute.xlu1 %4062  ;;  %v4949_v7 = vpop.f32.mrb[5].mxu0  ;;  %v5454_v42 = vadd.f32 %v5453_v10, %v5452_v21  ;;  %6178 = vmatprep.mubr.msk.f32.mxu1 %vm4666_vm10, %v4644_v19  ;;  %v4645_v15 = vld [vmem:[#allocation3 + $0x1b8] sm:$0xff] }
 0x53c   : > { %4198 = vst.msk [vmem:[#allocation3 + $0x1c8] sm:$0xff] %vm4140_vm8, %v4063_v6  ;;  %v4950_v17 = vadd.f32 %v9155_v49, %v4949_v7  ;;  %6179 = vmatmul.mubr.msk.f32.gmra.mrb[22].mxu1 %vm4666_vm10, %v4645_v15 }
 0x53d   : > { %v5389_v23 = vmul.f32 %v4955_v33, %v4955_v33  ;;  %v5258_v5 = vsel %vm5248_vm0, %v4955_v33, 0.0 }
 0x53e   : > { %v5256_v26 = vsel %vm5248_vm0, %v4950_v17, 0.0  ;;  %v5388_v45 = vmul.f32 %v4950_v17, %v4950_v17  ;;  %v4446_v54 = vpop.permute.xlu0 %4445  ;;  %5586 = vxpose.xlu0.b32.cont [5/16] (narrow) %v4950_v17, 8 }
 0x53f   : > { %v5257_v62 = vadd.f32 %v5256_v26, %v5255_v59  ;;  %4582 = vst.msk [vmem:[#allocation3 + $0x1c0] sm:$0xff] %vm4525_vm9, %v4446_v54  ;;  %v4448_v0 = vpop.permute.xlu1 %4447  ;;  %v5457_v51 = vsel %vm5248_vm0, %v5389_v23, 0.0 }
 0x540   : > { %v5455_v8 = vsel %vm5248_vm0, %v5388_v45, 0.0  ;;  %4583 = vst.msk [vmem:[#allocation3 + $0x1c8] sm:$0xff] %vm4525_vm9, %v4448_v0 }
 0x541   : > { %v5456_v4 = vadd.f32 %v5455_v8, %v5454_v42  ;;  %v5259_v20 = vadd.f32 %v5258_v5, %v5257_v62 }
 0x542   : > { %v3680_v28 = vpop.permute.xlu0 %3679  ;;  %v6108_v61 = vpop.f32.mrb[6].mxu0  ;;  %5587 = vxpose.xlu0.b32.cont [6/16] (narrow) %v4955_v33, 8 }
 0x543   : > { %3814 = vst.msk [vmem:[#allocation3 + $0x1d0] sm:$0xff] %vm3755_vm15, %v3680_v28  ;;  %v4965_v9 = vadd.f32 %v6108_v61, %v9155_v49  ;;  %v3682_v14 = vpop.permute.xlu1 %3681  ;;  %v4959_v53 = vpop.f32.mrb[7].mxu0  ;;  %v5458_v31 = vadd.f32 %v5457_v51, %v5456_v4 }
 0x544   : > { %3815 = vst.msk [vmem:[#allocation3 + $0x1d8] sm:$0xff] %vm3755_vm15, %v3682_v14  ;;  %v4960_v36 = vadd.f32 %v9155_v49, %v4959_v53 }
 0x545   : > { %v5391_v48 = vmul.f32 %v4965_v9, %v4965_v9  ;;  %v5262_v55 = vsel %vm5248_vm0, %v4965_v9, 0.0 }
 0x546   : > { %v5260_v56 = vsel %vm5248_vm0, %v4960_v36, 0.0  ;;  %v5390_v43 = vmul.f32 %v4960_v36, %v4960_v36  ;;  %v4065_v34 = vpop.permute.xlu0 %4064  ;;  %5588 = vxpose.xlu0.b32.cont [7/16] (narrow) %v4960_v36, 8  ;;  %v4646_v58 = vld [vmem:[#allocation3 + $0x1c0] sm:$0xff] }
 0x547   : > { %v5261_v3 = vadd.f32 %v5260_v56, %v5259_v20  ;;  %4199 = vst.msk [vmem:[#allocation3 + $0x1d0] sm:$0xff] %vm4140_vm8, %v4065_v34  ;;  %v4067_v13 = vpop.permute.xlu1 %4066  ;;  %6181 = vmatprep.mubr.msk.f32.mxu1 %vm4666_vm10, %v4646_v58  ;;  %v4647_v22 = vld [vmem:[#allocation3 + $0x1c8] sm:$0xff]  ;;  %v5461_v40 = vsel %vm5248_vm0, %v5391_v48, 0.0 }
 0x548   : > { %v5459_v50 = vsel %vm5248_vm0, %v5390_v43, 0.0  ;;  %4200 = vst.msk [vmem:[#allocation3 + $0x1d8] sm:$0xff] %vm4140_vm8, %v4067_v13  ;;  %6182 = vmatmul.mubr.msk.f32.gmra.mrb[24].mxu1 %vm4666_vm10, %v4647_v22 }
 0x549   : > { %v5460_v38 = vadd.f32 %v5459_v50, %v5458_v31  ;;  %v5263_v2 = vadd.f32 %v5262_v55, %v5261_v3 }
 0x54a   : > { %v4450_v46 = vpop.permute.xlu0 %4449  ;;  %v6111_v44 = vpop.f32.mrb[8].mxu0  ;;  %5589 = vxpose.xlu0.b32.cont [8/16] (narrow) %v4965_v9, 8 }
 0x54b   : > { %4584 = vst.msk [vmem:[#allocation3 + $0x1d0] sm:$0xff] %vm4525_vm9, %v4450_v46  ;;  %v4975_v39 = vadd.f32 %v6111_v44, %v9155_v49  ;;  %v4452_v47 = vpop.permute.xlu1 %4451  ;;  %v4969_v25 = vpop.f32.mrb[9].mxu0  ;;  %v5462_v32 = vadd.f32 %v5461_v40, %v5460_v38 }
 0x54c   : > { %4585 = vst.msk [vmem:[#allocation3 + $0x1d8] sm:$0xff] %vm4525_vm9, %v4452_v47  ;;  %v4970_v27 = vadd.f32 %v9155_v49, %v4969_v25 }
 0x54d   : > { %v5393_v24 = vmul.f32 %v4975_v39, %v4975_v39  ;;  %v5266_v16 = vsel %vm5248_vm0, %v4975_v39, 0.0 }
 0x54e   : > { %v5264_v37 = vsel %vm5248_vm0, %v4970_v27, 0.0  ;;  %v5392_v35 = vmul.f32 %v4970_v27, %v4970_v27  ;;  %v3684_v12 = vpop.permute.xlu0 %3683  ;;  %5590 = vxpose.xlu0.b32.cont [9/16] (narrow) %v4970_v27, 8 }
 0x54f   : > { %v5265_v60 = vadd.f32 %v5264_v37, %v5263_v2  ;;  %3816 = vst.msk [vmem:[#allocation3 + $0x1e0] sm:$0xff] %vm3755_vm15, %v3684_v12  ;;  %v3686_v11 = vpop.permute.xlu1 %3685  ;;  %v5465_v52 = vsel %vm5248_vm0, %v5393_v24, 0.0 }
 0x550   : > { %v5463_v41 = vsel %vm5248_vm0, %v5392_v35, 0.0  ;;  %3817 = vst.msk [vmem:[#allocation3 + $0x1e8] sm:$0xff] %vm3755_vm15, %v3686_v11 }
 0x551   : > { %v5464_v29 = vadd.f32 %v5463_v41, %v5462_v32  ;;  %v5267_v30 = vadd.f32 %v5266_v16, %v5265_v60 }
 0x552   : > { %v4069_v57 = vpop.permute.xlu0 %4068  ;;  %v6114_v1 = vpop.f32.mrb[10].mxu0  ;;  %5591 = vxpose.xlu0.b32.cont [10/16] (narrow) %v4975_v39, 8  ;;  %v4648_v21 = vld [vmem:[#allocation3 + $0x1d0] sm:$0xff] }
 0x553   : > { %4201 = vst.msk [vmem:[#allocation3 + $0x1e0] sm:$0xff] %vm4140_vm8, %v4069_v57  ;;  %v4985_v59 = vadd.f32 %v6114_v1, %v9155_v49  ;;  %v4071_v10 = vpop.permute.xlu1 %4070  ;;  %v4979_v63 = vpop.f32.mrb[11].mxu0  ;;  %v5466_v18 = vadd.f32 %v5465_v52, %v5464_v29  ;;  %6184 = vmatprep.mubr.msk.f32.mxu1 %vm4666_vm10, %v4648_v21  ;;  %v4649_v19 = vld [vmem:[#allocation3 + $0x1d8] sm:$0xff] }
 0x554   : > { %4202 = vst.msk [vmem:[#allocation3 + $0x1e8] sm:$0xff] %vm4140_vm8, %v4071_v10  ;;  %v4980_v33 = vadd.f32 %v9155_v49, %v4979_v63  ;;  %6185 = vmatmul.mubr.msk.f32.gmra.mrb[26].mxu1 %vm4666_vm10, %v4649_v19 }
 0x555   : > { %v5395_v6 = vmul.f32 %v4985_v59, %v4985_v59  ;;  %v5270_v26 = vsel %vm5248_vm0, %v4985_v59, 0.0 }
 0x556   : > { %v5268_v7 = vsel %vm5248_vm0, %v4980_v33, 0.0  ;;  %v5394_v42 = vmul.f32 %v4980_v33, %v4980_v33  ;;  %v4454_v15 = vpop.permute.xlu0 %4453  ;;  %5592 = vxpose.xlu0.b32.cont [11/16] (narrow) %v4980_v33, 8 }
 0x557   : > { %v5269_v17 = vadd.f32 %v5268_v7, %v5267_v30  ;;  %4586 = vst.msk [vmem:[#allocation3 + $0x1e0] sm:$0xff] %vm4525_vm9, %v4454_v15  ;;  %v4456_v23 = vpop.permute.xlu1 %4455  ;;  %v5469_v0 = vsel %vm5248_vm0, %v5395_v6, 0.0 }
 0x558   : > { %v5467_v45 = vsel %vm5248_vm0, %v5394_v42, 0.0  ;;  %4587 = vst.msk [vmem:[#allocation3 + $0x1e8] sm:$0xff] %vm4525_vm9, %v4456_v23 }
 0x559   : > { %v5468_v54 = vadd.f32 %v5467_v45, %v5466_v18  ;;  %v5271_v62 = vadd.f32 %v5270_v26, %v5269_v17 }
 0x55a   : > { %v3688_v5 = vpop.permute.xlu0 %3687  ;;  %v6117_v8 = vpop.f32.mrb[12].mxu0  ;;  %5593 = vxpose.xlu0.b32.cont [12/16] (narrow) %v4985_v59, 8 }
 0x55b   : > { %3818 = vst.msk [vmem:[#allocation3 + $0x1f0] sm:$0xff] %vm3755_vm15, %v3688_v5  ;;  %v4995_v4 = vadd.f32 %v6117_v8, %v9155_v49  ;;  %v3690_v20 = vpop.permute.xlu1 %3689  ;;  %v4989_v51 = vpop.f32.mrb[13].mxu0  ;;  %v5470_v28 = vadd.f32 %v5469_v0, %v5468_v54 }
 0x55c   : > { %3819 = vst.msk [vmem:[#allocation3 + $0x1f8] sm:$0xff] %vm3755_vm15, %v3690_v20  ;;  %v4990_v61 = vadd.f32 %v9155_v49, %v4989_v51 }
 0x55d   : > { %v5397_v9 = vmul.f32 %v4995_v4, %v4995_v4  ;;  %v5274_v34 = vsel %vm5248_vm0, %v4995_v4, 0.0 }
 0x55e   : > { %v5272_v14 = vsel %vm5248_vm0, %v4990_v61, 0.0  ;;  %v5396_v53 = vmul.f32 %v4990_v61, %v4990_v61  ;;  %v4073_v31 = vpop.permute.xlu0 %4072  ;;  %5594 = vxpose.xlu0.b32.cont [13/16] (narrow) %v4990_v61, 8  ;;  %v4650_v36 = vld [vmem:[#allocation3 + $0x1e0] sm:$0xff] }
 0x55f   : > { %v5273_v48 = vadd.f32 %v5272_v14, %v5271_v62  ;;  %4203 = vst.msk [vmem:[#allocation3 + $0x1f0] sm:$0xff] %vm4140_vm8, %v4073_v31  ;;  %v4075_v56 = vpop.permute.xlu1 %4074  ;;  %6187 = vmatprep.mubr.msk.f32.mxu1 %vm4666_vm10, %v4650_v36  ;;  %v4651_v43 = vld [vmem:[#allocation3 + $0x1e8] sm:$0xff]  ;;  %v5473_v22 = vsel %vm5248_vm0, %v5397_v9, 0.0 }
 0x560   : > { %v5471_v58 = vsel %vm5248_vm0, %v5396_v53, 0.0  ;;  %4204 = vst.msk [vmem:[#allocation3 + $0x1f8] sm:$0xff] %vm4140_vm8, %v4075_v56  ;;  %6188 = vmatmul.mubr.msk.f32.gmra.mrb[28].mxu1 %vm4666_vm10, %v4651_v43 }
 0x561   : > { %v5472_v3 = vadd.f32 %v5471_v58, %v5470_v28  ;;  %v5275_v13 = vadd.f32 %v5274_v34, %v5273_v48 }
 0x562   : > { %v4458_v55 = vpop.permute.xlu0 %4457  ;;  %v6120_v50 = vpop.f32.mrb[14].mxu0  ;;  %5595 = vxpose.xlu0.b32.cont [14/16] (narrow) %v4995_v4, 8 }
 0x563   : > { %4588 = vst.msk [vmem:[#allocation3 + $0x1f0] sm:$0xff] %vm4525_vm9, %v4458_v55  ;;  %v5005_v38 = vadd.f32 %v6120_v50, %v9155_v49  ;;  %v4460_v2 = vpop.permute.xlu1 %4459  ;;  %v4999_v40 = vpop.f32.mrb[15].mxu0  ;;  %v5474_v46 = vadd.f32 %v5473_v22, %v5472_v3 }
 0x564   : > { %4589 = vst.msk [vmem:[#allocation3 + $0x1f8] sm:$0xff] %vm4525_vm9, %v4460_v2  ;;  %v5000_v44 = vadd.f32 %v9155_v49, %v4999_v40 }
 0x565   : > { %v5399_v39 = vmul.f32 %v5005_v38, %v5005_v38  ;;  %v5278_v27 = vsel %vm5248_vm0, %v5005_v38, 0.0 }
 0x566   : > { %v5276_v47 = vsel %vm5248_vm0, %v5000_v44, 0.0  ;;  %v5398_v25 = vmul.f32 %v5000_v44, %v5000_v44  ;;  %5596 = vxpose.xlu0.b32.cont [15/16] (narrow) %v5000_v44, 8 }
 0x567   : > { %v5277_v32 = vadd.f32 %v5276_v47, %v5275_v13  ;;  %v5477_v12 = vsel %vm5248_vm0, %v5399_v39, 0.0 }
 0x568   : > { %v5475_v24 = vsel %vm5248_vm0, %v5398_v25, 0.0 }
 0x569   : > { %v5476_v37 = vadd.f32 %v5475_v24, %v5474_v46  ;;  %v5279_v35 = vadd.f32 %v5278_v27, %v5277_v32 }
 0x56a   : > { %v6123_v60 = vpop.f32.mrb[16].mxu0  ;;  %5597 = vxpose.xlu0.b32.end [16/16] (narrow) %v5005_v38, 8  ;;  %v4652_v11 = vld [vmem:[#allocation3 + $0x1f0] sm:$0xff] }
 0x56b   : > { %v5015_v16 = vadd.f32 %v6123_v60, %v9155_v49  ;;  %v5009_v41 = vpop.f32.mrb[17].mxu0  ;;  %v5478_v29 = vadd.f32 %v5477_v12, %v5476_v37  ;;  %6190 = vmatprep.mubr.msk.f32.mxu1 %vm4666_vm10, %v4652_v11  ;;  %v4653_v30 = vld [vmem:[#allocation3 + $0x1f8] sm:$0xff] }
 0x56c   : > { %v5010_v52 = vadd.f32 %v9155_v49, %v5009_v41  ;;  %6191 = vmatmul.mubr.msk.f32.gmra.mrb[30].mxu1 %vm4666_vm10, %v4653_v30 }
 0x56d   : > { %v5401_v57 = vmul.f32 %v5015_v16, %v5015_v16  ;;  %v5282_v10 = vsel %vm5248_vm0, %v5015_v16, 0.0 }
 0x56e   : > { %v5280_v1 = vsel %vm5248_vm0, %v5010_v52, 0.0  ;;  %v5400_v21 = vmul.f32 %v5010_v52, %v5010_v52  ;;  %5614 = vxpose.xlu1.b32.start [1/16] (narrow) %v5010_v52, 8 }
 0x56f   : > { %v5281_v59 = vadd.f32 %v5280_v1, %v5279_v35  ;;  %v5481_v33 = vsel %vm5248_vm0, %v5401_v57, 0.0 }
 0x570   : > { %v5479_v63 = vsel %vm5248_vm0, %v5400_v21, 0.0 }
 0x571   : > { %v5480_v18 = vadd.f32 %v5479_v63, %v5478_v29  ;;  %v5283_v19 = vadd.f32 %v5282_v10, %v5281_v59 }
 0x572   : > { %v6126_v6 = vpop.f32.mrb[18].mxu0  ;;  %5615 = vxpose.xlu1.b32.cont [2/16] (narrow) %v5015_v16, 8 }
 0x573   : > { %v5025_v7 = vadd.f32 %v6126_v6, %v9155_v49  ;;  %v5019_v42 = vpop.f32.mrb[19].mxu0  ;;  %v5482_v15 = vadd.f32 %v5481_v33, %v5480_v18 }
 0x574   : > { %v5020_v17 = vadd.f32 %v9155_v49, %v5019_v42 }
 0x575   : > { %v5403_v23 = vmul.f32 %v5025_v7, %v5025_v7  ;;  %v5286_v62 = vsel %vm5248_vm0, %v5025_v7, 0.0 }
 0x576   : > { %v5284_v26 = vsel %vm5248_vm0, %v5020_v17, 0.0  ;;  %v5402_v45 = vmul.f32 %v5020_v17, %v5020_v17  ;;  %5616 = vxpose.xlu1.b32.cont [3/16] (narrow) %v5020_v17, 8 }
 0x577   : > { %v5285_v54 = vadd.f32 %v5284_v26, %v5283_v19  ;;  %v5485_v4 = vsel %vm5248_vm0, %v5403_v23, 0.0 }
 0x578   : > { %v5483_v0 = vsel %vm5248_vm0, %v5402_v45, 0.0 }
 0x579   : > { %v5484_v5 = vadd.f32 %v5483_v0, %v5482_v15  ;;  %v5287_v8 = vadd.f32 %v5286_v62, %v5285_v54 }
 0x57a   : > { %v6129_v20 = vpop.f32.mrb[20].mxu0  ;;  %5617 = vxpose.xlu1.b32.cont [4/16] (narrow) %v5025_v7, 8 }
 0x57b   : > { %v5035_v51 = vadd.f32 %v6129_v20, %v9155_v49  ;;  %v5029_v28 = vpop.f32.mrb[21].mxu0  ;;  %v5486_v61 = vadd.f32 %v5485_v4, %v5484_v5 }
 0x57c   : > { %v5030_v9 = vadd.f32 %v9155_v49, %v5029_v28 }
 0x57d   : > { %v5405_v14 = vmul.f32 %v5035_v51, %v5035_v51  ;;  %v5290_v48 = vsel %vm5248_vm0, %v5035_v51, 0.0 }
 0x57e   : > { %v5288_v53 = vsel %vm5248_vm0, %v5030_v9, 0.0  ;;  %v5404_v31 = vmul.f32 %v5030_v9, %v5030_v9  ;;  %5618 = vxpose.xlu1.b32.cont [5/16] (narrow) %v5030_v9, 8 }
 0x57f   : > { %v5289_v36 = vadd.f32 %v5288_v53, %v5287_v8  ;;  %v5489_v58 = vsel %vm5248_vm0, %v5405_v14, 0.0 }
 0x580   : > { %v5487_v56 = vsel %vm5248_vm0, %v5404_v31, 0.0 }
 0x581   : > { %v5488_v43 = vadd.f32 %v5487_v56, %v5486_v61  ;;  %v5291_v34 = vadd.f32 %v5290_v48, %v5289_v36 }
 0x582   : > { %5619 = vxpose.xlu1.b32.cont [6/16] (narrow) %v5035_v51, 8 }
 0x583   : > { %v6132_v3 = vpop.f32.mrb[22].mxu0  ;;  %v5490_v55 = vadd.f32 %v5489_v58, %v5488_v43 }
 0x584   : > { %v5045_v13 = vadd.f32 %v6132_v3, %v9155_v49  ;;  %v5039_v22 = vpop.f32.mrb[23].mxu0 }
 0x585   : > { %v5040_v50 = vadd.f32 %v9155_v49, %v5039_v22 }
 0x586   : > { %v5407_v38 = vmul.f32 %v5045_v13, %v5045_v13  ;;  %v5294_v44 = vsel %vm5248_vm0, %v5045_v13, 0.0 }
 0x587   : > { %v5292_v2 = vsel %vm5248_vm0, %v5040_v50, 0.0  ;;  %v5406_v40 = vmul.f32 %v5040_v50, %v5040_v50  ;;  %5620 = vxpose.xlu1.b32.cont [7/16] (narrow) %v5040_v50, 8 }
 0x588   : > { %v5293_v46 = vadd.f32 %v5292_v2, %v5291_v34  ;;  %v5493_v32 = vsel %vm5248_vm0, %v5407_v38, 0.0 }
 0x589   : > { %v5491_v39 = vsel %vm5248_vm0, %v5406_v40, 0.0 }
 0x58a   : > { %v5492_v47 = vadd.f32 %v5491_v39, %v5490_v55  ;;  %v5295_v25 = vadd.f32 %v5294_v44, %v5293_v46 }
 0x58b   : > { %v6147_v27 = vpop.f32.mrb[0].mxu1  ;;  %5621 = vxpose.xlu1.b32.cont [8/16] (narrow) %v5045_v13, 8 }
 0x58c   : > { %v5089_v24 = vpop.f32.mrb[1].mxu1  ;;  %v5494_v37 = vadd.f32 %v5493_v32, %v5492_v47  ;;  %v9276_v12 = vadd.f32 %v6147_v27, %v9155_v49 }
 0x58d   : > { %v9272_v35 = vadd.f32 %v9155_v49, %v5089_v24 }
 0x58f   : > { %5646 = vxpose.xlu0.b32.start [1/16] (narrow) %v9272_v35, 8 }
 0x593   : > { %v6135_v60 = vpop.f32.mrb[24].mxu0  ;;  %5647 = vxpose.xlu0.b32.cont [2/16] (narrow) %v9276_v12, 8 }
 0x594   : > { %v5055_v11 = vadd.f32 %v6135_v60, %v9155_v49  ;;  %v5049_v16 = vpop.f32.mrb[25].mxu0 }
 0x595   : > { %v5050_v41 = vadd.f32 %v9155_v49, %v5049_v16 }
 0x596   : > { %v5409_v29 = vmul.f32 %v5055_v11, %v5055_v11  ;;  %v5298_v1 = vsel %vm5248_vm0, %v5055_v11, 0.0 }
 0x597   : > { %v5296_v30 = vsel %vm5248_vm0, %v5050_v41, 0.0  ;;  %v5408_v52 = vmul.f32 %v5050_v41, %v5050_v41  ;;  %5622 = vxpose.xlu1.b32.cont [9/16] (narrow) %v5050_v41, 8 }
 0x598   : > { %v5297_v57 = vadd.f32 %v5296_v30, %v5295_v25  ;;  %v5497_v63 = vsel %vm5248_vm0, %v5409_v29, 0.0 }
 0x599   : > { %v5495_v21 = vsel %vm5248_vm0, %v5408_v52, 0.0  ;;  %v5417_v52 = vmul.f32 %v9276_v12, %v9276_v12 }
 0x59a   : > { %v5496_v59 = vadd.f32 %v5495_v21, %v5494_v37  ;;  %v5299_v10 = vadd.f32 %v5298_v1, %v5297_v57  ;;  %v5312_v57 = vsel %vm5248_vm0, %v9272_v35, 0.0 }
 0x59b   : > { %v6150_v18 = vpop.f32.mrb[2].mxu1  ;;  %5623 = vxpose.xlu1.b32.cont [10/16] (narrow) %v5055_v11, 8  ;;  %v5416_v11 = vmul.f32 %v9272_v35, %v9272_v35 }
 0x59c   : > { %v5099_v19 = vpop.f32.mrb[3].mxu1  ;;  %v5498_v33 = vadd.f32 %v5497_v63, %v5496_v59  ;;  %v9290_v7 = vadd.f32 %v6150_v18, %v9155_v49  ;;  %v5314_v18 = vsel %vm5248_vm0, %v9276_v12, 0.0 }
 0x59d   : > { %v9286_v6 = vadd.f32 %v9155_v49, %v5099_v19  ;;  %v5511_v19 = vsel %vm5248_vm0, %v5416_v11, 0.0 }
 0x59f   : > { %5648 = vxpose.xlu0.b32.cont [3/16] (narrow) %v9286_v6, 8 }
 0x5a3   : > { %v6138_v42 = vpop.f32.mrb[26].mxu0  ;;  %5649 = vxpose.xlu0.b32.cont [4/16] (narrow) %v9290_v7, 8 }
 0x5a4   : > { %v5065_v15 = vadd.f32 %v6138_v42, %v9155_v49  ;;  %v5059_v17 = vpop.f32.mrb[27].mxu0 }
 0x5a5   : > { %v5060_v23 = vadd.f32 %v9155_v49, %v5059_v17  ;;  %v5513_v17 = vsel %vm5248_vm0, %v5417_v52, 0.0 }
 0x5a6   : > { %v5411_v26 = vmul.f32 %v5065_v15, %v5065_v15  ;;  %v5302_v0 = vsel %vm5248_vm0, %v5065_v15, 0.0 }
 0x5a7   : > { %v5300_v45 = vsel %vm5248_vm0, %v5060_v23, 0.0  ;;  %v5410_v54 = vmul.f32 %v5060_v23, %v5060_v23  ;;  %5624 = vxpose.xlu1.b32.cont [11/16] (narrow) %v5060_v23, 8  ;;  %v5419_v23 = vmul.f32 %v9290_v7, %v9290_v7 }
 0x5a8   : > { %v5301_v62 = vadd.f32 %v5300_v45, %v5299_v10  ;;  %v5501_v20 = vsel %vm5248_vm0, %v5411_v26, 0.0  ;;  %v5316_v26 = vsel %vm5248_vm0, %v9286_v6, 0.0 }
 0x5a9   : > { %v5499_v5 = vsel %vm5248_vm0, %v5410_v54, 0.0 }
 0x5aa   : > { %v5500_v8 = vadd.f32 %v5499_v5, %v5498_v33  ;;  %v5303_v4 = vadd.f32 %v5302_v0, %v5301_v62  ;;  %v5418_v33 = vmul.f32 %v9286_v6, %v9286_v6  ;;  %v5318_v62 = vsel %vm5248_vm0, %v9290_v7, 0.0 }
 0x5ab   : > { %v6153_v51 = vpop.f32.mrb[4].mxu1  ;;  %5625 = vxpose.xlu1.b32.cont [12/16] (narrow) %v5065_v15, 8 }
 0x5ac   : > { %v5109_v28 = vpop.f32.mrb[5].mxu1  ;;  %v5502_v61 = vadd.f32 %v5501_v20, %v5500_v8  ;;  %v9304_v14 = vadd.f32 %v6153_v51, %v9155_v49  ;;  %v5515_v0 = vsel %vm5248_vm0, %v5418_v33, 0.0  ;;  %v5517_v20 = vsel %vm5248_vm0, %v5419_v23, 0.0 }
 0x5ad   : > { %v9300_v9 = vadd.f32 %v9155_v49, %v5109_v28 }
 0x5ae   : > { %v5598_v12 = vpop.trf.xlu0  ;;  %v5421_v51 = vmul.f32 %v9304_v14, %v9304_v14 }
 0x5af   : > { %5650 = vxpose.xlu0.b32.cont [5/16] (narrow) %v9300_v9, 8  ;;  %v5420_v5 = vmul.f32 %v9300_v9, %v9300_v9  ;;  %5710 = vst [vmem:[%s9354_s0] sm:$0xff] %v5598_v12  ;;  %v5320_v7 = vsel %vm5248_vm0, %v9300_v9, 0.0 }
 0x5b3   : > { %v6141_v53 = vpop.f32.mrb[28].mxu0  ;;  %5651 = vxpose.xlu0.b32.cont [6/16] (narrow) %v9304_v14, 8 }
 0x5b4   : > { %v5075_v31 = vadd.f32 %v6141_v53, %v9155_v49  ;;  %v5069_v36 = vpop.f32.mrb[29].mxu0 }
 0x5b5   : > { %v5070_v48 = vadd.f32 %v9155_v49, %v5069_v36  ;;  %v5322_v36 = vsel %vm5248_vm0, %v9304_v14, 0.0 }
 0x5b6   : > { %v5413_v56 = vmul.f32 %v5075_v31, %v5075_v31  ;;  %v5306_v3 = vsel %vm5248_vm0, %v5075_v31, 0.0 }
 0x5b7   : > { %v5304_v43 = vsel %vm5248_vm0, %v5070_v48, 0.0  ;;  %v5412_v34 = vmul.f32 %v5070_v48, %v5070_v48  ;;  %5626 = vxpose.xlu1.b32.cont [13/16] (narrow) %v5070_v48, 8  ;;  %v5519_v48 = vsel %vm5248_vm0, %v5420_v5, 0.0 }
 0x5b8   : > { %v5305_v58 = vadd.f32 %v5304_v43, %v5303_v4  ;;  %v5505_v50 = vsel %vm5248_vm0, %v5413_v56, 0.0 }
 0x5b9   : > { %v5503_v13 = vsel %vm5248_vm0, %v5412_v34, 0.0 }
 0x5ba   : > { %v5504_v22 = vadd.f32 %v5503_v13, %v5502_v61  ;;  %v5307_v55 = vadd.f32 %v5306_v3, %v5305_v58  ;;  %v5521_v3 = vsel %vm5248_vm0, %v5421_v51, 0.0 }
 0x5bb   : > { %v6156_v38 = vpop.f32.mrb[6].mxu1  ;;  %5627 = vxpose.xlu1.b32.cont [14/16] (narrow) %v5075_v31, 8 }
 0x5bc   : > { %v5119_v2 = vpop.f32.mrb[7].mxu1  ;;  %v5506_v40 = vadd.f32 %v5505_v50, %v5504_v22  ;;  %v9318_v44 = vadd.f32 %v6156_v38, %v9155_v49 }
 0x5bd   : > { %v9314_v46 = vadd.f32 %v9155_v49, %v5119_v2 }
 0x5be   : > { %v5423_v9 = vmul.f32 %v9318_v44, %v9318_v44 }
 0x5bf   : > { %5652 = vxpose.xlu0.b32.cont [7/16] (narrow) %v9314_v46, 8  ;;  %v5422_v56 = vmul.f32 %v9314_v46, %v9314_v46  ;;  %v5324_v13 = vsel %vm5248_vm0, %v9314_v46, 0.0 }
 0x5c1   : > { %v5523_v50 = vsel %vm5248_vm0, %v5422_v56, 0.0 }
 0x5c3   : > { %v6144_v39 = vpop.f32.mrb[30].mxu0  ;;  %5653 = vxpose.xlu0.b32.cont [8/16] (narrow) %v9318_v44, 8 }
 0x5c4   : > { %v5085_v47 = vadd.f32 %v6144_v39, %v9155_v49  ;;  %v5079_v25 = vpop.f32.mrb[31].mxu0 }
 0x5c5   : > { %v5080_v32 = vadd.f32 %v9155_v49, %v5079_v25 }
 0x5c6   : > { %v5415_v27 = vmul.f32 %v5085_v47, %v5085_v47  ;;  %v5310_v16 = vsel %vm5248_vm0, %v5085_v47, 0.0 }
 0x5c7   : > { %v5308_v24 = vsel %vm5248_vm0, %v5080_v32, 0.0  ;;  %v5414_v37 = vmul.f32 %v5080_v32, %v5080_v32  ;;  %5628 = vxpose.xlu1.b32.cont [15/16] (narrow) %v5080_v32, 8 }
 0x5c8   : > { %v5309_v60 = vadd.f32 %v5308_v24, %v5307_v55  ;;  %v5509_v1 = vsel %vm5248_vm0, %v5415_v27, 0.0  ;;  %v5326_v55 = vsel %vm5248_vm0, %v9318_v44, 0.0 }
 0x5c9   : > { %v5507_v41 = vsel %vm5248_vm0, %v5414_v37, 0.0 }
 0x5ca   : > { %v5311_v29 = vadd.f32 %v5310_v16, %v5309_v60  ;;  %v5508_v30 = vadd.f32 %v5507_v41, %v5506_v40  ;;  %v6159_v21 = vpop.f32.mrb[8].mxu1 }
 0x5cb   : > { %5629 = vxpose.xlu1.b32.end [16/16] (narrow) %v5085_v47, 8  ;;  %v5129_v63 = vpop.f32.mrb[9].mxu1  ;;  %v5135_v8 = vadd.f32 %v6159_v21, %v9155_v49  ;;  %v5525_v47 = vsel %vm5248_vm0, %v5423_v9, 0.0 }
 0x5cc   : > { %v5313_v59 = vadd.f32 %v5312_v57, %v5311_v29  ;;  %v5510_v10 = vadd.f32 %v5509_v1, %v5508_v30  ;;  %v5130_v42 = vadd.f32 %v9155_v49, %v5129_v63 }
 0x5cd   : > { %v5425_v25 = vmul.f32 %v5135_v8, %v5135_v8  ;;  %v5330_v60 = vsel %vm5248_vm0, %v5135_v8, 0.0 }
 0x5ce   : > { %v5315_v15 = vadd.f32 %v5314_v18, %v5313_v59  ;;  %v5512_v35 = vadd.f32 %v5511_v19, %v5510_v10  ;;  %5654 = vxpose.xlu0.b32.cont [9/16] (narrow) %v5130_v42, 8  ;;  %v5424_v38 = vmul.f32 %v5130_v42, %v5130_v42  ;;  %v5328_v32 = vsel %vm5248_vm0, %v5130_v42, 0.0 }
 0x5cf   : > { %v5529_v30 = vsel %vm5248_vm0, %v5425_v25, 0.0 }
 0x5d0   : > { %v5317_v45 = vadd.f32 %v5316_v26, %v5315_v15  ;;  %v5514_v54 = vadd.f32 %v5513_v17, %v5512_v35  ;;  %v5527_v44 = vsel %vm5248_vm0, %v5424_v38, 0.0 }
 0x5d2   : > { %v5516_v4 = vadd.f32 %v5515_v0, %v5514_v54  ;;  %v5319_v6 = vadd.f32 %v5318_v62, %v5317_v45  ;;  %v6162_v28 = vpop.f32.mrb[10].mxu1  ;;  %5655 = vxpose.xlu0.b32.cont [10/16] (narrow) %v5135_v8, 8 }
 0x5d3   : > { %v5139_v31 = vpop.f32.mrb[11].mxu1  ;;  %v5145_v2 = vadd.f32 %v6162_v28, %v9155_v49 }
 0x5d4   : > { %v5321_v61 = vadd.f32 %v5320_v7, %v5319_v6  ;;  %v5518_v53 = vadd.f32 %v5517_v20, %v5516_v4  ;;  %v5140_v43 = vadd.f32 %v9155_v49, %v5139_v31 }
 0x5d5   : > { %v5427_v52 = vmul.f32 %v5145_v2, %v5145_v2  ;;  %v5334_v10 = vsel %vm5248_vm0, %v5145_v2, 0.0 }
 0x5d6   : > { %v5323_v34 = vadd.f32 %v5322_v36, %v5321_v61  ;;  %v5520_v58 = vadd.f32 %v5519_v48, %v5518_v53  ;;  %5656 = vxpose.xlu0.b32.cont [11/16] (narrow) %v5140_v43, 8  ;;  %v5426_v11 = vmul.f32 %v5140_v43, %v5140_v43  ;;  %v5332_v57 = vsel %vm5248_vm0, %v5140_v43, 0.0 }
 0x5d7   : > { %v5533_v42 = vsel %vm5248_vm0, %v5427_v52, 0.0 }
 0x5d8   : > { %v5325_v22 = vadd.f32 %v5324_v13, %v5323_v34  ;;  %v5522_v14 = vadd.f32 %v5521_v3, %v5520_v58  ;;  %v5531_v63 = vsel %vm5248_vm0, %v5426_v11, 0.0 }
 0x5da   : > { %v5327_v40 = vadd.f32 %v5326_v55, %v5325_v22  ;;  %v5524_v39 = vadd.f32 %v5523_v50, %v5522_v14  ;;  %v6165_v27 = vpop.f32.mrb[12].mxu1  ;;  %5657 = vxpose.xlu0.b32.cont [12/16] (narrow) %v5145_v2, 8 }
 0x5db   : > { %v5149_v37 = vpop.f32.mrb[13].mxu1  ;;  %v5155_v1 = vadd.f32 %v6165_v27, %v9155_v49 }
 0x5dc   : > { %v5329_v46 = vadd.f32 %v5328_v32, %v5327_v40  ;;  %v5526_v24 = vadd.f32 %v5525_v47, %v5524_v39  ;;  %v5150_v16 = vadd.f32 %v9155_v49, %v5149_v37 }
 0x5dd   : > { %v5429_v15 = vmul.f32 %v5155_v1, %v5155_v1  ;;  %v5338_v54 = vsel %vm5248_vm0, %v5155_v1, 0.0 }
 0x5de   : > { %v5528_v41 = vadd.f32 %v5527_v44, %v5526_v24  ;;  %v5331_v29 = vadd.f32 %v5330_v60, %v5329_v46  ;;  %5658 = vxpose.xlu0.b32.cont [13/16] (narrow) %v5150_v16, 8  ;;  %v5428_v18 = vmul.f32 %v5150_v16, %v5150_v16  ;;  %v5336_v35 = vsel %vm5248_vm0, %v5150_v16, 0.0 }
 0x5df   : > { %v5537_v4 = vsel %vm5248_vm0, %v5429_v15, 0.0 }
 0x5e0   : > { %v5333_v21 = vadd.f32 %v5332_v57, %v5331_v29  ;;  %v5530_v59 = vadd.f32 %v5529_v30, %v5528_v41  ;;  %v5535_v62 = vsel %vm5248_vm0, %v5428_v18, 0.0 }
 0x5e2   : > { %v5532_v19 = vadd.f32 %v5531_v63, %v5530_v59  ;;  %v5335_v33 = vadd.f32 %v5334_v10, %v5333_v21  ;;  %v6168_v17 = vpop.f32.mrb[14].mxu1  ;;  %5659 = vxpose.xlu0.b32.cont [14/16] (narrow) %v5155_v1, 8 }
 0x5e3   : > { %v5165_v12 = vadd.f32 %v6168_v17, %v9155_v49  ;;  %v5159_v45 = vpop.f32.mrb[15].mxu1 }
 0x5e4   : > { %v5337_v23 = vadd.f32 %v5336_v35, %v5335_v33  ;;  %v5534_v26 = vadd.f32 %v5533_v42, %v5532_v19  ;;  %v5160_v0 = vadd.f32 %v9155_v49, %v5159_v45 }
 0x5e5   : > { %v5431_v6 = vmul.f32 %v5165_v12, %v5165_v12  ;;  %v5342_v61 = vsel %vm5248_vm0, %v5165_v12, 0.0 }
 0x5e6   : > { %v5536_v5 = vadd.f32 %v5535_v62, %v5534_v26  ;;  %v5339_v8 = vadd.f32 %v5338_v54, %v5337_v23  ;;  %v5340_v20 = vsel %vm5248_vm0, %v5160_v0, 0.0  ;;  %v5430_v51 = vmul.f32 %v5160_v0, %v5160_v0  ;;  %5660 = vxpose.xlu0.b32.cont [15/16] (narrow) %v5160_v0, 8 }
 0x5e7   : > { %v5541_v48 = vsel %vm5248_vm0, %v5431_v6, 0.0 }
 0x5e8   : > { %v5341_v7 = vadd.f32 %v5340_v20, %v5339_v8  ;;  %v5538_v28 = vadd.f32 %v5537_v4, %v5536_v5  ;;  %v5539_v53 = vsel %vm5248_vm0, %v5430_v51, 0.0 }
 0x5ea   : > { %v5540_v31 = vadd.f32 %v5539_v53, %v5538_v28  ;;  %v5343_v36 = vadd.f32 %v5342_v61, %v5341_v7  ;;  %5661 = vxpose.xlu0.b32.end [16/16] (narrow) %v5165_v12, 8 }
 0x5eb   : > { %v6171_v56 = vpop.f32.mrb[16].mxu1 }
 0x5ec   : > { %v5542_v43 = vadd.f32 %v5541_v48, %v5540_v31  ;;  %v5175_v34 = vadd.f32 %v6171_v56, %v9155_v49  ;;  %v5169_v58 = vpop.f32.mrb[17].mxu1 }
 0x5ed   : > { %v5170_v3 = vadd.f32 %v9155_v49, %v5169_v58 }
 0x5ee   : > { %v5433_v9 = vmul.f32 %v5175_v34, %v5175_v34  ;;  %v5346_v55 = vsel %vm5248_vm0, %v5175_v34, 0.0 }
 0x5ef   : > { %v5344_v13 = vsel %vm5248_vm0, %v5170_v3, 0.0  ;;  %v5432_v22 = vmul.f32 %v5170_v3, %v5170_v3  ;;  %5678 = vxpose.xlu1.b32.start [1/16] (narrow) %v5170_v3, 8 }
 0x5f0   : > { %v5345_v14 = vadd.f32 %v5344_v13, %v5343_v36  ;;  %v5545_v40 = vsel %vm5248_vm0, %v5433_v9, 0.0 }
 0x5f1   : > { %v5543_v50 = vsel %vm5248_vm0, %v5432_v22, 0.0 }
 0x5f2   : > { %v5544_v38 = vadd.f32 %v5543_v50, %v5542_v43  ;;  %v5347_v2 = vadd.f32 %v5346_v55, %v5345_v14 }
 0x5f3   : > { %5679 = vxpose.xlu1.b32.cont [2/16] (narrow) %v5175_v34, 8 }
 0x5f4   : > { %v5546_v39 = vadd.f32 %v5545_v40, %v5544_v38 }
 0x5f7   : > { %v6174_v47 = vpop.f32.mrb[18].mxu1 }
 0x5f8   : > { %v5185_v25 = vadd.f32 %v6174_v47, %v9155_v49  ;;  %v5179_v32 = vpop.f32.mrb[19].mxu1 }
 0x5f9   : > { %v5180_v27 = vadd.f32 %v9155_v49, %v5179_v32 }
 0x5fa   : > { %v5435_v46 = vmul.f32 %v5185_v25, %v5185_v25  ;;  %v5350_v44 = vsel %vm5248_vm0, %v5185_v25, 0.0 }
 0x5fb   : > { %v5348_v24 = vsel %vm5248_vm0, %v5180_v27, 0.0  ;;  %v5434_v37 = vmul.f32 %v5180_v27, %v5180_v27  ;;  %5680 = vxpose.xlu1.b32.cont [3/16] (narrow) %v5180_v27, 8 }
 0x5fc   : > { %v5349_v60 = vadd.f32 %v5348_v24, %v5347_v2  ;;  %v5549_v29 = vsel %vm5248_vm0, %v5435_v46, 0.0 }
 0x5fd   : > { %v5547_v11 = vsel %vm5248_vm0, %v5434_v37, 0.0 }
 0x5fe   : > { %v5548_v16 = vadd.f32 %v5547_v11, %v5546_v39  ;;  %v5351_v41 = vadd.f32 %v5350_v44, %v5349_v60 }
 0x5ff   : > { %5681 = vxpose.xlu1.b32.cont [4/16] (narrow) %v5185_v25, 8 }
 0x600   : > { %v5550_v30 = vadd.f32 %v5549_v29, %v5548_v16 }
 0x603   : > { %v6177_v52 = vpop.f32.mrb[20].mxu1 }
 0x604   : > { %v5195_v57 = vadd.f32 %v6177_v52, %v9155_v49  ;;  %v5189_v1 = vpop.f32.mrb[21].mxu1 }
 0x605   : > { %v5190_v21 = vadd.f32 %v9155_v49, %v5189_v1  ;;  %v9420_v49 = vld [vmem:[%s9551_s5] ss:$0 sm:$0xff] }
 0x606   : > { %v5437_v59 = vmul.f32 %v5195_v57, %v5195_v57  ;;  %v5354_v19 = vsel %vm5248_vm0, %v5195_v57, 0.0 }
 0x607   : > { %v5352_v10 = vsel %vm5248_vm0, %v5190_v21, 0.0  ;;  %v5436_v63 = vmul.f32 %v5190_v21, %v5190_v21  ;;  %5682 = vxpose.xlu1.b32.cont [5/16] (narrow) %v5190_v21, 8 }
 0x608   : > { %v5353_v18 = vadd.f32 %v5352_v10, %v5351_v41  ;;  %v5553_v35 = vsel %vm5248_vm0, %v5437_v59, 0.0 }
 0x609   : > { %v5551_v33 = vsel %vm5248_vm0, %v5436_v63, 0.0 }
 0x60a   : > { %v5552_v42 = vadd.f32 %v5551_v33, %v5550_v30  ;;  %v5355_v15 = vadd.f32 %v5354_v19, %v5353_v18 }
 0x60b   : > { %5683 = vxpose.xlu1.b32.cont [6/16] (narrow) %v5195_v57, 8 }
 0x60c   : > { %v5554_v17 = vadd.f32 %v5553_v35, %v5552_v42 }
 0x60f   : > { %v5630_v23 = vpop.trf.xlu1  ;;  %v6180_v26 = vpop.f32.mrb[22].mxu1 }
 0x610   : > { %5711 = vst [vmem:[%s9354_s0 + $0x8] sm:$0xff] %v5630_v23  ;;  %v5205_v12 = vadd.f32 %v9420_v49, %v6180_v26  ;;  %v5199_v45 = vpop.f32.mrb[23].mxu1 }
 0x611   : > { %v5200_v54 = vadd.f32 %v9420_v49, %v5199_v45 }
 0x612   : > { %v5439_v62 = vmul.f32 %v5205_v12, %v5205_v12  ;;  %v5358_v4 = vsel %vm5248_vm0, %v5205_v12, 0.0 }
 0x613   : > { %v5356_v0 = vsel %vm5248_vm0, %v5200_v54, 0.0  ;;  %v5438_v5 = vmul.f32 %v5200_v54, %v5200_v54  ;;  %5684 = vxpose.xlu1.b32.cont [7/16] (narrow) %v5200_v54, 8 }
 0x614   : > { %v5357_v8 = vadd.f32 %v5356_v0, %v5355_v15  ;;  %v5557_v7 = vsel %vm5248_vm0, %v5439_v62, 0.0 }
 0x615   : > { %v5555_v6 = vsel %vm5248_vm0, %v5438_v5, 0.0 }
 0x616   : > { %v5556_v20 = vadd.f32 %v5555_v6, %v5554_v17  ;;  %v5359_v51 = vadd.f32 %v5358_v4, %v5357_v8 }
 0x617   : > { %5685 = vxpose.xlu1.b32.cont [8/16] (narrow) %v5205_v12, 8 }
 0x618   : > { %v5558_v28 = vadd.f32 %v5557_v7, %v5556_v20 }
 0x61b   : > { %v6183_v61 = vpop.f32.mrb[24].mxu1 }
 0x61c   : > { %v5215_v53 = vadd.f32 %v9420_v49, %v6183_v61  ;;  %v5209_v31 = vpop.f32.mrb[25].mxu1 }
 0x61d   : > { %v5210_v36 = vadd.f32 %v9420_v49, %v5209_v31 }
 0x61e   : > { %v5441_v48 = vmul.f32 %v5215_v53, %v5215_v53  ;;  %v5362_v58 = vsel %vm5248_vm0, %v5215_v53, 0.0 }
 0x61f   : > { %v5360_v56 = vsel %vm5248_vm0, %v5210_v36, 0.0  ;;  %v5440_v43 = vmul.f32 %v5210_v36, %v5210_v36  ;;  %5686 = vxpose.xlu1.b32.cont [9/16] (narrow) %v5210_v36, 8 }
 0x620   : > { %v5361_v34 = vadd.f32 %v5360_v56, %v5359_v51  ;;  %v5561_v22 = vsel %vm5248_vm0, %v5441_v48, 0.0 }
 0x621   : > { %v5559_v3 = vsel %vm5248_vm0, %v5440_v43, 0.0 }
 0x622   : > { %v5560_v9 = vadd.f32 %v5559_v3, %v5558_v28  ;;  %v5363_v13 = vadd.f32 %v5362_v58, %v5361_v34 }
 0x623   : > { %5687 = vxpose.xlu1.b32.cont [10/16] (narrow) %v5215_v53, 8 }
 0x624   : > { %v5562_v14 = vadd.f32 %v5561_v22, %v5560_v9 }
 0x627   : > { %v6186_v55 = vpop.f32.mrb[26].mxu1 }
 0x628   : > { %v5225_v50 = vadd.f32 %v9420_v49, %v6186_v55  ;;  %v5219_v38 = vpop.f32.mrb[27].mxu1 }
 0x629   : > { %v5220_v2 = vadd.f32 %v9420_v49, %v5219_v38 }
 0x62a   : > { %v5443_v40 = vmul.f32 %v5225_v50, %v5225_v50  ;;  %v5366_v32 = vsel %vm5248_vm0, %v5225_v50, 0.0 }
 0x62b   : > { %v5364_v39 = vsel %vm5248_vm0, %v5220_v2, 0.0  ;;  %v5442_v47 = vmul.f32 %v5220_v2, %v5220_v2  ;;  %5688 = vxpose.xlu1.b32.cont [11/16] (narrow) %v5220_v2, 8 }
 0x62c   : > { %v5365_v25 = vadd.f32 %v5364_v39, %v5363_v13  ;;  %v5565_v60 = vsel %vm5248_vm0, %v5443_v40, 0.0 }
 0x62d   : > { %v5563_v27 = vsel %vm5248_vm0, %v5442_v47, 0.0 }
 0x62e   : > { %v5564_v46 = vadd.f32 %v5563_v27, %v5562_v14  ;;  %v5367_v24 = vadd.f32 %v5366_v32, %v5365_v25  ;;  %v5662_v37 = vpop.trf.xlu0 }
 0x62f   : > { %5689 = vxpose.xlu1.b32.cont [12/16] (narrow) %v5225_v50, 8  ;;  %5712 = vst [vmem:[%s9354_s0 + $0x10] sm:$0xff] %v5662_v37 }
 0x630   : > { %v5566_v44 = vadd.f32 %v5565_v60, %v5564_v46 }
 0x633   : > { %v6189_v11 = vpop.f32.mrb[28].mxu1 }
 0x634   : > { %v5235_v16 = vadd.f32 %v9420_v49, %v6189_v11  ;;  %v5229_v41 = vpop.f32.mrb[29].mxu1 }
 0x635   : > { %v5230_v29 = vadd.f32 %v9420_v49, %v5229_v41 }
 0x636   : > { %v5445_v30 = vmul.f32 %v5235_v16, %v5235_v16  ;;  %v5370_v21 = vsel %vm5248_vm0, %v5235_v16, 0.0 }
 0x637   : > { %v5368_v52 = vsel %vm5248_vm0, %v5230_v29, 0.0  ;;  %v5444_v57 = vmul.f32 %v5230_v29, %v5230_v29  ;;  %5690 = vxpose.xlu1.b32.cont [13/16] (narrow) %v5230_v29, 8 }
 0x638   : > { %v5369_v1 = vadd.f32 %v5368_v52, %v5367_v24  ;;  %v5569_v18 = vsel %vm5248_vm0, %v5445_v30, 0.0 }
 0x639   : > { %v5567_v59 = vsel %vm5248_vm0, %v5444_v57, 0.0 }
 0x63a   : > { %v5568_v10 = vadd.f32 %v5567_v59, %v5566_v44  ;;  %v5371_v63 = vadd.f32 %v5370_v21, %v5369_v1 }
 0x63b   : > { %5691 = vxpose.xlu1.b32.cont [14/16] (narrow) %v5235_v16, 8 }
 0x63c   : > { %v5570_v19 = vadd.f32 %v5569_v18, %v5568_v10 }
 0x63f   : > { %v6192_v33 = vpop.f32.mrb[30].mxu1 }
 0x640   : > { %v5245_v42 = vadd.f32 %v9420_v49, %v6192_v33  ;;  %v5239_v15 = vpop.f32.mrb[31].mxu1 }
 0x641   : > { %v5240_v35 = vadd.f32 %v9420_v49, %v5239_v15 }
 0x642   : > { %v5447_v17 = vmul.f32 %v5245_v42, %v5245_v42  ;;  %v5374_v45 = vsel %vm5248_vm0, %v5245_v42, 0.0 }
 0x643   : > { %v5372_v23 = vsel %vm5248_vm0, %v5240_v35, 0.0  ;;  %v5446_v26 = vmul.f32 %v5240_v35, %v5240_v35  ;;  %5692 = vxpose.xlu1.b32.cont [15/16] (narrow) %v5240_v35, 8 }
 0x644   : > { %v5373_v12 = vadd.f32 %v5372_v23, %v5371_v63  ;;  %v5573_v5 = vsel %vm5248_vm0, %v5447_v17, 0.0 }
 0x645   : > { %v5571_v54 = vsel %vm5248_vm0, %v5446_v26, 0.0 }
 0x646   : > { %v5375_v62 = vadd.f32 %v5374_v45, %v5373_v12  ;;  %v5572_v0 = vadd.f32 %v5571_v54, %v5570_v19 }
 0x647   : > { %5693 = vxpose.xlu1.b32.end [16/16] (narrow) %v5245_v42, 8 }
 0x648   : > { %v5376_v8 = vrot.slane %v5375_v62, 4  ;;  %v5574_v49 = vadd.f32 %v5573_v5, %v5572_v0 }
 0x64a   : > { %v5377_v4 = vadd.f32 %v5376_v8, %v5375_v62  ;;  %v5575_v6 = vrot.slane %v5574_v49, 4 }
 0x64c   : > { %v5378_v20 = vrot.slane %v5377_v4, 2  ;;  %v5576_v51 = vadd.f32 %v5575_v6, %v5574_v49 }
 0x64e   : > { %v5379_v7 = vadd.f32 %v5378_v20, %v5377_v4  ;;  %v5577_v28 = vrot.slane %v5576_v51, 2 }
 0x650   : > { %v5380_v61 = vrot.slane %v5379_v7, 1  ;;  %v5578_v53 = vadd.f32 %v5577_v28, %v5576_v51 }
 0x652   : > { %v5381_v31 = vadd.f32 %v5380_v61, %v5379_v7  ;;  %v5579_v36 = vrot.slane %v5578_v53, 1 }
 0x654   : > { %5383 = vst.msk [vmem:[%s343_s13] sm:$0x1] %vm5382_vm1, %v5381_v31  ;;  %v5580_v48 = vadd.f32 %v5579_v36, %v5578_v53 }
 0x656   : > { %5581 = vst.msk [vmem:[%s343_s13 + $0x1] sm:$0x1] %vm5382_vm1, %v5580_v48 }
 0x657   : > { %6312 = shalt.err (!%p6309_p11)
}
 0x658   : > { %s6313_s12 = scalar_lea.hbm %s9459_s20, 32  ;;  %s6317_s9 = scalar_lea.hbm %s9553_s7, 128 }
 0x659   : > { %p6314_p12 = scmp.ne.s32.totalorder %s9459_s20, %s6313_s12  ;;  %p6318_p1 = scmp.lt.u32.totalorder %s9459_s20, %s9553_s7 }
 0x65a   : > { %p6319_p2 = scmp.lt.u32.totalorder %s6317_s9, %s6313_s12  ;;  %p6321_p5 = scmp.lt.u32.totalorder %s6313_s12, %s9459_s20 }
 0x65b   : > { %p6315_p13 = pnand %p6314_p12, %p6529_p3 }
 0x65c   : > { %p6320_p4 = por %p6319_p2, %p6318_p1 }
 0x65d   : > { %p6316_p0 = pneg %p6315_p13 }
 0x65e   : > { %p6322_p6 = por %p6321_p5, %p6320_p4 }
 0x660   : > { %p6323_p7 = pnand %p6322_p6, %p6316_p0 }
 0x662   : > { %6326 = shalt.err (!%p6323_p7)
}
 0x663   : > { %6208 = dma.vmem_to_hbm [thread:$0]  (%p6529_p3), %s9461_s23, 32, %s9459_s20, %s5720_s1  }
 0x664   : > { %s6006_s22 = sshll.u32 %s6409_s27, 2  ;;  %s6007_s16 = sshll.u32 %s6413_s28, 3 }
 0x665   : > { %s5732_s13 = sadd.s32 %s6007_s16, %s6006_s22  ;;  %s5736_s9 = sshll.u32 %s9354_s0, 4  ;;  %s9493_s9 = int_to_ptr.vmem [resolvable:$true] %s5736_s9 }
 0x666   : > { %s6008_s21 = sshll.u32 %s5732_s13, 7  ;;  %s5715_s2 = scalar_lea.sflag [#allocation5], %s9345_s18 }
 0x667   : > { %s9491_s17 = scalar_lea.hbm %s9552_s6, %s6008_s21  ;;  %s6327_s3 = scalar_lea.vmem %s9493_s9, 512 }
 0x668   : > { %p6328_p9 = scmp.ne.s32.totalorder %s9493_s9, %s6327_s3  ;;  %s6437_s27 = smov [#allocation4]  }
 0x669   : > { %s6331_s28 = sshll.u32 %s6437_s27, 4  ;;  %s6332_s28 = int_to_ptr.vmem [resolvable:$false] %s6331_s28 }
 0x66a   : > { %p6329_p10 = pnand %p6328_p9, %p6529_p3  ;;  %s6333_s23 = scalar_lea.vmem %s6332_s28, 1024 }
 0x66b   : > { %p6334_p12 = scmp.lt.s32.totalorder %s9493_s9, %s6332_s28  ;;  %p6335_p13 = scmp.lt.s32.totalorder %s6333_s23, %s6327_s3 }
 0x66c   : > { %p6330_p11 = pneg %p6329_p10 }
 0x66d   : > { %p6336_p0 = por %p6335_p13, %p6334_p12 }
 0x66f   : > { %p6337_p1 = pnand %p6336_p0, %p6330_p11 }
 0x68b   : > { %v5694_v56 = vpop.trf.xlu1 }
 0x68c   : > { %5713 = vst [vmem:[%s9354_s0 + $0x18] sm:$0xff] %v5694_v56 }
 0x68d   : > { %6340 = shalt.err (!%p6337_p1)
}
 0x68e   : > { %s6341_s18 = scalar_lea.hbm %s9491_s17, 512  ;;  %s6345_s1 = scalar_lea.hbm %s9552_s6, 2048 }
 0x68f   : > { %p6342_p2 = scmp.ne.s32.totalorder %s9491_s17, %s6341_s18  ;;  %p6346_p6 = scmp.lt.u32.totalorder %s9491_s17, %s9552_s6 }
 0x690   : > { %p6347_p7 = scmp.lt.u32.totalorder %s6345_s1, %s6341_s18  ;;  %p6349_p10 = scmp.lt.u32.totalorder %s6341_s18, %s9491_s17 }
 0x691   : > { %p6343_p4 = pnand %p6342_p2, %p6529_p3 }
 0x692   : > { %p6348_p9 = por %p6347_p7, %p6346_p6 }
 0x693   : > { %p6344_p5 = pneg %p6343_p4 }
 0x694   : > { %p6350_p11 = por %p6349_p10, %p6348_p9 }
 0x696   : > { %p6351_p12 = pnand %p6350_p11, %p6344_p5 }
 0x698   : > { %6354 = shalt.err (!%p6351_p12)
}
 0x699   : > { %6207 = dma.vmem_to_hbm [thread:$0]  (%p6529_p3), %s9493_s9, 512, %s9491_s17, %s5715_s2  }
 0x69a PF: > { %p6218_p13 = scmp.ge.s32.totalorder %s6425_s8, 2  ;;  %s5763_s3 = sand.u32 1, %s6397_s24  }
 0x69b   : > { %s5764_s13 = scalar_lea.sflag [#allocation5], %s5763_s3 }
 0x69c   : > { %p6212_p0 = pnand %p6218_p13, %p6538_p8 }
 0x69e   : > { %6388 = dma.done.wait (!%p6212_p0), %s5764_s13, 512  }
 0x69f   : > { %6390 = vsyncadd (!%p6212_p0), %s5764_s13, 4294966784  ;;  %s5773_s21 = scalar_lea.sflag [#allocation7], %s5763_s3 }
 0x6a0   : > { %6392 = dma.done.wait (!%p6212_p0), %s5773_s21, 32  }
 0x6a1   : > { %6394 = vsyncadd (!%p6212_p0), %s5773_s21, 4294967264  ;;  %s24_s8 = sadd.s32 1, %s6425_s8   ;;  %s9616_s2 = sld [smem:[#allocation10_spill]] }
 0x6a2   : > { %p21_p1 = scmp.ge.s32.totalorder %s24_s8, 6   ;;  %s9617_s24 = smov %s6401_s25 }
 0x6a3   : > { %s9618_s25 = smov %s6405_s26  ;;  %s9619_s26 = smov %s6547_s19 }
 0x6a4   : > { %s9620_s27 = smov %s6417_s29  ;;  %s9621_s28 = smov %s6421_s30 }
 0x6a5   : > { %s9622_s29 = smov %s9625_s11  ;;  %23 = sbr.rel (!%p21_p1) target bundleno = 12 (0xc), region = 119 }
 0x6a7   : > { %s9623_s30 = smov %s9616_s2 }
 0x6ac   :  { %5778 = vsyncpa [#allocation5], 1 }
 0x6ad   :  { %5780 = vsyncpa [#allocation5 + $0x1], 1 }
 0x6ae   :  { %5781 = vsyncpa [#allocation7], 1 }
 0x6af   :  { %5783 = vsyncpa [#allocation7 + $0x1], 1 }

</bundles_post_ra>
